<compile_context>
chip_gen: v7x
topology: tpu7x:2x2x1
jax: 0.10.0
libtpu: 0.0.40
codegen_flags: <defaults>
</compile_context>

<pallas_src>
import jax
import jax.numpy as jnp
import numpy as np
from jax.experimental import pallas as pl
from jax.experimental.pallas import tpu as pltpu

_LANE = 128


def _round_up(v, m):
    return ((v + m - 1) // m) * m


# ------------------------------ fused kernel ------------------------------

def _make_kernel(NB, Rp, Wp, R, margin):
    NBRp = NB * Rp
    inv_r = 1.0 / float(R)
    # Flat row offset of each 3x3 tap on the padded (Hp, Wp) grid, kh-major,
    # kw-minor -- must match the weight-tap ordering built in the wrapper.
    offsets = tuple(a * Wp + b for a in (-1, 0, 1) for b in (-1, 0, 1))

    def kernel(x_ref, w1_ref, w2_ref, b2_ref, pmat_ref, o_ref, buf_ref):
        # x_ref:    (1, NB*Rp, K1P) bf16  im2col over the padded grid
        #                                  (border rows all-zero, bias folded
        #                                   in via a ones column)
        # w1_ref:   (K1P, C1P)      bf16  conv1 weights (+ bias row)
        # w2_ref:   (9, C1P, C2P)   bf16  conv2 weights, one matrix per tap
        # b2_ref:   (1, C2P)        f32   conv2 bias
        # pmat_ref: (NB, NB*Rp)     f32   0/1 per-image interior selector
        # o_ref:    (1, NB, C2P)    f32   pooled features
        # buf_ref:  (BUF, C1P)      bf16  halo scratch holding y1

        # The scratch's margin rows are never written with data; zero them once
        # (the interior region is fully overwritten every grid step).
        @pl.when(pl.program_id(0) == 0)
        def _():
            buf_ref[...] = jnp.zeros_like(buf_ref)

        # ---- conv1 + bias + ReLU: one lane-dense bf16 MXU matmul ----------
        y1 = jnp.dot(x_ref[0], w1_ref[...], preferred_element_type=jnp.float32)
        y1 = jnp.maximum(y1, 0.0)                       # (NB*Rp, C1P) f32
        # y1 lives on the padded grid with zero border rows -> it is already
        # the halo layout; one aligned store into the scratch.
        buf_ref[margin:margin + NBRp, :] = y1.astype(jnp.bfloat16)

        # ---- conv2 + bias + ReLU: 9 static-offset halo slices, K = C1P -----
        d0 = offsets[0]
        acc = jnp.dot(buf_ref[margin + d0:margin + d0 + NBRp, :], w2_ref[0],
                      preferred_element_type=jnp.float32) + b2_ref[...]
        for idx in range(1, 9):
            d = offsets[idx]
            acc = acc + jnp.dot(buf_ref[margin + d:margin + d + NBRp, :],
                                w2_ref[idx],
                                preferred_element_type=jnp.float32)
        y2 = jnp.maximum(acc, 0.0)                      # (NB*Rp, C2P) f32

        # ---- AdaptiveAvgPool2d(1): per-image masked mean (f32, exact) ------
        pooled = jnp.dot(pmat_ref[...], y2, preferred_element_type=jnp.float32)
        o_ref[0] = (pooled * inv_r).astype(o_ref.dtype)

    return kernel


# ---------------------- wrapper (layout / padding) ------------------------

def _conv_taps(w):
    # PyTorch OIHW (C_out, C_in, 3, 3) -> (9, C_in, C_out), kh-major / kw-minor.
    c_out, c_in, kh, kw = w.shape
    return jnp.transpose(w, (2, 3, 1, 0)).reshape(kh * kw, c_in, c_out)


def _build_w1(w1, b1, k1p, c1p):
    # Single conv1 matrix (K1P, C1P): 9*C_in tap rows + one bias row, zero-pad.
    c_mid, c_in = w1.shape[0], w1.shape[1]
    mat = _conv_taps(w1).reshape(9 * c_in, c_mid)
    mat = jnp.concatenate([mat, b1.reshape(1, c_mid)], axis=0)
    mat = jnp.pad(mat, ((0, k1p - mat.shape[0]), (0, c1p - c_mid)))
    return mat.astype(jnp.bfloat16)


def _build_w2(w2, c1p, c2p):
    c_out, c_mid = w2.shape[0], w2.shape[1]
    taps = _conv_taps(w2)                                   # (9, C_mid, C_out)
    taps = jnp.pad(taps, ((0, 0), (0, c1p - c_mid), (0, c2p - c_out)))
    return taps.astype(jnp.bfloat16)


def _interior_mask(H, W):
    hp, wp = H + 2, W + 2
    hh = jnp.arange(hp)
    ww = jnp.arange(wp)
    return (((hh >= 1) & (hh <= H))[:, None]
            & ((ww >= 1) & (ww <= W))[None, :])             # (Hp, Wp) bool


def _build_x_cols(x_nchw, k1p):
    # im2col of x over the PADDED (H+2, W+2) output grid:
    #   interior rows: [x(h+a, w+b) for the 9 taps, 1.0 (bias), 0-pad]
    #   border rows:   all zero  -> conv1 output is exactly 0 there, which is
    #                               precisely the zero-padding conv2 needs.
    N, C, H, W = x_nchw.shape
    hp, wp = H + 2, W + 2
    x = jnp.transpose(x_nchw, (0, 2, 3, 1))                 # (N, H, W, C)
    xpad = jnp.pad(x, ((0, 0), (2, 2), (2, 2), (0, 0)))     # (N, H+4, W+4, C)
    taps = [xpad[:, 1 + a:1 + a + hp, 1 + b:1 + b + wp, :]
            for a in (-1, 0, 1) for b in (-1, 0, 1)]
    cols = jnp.concatenate(taps, axis=-1)                   # (N, Hp, Wp, 9*C)
    ones = jnp.ones((N, hp, wp, 1), x.dtype)
    cols = jnp.concatenate([cols, ones], axis=-1)           # bias column
    cols = cols * _interior_mask(H, W)[None, :, :, None].astype(x.dtype)
    cols = cols.reshape(N, hp * wp, 9 * C + 1)
    cols = jnp.pad(cols, ((0, 0), (0, 0), (0, k1p - (9 * C + 1))))
    return cols.astype(jnp.bfloat16)                        # (N, Rp, K1P)


def _pool_matrix(nb, H, W):
    # pmat[i, j*Rp + p] = 1 iff j == i and padded position p is a real pixel.
    rp = (H + 2) * (W + 2)
    interior = _interior_mask(H, W).reshape(rp).astype(jnp.float32)
    eye = jnp.eye(nb, dtype=jnp.float32)
    return (eye[:, :, None] * interior[None, None, :]).reshape(nb, nb * rp)


def cnn_feature_extractor(x_nchw, params, nb_max=8):
    """Pallas equivalent of CNNFeatureExtractor.forward -> (N, C_out)."""
    w1, b1, w2, b2 = params
    N, C_in, H, W = x_nchw.shape
    C_mid, C_out = w1.shape[0], w2.shape[0]
    Hp, Wp = H + 2, W + 2
    Rp, R = Hp * Wp, H * W

    C1P = _round_up(C_mid, _LANE)
    C2P = _round_up(C_out, _LANE)
    K1P = _round_up(9 * C_in + 1, _LANE)

    NB = min(nb_max, N)                 # images per grid step (batch blocking)
    Npad = _round_up(N, NB)
    nsteps = Npad // NB
    NBRp = NB * Rp
    margin = _round_up(Wp + 1, 8)       # 8-aligned halo margin for the y1 store
    BUF = _round_up(NBRp + 2 * margin, 8)

    x_cols = _build_x_cols(x_nchw, K1P)                      # (N, Rp, K1P) bf16
    if Npad != N:
        x_cols = jnp.pad(x_cols, ((0, Npad - N), (0, 0), (0, 0)))
    x_cols = x_cols.reshape(nsteps, NBRp, K1P)

    w1m = _build_w1(w1, b1, K1P, C1P)                        # (K1P, C1P) bf16
    w2t = _build_w2(w2, C1P, C2P)                            # (9, C1P, C2P) bf16
    b2p = jnp.pad(b2, (0, C2P - C_out)).reshape(1, C2P).astype(jnp.float32)
    pmat = _pool_matrix(NB, H, W)                            # (NB, NB*Rp) f32

    out = pl.pallas_call(
        _make_kernel(NB, Rp, Wp, R, margin),
        out_shape=jax.ShapeDtypeStruct((nsteps, NB, C2P), jnp.float32),
        grid=(nsteps,),
        in_specs=[
            pl.BlockSpec((1, NBRp, K1P), lambda n: (n, 0, 0)),
            pl.BlockSpec((K1P, C1P), lambda n: (0, 0)),      # grid-invariant
            pl.BlockSpec((9, C1P, C2P), lambda n: (0, 0, 0)),
            pl.BlockSpec((1, C2P), lambda n: (0, 0)),
            pl.BlockSpec((NB, NBRp), lambda n: (0, 0)),
        ],
        out_specs=pl.BlockSpec((1, NB, C2P), lambda n: (n, 0, 0)),
        scratch_shapes=[pltpu.VMEM((BUF, C1P), jnp.bfloat16)],
        compiler_params=pltpu.CompilerParams(
            dimension_semantics=("parallel",),
            vmem_limit_bytes=32 * 1024 * 1024),
    )(x_cols, w1m, w2t, b2p, pmat)

    # features.view(N, -1): drop batch padding and zero-padded channels.
    return out.reshape(Npad, C2P)[:N, :C_out]


# ------------------------- reference (pure JAX) -------------------------
# Mirrors the kernel's bf16 MXU operands with f32 accumulation / f32 epilogue.

def ref_forward(x, params):
    w1, b1, w2, b2 = params
    dn = ("NCHW", "OIHW", "NCHW")
    bf = jnp.bfloat16
    y = jax.lax.conv_general_dilated(x.astype(bf), w1.astype(bf), (1, 1),
                                     ((1, 1), (1, 1)), dimension_numbers=dn,
                                     preferred_element_type=jnp.float32)
    y = jnp.maximum(y + b1[None, :, None, None], 0.0)
    y = jax.lax.conv_general_dilated(y.astype(bf), w2.astype(bf), (1, 1),
                                     ((1, 1), (1, 1)), dimension_numbers=dn,
                                     preferred_element_type=jnp.float32)
    y = jnp.maximum(y + b2[None, :, None, None], 0.0)
    y = jnp.mean(y, axis=(2, 3))                             # AdaptiveAvgPool2d(1)
    return y.reshape(y.shape[0], -1)


# ----------------------------------- main -----------------------------------

if __name__ == "__main__":
    key = jax.random.PRNGKey(0)
    k_x, k_w1, k_b1, k_w2, k_b2 = jax.random.split(key, 5)

    N, C_in, H, W = 2, 4, 16, 16
    C_mid, C_out = 8, 32

    x = jax.random.normal(k_x, (N, C_in, H, W), dtype=jnp.float32)
    w1 = jax.random.normal(k_w1, (C_mid, C_in, 3, 3), dtype=jnp.float32) * 0.1
    b1 = jax.random.normal(k_b1, (C_mid,), dtype=jnp.float32) * 0.1
    w2 = jax.random.normal(k_w2, (C_out, C_mid, 3, 3), dtype=jnp.float32) * 0.1
    b2 = jax.random.normal(k_b2, (C_out,), dtype=jnp.float32) * 0.1
    params = (w1, b1, w2, b2)

    feats = jax.block_until_ready(jax.jit(cnn_feature_extractor)(x, params))
    ref = jax.block_until_ready(ref_forward(x, params))

    assert feats.shape == (N, C_out)
    np.testing.assert_allclose(np.asarray(feats), np.asarray(ref),
                               rtol=1e-2, atol=1e-2)
    print("KERNEL_OK")
</pallas_src>

<mosaic_0001>
module attributes {stable_mosaic.version = 11 : i64} {
  func.func @kernel(%arg0: i32, %arg1: memref<1x648x128xbf16, #tpu.memory_space<vmem>>, %arg2: memref<128x128xbf16, #tpu.memory_space<vmem>>, %arg3: memref<9x128x128xbf16, #tpu.memory_space<vmem>>, %arg4: memref<1x128xf32, #tpu.memory_space<vmem>>, %arg5: memref<2x648xf32, #tpu.memory_space<vmem>>, %arg6: memref<1x2x128xf32, #tpu.memory_space<vmem>>, %arg7: memref<696x128xbf16, #tpu.memory_space<vmem>>) attributes {dimension_semantics = [#tpu.dimension_semantics<parallel>], iteration_bounds = array<i64: 1>, scalar_prefetch = 0 : i64, scratch_operands = 1 : i64, tpu.core_type = #tpu.core_type<tc>, window_params = [{transform_indices = @transform_0, window_bounds = array<i64: 1, 648, 128>}, {pipeline_mode = #tpu.pipeline_mode<synchronous>, transform_indices = @transform_1, window_bounds = array<i64: 128, 128>}, {pipeline_mode = #tpu.pipeline_mode<synchronous>, transform_indices = @transform_2, window_bounds = array<i64: 9, 128, 128>}, {pipeline_mode = #tpu.pipeline_mode<synchronous>, transform_indices = @transform_3, window_bounds = array<i64: 1, 128>}, {pipeline_mode = #tpu.pipeline_mode<synchronous>, transform_indices = @transform_4, window_bounds = array<i64: 2, 648>}, {transform_indices = @transform_5, window_bounds = array<i64: 1, 2, 128>}]} {
    %c0_i32 = arith.constant 0 : i32
    %0 = arith.cmpi eq, %arg0, %c0_i32 : i32
    %1 = arith.extui %0 : i1 to i32
    %c0_i32_0 = arith.constant 0 : i32
    %2 = arith.cmpi ne, %1, %c0_i32_0 : i32
    scf.if %2 {
      %cst_58 = arith.constant 0.000000e+00 : bf16
      %67 = vector.broadcast %cst_58 : bf16 to vector<696x128xbf16>
      %c0_59 = arith.constant 0 : index
      %c0_60 = arith.constant 0 : index
      %68 = vector.load %arg7[%c0_59, %c0_60] : memref<696x128xbf16, #tpu.memory_space<vmem>>, vector<696x128xbf16>
      tpu.vector_store %arg7[%c0_59, %c0_60], %67 {strides = array<i32>} : memref<696x128xbf16, #tpu.memory_space<vmem>>, vector<696x128xbf16>,
    } else {
    }
    %c0 = arith.constant 0 : index
    %c0_1 = arith.constant 0 : index
    %c0_2 = arith.constant 0 : index
    %3 = vector.load %arg1[%c0, %c0_1, %c0_2] : memref<1x648x128xbf16, #tpu.memory_space<vmem>>, vector<1x648x128xbf16>
    %4 = vector.shape_cast %3 : vector<1x648x128xbf16> to vector<648x128xbf16>
    %c0_3 = arith.constant 0 : index
    %c0_4 = arith.constant 0 : index
    %5 = vector.load %arg2[%c0_3, %c0_4] : memref<128x128xbf16, #tpu.memory_space<vmem>>, vector<128x128xbf16>
    %cst = arith.constant dense<0.000000e+00> : vector<648x128xf32>
    %6 = tpu.matmul %4, %5, %cst {dimension_numbers = #tpu.dot_dimension_numbers<[1], [0], [0], [1], [0, 0, 1, 1], [], []>} : vector<648x128xbf16>, vector<128x128xbf16>, vector<648x128xf32> -> vector<648x128xf32>
    %cst_5 = arith.constant 0.000000e+00 : f32
    %7 = vector.broadcast %cst_5 : f32 to vector<648x128xf32>
    %8 = arith.maximumf %6, %7 : vector<648x128xf32>
    %9 = arith.truncf %8 : vector<648x128xf32> to vector<648x128xbf16>
    %c24 = arith.constant 24 : index
    %c0_6 = arith.constant 0 : index
    %10 = vector.load %arg7[%c24, %c0_6] : memref<696x128xbf16, #tpu.memory_space<vmem>>, vector<648x128xbf16>
    tpu.vector_store %arg7[%c24, %c0_6], %9 {strides = array<i32>} : memref<696x128xbf16, #tpu.memory_space<vmem>>, vector<648x128xbf16>,
    %c5 = arith.constant 5 : index
    %c0_7 = arith.constant 0 : index
    %11 = vector.load %arg7[%c5, %c0_7] : memref<696x128xbf16, #tpu.memory_space<vmem>>, vector<648x128xbf16>
    %c0_8 = arith.constant 0 : index
    %c0_9 = arith.constant 0 : index
    %c0_10 = arith.constant 0 : index
    %12 = vector.load %arg3[%c0_8, %c0_9, %c0_10] : memref<9x128x128xbf16, #tpu.memory_space<vmem>>, vector<1x128x128xbf16>
    %13 = vector.shape_cast %12 : vector<1x128x128xbf16> to vector<128x128xbf16>
    %cst_11 = arith.constant dense<0.000000e+00> : vector<648x128xf32>
    %14 = tpu.matmul %11, %13, %cst_11 {dimension_numbers = #tpu.dot_dimension_numbers<[1], [0], [0], [1], [0, 0, 1, 1], [], []>} : vector<648x128xbf16>, vector<128x128xbf16>, vector<648x128xf32> -> vector<648x128xf32>
    %c0_12 = arith.constant 0 : index
    %c0_13 = arith.constant 0 : index
    %15 = vector.load %arg4[%c0_12, %c0_13] : memref<1x128xf32, #tpu.memory_space<vmem>>, vector<1x128xf32>
    %16 = vector.broadcast %15 : vector<1x128xf32> to vector<648x128xf32>
    %17 = arith.addf %14, %16 : vector<648x128xf32>
    %c6 = arith.constant 6 : index
    %c0_14 = arith.constant 0 : index
    %18 = vector.load %arg7[%c6, %c0_14] : memref<696x128xbf16, #tpu.memory_space<vmem>>, vector<648x128xbf16>
    %c1 = arith.constant 1 : index
    %c0_15 = arith.constant 0 : index
    %c0_16 = arith.constant 0 : index
    %19 = vector.load %arg3[%c1, %c0_15, %c0_16] : memref<9x128x128xbf16, #tpu.memory_space<vmem>>, vector<1x128x128xbf16>
    %20 = vector.shape_cast %19 : vector<1x128x128xbf16> to vector<128x128xbf16>
    %cst_17 = arith.constant dense<0.000000e+00> : vector<648x128xf32>
    %21 = tpu.matmul %18, %20, %cst_17 {dimension_numbers = #tpu.dot_dimension_numbers<[1], [0], [0], [1], [0, 0, 1, 1], [], []>} : vector<648x128xbf16>, vector<128x128xbf16>, vector<648x128xf32> -> vector<648x128xf32>
    %22 = arith.addf %17, %21 : vector<648x128xf32>
    %c7 = arith.constant 7 : index
    %c0_18 = arith.constant 0 : index
    %23 = vector.load %arg7[%c7, %c0_18] : memref<696x128xbf16, #tpu.memory_space<vmem>>, vector<648x128xbf16>
    %c2 = arith.constant 2 : index
    %c0_19 = arith.constant 0 : index
    %c0_20 = arith.constant 0 : index
    %24 = vector.load %arg3[%c2, %c0_19, %c0_20] : memref<9x128x128xbf16, #tpu.memory_space<vmem>>, vector<1x128x128xbf16>
    %25 = vector.shape_cast %24 : vector<1x128x128xbf16> to vector<128x128xbf16>
    %cst_21 = arith.constant dense<0.000000e+00> : vector<648x128xf32>
    %26 = tpu.matmul %23, %25, %cst_21 {dimension_numbers = #tpu.dot_dimension_numbers<[1], [0], [0], [1], [0, 0, 1, 1], [], []>} : vector<648x128xbf16>, vector<128x128xbf16>, vector<648x128xf32> -> vector<648x128xf32>
    %27 = arith.addf %22, %26 : vector<648x128xf32>
    %c23 = arith.constant 23 : index
    %c0_22 = arith.constant 0 : index
    %28 = vector.load %arg7[%c23, %c0_22] : memref<696x128xbf16, #tpu.memory_space<vmem>>, vector<648x128xbf16>
    %c3 = arith.constant 3 : index
    %c0_23 = arith.constant 0 : index
    %c0_24 = arith.constant 0 : index
    %29 = vector.load %arg3[%c3, %c0_23, %c0_24] : memref<9x128x128xbf16, #tpu.memory_space<vmem>>, vector<1x128x128xbf16>
    %30 = vector.shape_cast %29 : vector<1x128x128xbf16> to vector<128x128xbf16>
    %cst_25 = arith.constant dense<0.000000e+00> : vector<648x128xf32>
    %31 = tpu.matmul %28, %30, %cst_25 {dimension_numbers = #tpu.dot_dimension_numbers<[1], [0], [0], [1], [0, 0, 1, 1], [], []>} : vector<648x128xbf16>, vector<128x128xbf16>, vector<648x128xf32> -> vector<648x128xf32>
    %32 = arith.addf %27, %31 : vector<648x128xf32>
    %c24_26 = arith.constant 24 : index
    %c0_27 = arith.constant 0 : index
    %33 = vector.load %arg7[%c24_26, %c0_27] : memref<696x128xbf16, #tpu.memory_space<vmem>>, vector<648x128xbf16>
    %c4 = arith.constant 4 : index
    %c0_28 = arith.constant 0 : index
    %c0_29 = arith.constant 0 : index
    %34 = vector.load %arg3[%c4, %c0_28, %c0_29] : memref<9x128x128xbf16, #tpu.memory_space<vmem>>, vector<1x128x128xbf16>
    %35 = vector.shape_cast %34 : vector<1x128x128xbf16> to vector<128x128xbf16>
    %cst_30 = arith.constant dense<0.000000e+00> : vector<648x128xf32>
    %36 = tpu.matmul %33, %35, %cst_30 {dimension_numbers = #tpu.dot_dimension_numbers<[1], [0], [0], [1], [0, 0, 1, 1], [], []>} : vector<648x128xbf16>, vector<128x128xbf16>, vector<648x128xf32> -> vector<648x128xf32>
    %37 = arith.addf %32, %36 : vector<648x128xf32>
    %c25 = arith.constant 25 : index
    %c0_31 = arith.constant 0 : index
    %38 = vector.load %arg7[%c25, %c0_31] : memref<696x128xbf16, #tpu.memory_space<vmem>>, vector<648x128xbf16>
    %c5_32 = arith.constant 5 : index
    %c0_33 = arith.constant 0 : index
    %c0_34 = arith.constant 0 : index
    %39 = vector.load %arg3[%c5_32, %c0_33, %c0_34] : memref<9x128x128xbf16, #tpu.memory_space<vmem>>, vector<1x128x128xbf16>
    %40 = vector.shape_cast %39 : vector<1x128x128xbf16> to vector<128x128xbf16>
    %cst_35 = arith.constant dense<0.000000e+00> : vector<648x128xf32>
    %41 = tpu.matmul %38, %40, %cst_35 {dimension_numbers = #tpu.dot_dimension_numbers<[1], [0], [0], [1], [0, 0, 1, 1], [], []>} : vector<648x128xbf16>, vector<128x128xbf16>, vector<648x128xf32> -> vector<648x128xf32>
    %42 = arith.addf %37, %41 : vector<648x128xf32>
    %c41 = arith.constant 41 : index
    %c0_36 = arith.constant 0 : index
    %43 = vector.load %arg7[%c41, %c0_36] : memref<696x128xbf16, #tpu.memory_space<vmem>>, vector<648x128xbf16>
    %c6_37 = arith.constant 6 : index
    %c0_38 = arith.constant 0 : index
    %c0_39 = arith.constant 0 : index
    %44 = vector.load %arg3[%c6_37, %c0_38, %c0_39] : memref<9x128x128xbf16, #tpu.memory_space<vmem>>, vector<1x128x128xbf16>
    %45 = vector.shape_cast %44 : vector<1x128x128xbf16> to vector<128x128xbf16>
    %cst_40 = arith.constant dense<0.000000e+00> : vector<648x128xf32>
    %46 = tpu.matmul %43, %45, %cst_40 {dimension_numbers = #tpu.dot_dimension_numbers<[1], [0], [0], [1], [0, 0, 1, 1], [], []>} : vector<648x128xbf16>, vector<128x128xbf16>, vector<648x128xf32> -> vector<648x128xf32>
    %47 = arith.addf %42, %46 : vector<648x128xf32>
    %c42 = arith.constant 42 : index
    %c0_41 = arith.constant 0 : index
    %48 = vector.load %arg7[%c42, %c0_41] : memref<696x128xbf16, #tpu.memory_space<vmem>>, vector<648x128xbf16>
    %c7_42 = arith.constant 7 : index
    %c0_43 = arith.constant 0 : index
    %c0_44 = arith.constant 0 : index
    %49 = vector.load %arg3[%c7_42, %c0_43, %c0_44] : memref<9x128x128xbf16, #tpu.memory_space<vmem>>, vector<1x128x128xbf16>
    %50 = vector.shape_cast %49 : vector<1x128x128xbf16> to vector<128x128xbf16>
    %cst_45 = arith.constant dense<0.000000e+00> : vector<648x128xf32>
    %51 = tpu.matmul %48, %50, %cst_45 {dimension_numbers = #tpu.dot_dimension_numbers<[1], [0], [0], [1], [0, 0, 1, 1], [], []>} : vector<648x128xbf16>, vector<128x128xbf16>, vector<648x128xf32> -> vector<648x128xf32>
    %52 = arith.addf %47, %51 : vector<648x128xf32>
    %c43 = arith.constant 43 : index
    %c0_46 = arith.constant 0 : index
    %53 = vector.load %arg7[%c43, %c0_46] : memref<696x128xbf16, #tpu.memory_space<vmem>>, vector<648x128xbf16>
    %c8 = arith.constant 8 : index
    %c0_47 = arith.constant 0 : index
    %c0_48 = arith.constant 0 : index
    %54 = vector.load %arg3[%c8, %c0_47, %c0_48] : memref<9x128x128xbf16, #tpu.memory_space<vmem>>, vector<1x128x128xbf16>
    %55 = vector.shape_cast %54 : vector<1x128x128xbf16> to vector<128x128xbf16>
    %cst_49 = arith.constant dense<0.000000e+00> : vector<648x128xf32>
    %56 = tpu.matmul %53, %55, %cst_49 {dimension_numbers = #tpu.dot_dimension_numbers<[1], [0], [0], [1], [0, 0, 1, 1], [], []>} : vector<648x128xbf16>, vector<128x128xbf16>, vector<648x128xf32> -> vector<648x128xf32>
    %57 = arith.addf %52, %56 : vector<648x128xf32>
    %cst_50 = arith.constant 0.000000e+00 : f32
    %58 = vector.broadcast %cst_50 : f32 to vector<648x128xf32>
    %59 = arith.maximumf %57, %58 : vector<648x128xf32>
    %c0_51 = arith.constant 0 : index
    %c0_52 = arith.constant 0 : index
    %60 = vector.load %arg5[%c0_51, %c0_52] : memref<2x648xf32, #tpu.memory_space<vmem>>, vector<2x648xf32>
    %cst_53 = arith.constant dense<0.000000e+00> : vector<2x128xf32>
    %61 = tpu.matmul %60, %59, %cst_53 {dimension_numbers = #tpu.dot_dimension_numbers<[1], [0], [0], [1], [0, 0, 1, 1], [], []>} : vector<2x648xf32>, vector<648x128xf32>, vector<2x128xf32> -> vector<2x128xf32>
    %cst_54 = arith.constant 3.906250e-03 : f32
    %62 = vector.broadcast %cst_54 : f32 to vector<2x128xf32>
    %63 = arith.mulf %61, %62 : vector<2x128xf32>
    %c0_55 = arith.constant 0 : index
    %c0_56 = arith.constant 0 : index
    %c0_57 = arith.constant 0 : index
    %64 = vector.load %arg6[%c0_55, %c0_56, %c0_57] : memref<1x2x128xf32, #tpu.memory_space<vmem>>, vector<1x2x128xf32>
    %65 = vector.shape_cast %64 : vector<1x2x128xf32> to vector<2x128xf32>
    %66 = vector.shape_cast %63 : vector<2x128xf32> to vector<1x2x128xf32>
    tpu.vector_store %arg6[%c0_55, %c0_56, %c0_57], %66 {strides = array<i32>} : memref<1x2x128xf32, #tpu.memory_space<vmem>>, vector<1x2x128xf32>,
    return
  }
  func.func @transform_0(%arg0: i32) -> (i32, i32, i32) {
    %c0_i32 = arith.constant 0 : i32
    %c0_i32_0 = arith.constant 0 : i32
    %c0_i32_1 = arith.constant 0 : i32
    return %arg0, %c0_i32, %c0_i32_0 : i32, i32, i32
  }
  func.func @transform_1(%arg0: i32) -> (i32, i32) {
    %c0_i32 = arith.constant 0 : i32
    %c0_i32_0 = arith.constant 0 : i32
    %c0_i32_1 = arith.constant 0 : i32
    return %c0_i32, %c0_i32_0 : i32, i32
  }
  func.func @transform_2(%arg0: i32) -> (i32, i32, i32) {
    %c0_i32 = arith.constant 0 : i32
    %c0_i32_0 = arith.constant 0 : i32
    %c0_i32_1 = arith.constant 0 : i32
    %c0_i32_2 = arith.constant 0 : i32
    return %c0_i32, %c0_i32_0, %c0_i32_1 : i32, i32, i32
  }
  func.func @transform_3(%arg0: i32) -> (i32, i32) {
    %c0_i32 = arith.constant 0 : i32
    %c0_i32_0 = arith.constant 0 : i32
    %c0_i32_1 = arith.constant 0 : i32
    return %c0_i32, %c0_i32_0 : i32, i32
  }
  func.func @transform_4(%arg0: i32) -> (i32, i32) {
    %c0_i32 = arith.constant 0 : i32
    %c0_i32_0 = arith.constant 0 : i32
    %c0_i32_1 = arith.constant 0 : i32
    return %c0_i32, %c0_i32_0 : i32, i32
  }
  func.func @transform_5(%arg0: i32) -> (i32, i32, i32) {
    %c0_i32 = arith.constant 0 : i32
    %c0_i32_0 = arith.constant 0 : i32
    %c0_i32_1 = arith.constant 0 : i32
    return %arg0, %c0_i32, %c0_i32_0 : i32, i32, i32
  }
}

</mosaic_0001>

<bundles_post_ra>
// kernel: cnn_feature_extractor.1
= control target key start
LH: loop header
LB: loop body
LE: loop exit
PB: predicated region body
PF: predicated region fallthrough
CT: control target
= control target key end

     0   :  { %v18626_v1 = vmov 0.0   ;;  %vm14735_vm0 = vmmov 0   ;;  %s18598_s0 = inlined_call_operand.vmem [shape: bf16[1,648,128], index: 0, kind: input, shape index: {}]   ;;  %s18599_s1 = inlined_call_operand.vmem [shape: bf16[128,128], index: 1, kind: input, shape index: {}]   ;;  %s18600_s2 = inlined_call_operand.vmem [shape: bf16[9,128,128], index: 2, kind: input, shape index: {}]   ;;  %s18601_s3 = inlined_call_operand.vmem [shape: f32[1,128], index: 3, kind: input, shape index: {}]   ;;  %s18602_s4 = inlined_call_operand.vmem [shape: f32[2,648], index: 4, kind: input, shape index: {}]   ;;  %s18603_s5 = inlined_call_operand.hbm [shape: f32[1,2,128], index: 5, kind: output, shape index: {}]  }
   0x1   :  { %v14293_v0 = vld [vmem:[%s18599_s1] sm:$0xff]   ;;  %11073 = vmatprep.subr.bf16.mxu0 %v18626_v1  ;;  %12961 = vmatprep.subr.bf16.mxu1 %v18626_v1  ;;  %v14294_v2 = vld [vmem:[%s18599_s1 + $0x8] sm:$0xff]   ;;  %v14295_v3 = vld [vmem:[%s18599_s1 + $0x10] sm:$0xff]  }
   0x2   :  { %11074 = vmatpush3.bf16.msra.mxu0 %v14293_v0  ;;  %11089 = vmatprep.mubr.msk.bf16.mxu0 %vm14735_vm0, %v18626_v1  ;;  %v14296_v4 = vld [vmem:[%s18599_s1 + $0x18] sm:$0xff]   ;;  %v14297_v5 = vld [vmem:[%s18599_s1 + $0x20] sm:$0xff]   ;;  %v14298_v6 = vld [vmem:[%s18599_s1 + $0x28] sm:$0xff]  }
   0x3   :  { %11075 = vmatprep.subr.bf16.mxu0 %v18626_v1  ;;  %11957 = vmatprep.mubr.msk.bf16.mxu1 %vm14735_vm0, %v18626_v1  ;;  %v14299_v7 = vld [vmem:[%s18599_s1 + $0x30] sm:$0xff]   ;;  %v14300_v8 = vld [vmem:[%s18599_s1 + $0x38] sm:$0xff]   ;;  %v14301_v9 = vld [vmem:[%s18598_s0] sm:$0xff]  }
   0x4   :  { %v14302_v10 = vld [vmem:[%s18598_s0 + $0x8] sm:$0xff]   ;;  %v14303_v11 = vld [vmem:[%s18598_s0 + $0x10] sm:$0xff]   ;;  %v14304_v12 = vld [vmem:[%s18598_s0 + $0x18] sm:$0xff]  }
   0x5   :  { %v14305_v13 = vld [vmem:[%s18598_s0 + $0x20] sm:$0xff]   ;;  %v14306_v14 = vld [vmem:[%s18598_s0 + $0x28] sm:$0xff]   ;;  %v14307_v15 = vld [vmem:[%s18598_s0 + $0x30] sm:$0xff]  }
   0x6   :  { %11076 = vmatpush3.bf16.msra.mxu0 %v14294_v2  ;;  %v14308_v16 = vld [vmem:[%s18598_s0 + $0x38] sm:$0xff]  }
   0x7   :  { %11077 = vmatprep.subr.bf16.mxu0 %v18626_v1 }
   0xa   :  { %11078 = vmatpush3.bf16.msra.mxu0 %v14295_v3 }
   0xb   :  { %11079 = vmatprep.subr.bf16.mxu0 %v18626_v1 }
   0xe   :  { %11080 = vmatpush3.bf16.msra.mxu0 %v14296_v4 }
   0xf   :  { %11081 = vmatprep.subr.bf16.mxu0 %v18626_v1 }
  0x12   :  { %11082 = vmatpush3.bf16.msra.mxu0 %v14297_v5 }
  0x13   :  { %11083 = vmatprep.subr.bf16.mxu0 %v18626_v1 }
  0x16   :  { %11084 = vmatpush3.bf16.msra.mxu0 %v14298_v6 }
  0x17   :  { %11085 = vmatprep.subr.bf16.mxu0 %v18626_v1 }
  0x1a   :  { %11086 = vmatpush3.bf16.msra.mxu0 %v14299_v7 }
  0x1b   :  { %11087 = vmatprep.subr.bf16.mxu0 %v18626_v1 }
  0x1e   :  { %11088 = vmatpush3.bf16.msra.mxu0 %v14300_v8 }
  0x1f   :  { %11253 = vmatprep.subr.bf16.mxu0 %v18626_v1 }
  0x21   :  { %11090 = vmatmul.mubr.bf16.vlgmr.msra.gmra.mrb[0].mxu0 %v14301_v9 }
  0x22   :  { %11093 = vmatprep.mubr.msk.bf16.mxu0 %vm14735_vm0, %v18626_v1 }
  0x29   :  { %11094 = vmatmul.mubr.bf16.gmra.mrb[4].mxu0 %v14302_v10 }
  0x2a   :  { %11097 = vmatprep.mubr.msk.bf16.mxu0 %vm14735_vm0, %v18626_v1 }
  0x31   :  { %11098 = vmatmul.mubr.bf16.gmra.mrb[8].mxu0 %v14303_v11 }
  0x32   :  { %11101 = vmatprep.mubr.msk.bf16.mxu0 %vm14735_vm0, %v18626_v1 }
  0x39   :  { %11102 = vmatmul.mubr.bf16.gmra.mrb[12].mxu0 %v14304_v12 }
  0x3a   :  { %11105 = vmatprep.mubr.msk.bf16.mxu0 %vm14735_vm0, %v18626_v1 }
  0x41   :  { %11106 = vmatmul.mubr.bf16.gmra.mrb[16].mxu0 %v14305_v13 }
  0x42   :  { %11109 = vmatprep.mubr.msk.bf16.mxu0 %vm14735_vm0, %v18626_v1 }
  0x49   :  { %11110 = vmatmul.mubr.bf16.gmra.mrb[20].mxu0 %v14306_v14 }
  0x4a   :  { %11113 = vmatprep.mubr.msk.bf16.mxu0 %vm14735_vm0, %v18626_v1 }
  0x51   :  { %11114 = vmatmul.mubr.bf16.gmra.mrb[24].mxu0 %v14307_v15 }
  0x52   :  { %11117 = vmatprep.mubr.msk.bf16.mxu0 %vm14735_vm0, %v18626_v1 }
  0x59   :  { %11118 = vmatmul.mubr.bf16.gmra.mrb[28].mxu0 %v14308_v16 }
  0x5a   :  { %11121 = vmatprep.mubr.msk.bf16.mxu0 %vm14735_vm0, %v18626_v1 }
  0x5b   :  { %10 = vsyncpa [#allocation4], 0  ;;  %v14309_v17 = vld [vmem:[%s18598_s0 + $0x40] sm:$0xff]   ;;  %v14310_v18 = vld [vmem:[%s18598_s0 + $0x48] sm:$0xff]   ;;  %v14736_v20 = vmov 0   ;;  %vm2498_vm1 = vcmask 1044480  }
  0x5c   :  { %v14311_v19 = vld [vmem:[%s18598_s0 + $0x50] sm:$0xff]   ;;  %29 = vst [vmem:[#allocation2 + $0xc] sm:$0xf] %v14736_v20  ;;  %26 = vst [vmem:[#allocation2] sm:$0xf] %v14736_v20  ;;  %v14312_v21 = vld [vmem:[%s18598_s0 + $0x58] sm:$0xff]  }
  0x5d   :  { %27 = vst [vmem:[#allocation2 + $0x4] sm:$0xf] %v14736_v20  ;;  %28 = vst [vmem:[#allocation2 + $0x8] sm:$0xf] %v14736_v20  ;;  %v14313_v22 = vld [vmem:[%s18598_s0 + $0x60] sm:$0xff]   ;;  %v14314_v23 = vld [vmem:[%s18598_s0 + $0x68] sm:$0xff]  }
  0x5e   :  { %30 = vst [vmem:[#allocation2 + $0x10] sm:$0xf] %v14736_v20  ;;  %31 = vst [vmem:[#allocation2 + $0x14] sm:$0xf] %v14736_v20  ;;  %v14315_v24 = vld [vmem:[%s18598_s0 + $0x70] sm:$0xff]   ;;  %v14316_v25 = vld [vmem:[%s18598_s0 + $0x78] sm:$0xff]  }
  0x5f   :  { %32 = vst [vmem:[#allocation2 + $0x18] sm:$0xf] %v14736_v20  ;;  %33 = vst [vmem:[#allocation2 + $0x1c] sm:$0xf] %v14736_v20  ;;  %v14317_v26 = vld [vmem:[%s18598_s0 + $0x80] sm:$0xff]   ;;  %v14318_v27 = vld [vmem:[%s18598_s0 + $0x88] sm:$0xff]  }
  0x60   :  { %34 = vst [vmem:[#allocation2 + $0x20] sm:$0xf] %v14736_v20  ;;  %35 = vst [vmem:[#allocation2 + $0x24] sm:$0xf] %v14736_v20  ;;  %v14319_v28 = vld [vmem:[%s18598_s0 + $0x90] sm:$0xff]   ;;  %v14320_v29 = vld [vmem:[%s18598_s0 + $0x98] sm:$0xff]  }
  0x61   :  { %11122 = vmatmul.mubr.bf16.gmra.mrb[32].mxu0 %v14309_v17  ;;  %36 = vst [vmem:[#allocation2 + $0x28] sm:$0xf] %v14736_v20  ;;  %37 = vst [vmem:[#allocation2 + $0x2c] sm:$0xf] %v14736_v20  ;;  %v14321_v30 = vld [vmem:[%s18598_s0 + $0xa0] sm:$0xff]   ;;  %v14322_v31 = vld [vmem:[%s18598_s0 + $0xa8] sm:$0xff]  }
  0x62   :  { %11125 = vmatprep.mubr.msk.bf16.mxu0 %vm14735_vm0, %v18626_v1  ;;  %38 = vst [vmem:[#allocation2 + $0x30] sm:$0xf] %v14736_v20  ;;  %39 = vst [vmem:[#allocation2 + $0x34] sm:$0xf] %v14736_v20  ;;  %v14339_v32 = vld [vmem:[%s18600_s2] sm:$0xff]   ;;  %v14340_v33 = vld [vmem:[%s18600_s2 + $0x8] sm:$0xff]  }
  0x63   :  { %40 = vst [vmem:[#allocation2 + $0x38] sm:$0xf] %v14736_v20  ;;  %41 = vst [vmem:[#allocation2 + $0x3c] sm:$0xf] %v14736_v20  ;;  %11254 = vmatpush3.bf16.msra.mxu0 %v14339_v32  ;;  %v14323_v34 = vld [vmem:[%s18598_s0 + $0xb0] sm:$0xff]   ;;  %v14343_v36 = vld [vmem:[%s18600_s2 + $0x18] sm:$0xff]  }
  0x64   :  { %42 = vst [vmem:[#allocation2 + $0x40] sm:$0xf] %v14736_v20  ;;  %43 = vst [vmem:[#allocation2 + $0x44] sm:$0xf] %v14736_v20  ;;  %11255 = vmatprep.subr.bf16.mxu0 %v18626_v1  ;;  %v14342_v35 = vld [vmem:[%s18600_s2 + $0x10] sm:$0xff]   ;;  %v14324_v37 = vld [vmem:[%s18598_s0 + $0xb8] sm:$0xff]  }
  0x65   :  { %44 = vst [vmem:[#allocation2 + $0x48] sm:$0xf] %v14736_v20  ;;  %45 = vst [vmem:[#allocation2 + $0x4c] sm:$0xf] %v14736_v20  ;;  %v14345_v38 = vld [vmem:[%s18600_s2 + $0x20] sm:$0xff]   ;;  %v14346_v39 = vld [vmem:[%s18600_s2 + $0x28] sm:$0xff]  }
  0x66   :  { %46 = vst [vmem:[#allocation2 + $0x50] sm:$0xf] %v14736_v20  ;;  %47 = vst [vmem:[#allocation2 + $0x54] sm:$0xf] %v14736_v20  ;;  %v14325_v40 = vld [vmem:[%s18598_s0 + $0xc0] sm:$0xff]   ;;  %v14348_v41 = vld [vmem:[%s18600_s2 + $0x30] sm:$0xff]  }
  0x67   :  { %48 = vst [vmem:[#allocation2 + $0x58] sm:$0xf] %v14736_v20  ;;  %49 = vst [vmem:[#allocation2 + $0x5c] sm:$0xf] %v14736_v20  ;;  %11256 = vmatpush3.bf16.msra.mxu0 %v14340_v33  ;;  %v14349_v42 = vld [vmem:[%s18600_s2 + $0x38] sm:$0xff]   ;;  %v14326_v43 = vld [vmem:[%s18598_s0 + $0xc8] sm:$0xff]  }
  0x68   :  { %50 = vst [vmem:[#allocation2 + $0x60] sm:$0xf] %v14736_v20  ;;  %51 = vst [vmem:[#allocation2 + $0x64] sm:$0xf] %v14736_v20  ;;  %11257 = vmatprep.subr.bf16.mxu0 %v18626_v1  ;;  %v14327_v44 = vld [vmem:[%s18598_s0 + $0xd0] sm:$0xff]   ;;  %v14328_v48 = vld [vmem:[%s18598_s0 + $0xd8] sm:$0xff]  }
  0x69   :  { %11126 = vmatmul.mubr.bf16.gmra.mrb[36].mxu0 %v14310_v18  ;;  %52 = vst [vmem:[#allocation2 + $0x68] sm:$0xf] %v14736_v20  ;;  %53 = vst [vmem:[#allocation2 + $0x6c] sm:$0xf] %v14736_v20  ;;  %v15065_v50 = vld [vmem:[#allocation2 + $0x4] sm:$0xf] }
  0x6a   :  { %11129 = vmatprep.mubr.msk.bf16.mxu0 %vm14735_vm0, %v18626_v1  ;;  %54 = vst [vmem:[#allocation2 + $0x70] sm:$0xf] %v14736_v20  ;;  %55 = vst [vmem:[#allocation2 + $0x74] sm:$0xf] %v14736_v20  ;;  %v2477_v51 = vld [vmem:[#allocation2] sm:$0x8] }
  0x6b   :  { %56 = vst [vmem:[#allocation2 + $0x78] sm:$0xf] %v14736_v20  ;;  %57 = vst [vmem:[#allocation2 + $0x7c] sm:$0xf] %v14736_v20  ;;  %11258 = vmatpush3.bf16.msra.mxu0 %v14342_v35  ;;  %v9846_v54 = vcombine.low %v2477_v51, %v15065_v50  ;;  %v14329_v59 = vld [vmem:[%s18598_s0 + $0xe0] sm:$0xff]   ;;  %v14330_v18 = vld [vmem:[%s18598_s0 + $0xe8] sm:$0xff]  }
  0x6c   :  { %58 = vst [vmem:[#allocation2 + $0x80] sm:$0xf] %v14736_v20  ;;  %59 = vst [vmem:[#allocation2 + $0x84] sm:$0xf] %v14736_v20  ;;  %11259 = vmatprep.subr.bf16.mxu0 %v18626_v1  ;;  %v3835_v2 = vld [vmem:[#allocation2 + $0x8] sm:$0x8] }
  0x6d   :  { %60 = vst [vmem:[#allocation2 + $0x88] sm:$0xf] %v14736_v20  ;;  %61 = vst [vmem:[#allocation2 + $0x8c] sm:$0xf] %v14736_v20  ;;  %v3133_v60 = vshrl.u32 %v9846_v54, 16  ;;  %v3136_v61 = vshll.u32 %v9846_v54, 16 }
  0x6e   :  { %62 = vst [vmem:[#allocation2 + $0x90] sm:$0xf] %v14736_v20  ;;  %63 = vst [vmem:[#allocation2 + $0x94] sm:$0xf] %v14736_v20  ;;  %v2499_v5 = vrot.slane %v9846_v54, 3  ;;  %vm7969_vm6 = vcmask 1046528  }
  0x6f   :  { %64 = vst [vmem:[#allocation2 + $0x98] sm:$0xf] %v14736_v20  ;;  %65 = vst [vmem:[#allocation2 + $0x9c] sm:$0xf] %v14736_v20  ;;  %11260 = vmatpush3.bf16.msra.mxu0 %v14343_v36  ;;  %v3135_v6 = vrot.slane %v3133_v60, 3  ;;  %v3138_v7 = vrot.slane %v3136_v61, 4 }
  0x70   :  { %66 = vst [vmem:[#allocation2 + $0xa0] sm:$0xf] %v14736_v20  ;;  %67 = vst [vmem:[#allocation2 + $0xa4] sm:$0xf] %v14736_v20  ;;  %11261 = vmatprep.subr.bf16.mxu0 %v18626_v1  ;;  %vm3131_vm2 = vsmask.f32 4352 }
  0x71   :  { %11130 = vmatmul.mubr.bf16.gmra.mrb[40].mxu0 %v14311_v19  ;;  %68 = vst [vmem:[#allocation2 + $0xa8] sm:$0xf] %v14736_v20  ;;  %69 = vst [vmem:[#allocation2 + $0xac] sm:$0xf] %v14736_v20  ;;  %v3139_v19 = vor.u32 %v3138_v7, %v3135_v6  ;;  %v14332_v7 = vld [vmem:[%s18598_s0 + $0xf8] sm:$0xff]   ;;  %vm9421_vm7 = vcmask 64512  }
  0x72   :  { %11133 = vmatprep.mubr.msk.bf16.mxu0 %vm14735_vm0, %v18626_v1  ;;  %70 = vst [vmem:[#allocation2 + $0xb0] sm:$0xf] %v14736_v20  ;;  %71 = vst [vmem:[#allocation2 + $0xb4] sm:$0xf] %v14736_v20  ;;  %vm1659_vm3 = vsmask.f32 5376 }
  0x73   :  { %72 = vst [vmem:[#allocation2 + $0xb8] sm:$0xf] %v14736_v20  ;;  %73 = vst [vmem:[#allocation2 + $0xbc] sm:$0xf] %v14736_v20  ;;  %11262 = vmatpush3.bf16.msra.mxu0 %v14345_v38  ;;  %vm8602_vm4 = vsmask.f32 6400 }
  0x74   :  { %74 = vst [vmem:[#allocation2 + $0xc0] sm:$0xf] %v14736_v20  ;;  %75 = vst [vmem:[#allocation2 + $0xc4] sm:$0xf] %v14736_v20  ;;  %11263 = vmatprep.subr.bf16.mxu0 %v18626_v1  ;;  %vm5929_vm5 = vsmask.f32 7424 }
  0x75   :  { %76 = vst [vmem:[#allocation2 + $0xc8] sm:$0xf] %v14736_v20  ;;  %77 = vst [vmem:[#allocation2 + $0xcc] sm:$0xf] %v14736_v20 }
  0x76   :  { %78 = vst [vmem:[#allocation2 + $0xd0] sm:$0xf] %v14736_v20  ;;  %79 = vst [vmem:[#allocation2 + $0xd4] sm:$0xf] %v14736_v20 }
  0x77   :  { %80 = vst [vmem:[#allocation2 + $0xd8] sm:$0xf] %v14736_v20  ;;  %81 = vst [vmem:[#allocation2 + $0xdc] sm:$0xf] %v14736_v20  ;;  %11264 = vmatpush3.bf16.msra.mxu0 %v14346_v39 }
  0x78   :  { %82 = vst [vmem:[#allocation2 + $0xe0] sm:$0xf] %v14736_v20  ;;  %83 = vst [vmem:[#allocation2 + $0xe4] sm:$0xf] %v14736_v20  ;;  %11265 = vmatprep.subr.bf16.mxu0 %v18626_v1 }
  0x79   :  { %84 = vst [vmem:[#allocation2 + $0xe8] sm:$0xf] %v14736_v20  ;;  %85 = vst [vmem:[#allocation2 + $0xec] sm:$0xf] %v14736_v20  ;;  %11134 = vmatmul.mubr.bf16.gmra.mrb[44].mxu0 %v14312_v21 }
  0x7a   :  { %86 = vst [vmem:[#allocation2 + $0xf0] sm:$0xf] %v14736_v20  ;;  %87 = vst [vmem:[#allocation2 + $0xf4] sm:$0xf] %v14736_v20  ;;  %11137 = vmatprep.mubr.msk.bf16.mxu0 %vm14735_vm0, %v18626_v1 }
  0x7b   :  { %88 = vst [vmem:[#allocation2 + $0xf8] sm:$0xf] %v14736_v20  ;;  %89 = vst [vmem:[#allocation2 + $0xfc] sm:$0xf] %v14736_v20  ;;  %11266 = vmatpush3.bf16.msra.mxu0 %v14348_v41 }
  0x7c   :  { %90 = vst [vmem:[#allocation2 + $0x100] sm:$0xf] %v14736_v20  ;;  %91 = vst [vmem:[#allocation2 + $0x104] sm:$0xf] %v14736_v20  ;;  %11267 = vmatprep.subr.bf16.mxu0 %v18626_v1 }
  0x7d   :  { %92 = vst [vmem:[#allocation2 + $0x108] sm:$0xf] %v14736_v20  ;;  %93 = vst [vmem:[#allocation2 + $0x10c] sm:$0xf] %v14736_v20 }
  0x7e   :  { %94 = vst [vmem:[#allocation2 + $0x110] sm:$0xf] %v14736_v20  ;;  %95 = vst [vmem:[#allocation2 + $0x114] sm:$0xf] %v14736_v20 }
  0x7f   :  { %96 = vst [vmem:[#allocation2 + $0x118] sm:$0xf] %v14736_v20  ;;  %97 = vst [vmem:[#allocation2 + $0x11c] sm:$0xf] %v14736_v20  ;;  %11268 = vmatpush3.bf16.msra.mxu0 %v14349_v42  ;;  %v14331_v42 = vld [vmem:[%s18598_s0 + $0xf0] sm:$0xff]  }
  0x80   :  { %98 = vst [vmem:[#allocation2 + $0x120] sm:$0xf] %v14736_v20  ;;  %99 = vst [vmem:[#allocation2 + $0x124] sm:$0xf] %v14736_v20  ;;  %11433 = vmatprep.subr.bf16.mxu0 %v18626_v1 }
  0x81   :  { %100 = vst [vmem:[#allocation2 + $0x128] sm:$0xf] %v14736_v20  ;;  %101 = vst [vmem:[#allocation2 + $0x12c] sm:$0xf] %v14736_v20  ;;  %11138 = vmatmul.mubr.bf16.gmra.mrb[48].mxu0 %v14313_v22 }
  0x82   :  { %102 = vst [vmem:[#allocation2 + $0x130] sm:$0xf] %v14736_v20  ;;  %103 = vst [vmem:[#allocation2 + $0x134] sm:$0xf] %v14736_v20  ;;  %11141 = vmatprep.mubr.msk.bf16.mxu0 %vm14735_vm0, %v18626_v1 }
  0x83   :  { %104 = vst [vmem:[#allocation2 + $0x138] sm:$0xf] %v14736_v20  ;;  %105 = vst [vmem:[#allocation2 + $0x13c] sm:$0xf] %v14736_v20 }
  0x84   :  { %106 = vst [vmem:[#allocation2 + $0x140] sm:$0xf] %v14736_v20  ;;  %107 = vst [vmem:[#allocation2 + $0x144] sm:$0xf] %v14736_v20 }
  0x85   :  { %108 = vst [vmem:[#allocation2 + $0x148] sm:$0xf] %v14736_v20  ;;  %109 = vst [vmem:[#allocation2 + $0x14c] sm:$0xf] %v14736_v20 }
  0x86   :  { %110 = vst [vmem:[#allocation2 + $0x150] sm:$0xf] %v14736_v20  ;;  %111 = vst [vmem:[#allocation2 + $0x154] sm:$0xf] %v14736_v20 }
  0x87   :  { %112 = vst [vmem:[#allocation2 + $0x158] sm:$0xf] %v14736_v20 }
  0x89   :  { %11142 = vmatmul.mubr.bf16.gmra.mrb[52].mxu0 %v14314_v23 }
  0x8a   :  { %11145 = vmatprep.mubr.msk.bf16.mxu0 %vm14735_vm0, %v18626_v1 }
  0x91   :  { %11146 = vmatmul.mubr.bf16.gmra.mrb[56].mxu0 %v14315_v24 }
  0x92   :  { %11149 = vmatprep.mubr.msk.bf16.mxu0 %vm14735_vm0, %v18626_v1 }
  0x99   :  { %11150 = vmatmul.mubr.bf16.gmra.mrb[60].mxu0 %v14316_v25 }
  0x9a   :  { %11153 = vmatprep.mubr.msk.bf16.mxu0 %vm14735_vm0, %v18626_v1 }
  0xa1   :  { %11154 = vmatmul.mubr.bf16.gmra.mrb[64].mxu0 %v14317_v26 }
  0xa2   :  { %11157 = vmatprep.mubr.msk.bf16.mxu0 %vm14735_vm0, %v18626_v1 }
  0xa9   :  { %11158 = vmatmul.mubr.bf16.gmra.mrb[68].mxu0 %v14318_v27 }
  0xaa   :  { %11161 = vmatprep.mubr.msk.bf16.mxu0 %vm14735_vm0, %v18626_v1 }
  0xb1   :  { %11162 = vmatmul.mubr.bf16.gmra.mrb[72].mxu0 %v14319_v28 }
  0xb2   :  { %11165 = vmatprep.mubr.msk.bf16.mxu0 %vm14735_vm0, %v18626_v1 }
  0xb9   :  { %11166 = vmatmul.mubr.bf16.gmra.mrb[76].mxu0 %v14320_v29 }
  0xba   :  { %11169 = vmatprep.mubr.msk.bf16.mxu0 %vm14735_vm0, %v18626_v1 }
  0xc1   :  { %11170 = vmatmul.mubr.bf16.gmra.mrb[80].mxu0 %v14321_v30 }
  0xc2   :  { %11173 = vmatprep.mubr.msk.bf16.mxu0 %vm14735_vm0, %v18626_v1 }
  0xc9   :  { %11174 = vmatmul.mubr.bf16.gmra.mrb[84].mxu0 %v14322_v31 }
  0xca   :  { %11177 = vmatprep.mubr.msk.bf16.mxu0 %vm14735_vm0, %v18626_v1 }
  0xd1   :  { %11178 = vmatmul.mubr.bf16.gmra.mrb[88].mxu0 %v14323_v34 }
  0xd2   :  { %11181 = vmatprep.mubr.msk.bf16.mxu0 %vm14735_vm0, %v18626_v1 }
  0xd9   :  { %11182 = vmatmul.mubr.bf16.gmra.mrb[92].mxu0 %v14324_v37 }
  0xda   :  { %11185 = vmatprep.mubr.msk.bf16.mxu0 %vm14735_vm0, %v18626_v1 }
  0xe1   :  { %11186 = vmatmul.mubr.bf16.gmra.mrb[96].mxu0 %v14325_v40 }
  0xe2   :  { %11189 = vmatprep.mubr.msk.bf16.mxu0 %vm14735_vm0, %v18626_v1 }
  0xe9   :  { %11190 = vmatmul.mubr.bf16.gmra.mrb[100].mxu0 %v14326_v43 }
  0xea   :  { %11193 = vmatprep.mubr.msk.bf16.mxu0 %vm14735_vm0, %v18626_v1 }
  0xf1   :  { %11194 = vmatmul.mubr.bf16.gmra.mrb[104].mxu0 %v14327_v44 }
  0xf2   :  { %11197 = vmatprep.mubr.msk.bf16.mxu0 %vm14735_vm0, %v18626_v1 }
  0xf4   :  { %v536_v45 = vpop.f32.mrb[0].mxu0 }
  0xf5   :  { %v862_v46 = vmax.f32 %v536_v45, 0.0  ;;  %v11091_v47 = vpop.f32.mrb[1].mxu0 }
  0xf6   :  { %v539_v49 = vpop.f32.mrb[2].mxu0 }
  0xf7   :  { %v10192_v52 = vpack.c.bf16 %v862_v46, %v862_v46  ;;  %v11092_v53 = vpop.f32.mrb[3].mxu0  ;;  %v863_v56 = vmax.f32 %v539_v49, 0.0 }
  0xf9   :  { %1268 = vst [vmem:[#allocation2 + $0xc] sm:$0xf] %v10192_v52  ;;  %11198 = vmatmul.mubr.bf16.gmra.mrb[108].mxu0 %v14328_v48 }
  0xfa   :  { %11201 = vmatprep.mubr.msk.bf16.mxu0 %vm14735_vm0, %v18626_v1 }
  0xfc   :  { %v544_v55 = vpop.f32.mrb[4].mxu0 }
  0xfd   :  { %v864_v57 = vmax.f32 %v544_v55, 0.0  ;;  %v11095_v58 = vpop.f32.mrb[5].mxu0 }
  0xfe   :  { %v547_v62 = vpop.f32.mrb[6].mxu0 }
  0xff   :  { %v10276_v63 = vpack.c.bf16 %v864_v57, %v863_v56  ;;  %v11096_v0 = vpop.f32.mrb[7].mxu0  ;;  %v865_v15 = vmax.f32 %v547_v62, 0.0 }
 0x100   :  { %v15073_v3 = vld [vmem:[#allocation2 + $0x8] sm:$0xff]  }
 0x101   :  { %v3836_v4 = vld [vmem:[#allocation2 + $0xc] sm:$0xf]  ;;  %10473 = vst [vmem:[#allocation2 + $0x10] sm:$0xff] %v10276_v63   ;;  %11202 = vmatmul.mubr.bf16.gmra.mrb[112].mxu0 %v14329_v59  ;;  %v18623_v8 = vshrl.u32 %v15073_v3, 16  ;;  %v18622_v9 = vshll.u32 %v15073_v3, 16  ;;  %v2500_v10 = vrot.slane %v15073_v3, 3 }
 0x102   :  { %11205 = vmatprep.mubr.msk.bf16.mxu0 %vm14735_vm0, %v18626_v1  ;;  %v9896_v11 = vcombine.low %v3835_v2, %v3836_v4 }
 0x103   :  { %v15081_v13 = vsel %vm2498_vm1, %v2499_v5, %v2500_v10  ;;  %v3140_v14 = vrot.slane %v18623_v8, 3  ;;  %v3141_v20 = vrot.slane %v18622_v9, 4 }
 0x104   :  { %v552_v12 = vpop.f32.mrb[8].mxu0  ;;  %18743 = vst [vmem:[#allocation6_spill] sm:$0xff] %v15081_v13  ;;  %v4140_v25 = vshrl.u32 %v9896_v11, 16  ;;  %v4143_v27 = vshll.u32 %v9896_v11, 16 }
 0x105   :  { %v866_v16 = vmax.f32 %v552_v12, 0.0  ;;  %v11099_v17 = vpop.f32.mrb[9].mxu0  ;;  %v3142_v24 = vor.u32 %v3141_v20, %v3140_v14 }
 0x106   :  { %v555_v21 = vpop.f32.mrb[10].mxu0  ;;  %v4142_v38 = vrot.slane %v4140_v25, 3  ;;  %v4145_v44 = vrot.slane %v4143_v27, 4 }
 0x107   :  { %v10281_v22 = vpack.c.bf16 %v866_v16, %v865_v15  ;;  %v11100_v23 = vpop.f32.mrb[11].mxu0  ;;  %v15093_v30 = vsel %vm3131_vm2, %v3139_v19, %v3142_v24  ;;  %v867_v39 = vmax.f32 %v555_v21, 0.0 }
 0x108   :  { %v15090_v26 = vld [vmem:[#allocation2 + $0x10] sm:$0xff]   ;;  %18744 = vst [vmem:[#allocation7_spill] sm:$0xff] %v15093_v30  ;;  %v4146_v58 = vor.u32 %v4145_v44, %v4142_v38 }
 0x109   :  { %10474 = vst [vmem:[#allocation2 + $0x18] sm:$0xff] %v10281_v22   ;;  %11206 = vmatmul.mubr.bf16.gmra.mrb[116].mxu0 %v14330_v18  ;;  %v3837_v28 = vld [vmem:[#allocation2 + $0x10] sm:$0xf]  ;;  %v3838_v29 = vld [vmem:[#allocation2 + $0x14] sm:$0xf]  ;;  %v18621_v31 = vshrl.u32 %v15090_v26, 16 }
 0x10a   :  { %11209 = vmatprep.mubr.msk.bf16.mxu0 %vm14735_vm0, %v18626_v1  ;;  %v9897_v32 = vcombine.low %v3837_v28, %v3838_v29  ;;  %v18620_v33 = vshll.u32 %v15090_v26, 16  ;;  %v2502_v34 = vrot.slane %v15090_v26, 3 }
 0x10b   :  { %v3144_v48 = vrot.slane %v18621_v31, 3 }
 0x10c   :  { %v560_v35 = vpop.f32.mrb[12].mxu0  ;;  %v4148_v36 = vshrl.u32 %v9897_v32, 16  ;;  %v4151_v37 = vshll.u32 %v9897_v32, 16  ;;  %v15104_v43 = vsel %vm2498_vm1, %v2500_v10, %v2502_v34  ;;  %v3145_v52 = vrot.slane %v18620_v33, 4 }
 0x10d   :  { %v868_v40 = vmax.f32 %v560_v35, 0.0  ;;  %v11103_v41 = vpop.f32.mrb[13].mxu0  ;;  %18745 = vst [vmem:[#allocation8_spill] sm:$0xff] %v15104_v43 }
 0x10e   :  { %v563_v45 = vpop.f32.mrb[14].mxu0  ;;  %v4150_v46 = vrot.slane %v4148_v36, 3  ;;  %v4153_v47 = vrot.slane %v4151_v37, 4  ;;  %v3146_v57 = vor.u32 %v3145_v52, %v3144_v48 }
 0x10f   :  { %v10286_v49 = vpack.c.bf16 %v868_v40, %v867_v39  ;;  %v11104_v51 = vpop.f32.mrb[15].mxu0  ;;  %v869_v4 = vmax.f32 %v563_v45, 0.0 }
 0x110   :  { %v15110_v53 = vld [vmem:[#allocation2 + $0x18] sm:$0xff]   ;;  %v15112_v54 = vor.u32 %v4153_v47, %v4150_v46  ;;  %v15122_v63 = vsel %vm3131_vm2, %v3142_v24, %v3146_v57 }
 0x111   :  { %10475 = vst [vmem:[#allocation2 + $0x20] sm:$0xff] %v10286_v49   ;;  %11210 = vmatmul.mubr.bf16.gmra.mrb[120].mxu0 %v14331_v42  ;;  %v3839_v55 = vld [vmem:[#allocation2 + $0x18] sm:$0xf]  ;;  %v3840_v56 = vld [vmem:[#allocation2 + $0x1c] sm:$0xf]  ;;  %v18619_v59 = vshrl.u32 %v15110_v53, 16 }
 0x112   :  { %11213 = vmatprep.mubr.msk.bf16.mxu0 %vm14735_vm0, %v18626_v1  ;;  %v18616_v60 = vshll.u32 %v15110_v53, 16  ;;  %v15118_v61 = vcombine.low %v3839_v55, %v3840_v56  ;;  %v2504_v62 = vrot.slane %v15110_v53, 3  ;;  %18746 = vst [vmem:[#allocation9_spill] sm:$0xff] %v15122_v63  ;;  %v15126_v0 = vsel %vm3131_vm2, %v4146_v58, %v15112_v54  ;;  %v14334_v58 = vld [vmem:[%s18598_s0 + $0x108] sm:$0xff]  }
 0x113   :  { %18747 = vst [vmem:[#allocation10_spill] sm:$0xff] %v15126_v0  ;;  %v3148_v12 = vrot.slane %v18619_v59, 3 }
 0x114   :  { %v568_v2 = vpop.f32.mrb[16].mxu0  ;;  %v15132_v10 = vsel %vm2498_vm1, %v2502_v34, %v2504_v62  ;;  %v3149_v14 = vrot.slane %v18616_v60, 4  ;;  %v14333_v34 = vld [vmem:[%s18598_s0 + $0x100] sm:$0xff]  }
 0x115   :  { %v870_v5 = vmax.f32 %v568_v2, 0.0  ;;  %v11107_v6 = vpop.f32.mrb[17].mxu0  ;;  %18748 = vst [vmem:[#allocation11_spill] sm:$0xff] %v15132_v10 }
 0x116   :  { %v571_v11 = vpop.f32.mrb[18].mxu0  ;;  %v3150_v18 = vor.u32 %v3149_v14, %v3148_v12 }
 0x117   :  { %v10291_v15 = vpack.c.bf16 %v870_v5, %v869_v4  ;;  %v11108_v16 = vpop.f32.mrb[19].mxu0  ;;  %v871_v28 = vmax.f32 %v571_v11, 0.0 }
 0x118   :  { %v15138_v17 = vld [vmem:[#allocation2 + $0x20] sm:$0xff]   ;;  %v15148_v25 = vsel %vm3131_vm2, %v3146_v57, %v3150_v18 }
 0x119   :  { %10476 = vst [vmem:[#allocation2 + $0x28] sm:$0xff] %v10291_v15   ;;  %11214 = vmatmul.mubr.bf16.gmra.mrb[124].mxu0 %v14332_v7  ;;  %v3841_v19 = vld [vmem:[#allocation2 + $0x20] sm:$0xf]  ;;  %v3842_v20 = vld [vmem:[#allocation2 + $0x24] sm:$0xf]  ;;  %v18615_v21 = vshrl.u32 %v15138_v17, 16 }
 0x11a   :  { %11217 = vmatprep.mubr.msk.bf16.mxu0 %vm14735_vm0, %v18626_v1  ;;  %v18614_v22 = vshll.u32 %v15138_v17, 16  ;;  %v15144_v23 = vcombine.low %v3841_v19, %v3842_v20  ;;  %v2506_v24 = vrot.slane %v15138_v17, 3  ;;  %18749 = vst [vmem:[#allocation12_spill] sm:$0xff] %v15148_v25 }
 0x11b   :  { %v3152_v37 = vrot.slane %v18615_v21, 3 }
 0x11c   :  { %v576_v27 = vpop.f32.mrb[20].mxu0  ;;  %v15154_v35 = vsel %vm2498_vm1, %v2504_v62, %v2506_v24  ;;  %v3153_v38 = vrot.slane %v18614_v22, 4 }
 0x11d   :  { %v872_v29 = vmax.f32 %v576_v27, 0.0  ;;  %v11111_v32 = vpop.f32.mrb[21].mxu0  ;;  %18750 = vst [vmem:[#allocation13_spill] sm:$0xff] %v15154_v35 }
 0x11e   :  { %v579_v36 = vpop.f32.mrb[22].mxu0  ;;  %v3154_v42 = vor.u32 %v3153_v38, %v3152_v37 }
 0x11f   :  { %v10296_v39 = vpack.c.bf16 %v872_v29, %v871_v28  ;;  %v11112_v40 = vpop.f32.mrb[23].mxu0  ;;  %v873_v55 = vmax.f32 %v579_v36, 0.0 }
 0x120   :  { %v15160_v41 = vld [vmem:[#allocation2 + $0x28] sm:$0xff]   ;;  %v15170_v51 = vsel %vm3131_vm2, %v3150_v18, %v3154_v42 }
 0x121   :  { %10477 = vst [vmem:[#allocation2 + $0x30] sm:$0xff] %v10296_v39   ;;  %11218 = vmatmul.mubr.bf16.gmra.mrb[128].mxu0 %v14333_v34  ;;  %v3843_v44 = vld [vmem:[#allocation2 + $0x28] sm:$0xf]  ;;  %v3844_v45 = vld [vmem:[#allocation2 + $0x2c] sm:$0xf]  ;;  %v18613_v46 = vshrl.u32 %v15160_v41, 16 }
 0x122   :  { %11221 = vmatprep.mubr.msk.bf16.mxu0 %vm14735_vm0, %v18626_v1  ;;  %v18610_v47 = vshll.u32 %v15160_v41, 16  ;;  %v15166_v48 = vcombine.low %v3843_v44, %v3844_v45  ;;  %v2508_v49 = vrot.slane %v15160_v41, 3  ;;  %18751 = vst [vmem:[#allocation14_spill] sm:$0xff] %v15170_v51  ;;  %v14335_v34 = vld [vmem:[%s18598_s0 + $0x110] sm:$0xff]  }
 0x123   :  { %v3156_v4 = vrot.slane %v18613_v46, 3 }
 0x124   :  { %v584_v52 = vpop.f32.mrb[24].mxu0  ;;  %v15176_v62 = vsel %vm2498_vm1, %v2506_v24, %v2508_v49  ;;  %v3157_v5 = vrot.slane %v18610_v47, 4 }
 0x125   :  { %v874_v56 = vmax.f32 %v584_v52, 0.0  ;;  %v11115_v57 = vpop.f32.mrb[25].mxu0  ;;  %18752 = vst [vmem:[#allocation15_spill] sm:$0xff] %v15176_v62 }
 0x126   :  { %v587_v2 = vpop.f32.mrb[26].mxu0  ;;  %v3158_v12 = vor.u32 %v3157_v5, %v3156_v4 }
 0x127   :  { %v10301_v6 = vpack.c.bf16 %v874_v56, %v873_v55  ;;  %v11116_v7 = vpop.f32.mrb[27].mxu0  ;;  %v875_v28 = vmax.f32 %v587_v2, 0.0 }
 0x128   :  { %v15182_v11 = vld [vmem:[#allocation2 + $0x30] sm:$0xff]   ;;  %v15192_v24 = vsel %vm3131_vm2, %v3154_v42, %v3158_v12 }
 0x129   :  { %10478 = vst [vmem:[#allocation2 + $0x38] sm:$0xff] %v10301_v6   ;;  %11222 = vmatmul.mubr.bf16.gmra.mrb[132].mxu0 %v14334_v58  ;;  %v3845_v14 = vld [vmem:[#allocation2 + $0x30] sm:$0xf]  ;;  %v3846_v15 = vld [vmem:[#allocation2 + $0x34] sm:$0xf]  ;;  %v18609_v16 = vshrl.u32 %v15182_v11, 16 }
 0x12a   :  { %11225 = vmatprep.mubr.msk.bf16.mxu0 %vm14735_vm0, %v18626_v1  ;;  %v18608_v18 = vshll.u32 %v15182_v11, 16  ;;  %v15188_v19 = vcombine.low %v3845_v14, %v3846_v15  ;;  %v2510_v20 = vrot.slane %v15182_v11, 3  ;;  %18753 = vst [vmem:[#allocation16_spill] sm:$0xff] %v15192_v24  ;;  %v14336_v14 = vld [vmem:[%s18598_s0 + $0x118] sm:$0xff]  }
 0x12b   :  { %v3160_v38 = vrot.slane %v18609_v16, 3 }
 0x12c   :  { %v592_v27 = vpop.f32.mrb[28].mxu0  ;;  %v15198_v36 = vsel %vm2498_vm1, %v2508_v49, %v2510_v20  ;;  %v3161_v39 = vrot.slane %v18608_v18, 4 }
 0x12d   :  { %v876_v29 = vmax.f32 %v592_v27, 0.0  ;;  %v11119_v32 = vpop.f32.mrb[29].mxu0  ;;  %18754 = vst [vmem:[#allocation17_spill] sm:$0xff] %v15198_v36 }
 0x12e   :  { %v595_v37 = vpop.f32.mrb[30].mxu0  ;;  %v3162_v45 = vor.u32 %v3161_v39, %v3160_v38 }
 0x12f   :  { %v10306_v40 = vpack.c.bf16 %v876_v29, %v875_v28  ;;  %v11120_v42 = vpop.f32.mrb[31].mxu0  ;;  %v877_v5 = vmax.f32 %v595_v37, 0.0 }
 0x130   :  { %v15204_v44 = vld [vmem:[#allocation2 + $0x38] sm:$0xff]   ;;  %v15214_v2 = vsel %vm3131_vm2, %v3158_v12, %v3162_v45 }
 0x131   :  { %10479 = vst [vmem:[#allocation2 + $0x40] sm:$0xff] %v10306_v40   ;;  %11226 = vmatmul.mubr.bf16.gmra.mrb[136].mxu0 %v14335_v34  ;;  %v3847_v52 = vld [vmem:[#allocation2 + $0x38] sm:$0xf]  ;;  %v3848_v55 = vld [vmem:[#allocation2 + $0x3c] sm:$0xf]  ;;  %v18607_v49 = vshrl.u32 %v15204_v44, 16 }
 0x132   :  { %11229 = vmatprep.mubr.msk.bf16.mxu0 %vm14735_vm0, %v18626_v1  ;;  %v18604_v56 = vshll.u32 %v15204_v44, 16  ;;  %v15210_v57 = vcombine.low %v3847_v52, %v3848_v55  ;;  %v2512_v58 = vrot.slane %v15204_v44, 3  ;;  %18755 = vst [vmem:[#allocation18_spill] sm:$0xff] %v15214_v2  ;;  %v18769_v2 = vmov 0.0  }
 0x133   :  { %v3164_v28 = vrot.slane %v18607_v49, 3 }
 0x134   :  { %v600_v4 = vpop.f32.mrb[32].mxu0  ;;  %v15220_v15 = vsel %vm2498_vm1, %v2510_v20, %v2512_v58  ;;  %v3165_v29 = vrot.slane %v18604_v56, 4 }
 0x135   :  { %v878_v6 = vmax.f32 %v600_v4, 0.0  ;;  %v11123_v7 = vpop.f32.mrb[33].mxu0  ;;  %18756 = vst [vmem:[#allocation19_spill] sm:$0xff] %v15220_v15 }
 0x136   :  { %v603_v27 = vpop.f32.mrb[34].mxu0  ;;  %v3166_v37 = vor.u32 %v3165_v29, %v3164_v28 }
 0x137   :  { %v10311_v12 = vpack.c.bf16 %v878_v6, %v877_v5  ;;  %v11124_v32 = vpop.f32.mrb[35].mxu0  ;;  %v879_v5 = vmax.f32 %v603_v27, 0.0 }
 0x138   :  { %v15226_v34 = vld [vmem:[#allocation2 + $0x40] sm:$0xff]   ;;  %v15236_v55 = vsel %vm3131_vm2, %v3162_v45, %v3166_v37 }
 0x139   :  { %10480 = vst [vmem:[#allocation2 + $0x48] sm:$0xff] %v10311_v12   ;;  %11230 = vmatmul.mubr.bf16.gmra.mrb[140].mxu0 %v14336_v14  ;;  %v3849_v38 = vld [vmem:[#allocation2 + $0x40] sm:$0xf]  ;;  %v3850_v39 = vld [vmem:[#allocation2 + $0x44] sm:$0xf]  ;;  %v18605_v20 = vshrl.u32 %v15226_v34, 16 }
 0x13a   :  { %11233 = vmatprep.mubr.msk.bf16.mxu0 %vm14735_vm0, %v18626_v1  ;;  %v18606_v40 = vshll.u32 %v15226_v34, 16  ;;  %v15232_v42 = vcombine.low %v3849_v38, %v3850_v39  ;;  %v2514_v52 = vrot.slane %v15226_v34, 3  ;;  %18757 = vst [vmem:[#allocation20_spill] sm:$0xff] %v15236_v55  ;;  %v14337_v14 = vld [vmem:[%s18598_s0 + $0x120] sm:$0xff]  }
 0x13b   :  { %v3168_v12 = vrot.slane %v18605_v20, 3 }
 0x13c   :  { %v608_v4 = vpop.f32.mrb[36].mxu0  ;;  %v15242_v28 = vsel %vm2498_vm1, %v2512_v58, %v2514_v52  ;;  %v3169_v32 = vrot.slane %v18606_v40, 4 }
 0x13d   :  { %v880_v6 = vmax.f32 %v608_v4, 0.0  ;;  %v11127_v7 = vpop.f32.mrb[37].mxu0  ;;  %18758 = vst [vmem:[#allocation21_spill] sm:$0xff] %v15242_v28 }
 0x13e   :  { %v611_v29 = vpop.f32.mrb[38].mxu0  ;;  %v3170_v27 = vor.u32 %v3169_v32, %v3168_v12 }
 0x13f   :  { %v10316_v45 = vpack.c.bf16 %v880_v6, %v879_v5  ;;  %v11128_v38 = vpop.f32.mrb[39].mxu0  ;;  %v881_v12 = vmax.f32 %v611_v29, 0.0 }
 0x140   :  { %v15248_v39 = vld [vmem:[#allocation2 + $0x48] sm:$0xff]   ;;  %v15258_v5 = vsel %vm3131_vm2, %v3166_v37, %v3170_v27 }
 0x141   :  { %10481 = vst [vmem:[#allocation2 + $0x50] sm:$0xff] %v10316_v45   ;;  %11234 = vmatmul.mubr.bf16.gmra.mrb[144].mxu0 %v14337_v14  ;;  %v3851_v4 = vld [vmem:[#allocation2 + $0x48] sm:$0xf]  ;;  %v3852_v7 = vld [vmem:[#allocation2 + $0x4c] sm:$0xf]  ;;  %v18611_v58 = vshrl.u32 %v15248_v39, 16 }
 0x142   :  { %11237 = vmatprep.mubr.msk.bf16.mxu0 %vm14735_vm0, %v18626_v1  ;;  %v18612_v56 = vshll.u32 %v15248_v39, 16  ;;  %v15254_v20 = vcombine.low %v3851_v4, %v3852_v7  ;;  %v2516_v40 = vrot.slane %v15248_v39, 3  ;;  %18759 = vst [vmem:[#allocation22_spill] sm:$0xff] %v15258_v5  ;;  %v14338_v45 = vld [vmem:[%s18598_s0 + $0x128] sm:$0xff]  }
 0x143   :  { %v3172_v4 = vrot.slane %v18611_v58, 3 }
 0x144   :  { %v616_v6 = vpop.f32.mrb[40].mxu0  ;;  %v15264_v38 = vsel %vm2498_vm1, %v2514_v52, %v2516_v40  ;;  %v3173_v7 = vrot.slane %v18612_v56, 4 }
 0x145   :  { %v882_v32 = vmax.f32 %v616_v6, 0.0  ;;  %v11131_v14 = vpop.f32.mrb[41].mxu0  ;;  %18760 = vst [vmem:[#allocation23_spill] sm:$0xff] %v15264_v38 }
 0x146   :  { %v619_v49 = vpop.f32.mrb[42].mxu0  ;;  %v3174_v29 = vor.u32 %v3173_v7, %v3172_v4  ;;  %v14341_v7 = vld [vmem:[%s18598_s0 + $0x130] sm:$0xff]  }
 0x147   :  { %v10321_v37 = vpack.c.bf16 %v882_v32, %v881_v12  ;;  %v11132_v18 = vpop.f32.mrb[43].mxu0  ;;  %v883_v32 = vmax.f32 %v619_v49, 0.0 }
 0x148   :  { %v15270_v16 = vld [vmem:[#allocation2 + $0x50] sm:$0xff]   ;;  %v15280_v18 = vsel %vm3131_vm2, %v3170_v27, %v3174_v29 }
 0x149   :  { %10482 = vst [vmem:[#allocation2 + $0x58] sm:$0xff] %v10321_v37   ;;  %11238 = vmatmul.mubr.bf16.gmra.mrb[148].mxu0 %v14338_v45  ;;  %v3853_v6 = vld [vmem:[#allocation2 + $0x50] sm:$0xf]  ;;  %v3854_v14 = vld [vmem:[#allocation2 + $0x54] sm:$0xf]  ;;  %v18617_v52 = vshrl.u32 %v15270_v16, 16 }
 0x14a   :  { %11241 = vmatprep.mubr.msk.bf16.mxu0 %vm14735_vm0, %v18626_v1  ;;  %v18618_v47 = vshll.u32 %v15270_v16, 16  ;;  %v15276_v58 = vcombine.low %v3853_v6, %v3854_v14  ;;  %v2518_v56 = vrot.slane %v15270_v16, 3  ;;  %18761 = vst [vmem:[#allocation24_spill] sm:$0xff] %v15280_v18  ;;  %v18767_v18 = vshrl.u32 %v15073_v3, 16 }
 0x14b   :  { %v3176_v6 = vrot.slane %v18617_v52, 3 }
 0x14c   :  { %v624_v12 = vpop.f32.mrb[44].mxu0  ;;  %v15286_v37 = vsel %vm2498_vm1, %v2516_v40, %v2518_v56  ;;  %v3177_v14 = vrot.slane %v18618_v47, 4  ;;  %v1671_v5 = vrot.slane %v18767_v18, 2 }
 0x14d   :  { %v884_v4 = vmax.f32 %v624_v12, 0.0  ;;  %v11135_v45 = vpop.f32.mrb[45].mxu0  ;;  %18762 = vst [vmem:[#allocation25_spill] sm:$0xff] %v15286_v37 }
 0x14e   :  { %v627_v46 = vpop.f32.mrb[46].mxu0  ;;  %v3178_v49 = vor.u32 %v3177_v14, %v3176_v6 }
 0x14f   :  { %v10326_v27 = vpack.c.bf16 %v884_v4, %v883_v32  ;;  %v11136_v22 = vpop.f32.mrb[47].mxu0  ;;  %v1349_v4 = vld [vmem:[#allocation2] sm:$0xc]  ;;  %v885_v6 = vmax.f32 %v627_v46, 0.0 }
 0x150   :  { %v15292_v21 = vld [vmem:[#allocation2 + $0x58] sm:$0xff]   ;;  %v15302_v22 = vsel %vm3131_vm2, %v3174_v29, %v3178_v49  ;;  %v9781_v46 = vcombine.low %v1349_v4, %v15065_v50 }
 0x151   :  { %10483 = vst [vmem:[#allocation2 + $0x60] sm:$0xff] %v10326_v27   ;;  %11242 = vmatmul.mubr.bf16.gmra.mrb[152].mxu0 %v14341_v7  ;;  %v3855_v12 = vld [vmem:[#allocation2 + $0x58] sm:$0xf]  ;;  %v3856_v45 = vld [vmem:[#allocation2 + $0x5c] sm:$0xf]  ;;  %v18624_v40 = vshrl.u32 %v15292_v21, 16 }
 0x152   :  { %11245 = vmatprep.mubr.msk.bf16.mxu0 %vm14735_vm0, %v18626_v1  ;;  %v18625_v60 = vshll.u32 %v15292_v21, 16  ;;  %v15298_v52 = vcombine.low %v3855_v12, %v3856_v45  ;;  %v2520_v47 = vrot.slane %v15292_v21, 3  ;;  %18763 = vst [vmem:[#allocation26_spill] sm:$0xff] %v15302_v22  ;;  %v14344_v27 = vld [vmem:[%s18598_s0 + $0x138] sm:$0xff]  }
 0x153   :  { %v3180_v12 = vrot.slane %v18624_v40, 3 }
 0x154   :  { %v632_v32 = vpop.f32.mrb[48].mxu0  ;;  %v15308_v59 = vsel %vm2498_vm1, %v2518_v56, %v2520_v47  ;;  %v3181_v29 = vrot.slane %v18625_v60, 4 }
 0x155   :  { %v886_v7 = vmax.f32 %v632_v32, 0.0  ;;  %v11139_v14 = vpop.f32.mrb[49].mxu0  ;;  %18764 = vst [vmem:[#allocation27_spill] sm:$0xff] %v15308_v59 }
 0x156   :  { %v635_v33 = vpop.f32.mrb[50].mxu0  ;;  %v3182_v14 = vor.u32 %v3181_v29, %v3180_v12 }
 0x157   :  { %v10331_v45 = vpack.c.bf16 %v886_v7, %v885_v6  ;;  %v11140_v31 = vpop.f32.mrb[51].mxu0  ;;  %v1661_v6 = vshrl.u32 %v9781_v46, 16  ;;  %v887_v12 = vmax.f32 %v635_v33, 0.0  ;;  %v18768_v33 = vshll.u32 %v15073_v3, 16 }
 0x158   :  { %v15315_v32 = vld [vmem:[#allocation2 + $0x60] sm:$0xff]   ;;  %v1664_v31 = vshll.u32 %v9781_v46, 16  ;;  %v15325_v4 = vsel %vm3131_vm2, %v3178_v49, %v3182_v14 }
 0x159   :  { %10484 = vst [vmem:[#allocation2 + $0x68] sm:$0xff] %v10331_v45   ;;  %11246 = vmatmul.mubr.bf16.gmra.mrb[156].mxu0 %v14344_v27  ;;  %v3857_v9 = vld [vmem:[#allocation2 + $0x60] sm:$0xf]  ;;  %v3858_v8 = vld [vmem:[#allocation2 + $0x64] sm:$0xf]  ;;  %v18628_v56 = vshrl.u32 %v15315_v32, 16 }
 0x15a   :  { %11249 = vmatprep.mubr.msk.bf16.mxu0 %vm14735_vm0, %v18626_v1  ;;  %v18629_v40 = vshll.u32 %v15315_v32, 16  ;;  %v15321_v0 = vcombine.low %v3857_v9, %v3858_v8  ;;  %v2522_v50 = vrot.slane %v15315_v32, 3  ;;  %18765 = vst [vmem:[#allocation28_spill] sm:$0xff] %v15325_v4  ;;  %v14347_v27 = vld [vmem:[%s18598_s0 + $0x140] ss:$0 sps:$4 sm:$0xff]   ;;  %v1663_v4 = vrot.slane %v1661_v6, 2 }
 0x15b   :  { %v3184_v9 = vrot.slane %v18628_v56, 3  ;;  %v1666_v22 = vrot.slane %v1664_v31, 3 }
 0x15c   :  { %v640_v7 = vpop.f32.mrb[52].mxu0  ;;  %v15331_v60 = vsel %vm2498_vm1, %v2520_v47, %v2522_v50  ;;  %v3185_v46 = vrot.slane %v18629_v40, 4 }
 0x15d   :  { %v888_v29 = vmax.f32 %v640_v7, 0.0  ;;  %v11143_v45 = vpop.f32.mrb[53].mxu0  ;;  %18766 = vst [vmem:[#allocation29_spill] sm:$0xff] %v15331_v60  ;;  %v1674_v7 = vrot.slane %v18768_v33, 3 }
 0x15e   :  { %v643_v8 = vpop.f32.mrb[54].mxu0  ;;  %v3186_v47 = vor.u32 %v3185_v46, %v3184_v9 }
 0x15f   :  { %v10336_v49 = vpack.c.bf16 %v888_v29, %v887_v12  ;;  %v11144_v1 = vpop.f32.mrb[55].mxu0  ;;  %v1667_v29 = vor.u32 %v1666_v22, %v1663_v4  ;;  %v889_v9 = vmax.f32 %v643_v8, 0.0  ;;  %v18773_v22 = vshll.u32 %v15090_v26, 16 }
 0x160   :  { %v15341_v45 = vld [vmem:[#allocation2 + $0x68] sm:$0xff]   ;;  %v15351_v3 = vsel %vm3131_vm2, %v3182_v14, %v3186_v47 }
 0x161   :  { %10485 = vst [vmem:[#allocation2 + $0x70] sm:$0xff] %v10336_v49   ;;  %11250 = vmatmul.mubr.bf16.gmra.mrb[160].mxu0 %v14347_v27  ;;  %v3859_v55 = vld [vmem:[#allocation2 + $0x68] sm:$0xf]  ;;  %v3860_v56 = vld [vmem:[#allocation2 + $0x6c] sm:$0xf]  ;;  %v18631_v1 = vshrl.u32 %v15341_v45, 16  ;;  %v1675_v27 = vor.u32 %v1674_v7, %v1671_v5 }
 0x162   :  { %11269 = vmatprep.mubr.msk.bf16.mxu0 %vm14735_vm0, %v18769_v2  ;;  %v18630_v6 = vshll.u32 %v15341_v45, 16  ;;  %v15347_v31 = vcombine.low %v3859_v55, %v3860_v56  ;;  %v2524_v18 = vrot.slane %v15341_v45, 3  ;;  %18770 = vst [vmem:[#allocation30_spill] sm:$0xff] %v15351_v3  ;;  %v18772_v3 = vshrl.u32 %v15090_v26, 16 }
 0x163   :  { %v3188_v55 = vrot.slane %v18631_v1, 3  ;;  %v1676_v5 = vsel %vm1659_vm3, %v1667_v29, %v1675_v27  ;;  %v1683_v4 = vrot.slane %v18773_v22, 3 }
 0x164   :  { %v648_v12 = vpop.f32.mrb[56].mxu0  ;;  %v15354_v33 = vsel %vm2498_vm1, %v2522_v50, %v2524_v18  ;;  %v3189_v56 = vrot.slane %v18630_v6, 4  ;;  %v1680_v51 = vrot.slane %v18772_v3, 2 }
 0x165   :  { %v890_v46 = vmax.f32 %v648_v12, 0.0  ;;  %v11147_v49 = vpop.f32.mrb[57].mxu0  ;;  %18771 = vst [vmem:[#allocation31_spill] sm:$0xff] %v15354_v33 }
 0x166   :  { %v651_v40 = vpop.f32.mrb[58].mxu0  ;;  %v3190_v50 = vor.u32 %v3189_v56, %v3188_v55  ;;  %v1684_v55 = vor.u32 %v1683_v4, %v1680_v51 }
 0x167   :  { %v10341_v24 = vpack.c.bf16 %v890_v46, %v889_v9  ;;  %v11148_v14 = vpop.f32.mrb[59].mxu0 }
 0x168   :  { %v15365_v8 = vld [vmem:[#allocation2 + $0x70] sm:$0xff]   ;;  %v15375_v26 = vsel %vm3131_vm2, %v3186_v47, %v3190_v50  ;;  %v18776_v47 = vshrl.u32 %v15110_v53, 16  ;;  %v1685_v51 = vsel %vm1659_vm3, %v1675_v27, %v1684_v55 }
 0x169   :  { %10486 = vst [vmem:[#allocation2 + $0x78] sm:$0xff] %v10341_v24   ;;  %11270 = vmatmul.mubr.bf16.vlgmr.msra.gmra.mrb[164].mxu0 %v1676_v5  ;;  %v3861_v7 = vld [vmem:[#allocation2 + $0x70] sm:$0xf]  ;;  %v3862_v12 = vld [vmem:[#allocation2 + $0x74] sm:$0xf]  ;;  %v18632_v9 = vshrl.u32 %v15365_v8, 16 }
 0x16a   :  { %11273 = vmatprep.mubr.msk.bf16.mxu0 %vm14735_vm0, %v18769_v2  ;;  %v18633_v46 = vshll.u32 %v15365_v8, 16  ;;  %v15371_v3 = vcombine.low %v3861_v7, %v3862_v12  ;;  %v2526_v29 = vrot.slane %v15365_v8, 3  ;;  %18774 = vst [vmem:[#allocation32_spill] sm:$0xff] %v15375_v26  ;;  %v891_v24 = vmax.f32 %v651_v40, 0.0 }
 0x16b   :  { %v3192_v6 = vrot.slane %v18632_v9, 3  ;;  %v1689_v26 = vrot.slane %v18776_v47, 2  ;;  %v18777_v40 = vshll.u32 %v15110_v53, 16 }
 0x16c   :  { %v656_v49 = vpop.f32.mrb[60].mxu0  ;;  %v15378_v5 = vsel %vm2498_vm1, %v2524_v18, %v2526_v29  ;;  %v3193_v7 = vrot.slane %v18633_v46, 4 }
 0x16d   :  { %v892_v56 = vmax.f32 %v656_v49, 0.0  ;;  %v11151_v14 = vpop.f32.mrb[61].mxu0  ;;  %18775 = vst [vmem:[#allocation33_spill] sm:$0xff] %v15378_v5  ;;  %v1692_v4 = vrot.slane %v18777_v40, 3 }
 0x16e   :  { %v659_v22 = vpop.f32.mrb[62].mxu0  ;;  %v3194_v18 = vor.u32 %v3193_v7, %v3192_v6 }
 0x16f   :  { %v10346_v12 = vpack.c.bf16 %v892_v56, %v891_v24  ;;  %v11152_v1 = vpop.f32.mrb[63].mxu0  ;;  %v1693_v6 = vor.u32 %v1692_v4, %v1689_v26  ;;  %v893_v7 = vmax.f32 %v659_v22, 0.0  ;;  %v4157_v26 = vshrl.u32 %v15118_v61, 16 }
 0x170   :  { %v15389_v49 = vld [vmem:[#allocation2 + $0x78] sm:$0xff]   ;;  %v15399_v53 = vsel %vm3131_vm2, %v3190_v50, %v3194_v18  ;;  %v18780_v50 = vshrl.u32 %v15138_v17, 16  ;;  %v4160_v22 = vshll.u32 %v15118_v61, 16 }
 0x171   :  { %10487 = vst [vmem:[#allocation2 + $0x80] sm:$0xff] %v10346_v12   ;;  %11274 = vmatmul.mubr.bf16.gmra.mrb[168].mxu0 %v1685_v51  ;;  %v3863_v14 = vld [vmem:[#allocation2 + $0x78] sm:$0xf]  ;;  %v3864_v9 = vld [vmem:[#allocation2 + $0x7c] sm:$0xf]  ;;  %v18634_v1 = vshrl.u32 %v15389_v49, 16  ;;  %v1694_v4 = vsel %vm1659_vm3, %v1684_v55, %v1693_v6 }
 0x172   :  { %11277 = vmatprep.mubr.msk.bf16.mxu0 %vm14735_vm0, %v18769_v2  ;;  %v18635_v24 = vshll.u32 %v15389_v49, 16  ;;  %v15395_v56 = vcombine.low %v3863_v14, %v3864_v9  ;;  %v2528_v27 = vrot.slane %v15389_v49, 3  ;;  %18778 = vst [vmem:[#allocation34_spill] sm:$0xff] %v15399_v53  ;;  %v1698_v53 = vrot.slane %v18780_v50, 2 }
 0x173   :  { %v3196_v25 = vrot.slane %v18634_v1, 3  ;;  %v4159_v50 = vrot.slane %v4157_v26, 3  ;;  %v18786_v26 = vshrl.u32 %v15160_v41, 16  ;;  %v18837_v37 = vshrl.u32 %v15389_v49, 16 }
 0x174   :  { %v664_v47 = vpop.f32.mrb[64].mxu0  ;;  %v15402_v40 = vsel %vm2498_vm1, %v2526_v29, %v2528_v27  ;;  %v3197_v9 = vrot.slane %v18635_v24, 4  ;;  %v18781_v29 = vshll.u32 %v15138_v17, 16 }
 0x175   :  { %v894_v12 = vmax.f32 %v664_v47, 0.0  ;;  %v11155_v51 = vpop.f32.mrb[65].mxu0  ;;  %18779 = vst [vmem:[#allocation35_spill] sm:$0xff] %v15402_v40 }
 0x176   :  { %v667_v46 = vpop.f32.mrb[66].mxu0  ;;  %v1701_v47 = vrot.slane %v18781_v29, 3  ;;  %v3198_v1 = vor.u32 %v3197_v9, %v3196_v25  ;;  %v4162_v25 = vrot.slane %v4160_v22, 4  ;;  %v1707_v22 = vrot.slane %v18786_v26, 2 }
 0x177   :  { %v10351_v14 = vpack.c.bf16 %v894_v12, %v893_v7  ;;  %v11156_v63 = vpop.f32.mrb[67].mxu0 }
 0x178   :  { %v15415_v51 = vld [vmem:[#allocation2 + $0x80] sm:$0xff]   ;;  %v15425_v17 = vsel %vm3131_vm2, %v3194_v18, %v3198_v1 }
 0x179   :  { %10488 = vst [vmem:[#allocation2 + $0x88] sm:$0xff] %v10351_v14   ;;  %11278 = vmatmul.mubr.bf16.gmra.mrb[172].mxu0 %v1694_v4  ;;  %v3865_v24 = vld [vmem:[#allocation2 + $0x80] sm:$0xf]  ;;  %v3866_v7 = vld [vmem:[#allocation2 + $0x84] sm:$0xf]  ;;  %v2530_v55 = vrot.slane %v15415_v51, 3  ;;  %v1702_v14 = vor.u32 %v1701_v47, %v1698_v53 }
 0x17a   :  { %11281 = vmatprep.mubr.msk.bf16.mxu0 %vm14735_vm0, %v18769_v2  ;;  %v15421_v61 = vcombine.low %v3865_v24, %v3866_v7  ;;  %18782 = vst [vmem:[#allocation36_spill] sm:$0xff] %v15425_v17  ;;  %v895_v4 = vmax.f32 %v667_v46, 0.0  ;;  %v18784_v12 = vshrl.u32 %v15415_v51, 16  ;;  %v18785_v7 = vshll.u32 %v15415_v51, 16 }
 0x17b   :  { %v15428_v40 = vsel %vm2498_vm1, %v2528_v27, %v2530_v55  ;;  %v4163_v17 = vor.u32 %v4162_v25, %v4159_v50  ;;  %v1703_v46 = vsel %vm1659_vm3, %v1693_v6, %v1702_v14  ;;  %v4166_v25 = vshrl.u32 %v15144_v23, 16 }
 0x17c   :  { %v672_v9 = vpop.f32.mrb[68].mxu0  ;;  %18783 = vst [vmem:[#allocation37_spill] sm:$0xff] %v15428_v40  ;;  %v3200_v24 = vrot.slane %v18784_v12, 3  ;;  %v3201_v5 = vrot.slane %v18785_v7, 4 }
 0x17d   :  { %v896_v29 = vmax.f32 %v672_v9, 0.0  ;;  %v11159_v30 = vpop.f32.mrb[69].mxu0 }
 0x17e   :  { %v675_v63 = vpop.f32.mrb[70].mxu0  ;;  %v18787_v30 = vshll.u32 %v15160_v41, 16  ;;  %v3202_v47 = vor.u32 %v3201_v5, %v3200_v24 }
 0x17f   :  { %v10356_v33 = vpack.c.bf16 %v896_v29, %v895_v4  ;;  %v11160_v18 = vpop.f32.mrb[71].mxu0  ;;  %v15443_v4 = vsel %vm3131_vm2, %v15112_v54, %v4163_v17  ;;  %v4169_v54 = vshll.u32 %v15144_v23, 16  ;;  %v897_v7 = vmax.f32 %v675_v63, 0.0 }
 0x180   :  { %v1710_v53 = vrot.slane %v18787_v30, 3  ;;  %v15439_v27 = vld [vmem:[#allocation2 + $0x88] sm:$0xff]   ;;  %18788 = vst [vmem:[#allocation38_spill] sm:$0xff] %v15443_v4  ;;  %v15454_v5 = vsel %vm3131_vm2, %v3198_v1, %v3202_v47  ;;  %v18792_v23 = vshll.u32 %v15182_v11, 16 }
 0x181   :  { %10489 = vst [vmem:[#allocation2 + $0x90] sm:$0xff] %v10356_v33   ;;  %11282 = vmatmul.mubr.bf16.gmra.mrb[176].mxu0 %v1703_v46  ;;  %v3867_v12 = vld [vmem:[#allocation2 + $0x88] sm:$0xf]  ;;  %v3868_v9 = vld [vmem:[#allocation2 + $0x8c] sm:$0xf]  ;;  %v18636_v50 = vshrl.u32 %v15439_v27, 16 }
 0x182   :  { %11285 = vmatprep.mubr.msk.bf16.mxu0 %vm14735_vm0, %v18769_v2  ;;  %v18638_v6 = vshll.u32 %v15439_v27, 16  ;;  %v15449_v41 = vcombine.low %v3867_v12, %v3868_v9  ;;  %v2532_v33 = vrot.slane %v15439_v27, 3  ;;  %18789 = vst [vmem:[#allocation39_spill] sm:$0xff] %v15454_v5  ;;  %v1711_v24 = vor.u32 %v1710_v53, %v1707_v22 }
 0x183   :  { %v3204_v12 = vrot.slane %v18636_v50, 3  ;;  %v18791_v5 = vshrl.u32 %v15182_v11, 16  ;;  %v1719_v63 = vrot.slane %v18792_v23, 3  ;;  %v4168_v53 = vrot.slane %v4166_v25, 3 }
 0x184   :  { %v680_v29 = vpop.f32.mrb[72].mxu0  ;;  %v15458_v46 = vsel %vm2498_vm1, %v2530_v55, %v2532_v33  ;;  %v3205_v9 = vrot.slane %v18638_v6, 4 }
 0x185   :  { %v898_v18 = vmax.f32 %v680_v29, 0.0  ;;  %v11163_v26 = vpop.f32.mrb[73].mxu0  ;;  %18790 = vst [vmem:[#allocation40_spill] sm:$0xff] %v15458_v46  ;;  %v1716_v22 = vrot.slane %v18791_v5, 2  ;;  %v1712_v29 = vsel %vm1659_vm3, %v1702_v14, %v1711_v24  ;;  %v4171_v46 = vrot.slane %v4169_v54, 4 }
 0x186   :  { %v683_v30 = vpop.f32.mrb[74].mxu0  ;;  %v3206_v26 = vor.u32 %v3205_v9, %v3204_v12 }
 0x187   :  { %v10361_v4 = vpack.c.bf16 %v898_v18, %v897_v7  ;;  %v11164_v1 = vpop.f32.mrb[75].mxu0  ;;  %v15481_v18 = vor.u32 %v4171_v46, %v4168_v53  ;;  %v1720_v54 = vor.u32 %v1719_v63, %v1716_v22  ;;  %v899_v12 = vmax.f32 %v683_v30, 0.0 }
 0x188   :  { %v15469_v55 = vld [vmem:[#allocation2 + $0x90] sm:$0xff]   ;;  %v15479_v14 = vsel %vm3131_vm2, %v3202_v47, %v3206_v26  ;;  %v18796_v30 = vshrl.u32 %v15204_v44, 16  ;;  %v4175_v63 = vshrl.u32 %v15166_v48, 16 }
 0x189   :  { %10490 = vst [vmem:[#allocation2 + $0x98] sm:$0xff] %v10361_v4   ;;  %11286 = vmatmul.mubr.bf16.gmra.mrb[180].mxu0 %v1712_v29  ;;  %v3869_v50 = vld [vmem:[#allocation2 + $0x90] sm:$0xf]  ;;  %v3870_v40 = vld [vmem:[#allocation2 + $0x94] sm:$0xf]  ;;  %v18637_v7 = vshrl.u32 %v15469_v55, 16  ;;  %v15492_v47 = vsel %vm3131_vm2, %v4163_v17, %v15481_v18 }
 0x18a   :  { %11289 = vmatprep.mubr.msk.bf16.mxu0 %vm14735_vm0, %v18769_v2  ;;  %v18639_v5 = vshll.u32 %v15469_v55, 16  ;;  %v15475_v11 = vcombine.low %v3869_v50, %v3870_v40  ;;  %v2534_v25 = vrot.slane %v15469_v55, 3  ;;  %18793 = vst [vmem:[#allocation41_spill] sm:$0xff] %v15479_v14  ;;  %18795 = vst [vmem:[#allocation43_spill] sm:$0xff] %v15492_v47  ;;  %v1725_v22 = vrot.slane %v18796_v30, 2 }
 0x18b   :  { %v3208_v40 = vrot.slane %v18637_v7, 3 }
 0x18c   :  { %v688_v4 = vpop.f32.mrb[76].mxu0  ;;  %v15484_v23 = vsel %vm2498_vm1, %v2532_v33, %v2534_v25  ;;  %v3209_v50 = vrot.slane %v18639_v5, 4  ;;  %v1721_v33 = vsel %vm1659_vm3, %v1711_v24, %v1720_v54  ;;  %v4178_v24 = vshll.u32 %v15166_v48, 16 }
 0x18d   :  { %v900_v9 = vmax.f32 %v688_v4, 0.0  ;;  %v11167_v1 = vpop.f32.mrb[77].mxu0  ;;  %18794 = vst [vmem:[#allocation42_spill] sm:$0xff] %v15484_v23  ;;  %v18797_v4 = vshll.u32 %v15204_v44, 16 }
 0x18e   :  { %v691_v29 = vpop.f32.mrb[78].mxu0  ;;  %v3210_v6 = vor.u32 %v3209_v50, %v3208_v40 }
 0x18f   :  { %v10366_v46 = vpack.c.bf16 %v900_v9, %v899_v12  ;;  %v11168_v53 = vpop.f32.mrb[79].mxu0  ;;  %v1728_v1 = vrot.slane %v18797_v4, 3  ;;  %v4177_v12 = vrot.slane %v4175_v63, 3 }
 0x190   :  { %v15500_v7 = vld [vmem:[#allocation2 + $0x98] sm:$0xff]   ;;  %v15511_v30 = vsel %vm3131_vm2, %v3206_v26, %v3210_v6  ;;  %v18801_v26 = vshrl.u32 %v15226_v34, 16 }
 0x191   :  { %10491 = vst [vmem:[#allocation2 + $0xa0] sm:$0xff] %v10366_v46   ;;  %11290 = vmatmul.mubr.bf16.gmra.mrb[184].mxu0 %v1721_v33  ;;  %v3871_v5 = vld [vmem:[#allocation2 + $0x98] sm:$0xf]  ;;  %v3872_v17 = vld [vmem:[#allocation2 + $0x9c] sm:$0xf]  ;;  %v18640_v9 = vshll.u32 %v15500_v7, 16  ;;  %v1729_v50 = vor.u32 %v1728_v1, %v1725_v22 }
 0x192   :  { %11293 = vmatprep.mubr.msk.bf16.mxu0 %vm14735_vm0, %v18769_v2  ;;  %v15506_v53 = vcombine.low %v3871_v5, %v3872_v17  ;;  %v2536_v44 = vrot.slane %v15500_v7, 3  ;;  %18798 = vst [vmem:[#allocation44_spill] sm:$0xff] %v15511_v30  ;;  %v901_v46 = vmax.f32 %v691_v29, 0.0  ;;  %v18800_v5 = vshrl.u32 %v15500_v7, 16 }
 0x193   :  { %v3213_v48 = vrot.slane %v18640_v9, 4  ;;  %v1734_v30 = vrot.slane %v18801_v26, 2  ;;  %v4180_v22 = vrot.slane %v4178_v24, 4  ;;  %v1730_v29 = vsel %vm1659_vm3, %v1720_v54, %v1729_v50 }
 0x194   :  { %v696_v40 = vpop.f32.mrb[80].mxu0  ;;  %v15514_v47 = vsel %vm2498_vm1, %v2534_v25, %v2536_v44  ;;  %v3212_v17 = vrot.slane %v18800_v5, 3  ;;  %v18802_v1 = vshll.u32 %v15226_v34, 16 }
 0x195   :  { %v902_v33 = vmax.f32 %v696_v40, 0.0  ;;  %v11171_v4 = vpop.f32.mrb[81].mxu0  ;;  %18799 = vst [vmem:[#allocation45_spill] sm:$0xff] %v15514_v47 }
 0x196   :  { %v699_v14 = vpop.f32.mrb[82].mxu0  ;;  %v1737_v25 = vrot.slane %v18802_v1, 3  ;;  %v3214_v63 = vor.u32 %v3213_v48, %v3212_v17  ;;  %v14375_v4 = vld [vmem:[%s18600_s2 + $0xc0] sm:$0xff]  }
 0x197   :  { %v10371_v23 = vpack.c.bf16 %v902_v33, %v901_v46  ;;  %v11172_v60 = vpop.f32.mrb[83].mxu0  ;;  %v4181_v33 = vor.u32 %v4180_v22, %v4177_v12  ;;  %12969 = vmatpush3.bf16.msra.mxu1 %v14375_v4  ;;  %v4187_v22 = vshll.u32 %v15188_v19, 16 }
 0x198   :  { %v15525_v40 = vld [vmem:[#allocation2 + $0xa0] sm:$0xff]   ;;  %v15539_v17 = vsel %vm3131_vm2, %v3210_v6, %v3214_v63  ;;  %v1738_v26 = vor.u32 %v1737_v25, %v1734_v30  ;;  %12962 = vmatprep.subr.bf16.mxu1 %v18769_v2 }
 0x199   :  { %10492 = vst [vmem:[#allocation2 + $0xa8] sm:$0xff] %v10371_v23   ;;  %11294 = vmatmul.mubr.bf16.gmra.mrb[188].mxu0 %v1730_v29  ;;  %v3873_v46 = vld [vmem:[#allocation2 + $0xa0] sm:$0xf]  ;;  %v3874_v60 = vld [vmem:[#allocation2 + $0xa4] sm:$0xf]  ;;  %v18641_v54 = vshrl.u32 %v15525_v40, 16  ;;  %v15543_v12 = vsel %vm3131_vm2, %v15481_v18, %v4181_v33 }
 0x19a   :  { %11297 = vmatprep.mubr.msk.bf16.mxu0 %vm14735_vm0, %v18769_v2  ;;  %v18642_v34 = vshll.u32 %v15525_v40, 16  ;;  %v15534_v24 = vcombine.low %v3873_v46, %v3874_v60  ;;  %v4184_v23 = vshrl.u32 %v15188_v19, 16  ;;  %v2538_v5 = vrot.slane %v15525_v40, 3  ;;  %18803 = vst [vmem:[#allocation46_spill] sm:$0xff] %v15539_v17  ;;  %18804 = vst [vmem:[#allocation47_spill] sm:$0xff] %v15543_v12  ;;  %v14376_v46 = vld [vmem:[%s18600_s2 + $0xc8] sm:$0xff]  }
 0x19b   :  { %v903_v29 = vmax.f32 %v699_v14, 0.0  ;;  %v3216_v18 = vrot.slane %v18641_v54, 3  ;;  %v18806_v19 = vshrl.u32 %v15248_v39, 16  ;;  %12970 = vmatpush3.bf16.msra.mxu1 %v14376_v46  ;;  %v18866_v15 = vshrl.u32 %v15525_v40, 16 }
 0x19c   :  { %v704_v48 = vpop.f32.mrb[84].mxu0  ;;  %v15551_v6 = vsel %vm2498_vm1, %v2536_v44, %v2538_v5  ;;  %v3217_v30 = vrot.slane %v18642_v34, 4  ;;  %v4186_v12 = vrot.slane %v4184_v23, 3  ;;  %v1739_v44 = vsel %vm1659_vm3, %v1729_v50, %v1738_v26  ;;  %12963 = vmatprep.subr.bf16.mxu1 %v18769_v2  ;;  %v14378_v34 = vld [vmem:[%s18600_s2 + $0xd8] sm:$0xff]  }
 0x19d   :  { %v904_v1 = vmax.f32 %v704_v48, 0.0  ;;  %v11175_v4 = vpop.f32.mrb[85].mxu0  ;;  %18805 = vst [vmem:[#allocation48_spill] sm:$0xff] %v15551_v6  ;;  %v1743_v14 = vrot.slane %v18806_v19, 2  ;;  %v18807_v48 = vshll.u32 %v15248_v39, 16  ;;  %v4189_v6 = vrot.slane %v4187_v22, 4 }
 0x19e   :  { %v707_v60 = vpop.f32.mrb[86].mxu0  ;;  %v3218_v54 = vor.u32 %v3217_v30, %v3216_v18 }
 0x19f   :  { %v10376_v25 = vpack.c.bf16 %v904_v1, %v903_v29  ;;  %v11176_v9 = vpop.f32.mrb[87].mxu0  ;;  %v1746_v4 = vrot.slane %v18807_v48, 3  ;;  %v4190_v18 = vor.u32 %v4189_v6, %v4186_v12  ;;  %v905_v19 = vmax.f32 %v707_v60, 0.0 }
 0x1a0   :  { %v15562_v17 = vld [vmem:[#allocation2 + $0xa8] sm:$0xff]   ;;  %v14377_v9 = vld [vmem:[%s18600_s2 + $0xd0] sm:$0xff]   ;;  %v15576_v46 = vsel %vm3131_vm2, %v3214_v63, %v3218_v54 }
 0x1a1   :  { %10493 = vst [vmem:[#allocation2 + $0xb0] sm:$0xff] %v10376_v25   ;;  %11298 = vmatmul.mubr.bf16.gmra.mrb[192].mxu0 %v1739_v44  ;;  %v3875_v29 = vld [vmem:[#allocation2 + $0xa8] sm:$0xf]  ;;  %v3876_v1 = vld [vmem:[#allocation2 + $0xac] sm:$0xf]  ;;  %v18643_v39 = vshrl.u32 %v15562_v17, 16  ;;  %12971 = vmatpush3.bf16.msra.mxu1 %v14377_v9  ;;  %v1747_v25 = vor.u32 %v1746_v4, %v1743_v14  ;;  %v15591_v6 = vsel %vm3131_vm2, %v4181_v33, %v4190_v18 }
 0x1a2   :  { %11301 = vmatprep.mubr.msk.bf16.mxu0 %vm14735_vm0, %v18769_v2  ;;  %v18644_v50 = vshll.u32 %v15562_v17, 16  ;;  %v15572_v23 = vcombine.low %v3875_v29, %v3876_v1  ;;  %v2540_v22 = vrot.slane %v15562_v17, 3  ;;  %18808 = vst [vmem:[#allocation49_spill] sm:$0xff] %v15576_v46  ;;  %12964 = vmatprep.subr.bf16.mxu1 %v18769_v2  ;;  %v4193_v1 = vshrl.u32 %v15210_v57, 16  ;;  %18810 = vst [vmem:[#allocation51_spill] sm:$0xff] %v15591_v6  ;;  %v14380_v33 = vld [vmem:[%s18600_s2 + $0xe0] sm:$0xff]  }
 0x1a3   :  { %v3220_v63 = vrot.slane %v18643_v39, 3  ;;  %v18811_v4 = vshrl.u32 %v15270_v16, 16  ;;  %v18812_v46 = vshll.u32 %v15270_v16, 16 }
 0x1a4   :  { %v712_v30 = vpop.f32.mrb[88].mxu0  ;;  %v15583_v29 = vsel %vm2498_vm1, %v2538_v5, %v2540_v22  ;;  %v3221_v12 = vrot.slane %v18644_v50, 4  ;;  %v4196_v5 = vshll.u32 %v15210_v57, 16 }
 0x1a5   :  { %v906_v48 = vmax.f32 %v712_v30, 0.0  ;;  %v11179_v44 = vpop.f32.mrb[89].mxu0  ;;  %18809 = vst [vmem:[#allocation50_spill] sm:$0xff] %v15583_v29  ;;  %v1752_v30 = vrot.slane %v18811_v4, 2  ;;  %12972 = vmatpush3.bf16.msra.mxu1 %v14378_v34  ;;  %v1755_v29 = vrot.slane %v18812_v46, 3  ;;  %v4195_v46 = vrot.slane %v4193_v1, 3 }
 0x1a6   :  { %v715_v9 = vpop.f32.mrb[90].mxu0  ;;  %v1748_v44 = vsel %vm1659_vm3, %v1738_v26, %v1747_v25  ;;  %12965 = vmatprep.subr.bf16.mxu1 %v18769_v2  ;;  %v3222_v50 = vor.u32 %v3221_v12, %v3220_v63  ;;  %v4198_v12 = vrot.slane %v4196_v5, 4 }
 0x1a7   :  { %v10381_v60 = vpack.c.bf16 %v906_v48, %v905_v19  ;;  %v11180_v14 = vpop.f32.mrb[91].mxu0  ;;  %v907_v4 = vmax.f32 %v715_v9, 0.0  ;;  %v18815_v9 = vshrl.u32 %v15292_v21, 16 }
 0x1a8   :  { %v15599_v39 = vld [vmem:[#allocation2 + $0xb0] sm:$0xff]   ;;  %v15613_v63 = vsel %vm3131_vm2, %v3218_v54, %v3222_v50  ;;  %v1756_v14 = vor.u32 %v1755_v29, %v1752_v30  ;;  %v4199_v29 = vor.u32 %v4198_v12, %v4195_v46 }
 0x1a9   :  { %10494 = vst [vmem:[#allocation2 + $0xb8] sm:$0xff] %v10381_v60   ;;  %11302 = vmatmul.mubr.bf16.gmra.mrb[196].mxu0 %v1748_v44  ;;  %v3877_v19 = vld [vmem:[#allocation2 + $0xb0] sm:$0xf]  ;;  %v3878_v34 = vld [vmem:[#allocation2 + $0xb4] sm:$0xf]  ;;  %v18645_v57 = vshrl.u32 %v15599_v39, 16  ;;  %12973 = vmatpush3.bf16.msra.mxu1 %v14380_v33 }
 0x1aa   :  { %11305 = vmatprep.mubr.msk.bf16.mxu0 %vm14735_vm0, %v18769_v2  ;;  %v18646_v16 = vshll.u32 %v15599_v39, 16  ;;  %v15609_v26 = vcombine.low %v3877_v19, %v3878_v34  ;;  %v2542_v48 = vrot.slane %v15599_v39, 3  ;;  %18813 = vst [vmem:[#allocation52_spill] sm:$0xff] %v15613_v63  ;;  %12966 = vmatprep.subr.bf16.mxu1 %v18769_v2  ;;  %v14381_v19 = vld [vmem:[%s18600_s2 + $0xe8] sm:$0xff]   ;;  %v4205_v63 = vshll.u32 %v15232_v42, 16 }
 0x1ab   :  { %v3224_v54 = vrot.slane %v18645_v57, 3  ;;  %v15637_v12 = vsel %vm3131_vm2, %v4190_v18, %v4199_v29 }
 0x1ac   :  { %v720_v60 = vpop.f32.mrb[92].mxu0  ;;  %v15620_v1 = vsel %vm2498_vm1, %v2540_v22, %v2542_v48  ;;  %v3225_v5 = vrot.slane %v18646_v16, 4  ;;  %v1757_v22 = vsel %vm1659_vm3, %v1747_v25, %v1756_v14  ;;  %18817 = vst [vmem:[#allocation54_spill] sm:$0xff] %v15637_v12 }
 0x1ad   :  { %v908_v44 = vmax.f32 %v720_v60, 0.0  ;;  %v11183_v6 = vpop.f32.mrb[93].mxu0  ;;  %18814 = vst [vmem:[#allocation53_spill] sm:$0xff] %v15620_v1  ;;  %12974 = vmatpush3.bf16.msra.mxu1 %v14381_v19  ;;  %v4202_v60 = vshrl.u32 %v15232_v42, 16  ;;  %v18816_v1 = vshll.u32 %v15292_v21, 16 }
 0x1ae   :  { %v723_v33 = vpop.f32.mrb[94].mxu0  ;;  %v1761_v6 = vrot.slane %v18815_v9, 2  ;;  %12967 = vmatprep.subr.bf16.mxu1 %v18769_v2  ;;  %v3226_v46 = vor.u32 %v3225_v5, %v3224_v54  ;;  %v4207_v5 = vrot.slane %v4205_v63, 4 }
 0x1af   :  { %v10386_v30 = vpack.c.bf16 %v908_v44, %v907_v4  ;;  %v11184_v34 = vpop.f32.mrb[95].mxu0  ;;  %v1764_v47 = vrot.slane %v18816_v1, 3  ;;  %v14383_v4 = vld [vmem:[%s18600_s2 + $0xf0] sm:$0xff]   ;;  %v4204_v54 = vrot.slane %v4202_v60, 3  ;;  %v909_v9 = vmax.f32 %v723_v33, 0.0 }
 0x1b0   :  { %v15633_v57 = vld [vmem:[#allocation2 + $0xb8] sm:$0xff]   ;;  %v15650_v1 = vsel %vm3131_vm2, %v3222_v50, %v3226_v46  ;;  %v18820_v33 = vshrl.u32 %v15315_v32, 16 }
 0x1b1   :  { %10495 = vst [vmem:[#allocation2 + $0xc0] sm:$0xff] %v10386_v30   ;;  %11306 = vmatmul.mubr.bf16.gmra.mrb[200].mxu0 %v1757_v22  ;;  %v3879_v42 = vld [vmem:[#allocation2 + $0xb8] sm:$0xf]  ;;  %v3880_v44 = vld [vmem:[#allocation2 + $0xbc] sm:$0xf]  ;;  %v18647_v21 = vshrl.u32 %v15633_v57, 16  ;;  %12975 = vmatpush3.bf16.msra.mxu1 %v14383_v4  ;;  %v1765_v34 = vor.u32 %v1764_v47, %v1761_v6 }
 0x1b2   :  { %11309 = vmatprep.mubr.msk.bf16.mxu0 %vm14735_vm0, %v18769_v2  ;;  %v18648_v25 = vshll.u32 %v15633_v57, 16  ;;  %v15646_v19 = vcombine.low %v3879_v42, %v3880_v44  ;;  %v2544_v18 = vrot.slane %v15633_v57, 3  ;;  %18818 = vst [vmem:[#allocation55_spill] sm:$0xff] %v15650_v1  ;;  %12968 = vmatprep.subr.bf16.mxu1 %v18769_v2  ;;  %v14384_v42 = vld [vmem:[%s18600_s2 + $0xf8] sm:$0xff]   ;;  %v1770_v60 = vrot.slane %v18820_v33, 2 }
 0x1b3   :  { %v3228_v50 = vrot.slane %v18647_v21, 3 }
 0x1b4   :  { %v728_v30 = vpop.f32.mrb[96].mxu0  ;;  %v15657_v4 = vsel %vm2498_vm1, %v2542_v48, %v2544_v18  ;;  %v3229_v63 = vrot.slane %v18648_v25, 4  ;;  %v18821_v48 = vshll.u32 %v15315_v32, 16 }
 0x1b5   :  { %v910_v22 = vmax.f32 %v728_v30, 0.0  ;;  %v11187_v16 = vpop.f32.mrb[97].mxu0  ;;  %18819 = vst [vmem:[#allocation56_spill] sm:$0xff] %v15657_v4  ;;  %12976 = vmatpush3.bf16.msra.mxu1 %v14384_v42  ;;  %v1766_v30 = vsel %vm1659_vm3, %v1756_v14, %v1765_v34 }
 0x1b6   :  { %v731_v44 = vpop.f32.mrb[98].mxu0  ;;  %v15665_v16 = vor.u32 %v4207_v5, %v4204_v54  ;;  %v1773_v12 = vrot.slane %v18821_v48, 3  ;;  %11973 = vmatprep.subr.bf16.mxu1 %v18769_v2  ;;  %v3230_v21 = vor.u32 %v3229_v63, %v3228_v50  ;;  %v4211_v5 = vshrl.u32 %v15254_v20, 16 }
 0x1b7   :  { %v10391_v47 = vpack.c.bf16 %v910_v22, %v909_v9  ;;  %v11188_v6 = vpop.f32.mrb[99].mxu0  ;;  %v911_v33 = vmax.f32 %v731_v44, 0.0 }
 0x1b8   :  { %v15670_v1 = vld [vmem:[#allocation2 + $0xc0] sm:$0xff]   ;;  %v15675_v6 = vsel %vm3131_vm2, %v4199_v29, %v15665_v16  ;;  %v15686_v50 = vsel %vm3131_vm2, %v3226_v46, %v3230_v21  ;;  %v4214_v29 = vshll.u32 %v15254_v20, 16  ;;  %v18827_v20 = vshll.u32 %v15341_v45, 16 }
 0x1b9   :  { %10496 = vst [vmem:[#allocation2 + $0xc8] sm:$0xff] %v10391_v47   ;;  %11310 = vmatmul.mubr.bf16.gmra.mrb[204].mxu0 %v1766_v30  ;;  %v3881_v9 = vld [vmem:[#allocation2 + $0xc0] sm:$0xf]  ;;  %v3882_v22 = vld [vmem:[#allocation2 + $0xc4] sm:$0xf]  ;;  %18822 = vst [vmem:[#allocation57_spill] sm:$0xff] %v15675_v6  ;;  %v1774_v47 = vor.u32 %v1773_v12, %v1770_v60 }
 0x1ba   :  { %11313 = vmatprep.mubr.msk.bf16.mxu0 %vm14735_vm0, %v18769_v2  ;;  %v18649_v14 = vshrl.u32 %v15670_v1, 16  ;;  %v15681_v54 = vcombine.low %v3881_v9, %v3882_v22  ;;  %v2546_v42 = vrot.slane %v15670_v1, 3  ;;  %18823 = vst [vmem:[#allocation58_spill] sm:$0xff] %v15686_v50  ;;  %v18825_v22 = vshll.u32 %v15670_v1, 16 }
 0x1bb   :  { %v18826_v50 = vshrl.u32 %v15341_v45, 16  ;;  %v1782_v44 = vrot.slane %v18827_v20, 3  ;;  %v4213_v60 = vrot.slane %v4211_v5, 3 }
 0x1bc   :  { %v736_v63 = vpop.f32.mrb[100].mxu0  ;;  %v15690_v25 = vsel %vm2498_vm1, %v2544_v18, %v2546_v42  ;;  %v3232_v9 = vrot.slane %v18649_v14, 3  ;;  %v3233_v6 = vrot.slane %v18825_v22, 4 }
 0x1bd   :  { %v912_v30 = vmax.f32 %v736_v63, 0.0  ;;  %v11191_v48 = vpop.f32.mrb[101].mxu0  ;;  %18824 = vst [vmem:[#allocation59_spill] sm:$0xff] %v15690_v25  ;;  %v1779_v12 = vrot.slane %v18826_v50, 2  ;;  %v1775_v63 = vsel %vm1659_vm3, %v1765_v34, %v1774_v47  ;;  %v4216_v25 = vrot.slane %v4214_v29, 4 }
 0x1be   :  { %v739_v32 = vpop.f32.mrb[102].mxu0  ;;  %v3234_v48 = vor.u32 %v3233_v6, %v3232_v9 }
 0x1bf   :  { %v10396_v4 = vpack.c.bf16 %v912_v30, %v911_v33  ;;  %v11192_v46 = vpop.f32.mrb[103].mxu0  ;;  %v1783_v29 = vor.u32 %v1782_v44, %v1779_v12  ;;  %v913_v30 = vmax.f32 %v739_v32, 0.0  ;;  %v4223_v12 = vshll.u32 %v15276_v58, 16 }
 0x1c0   :  { %v15701_v18 = vld [vmem:[#allocation2 + $0xc8] sm:$0xff]   ;;  %v15711_v34 = vsel %vm3131_vm2, %v3230_v21, %v3234_v48  ;;  %v18830_v21 = vshrl.u32 %v15365_v8, 16 }
 0x1c1   :  { %10497 = vst [vmem:[#allocation2 + $0xd0] sm:$0xff] %v10396_v4   ;;  %11314 = vmatmul.mubr.bf16.gmra.mrb[208].mxu0 %v1775_v63  ;;  %v3883_v14 = vld [vmem:[#allocation2 + $0xc8] sm:$0xf]  ;;  %v3884_v59 = vld [vmem:[#allocation2 + $0xcc] sm:$0xf]  ;;  %v18650_v33 = vshrl.u32 %v15701_v18, 16  ;;  %v4217_v4 = vor.u32 %v4216_v25, %v4213_v60  ;;  %v1784_v44 = vsel %vm1659_vm3, %v1774_v47, %v1783_v29 }
 0x1c2   :  { %11317 = vmatprep.mubr.msk.bf16.mxu0 %vm14735_vm0, %v18769_v2  ;;  %v15706_v50 = vcombine.low %v3883_v14, %v3884_v59  ;;  %v2548_v5 = vrot.slane %v15701_v18, 3  ;;  %18828 = vst [vmem:[#allocation60_spill] sm:$0xff] %v15711_v34  ;;  %v4220_v59 = vshrl.u32 %v15276_v58, 16  ;;  %v1788_v34 = vrot.slane %v18830_v21, 2 }
 0x1c3   :  { %v3236_v14 = vrot.slane %v18650_v33, 3  ;;  %v18831_v25 = vshll.u32 %v15701_v18, 16 }
 0x1c4   :  { %v744_v6 = vpop.f32.mrb[104].mxu0  ;;  %v15714_v46 = vsel %vm2498_vm1, %v2546_v42, %v2548_v5  ;;  %v18832_v42 = vshll.u32 %v15365_v8, 16 }
 0x1c5   :  { %v914_v9 = vmax.f32 %v744_v6, 0.0  ;;  %v11195_v22 = vpop.f32.mrb[105].mxu0  ;;  %18829 = vst [vmem:[#allocation61_spill] sm:$0xff] %v15714_v46  ;;  %v3237_v32 = vrot.slane %v18831_v25, 4 }
 0x1c6   :  { %v747_v20 = vpop.f32.mrb[106].mxu0  ;;  %v1791_v60 = vrot.slane %v18832_v42, 3  ;;  %v15731_v22 = vsel %vm3131_vm2, %v15665_v16, %v4217_v4  ;;  %v4225_v42 = vrot.slane %v4223_v12, 4 }
 0x1c7   :  { %v10401_v63 = vpack.c.bf16 %v914_v9, %v913_v30  ;;  %v11196_v45 = vpop.f32.mrb[107].mxu0  ;;  %18833 = vst [vmem:[#allocation62_spill] sm:$0xff] %v15731_v22  ;;  %v3238_v9 = vor.u32 %v3237_v32, %v3236_v14  ;;  %v915_v33 = vmax.f32 %v747_v20, 0.0  ;;  %v18839_v20 = vshll.u32 %v15389_v49, 16 }
 0x1c8   :  { %v15727_v6 = vld [vmem:[#allocation2 + $0xd0] sm:$0xff]  }
 0x1c9   :  { %10498 = vst [vmem:[#allocation2 + $0xd8] sm:$0xff] %v10401_v63   ;;  %11318 = vmatmul.mubr.bf16.gmra.mrb[212].mxu0 %v1784_v44  ;;  %v3885_v45 = vld [vmem:[#allocation2 + $0xd0] sm:$0xf]  ;;  %v3886_v30 = vld [vmem:[#allocation2 + $0xd4] sm:$0xf]  ;;  %v2550_v21 = vrot.slane %v15727_v6, 3  ;;  %v15741_v25 = vsel %vm3131_vm2, %v3234_v48, %v3238_v9  ;;  %v1792_v63 = vor.u32 %v1791_v60, %v1788_v34 }
 0x1ca   :  { %11321 = vmatprep.mubr.msk.bf16.mxu0 %vm14735_vm0, %v18769_v2  ;;  %v15736_v47 = vcombine.low %v3885_v45, %v3886_v30  ;;  %18834 = vst [vmem:[#allocation63_spill] sm:$0xff] %v15741_v25  ;;  %v4222_v44 = vrot.slane %v4220_v59, 3  ;;  %v18836_v45 = vshrl.u32 %v15727_v6, 16  ;;  %v1797_v48 = vrot.slane %v18837_v37, 2 }
 0x1cb   :  { %v15744_v22 = vsel %vm2498_vm1, %v2548_v5, %v2550_v21  ;;  %v18838_v25 = vshll.u32 %v15727_v6, 16  ;;  %v1793_v59 = vsel %vm1659_vm3, %v1783_v29, %v1792_v63  ;;  %v1800_v12 = vrot.slane %v18839_v20, 3 }
 0x1cc   :  { %v752_v16 = vpop.f32.mrb[108].mxu0  ;;  %18835 = vst [vmem:[#allocation64_spill] sm:$0xff] %v15744_v22  ;;  %v3240_v30 = vrot.slane %v18836_v45, 3  ;;  %v15757_v5 = vor.u32 %v4225_v42, %v4222_v44 }
 0x1cd   :  { %v916_v14 = vmax.f32 %v752_v16, 0.0  ;;  %v11199_v32 = vpop.f32.mrb[109].mxu0  ;;  %v3241_v34 = vrot.slane %v18838_v25, 4  ;;  %v1801_v42 = vor.u32 %v1800_v12, %v1797_v48 }
 0x1ce   :  { %v755_v58 = vpop.f32.mrb[110].mxu0 }
 0x1cf   :  { %v10406_v8 = vpack.c.bf16 %v916_v14, %v915_v33  ;;  %v11200_v46 = vpop.f32.mrb[111].mxu0  ;;  %v917_v32 = vmax.f32 %v755_v58, 0.0  ;;  %v1802_v48 = vsel %vm1659_vm3, %v1792_v63, %v1801_v42  ;;  %v18845_v58 = vshll.u32 %v15415_v51, 16 }
 0x1d0   :  { %v15755_v60 = vld [vmem:[#allocation2 + $0xd8] sm:$0xff]   ;;  %v3242_v46 = vor.u32 %v3241_v34, %v3240_v30  ;;  %v4229_v63 = vshrl.u32 %v15298_v52, 16 }
 0x1d1   :  { %10499 = vst [vmem:[#allocation2 + $0xe0] sm:$0xff] %v10406_v8   ;;  %11322 = vmatmul.mubr.bf16.gmra.mrb[216].mxu0 %v1793_v59  ;;  %v3887_v16 = vld [vmem:[#allocation2 + $0xd8] sm:$0xf]  ;;  %v3888_v33 = vld [vmem:[#allocation2 + $0xdc] sm:$0xf]  ;;  %v18651_v37 = vshrl.u32 %v15755_v60, 16  ;;  %v15771_v8 = vsel %vm3131_vm2, %v4217_v4, %v15757_v5 }
 0x1d2   :  { %11325 = vmatprep.mubr.msk.bf16.mxu0 %vm14735_vm0, %v18769_v2  ;;  %v15762_v25 = vcombine.low %v3887_v16, %v3888_v33  ;;  %v2552_v49 = vrot.slane %v15755_v60, 3  ;;  %v15767_v14 = vsel %vm3131_vm2, %v3238_v9, %v3242_v46  ;;  %18841 = vst [vmem:[#allocation66_spill] sm:$0xff] %v15771_v8  ;;  %v18843_v9 = vshrl.u32 %v15415_v51, 16 }
 0x1d3   :  { %18840 = vst [vmem:[#allocation65_spill] sm:$0xff] %v15767_v14  ;;  %v3244_v20 = vrot.slane %v18651_v37, 3  ;;  %v18844_v4 = vshll.u32 %v15755_v60, 16  ;;  %v1809_v12 = vrot.slane %v18845_v58, 3 }
 0x1d4   :  { %v760_v44 = vpop.f32.mrb[112].mxu0  ;;  %v15774_v34 = vsel %vm2498_vm1, %v2550_v21, %v2552_v49  ;;  %v1806_v29 = vrot.slane %v18843_v9, 2 }
 0x1d5   :  { %v918_v45 = vmax.f32 %v760_v44, 0.0  ;;  %v11203_v30 = vpop.f32.mrb[113].mxu0  ;;  %18842 = vst [vmem:[#allocation67_spill] sm:$0xff] %v15774_v34  ;;  %v3245_v8 = vrot.slane %v18844_v4, 4 }
 0x1d6   :  { %v763_v59 = vpop.f32.mrb[114].mxu0  ;;  %v1810_v4 = vor.u32 %v1809_v12, %v1806_v29  ;;  %v4231_v12 = vrot.slane %v4229_v63, 3 }
 0x1d7   :  { %v10411_v16 = vpack.c.bf16 %v918_v45, %v917_v32  ;;  %v11204_v33 = vpop.f32.mrb[115].mxu0  ;;  %v3246_v37 = vor.u32 %v3245_v8, %v3244_v20  ;;  %v4232_v8 = vshll.u32 %v15298_v52, 16  ;;  %v919_v20 = vmax.f32 %v763_v59, 0.0 }
 0x1d8   :  { %v15785_v44 = vld [vmem:[#allocation2 + $0xe0] sm:$0xff]  }
 0x1d9   :  { %10500 = vst [vmem:[#allocation2 + $0xe8] sm:$0xff] %v10411_v16   ;;  %11326 = vmatmul.mubr.bf16.gmra.mrb[220].mxu0 %v1802_v48  ;;  %v3889_v21 = vld [vmem:[#allocation2 + $0xe0] sm:$0xf]  ;;  %v3890_v30 = vld [vmem:[#allocation2 + $0xe4] sm:$0xf]  ;;  %v2554_v51 = vrot.slane %v15785_v44, 3  ;;  %v15796_v9 = vsel %vm3131_vm2, %v3242_v46, %v3246_v37 }
 0x1da   :  { %11329 = vmatprep.mubr.msk.bf16.mxu0 %vm14735_vm0, %v18769_v2  ;;  %v15790_v45 = vcombine.low %v3889_v21, %v3890_v30  ;;  %18846 = vst [vmem:[#allocation68_spill] sm:$0xff] %v15796_v9  ;;  %v18848_v30 = vshrl.u32 %v15439_v27, 16  ;;  %v18849_v14 = vshrl.u32 %v15785_v44, 16  ;;  %v18850_v9 = vshll.u32 %v15439_v27, 16 }
 0x1db   :  { %v15800_v32 = vsel %vm2498_vm1, %v2552_v49, %v2554_v51  ;;  %v18851_v52 = vshll.u32 %v15785_v44, 16 }
 0x1dc   :  { %v768_v16 = vpop.f32.mrb[116].mxu0  ;;  %18847 = vst [vmem:[#allocation69_spill] sm:$0xff] %v15800_v32  ;;  %v1815_v33 = vrot.slane %v18848_v30, 2  ;;  %v3248_v34 = vrot.slane %v18849_v14, 3  ;;  %v1818_v29 = vrot.slane %v18850_v9, 3  ;;  %v18854_v9 = vshrl.u32 %v15469_v55, 16 }
 0x1dd   :  { %v920_v48 = vmax.f32 %v768_v16, 0.0  ;;  %v11207_v58 = vpop.f32.mrb[117].mxu0  ;;  %v3249_v59 = vrot.slane %v18851_v52, 4  ;;  %v1811_v16 = vsel %vm1659_vm3, %v1801_v42, %v1810_v4 }
 0x1de   :  { %v771_v21 = vpop.f32.mrb[118].mxu0  ;;  %v4234_v58 = vrot.slane %v4232_v8, 4 }
 0x1df   :  { %v10416_v22 = vpack.c.bf16 %v920_v48, %v919_v20  ;;  %v11208_v46 = vpop.f32.mrb[119].mxu0  ;;  %v3250_v38 = vor.u32 %v3249_v59, %v3248_v34  ;;  %v921_v48 = vmax.f32 %v771_v21, 0.0  ;;  %v18856_v21 = vshll.u32 %v15469_v55, 16 }
 0x1e0   :  { %v15811_v49 = vld [vmem:[#allocation2 + $0xe8] sm:$0xff]   ;;  %v15823_v20 = vor.u32 %v4234_v58, %v4231_v12 }
 0x1e1   :  { %10501 = vst [vmem:[#allocation2 + $0xf0] sm:$0xff] %v10416_v22   ;;  %11330 = vmatmul.mubr.bf16.gmra.mrb[224].mxu0 %v1811_v16  ;;  %v3891_v30 = vld [vmem:[#allocation2 + $0xe8] sm:$0xf]  ;;  %v3892_v32 = vld [vmem:[#allocation2 + $0xec] sm:$0xf]  ;;  %v18652_v27 = vshrl.u32 %v15811_v49, 16  ;;  %v15821_v42 = vsel %vm3131_vm2, %v3246_v37, %v3250_v38  ;;  %v1819_v22 = vor.u32 %v1818_v29, %v1815_v33 }
 0x1e2   :  { %11333 = vmatprep.mubr.msk.bf16.mxu0 %vm14735_vm0, %v18769_v2  ;;  %v15816_v14 = vcombine.low %v3891_v30, %v3892_v32  ;;  %v2556_v63 = vrot.slane %v15811_v49, 3  ;;  %18852 = vst [vmem:[#allocation70_spill] sm:$0xff] %v15821_v42  ;;  %v1824_v37 = vrot.slane %v18854_v9, 2  ;;  %v18855_v42 = vshll.u32 %v15811_v49, 16 }
 0x1e3   :  { %v3252_v32 = vrot.slane %v18652_v27, 3  ;;  %v1820_v29 = vsel %vm1659_vm3, %v1810_v4, %v1819_v22  ;;  %v1827_v12 = vrot.slane %v18856_v21, 3  ;;  %v4238_v27 = vshrl.u32 %v15321_v0, 16 }
 0x1e4   :  { %v776_v8 = vpop.f32.mrb[120].mxu0  ;;  %v15826_v52 = vsel %vm2498_vm1, %v2554_v51, %v2556_v63  ;;  %v3253_v33 = vrot.slane %v18855_v42, 4  ;;  %v15842_v51 = vsel %vm3131_vm2, %v15757_v5, %v15823_v20 }
 0x1e5   :  { %v922_v34 = vmax.f32 %v776_v8, 0.0  ;;  %v11211_v46 = vpop.f32.mrb[121].mxu0  ;;  %18853 = vst [vmem:[#allocation71_spill] sm:$0xff] %v15826_v52  ;;  %18857 = vst [vmem:[#allocation72_spill] sm:$0xff] %v15842_v51  ;;  %v18860_v51 = vshrl.u32 %v15500_v7, 16 }
 0x1e6   :  { %v779_v59 = vpop.f32.mrb[122].mxu0  ;;  %v3254_v9 = vor.u32 %v3253_v33, %v3252_v32 }
 0x1e7   :  { %v10421_v16 = vpack.c.bf16 %v922_v34, %v921_v48  ;;  %v11212_v30 = vpop.f32.mrb[123].mxu0 }
 0x1e8   :  { %v15837_v58 = vld [vmem:[#allocation2 + $0xf0] sm:$0xff]   ;;  %v15852_v46 = vsel %vm3131_vm2, %v3250_v38, %v3254_v9  ;;  %v923_v30 = vmax.f32 %v779_v59, 0.0  ;;  %v1833_v38 = vrot.slane %v18860_v51, 2 }
 0x1e9   :  { %10502 = vst [vmem:[#allocation2 + $0xf8] sm:$0xff] %v10421_v16   ;;  %11334 = vmatmul.mubr.bf16.gmra.mrb[228].mxu0 %v1820_v29  ;;  %v3893_v8 = vld [vmem:[#allocation2 + $0xf0] sm:$0xf]  ;;  %v3894_v48 = vld [vmem:[#allocation2 + $0xf4] sm:$0xf]  ;;  %v18653_v4 = vshrl.u32 %v15837_v58, 16  ;;  %v1828_v16 = vor.u32 %v1827_v12, %v1824_v37 }
 0x1ea   :  { %11337 = vmatprep.mubr.msk.bf16.mxu0 %vm14735_vm0, %v18769_v2  ;;  %v15847_v42 = vcombine.low %v3893_v8, %v3894_v48  ;;  %v2558_v34 = vrot.slane %v15837_v58, 3  ;;  %18858 = vst [vmem:[#allocation73_spill] sm:$0xff] %v15852_v46  ;;  %v4241_v46 = vshll.u32 %v15321_v0, 16  ;;  %v18861_v59 = vshll.u32 %v15837_v58, 16 }
 0x1eb   :  { %v3256_v8 = vrot.slane %v18653_v4, 3  ;;  %v1829_v12 = vsel %vm1659_vm3, %v1819_v22, %v1828_v16 }
 0x1ec   :  { %v784_v5 = vpop.f32.mrb[124].mxu0  ;;  %v15855_v32 = vsel %vm2498_vm1, %v2556_v63, %v2558_v34  ;;  %v3257_v37 = vrot.slane %v18861_v59, 4  ;;  %v18862_v63 = vshll.u32 %v15500_v7, 16 }
 0x1ed   :  { %v924_v29 = vmax.f32 %v784_v5, 0.0  ;;  %v11215_v21 = vpop.f32.mrb[125].mxu0  ;;  %18859 = vst [vmem:[#allocation74_spill] sm:$0xff] %v15855_v32 }
 0x1ee   :  { %v787_v33 = vpop.f32.mrb[126].mxu0  ;;  %v1836_v5 = vrot.slane %v18862_v63, 3  ;;  %v4243_v63 = vrot.slane %v4241_v46, 4  ;;  %v18868_v46 = vshll.u32 %v15525_v40, 16 }
 0x1ef   :  { %v10426_v48 = vpack.c.bf16 %v924_v29, %v923_v30  ;;  %v11216_v55 = vpop.f32.mrb[127].mxu0  ;;  %v925_v32 = vmax.f32 %v787_v33, 0.0 }
 0x1f0   :  { %v15868_v21 = vld [vmem:[#allocation2 + $0xf8] sm:$0xff]   ;;  %v3258_v55 = vor.u32 %v3257_v37, %v3256_v8  ;;  %v1845_v33 = vrot.slane %v18868_v46, 3 }
 0x1f1   :  { %10503 = vst [vmem:[#allocation2 + $0x100] sm:$0xff] %v10426_v48   ;;  %11338 = vmatmul.mubr.bf16.gmra.mrb[232].mxu0 %v1829_v12  ;;  %v3895_v4 = vld [vmem:[#allocation2 + $0xf8] sm:$0xf]  ;;  %v3896_v30 = vld [vmem:[#allocation2 + $0xfc] sm:$0xf]  ;;  %v2560_v22 = vrot.slane %v15868_v21, 3  ;;  %v1837_v48 = vor.u32 %v1836_v5, %v1833_v38 }
 0x1f2   :  { %11341 = vmatprep.mubr.msk.bf16.mxu0 %vm14735_vm0, %v18769_v2  ;;  %v15873_v51 = vcombine.low %v3895_v4, %v3896_v30  ;;  %v15878_v7 = vsel %vm3131_vm2, %v3254_v9, %v3258_v55  ;;  %v4240_v12 = vrot.slane %v4238_v27, 3  ;;  %v18865_v4 = vshrl.u32 %v15868_v21, 16 }
 0x1f3   :  { %18863 = vst [vmem:[#allocation75_spill] sm:$0xff] %v15878_v7  ;;  %v15881_v52 = vsel %vm2498_vm1, %v2558_v34, %v2560_v22  ;;  %v1842_v9 = vrot.slane %v18866_v15, 2  ;;  %v18867_v7 = vshll.u32 %v15868_v21, 16  ;;  %v1838_v27 = vsel %vm1659_vm3, %v1828_v16, %v1837_v48 }
 0x1f4   :  { %v792_v59 = vpop.f32.mrb[128].mxu0  ;;  %18864 = vst [vmem:[#allocation76_spill] sm:$0xff] %v15881_v52  ;;  %v3260_v30 = vrot.slane %v18865_v4, 3  ;;  %v15894_v34 = vor.u32 %v4243_v63, %v4240_v12 }
 0x1f5   :  { %v926_v8 = vmax.f32 %v792_v59, 0.0  ;;  %v11219_v37 = vpop.f32.mrb[129].mxu0  ;;  %v3261_v38 = vrot.slane %v18867_v7, 4  ;;  %v1846_v63 = vor.u32 %v1845_v33, %v1842_v9 }
 0x1f6   :  { %v795_v0 = vpop.f32.mrb[130].mxu0 }
 0x1f7   :  { %v10431_v29 = vpack.c.bf16 %v926_v8, %v925_v32  ;;  %v11220_v28 = vpop.f32.mrb[131].mxu0  ;;  %v927_v37 = vmax.f32 %v795_v0, 0.0  ;;  %v1847_v9 = vsel %vm1659_vm3, %v1837_v48, %v1846_v63  ;;  %v18874_v0 = vshll.u32 %v15562_v17, 16 }
 0x1f8   :  { %v15892_v5 = vld [vmem:[#allocation2 + $0x100] sm:$0xff]   ;;  %v3262_v28 = vor.u32 %v3261_v38, %v3260_v30  ;;  %v4247_v48 = vshrl.u32 %v15347_v31, 16 }
 0x1f9   :  { %10504 = vst [vmem:[#allocation2 + $0x108] sm:$0xff] %v10431_v29   ;;  %11342 = vmatmul.mubr.bf16.gmra.mrb[236].mxu0 %v1838_v27  ;;  %v3897_v59 = vld [vmem:[#allocation2 + $0x100] sm:$0xf]  ;;  %v3898_v32 = vld [vmem:[#allocation2 + $0x104] sm:$0xf]  ;;  %v18654_v15 = vshrl.u32 %v15892_v5, 16  ;;  %v15909_v29 = vsel %vm3131_vm2, %v15823_v20, %v15894_v34 }
 0x1fa   :  { %11345 = vmatprep.mubr.msk.bf16.mxu0 %vm14735_vm0, %v18769_v2  ;;  %v15899_v7 = vcombine.low %v3897_v59, %v3898_v32  ;;  %v2562_v40 = vrot.slane %v15892_v5, 3  ;;  %v15904_v8 = vsel %vm3131_vm2, %v3258_v55, %v3262_v28  ;;  %18870 = vst [vmem:[#allocation78_spill] sm:$0xff] %v15909_v29  ;;  %v18872_v32 = vshrl.u32 %v15562_v17, 16 }
 0x1fb   :  { %18869 = vst [vmem:[#allocation77_spill] sm:$0xff] %v15904_v8  ;;  %v3264_v46 = vrot.slane %v18654_v15, 3  ;;  %v18873_v20 = vshll.u32 %v15892_v5, 16  ;;  %v1854_v33 = vrot.slane %v18874_v0, 3 }
 0x1fc   :  { %v800_v12 = vpop.f32.mrb[132].mxu0  ;;  %v15912_v38 = vsel %vm2498_vm1, %v2560_v22, %v2562_v40  ;;  %v1851_v16 = vrot.slane %v18872_v32, 2 }
 0x1fd   :  { %v928_v4 = vmax.f32 %v800_v12, 0.0  ;;  %v11223_v30 = vpop.f32.mrb[133].mxu0  ;;  %18871 = vst [vmem:[#allocation79_spill] sm:$0xff] %v15912_v38  ;;  %v3265_v29 = vrot.slane %v18873_v20, 4 }
 0x1fe   :  { %v803_v27 = vpop.f32.mrb[134].mxu0  ;;  %v1855_v20 = vor.u32 %v1854_v33, %v1851_v16  ;;  %v4249_v33 = vrot.slane %v4247_v48, 3 }
 0x1ff   :  { %v10436_v59 = vpack.c.bf16 %v928_v4, %v927_v37  ;;  %v11224_v55 = vpop.f32.mrb[135].mxu0  ;;  %v3266_v15 = vor.u32 %v3265_v29, %v3264_v46  ;;  %v4250_v29 = vshll.u32 %v15347_v31, 16  ;;  %v929_v46 = vmax.f32 %v803_v27, 0.0 }
 0x200   :  { %v15923_v12 = vld [vmem:[#allocation2 + $0x108] sm:$0xff]  }
 0x201   :  { %10505 = vst [vmem:[#allocation2 + $0x110] sm:$0xff] %v10436_v59   ;;  %11346 = vmatmul.mubr.bf16.gmra.mrb[240].mxu0 %v1847_v9  ;;  %v3899_v22 = vld [vmem:[#allocation2 + $0x108] sm:$0xf]  ;;  %v3900_v30 = vld [vmem:[#allocation2 + $0x10c] sm:$0xf]  ;;  %v2564_v17 = vrot.slane %v15923_v12, 3  ;;  %v15934_v32 = vsel %vm3131_vm2, %v3262_v28, %v3266_v15 }
 0x202   :  { %11349 = vmatprep.mubr.msk.bf16.mxu0 %vm14735_vm0, %v18769_v2  ;;  %v15928_v4 = vcombine.low %v3899_v22, %v3900_v30  ;;  %18876 = vst [vmem:[#allocation81_spill] sm:$0xff] %v15934_v32  ;;  %v18878_v30 = vshrl.u32 %v15599_v39, 16  ;;  %v18879_v8 = vshrl.u32 %v15923_v12, 16  ;;  %v18880_v32 = vshll.u32 %v15599_v39, 16 }
 0x203   :  { %v15938_v37 = vsel %vm2498_vm1, %v2562_v40, %v2564_v17  ;;  %v18881_v31 = vshll.u32 %v15923_v12, 16 }
 0x204   :  { %18875 = vst [vmem:[#allocation80_spill] sm:$0xff] %v15928_v4  ;;  %v808_v59 = vpop.f32.mrb[136].mxu0  ;;  %18877 = vst [vmem:[#allocation82_spill] sm:$0xff] %v15938_v37  ;;  %v1860_v55 = vrot.slane %v18878_v30, 2  ;;  %v3268_v38 = vrot.slane %v18879_v8, 3  ;;  %v1863_v16 = vrot.slane %v18880_v32, 3 }
 0x205   :  { %v930_v9 = vmax.f32 %v808_v59, 0.0  ;;  %v11227_v0 = vpop.f32.mrb[137].mxu0  ;;  %v3269_v27 = vrot.slane %v18881_v31, 4  ;;  %v1856_v59 = vsel %vm1659_vm3, %v1846_v63, %v1855_v20  ;;  %v18885_v32 = vshrl.u32 %v15633_v57, 16 }
 0x206   :  { %v811_v22 = vpop.f32.mrb[138].mxu0  ;;  %v4252_v0 = vrot.slane %v4250_v29, 4 }
 0x207   :  { %v10441_v52 = vpack.c.bf16 %v930_v9, %v929_v46  ;;  %v11228_v28 = vpop.f32.mrb[139].mxu0  ;;  %v3270_v36 = vor.u32 %v3269_v27, %v3268_v38  ;;  %v931_v9 = vmax.f32 %v811_v22, 0.0  ;;  %v18887_v22 = vshll.u32 %v15633_v57, 16 }
 0x208   :  { %v15949_v40 = vld [vmem:[#allocation2 + $0x110] sm:$0xff]   ;;  %v15961_v46 = vor.u32 %v4252_v0, %v4249_v33 }
 0x209   :  { %10506 = vst [vmem:[#allocation2 + $0x118] sm:$0xff] %v10441_v52   ;;  %11350 = vmatmul.mubr.bf16.gmra.mrb[244].mxu0 %v1856_v59  ;;  %v3901_v30 = vld [vmem:[#allocation2 + $0x110] sm:$0xf]  ;;  %v3902_v37 = vld [vmem:[#allocation2 + $0x114] sm:$0xf]  ;;  %v18655_v39 = vshrl.u32 %v15949_v40, 16  ;;  %v15959_v63 = vsel %vm3131_vm2, %v3266_v15, %v3270_v36  ;;  %v1864_v52 = vor.u32 %v1863_v16, %v1860_v55 }
 0x20a   :  { %11353 = vmatprep.mubr.msk.bf16.mxu0 %vm14735_vm0, %v18769_v2  ;;  %v15954_v8 = vcombine.low %v3901_v30, %v3902_v37  ;;  %v2566_v48 = vrot.slane %v15949_v40, 3  ;;  %18883 = vst [vmem:[#allocation84_spill] sm:$0xff] %v15959_v63  ;;  %v1869_v15 = vrot.slane %v18885_v32, 2  ;;  %v18886_v63 = vshll.u32 %v15949_v40, 16  ;;  %v14423_v32 = vld [vmem:[%s18600_s2 + $0x40] sm:$0xff]  }
 0x20b   :  { %v3272_v37 = vrot.slane %v18655_v39, 3  ;;  %v1865_v16 = vsel %vm1659_vm3, %v1855_v20, %v1864_v52  ;;  %v1872_v33 = vrot.slane %v18887_v22, 3  ;;  %11434 = vmatpush3.bf16.msra.mxu0 %v14423_v32 }
 0x20c   :  { %18882 = vst [vmem:[#allocation83_spill] sm:$0xff] %v15954_v8  ;;  %v816_v29 = vpop.f32.mrb[140].mxu0  ;;  %v15964_v31 = vsel %vm2498_vm1, %v2564_v17, %v2566_v48  ;;  %v3273_v55 = vrot.slane %v18886_v63, 4  ;;  %v15980_v17 = vsel %vm3131_vm2, %v15894_v34, %v15961_v46  ;;  %v14426_v34 = vld [vmem:[%s18600_s2 + $0x48] sm:$0xff]   ;;  %11435 = vmatprep.subr.bf16.mxu0 %v18769_v2 }
 0x20d   :  { %v932_v38 = vmax.f32 %v816_v29, 0.0  ;;  %v11231_v28 = vpop.f32.mrb[141].mxu0  ;;  %18884 = vst [vmem:[#allocation85_spill] sm:$0xff] %v15964_v31  ;;  %18888 = vst [vmem:[#allocation86_spill] sm:$0xff] %v15980_v17 }
 0x20e   :  { %v819_v27 = vpop.f32.mrb[142].mxu0  ;;  %v4256_v28 = vshrl.u32 %v15371_v3, 16 }
 0x20f   :  { %v10446_v59 = vpack.c.bf16 %v932_v38, %v931_v9  ;;  %v11232_v30 = vpop.f32.mrb[143].mxu0  ;;  %v3274_v9 = vor.u32 %v3273_v55, %v3272_v37  ;;  %v1873_v55 = vor.u32 %v1872_v33, %v1869_v15  ;;  %v933_v22 = vmax.f32 %v819_v27, 0.0  ;;  %11436 = vmatpush3.bf16.msra.mxu0 %v14426_v34 }
 0x210   :  { %v15975_v0 = vld [vmem:[#allocation2 + $0x118] sm:$0xff]   ;;  %v18892_v38 = vshrl.u32 %v15670_v1, 16  ;;  %v18894_v15 = vshll.u32 %v15670_v1, 16  ;;  %11437 = vmatprep.subr.bf16.mxu0 %v18769_v2 }
 0x211   :  { %10507 = vst [vmem:[#allocation2 + $0x120] sm:$0xff] %v10446_v59   ;;  %11354 = vmatmul.mubr.bf16.gmra.mrb[248].mxu0 %v1865_v16  ;;  %v3903_v29 = vld [vmem:[#allocation2 + $0x118] sm:$0xf]  ;;  %v3904_v63 = vld [vmem:[#allocation2 + $0x11c] sm:$0xf]  ;;  %v2568_v59 = vrot.slane %v15975_v0, 3  ;;  %v15997_v37 = vsel %vm3131_vm2, %v3270_v36, %v3274_v9 }
 0x212   :  { %11357 = vmatprep.mubr.msk.bf16.mxu0 %vm14735_vm0, %v18769_v2  ;;  %v15988_v20 = vcombine.low %v3903_v29, %v3904_v63  ;;  %18890 = vst [vmem:[#allocation88_spill] sm:$0xff] %v15997_v37  ;;  %v4259_v16 = vshll.u32 %v15371_v3, 16  ;;  %v1878_v57 = vrot.slane %v18892_v38, 2  ;;  %v18893_v17 = vshrl.u32 %v15975_v0, 16 }
 0x213   :  { %v16002_v63 = vsel %vm2498_vm1, %v2566_v48, %v2568_v59  ;;  %v1881_v33 = vrot.slane %v18894_v15, 3  ;;  %v18895_v3 = vshll.u32 %v15975_v0, 16  ;;  %v1874_v48 = vsel %vm1659_vm3, %v1864_v52, %v1873_v55 }
 0x214   :  { %18889 = vst [vmem:[#allocation87_spill] sm:$0xff] %v15988_v20  ;;  %v824_v30 = vpop.f32.mrb[144].mxu0  ;;  %18891 = vst [vmem:[#allocation89_spill] sm:$0xff] %v16002_v63  ;;  %v3276_v36 = vrot.slane %v18893_v17, 3  ;;  %v4261_v38 = vrot.slane %v4259_v16, 4  ;;  %v4265_v52 = vshrl.u32 %v15395_v56, 16 }
 0x215   :  { %v934_v29 = vmax.f32 %v824_v30, 0.0  ;;  %v11235_v32 = vpop.f32.mrb[145].mxu0  ;;  %v3277_v27 = vrot.slane %v18895_v3, 4  ;;  %v4258_v30 = vrot.slane %v4256_v28, 3 }
 0x216   :  { %v827_v39 = vpop.f32.mrb[146].mxu0 }
 0x217   :  { %v10451_v37 = vpack.c.bf16 %v934_v29, %v933_v22  ;;  %v11236_v31 = vpop.f32.mrb[147].mxu0  ;;  %v3278_v34 = vor.u32 %v3277_v27, %v3276_v36  ;;  %v1882_v36 = vor.u32 %v1881_v33, %v1878_v57  ;;  %v16033_v3 = vor.u32 %v4261_v38, %v4258_v30 }
 0x218   :  { %v16013_v32 = vld [vmem:[#allocation2 + $0x120] sm:$0xff]   ;;  %v14428_v31 = vld [vmem:[%s18600_s2 + $0x50] sm:$0xff]   ;;  %v935_v27 = vmax.f32 %v827_v39, 0.0  ;;  %v18899_v57 = vshrl.u32 %v15701_v18, 16  ;;  %v4268_v30 = vshll.u32 %v15395_v56, 16 }
 0x219   :  { %10508 = vst [vmem:[#allocation2 + $0x128] sm:$0xff] %v10451_v37   ;;  %11358 = vmatmul.mubr.bf16.gmra.mrb[252].mxu0 %v1874_v48  ;;  %v3905_v1 = vld [vmem:[#allocation2 + $0x120] sm:$0xf]  ;;  %v3906_v17 = vld [vmem:[#allocation2 + $0x124] sm:$0xf]  ;;  %v18656_v28 = vshrl.u32 %v16013_v32, 16  ;;  %v16030_v29 = vsel %vm3131_vm2, %v3274_v9, %v3278_v34 }
 0x21a   :  { %11361 = vmatprep.mubr.msk.bf16.mxu0 %vm14735_vm0, %v18769_v2  ;;  %v16023_v22 = vcombine.low %v3905_v1, %v3906_v17  ;;  %11438 = vmatpush3.bf16.msra.mxu0 %v14428_v31  ;;  %v14431_v37 = vld [vmem:[%s18600_s2 + $0x58] sm:$0xff]   ;;  %v2570_v16 = vrot.slane %v16013_v32, 3  ;;  %18897 = vst [vmem:[#allocation91_spill] sm:$0xff] %v16030_v29  ;;  %v1887_v33 = vrot.slane %v18899_v57, 2  ;;  %v18900_v39 = vshll.u32 %v16013_v32, 16  ;;  %v14433_v56 = vld [vmem:[%s18600_s2 + $0x60] sm:$0xff]  }
 0x21b   :  { %11439 = vmatprep.subr.bf16.mxu0 %v18769_v2  ;;  %v3280_v63 = vrot.slane %v18656_v28, 3 }
 0x21c   :  { %18896 = vst [vmem:[#allocation90_spill] sm:$0xff] %v16023_v22  ;;  %v832_v15 = vpop.f32.mrb[148].mxu0  ;;  %v16036_v31 = vsel %vm2498_vm1, %v2568_v59, %v2570_v16  ;;  %v3281_v38 = vrot.slane %v18900_v39, 4  ;;  %v1883_v59 = vsel %vm1659_vm3, %v1873_v55, %v1882_v36 }
 0x21d   :  { %v936_v48 = vmax.f32 %v832_v15, 0.0  ;;  %v11239_v1 = vpop.f32.mrb[149].mxu0  ;;  %18898 = vst [vmem:[#allocation92_spill] sm:$0xff] %v16036_v31  ;;  %v18901_v15 = vshll.u32 %v15701_v18, 16 }
 0x21e   :  { %v835_v17 = vpop.f32.mrb[150].mxu0  ;;  %11440 = vmatpush3.bf16.msra.mxu0 %v14431_v37 }
 0x21f   :  { %v10456_v9 = vpack.c.bf16 %v936_v48, %v935_v27  ;;  %v11240_v29 = vpop.f32.mrb[151].mxu0  ;;  %v1890_v1 = vrot.slane %v18901_v15, 3  ;;  %11441 = vmatprep.subr.bf16.mxu0 %v18769_v2  ;;  %v3282_v27 = vor.u32 %v3281_v38, %v3280_v63 }
 0x220   :  { %v16049_v31 = vld [vmem:[#allocation2 + $0x128] sm:$0xff]   ;;  %v16055_v29 = vsel %vm3131_vm2, %v15961_v46, %v16033_v3  ;;  %v937_v46 = vmax.f32 %v835_v17, 0.0 }
 0x221   :  { %18902 = vst [vmem:[#allocation93_spill] sm:$0xff] %v16055_v29  ;;  %10509 = vst [vmem:[#allocation2 + $0x130] sm:$0xff] %v10456_v9   ;;  %11362 = vmatmul.mubr.bf16.gmra.mrb[0].mxu0 %v1883_v59  ;;  %v3907_v37 = vld [vmem:[#allocation2 + $0x128] sm:$0xf]  ;;  %v3908_v18 = vld [vmem:[#allocation2 + $0x12c] sm:$0xf]  ;;  %v16075_v15 = vsel %vm3131_vm2, %v3278_v34, %v3282_v27  ;;  %v16077_v57 = vor.u32 %v1890_v1, %v1887_v33 }
 0x222   :  { %11365 = vmatprep.mubr.msk.bf16.mxu0 %vm14735_vm0, %v18769_v2  ;;  %v16066_v9 = vcombine.low %v3907_v37, %v3908_v18  ;;  %11442 = vmatpush3.bf16.msra.mxu0 %v14433_v56  ;;  %v14436_v59 = vld [vmem:[%s18600_s2 + $0x68] sm:$0xff]   ;;  %v2572_v38 = vrot.slane %v16049_v31, 3  ;;  %18904 = vst [vmem:[#allocation95_spill] sm:$0xff] %v16075_v15  ;;  %v4267_v18 = vrot.slane %v4265_v52, 3  ;;  %v4270_v56 = vrot.slane %v4268_v30, 4 }
 0x223   :  { %11443 = vmatprep.subr.bf16.mxu0 %v18769_v2  ;;  %v4364_v33 = vshrl.u32 %v15736_v47, 16  ;;  %v18906_v1 = vshrl.u32 %v16049_v31, 16  ;;  %v18907_v52 = vshrl.u32 %v15727_v6, 16  ;;  %v1892_v34 = vsel %vm1659_vm3, %v1882_v36, %v16077_v57 }
 0x224   :  { %18903 = vst [vmem:[#allocation94_spill] sm:$0xff] %v16066_v9  ;;  %v840_v28 = vpop.f32.mrb[152].mxu0  ;;  %v16083_v63 = vsel %vm2498_vm1, %v2570_v16, %v2572_v38  ;;  %v18909_v16 = vshll.u32 %v16049_v31, 16 }
 0x225   :  { %v938_v55 = vmax.f32 %v840_v28, 0.0  ;;  %v11243_v39 = vpop.f32.mrb[153].mxu0  ;;  %18905 = vst [vmem:[#allocation96_spill] sm:$0xff] %v16083_v63  ;;  %v3284_v15 = vrot.slane %v18906_v1, 3  ;;  %v1896_v17 = vrot.slane %v18907_v52, 2  ;;  %v18908_v28 = vshll.u32 %v15727_v6, 16 }
 0x226   :  { %v843_v29 = vpop.f32.mrb[154].mxu0  ;;  %11444 = vmatpush3.bf16.msra.mxu0 %v14436_v59  ;;  %v3285_v39 = vrot.slane %v18909_v16, 4  ;;  %v14437_v6 = vld [vmem:[%s18600_s2 + $0x70] sm:$0xff]   ;;  %v4367_v59 = vshll.u32 %v15736_v47, 16  ;;  %v16112_v1 = vrot.slane %v4364_v33, 3  ;;  %v14440_v52 = vld [vmem:[%s18600_s2 + $0x78] sm:$0xff]  }
 0x227   :  { %v10461_v9 = vpack.c.bf16 %v938_v55, %v937_v46  ;;  %v11244_v37 = vpop.f32.mrb[155].mxu0  ;;  %v1899_v30 = vrot.slane %v18908_v28, 3  ;;  %11445 = vmatprep.subr.bf16.mxu0 %v18769_v2  ;;  %v16100_v55 = vor.u32 %v4270_v56, %v4267_v18 }
 0x228   :  { %v3909_v48 = vld [vmem:[#allocation2 + $0x130] sm:$0xf]  ;;  %v16097_v63 = vld [vmem:[#allocation2 + $0x134] sm:$0xf]  ;;  %v4373_v37 = vshrl.u32 %v15762_v25, 16  ;;  %v3286_v18 = vor.u32 %v3285_v39, %v3284_v15  ;;  %v18912_v15 = vshrl.u32 %v15755_v60, 16 }
 0x229   :  { %18910 = vst [vmem:[#allocation97_spill] sm:$0xff] %v16097_v63  ;;  %10510 = vst [vmem:[#allocation2 + $0x138] sm:$0xff] %v10461_v9   ;;  %11366 = vmatmul.mubr.bf16.gmra.mrb[4].mxu0 %v1892_v34  ;;  %v16102_v46 = vld [vmem:[#allocation2 + $0x130] sm:$0xff]   ;;  %v9933_v36 = vcombine.low %v3909_v48, %v16097_v63  ;;  %v16117_v9 = vsel %vm3131_vm2, %v16033_v3, %v16100_v55  ;;  %v16119_v56 = vor.u32 %v1899_v30, %v1896_v17 }
 0x22a   :  { %11369 = vmatprep.mubr.msk.bf16.mxu0 %vm14735_vm0, %v18769_v2  ;;  %18911 = vst [vmem:[#allocation98_spill] sm:$0xff] %v16117_v9  ;;  %11446 = vmatpush3.bf16.msra.mxu0 %v14437_v6  ;;  %v4376_v48 = vshll.u32 %v15762_v25, 16  ;;  %v1905_v28 = vrot.slane %v18912_v15, 2  ;;  %v18913_v3 = vshll.u32 %v15755_v60, 16  ;;  %v2574_v17 = vrot.slane %v16102_v46, 3 }
 0x22b   :  { %11447 = vmatprep.subr.bf16.mxu0 %v18769_v2  ;;  %v16134_v30 = vsel %vm3131_vm2, %v3282_v27, %v3286_v18  ;;  %v939_v39 = vmax.f32 %v843_v29, 0.0  ;;  %v16136_v34 = vrot.slane %v4367_v59, 4  ;;  %v16138_v25 = vrot.slane %v4373_v37, 3 }
 0x22c   :  { %v848_v33 = vpop.f32.mrb[156].mxu0  ;;  %v1908_v16 = vrot.slane %v18913_v3, 3  ;;  %18914 = vst [vmem:[#allocation99_spill] sm:$0xff] %v16134_v30  ;;  %v4472_v22 = vshrl.u32 %v9933_v36, 16  ;;  %v4475_v15 = vshll.u32 %v9933_v36, 16  ;;  %v16141_v60 = vsel %vm2498_vm1, %v2572_v38, %v2574_v17 }
 0x22d   :  { %v940_v6 = vmax.f32 %v848_v33, 0.0  ;;  %v11247_v47 = vpop.f32.mrb[157].mxu0  ;;  %18915 = vst [vmem:[#allocation100_spill] sm:$0xff] %v16141_v60  ;;  %v18916_v3 = vshrl.u32 %v16102_v46, 16  ;;  %v18917_v27 = vshrl.u32 %v15785_v44, 16  ;;  %v16149_v59 = vrot.slane %v4376_v48, 4 }
 0x22e   :  { %v851_v9 = vpop.f32.mrb[158].mxu0  ;;  %11448 = vmatpush3.bf16.msra.mxu0 %v14440_v52  ;;  %v18918_v37 = vshll.u32 %v16102_v46, 16  ;;  %v1901_v38 = vsel %vm1659_vm3, %v16077_v57, %v16119_v56  ;;  %v16156_v36 = vor.u32 %v1908_v16, %v1905_v28  ;;  %v18920_v52 = vshll.u32 %v15785_v44, 16 }
 0x22f   :  { %v3288_v20 = vrot.slane %v18916_v3, 3  ;;  %v10466_v62 = vpack.c.bf16 %v940_v6, %v939_v39  ;;  %v11248_v8 = vpop.f32.mrb[159].mxu0  ;;  %v16147_v29 = vrot.slane %v18917_v27, 2  ;;  %11613 = vmatprep.subr.bf16.mxu0 %v18769_v2  ;;  %v4474_v16 = vrot.slane %v4472_v22, 3 }
 0x230   :  { %v3289_v47 = vrot.slane %v18918_v37, 4  ;;  %v16158_v33 = vld [vmem:[#allocation2 + $0x138] sm:$0xf]  ;;  %v16160_v39 = vld [vmem:[#allocation2 + $0x13c] sm:$0xf]  ;;  %v1917_v48 = vrot.slane %v18920_v52, 3 }
 0x231   :  { %18919 = vst [vmem:[#allocation101_spill] sm:$0xff] %v16158_v33  ;;  %10511 = vst [vmem:[#allocation2 + $0x140] sm:$0xff] %v10466_v62   ;;  %11370 = vmatmul.mubr.bf16.gmra.mrb[8].mxu0 %v1901_v38  ;;  %v9934_v8 = vcombine.low %v16158_v33, %v16160_v39  ;;  %v16167_v6 = vld [vmem:[#allocation2 + $0x138] sm:$0xff]   ;;  %v4477_v3 = vrot.slane %v4475_v15, 4  ;;  %v4382_v62 = vshrl.u32 %v15790_v45, 16  ;;  %v4385_v27 = vshll.u32 %v15790_v45, 16 }
 0x232   :  { %v3290_v28 = vor.u32 %v3289_v47, %v3288_v20  ;;  %11373 = vmatprep.mubr.msk.bf16.mxu0 %vm14735_vm0, %v18769_v2  ;;  %v2576_v60 = vrot.slane %v16167_v6, 3  ;;  %v18922_v47 = vshrl.u32 %v15421_v61, 16  ;;  %v18923_v15 = vshll.u32 %v15421_v61, 16 }
 0x233   :  { %v4481_v37 = vshrl.u32 %v9934_v8, 16  ;;  %v4484_v38 = vshll.u32 %v9934_v8, 16  ;;  %v941_v33 = vmax.f32 %v851_v9, 0.0  ;;  %v4384_v4 = vrot.slane %v4382_v62, 3 }
 0x234   :  { %v856_v30 = vpop.f32.mrb[160].mxu0  ;;  %v16179_v20 = vsel %vm3131_vm2, %v3286_v18, %v3290_v28  ;;  %v4276_v22 = vrot.slane %v18922_v47, 3  ;;  %v4279_v57 = vrot.slane %v18923_v15, 4  ;;  %v4387_v52 = vrot.slane %v4385_v27, 4 }
 0x235   :  { %18921 = vst [vmem:[#allocation102_spill] sm:$0xff] %v16179_v20  ;;  %v942_v45 = vmax.f32 %v856_v30, 0.0  ;;  %v11251_v63 = vpop.f32.mrb[161].mxu0  ;;  %v4483_v8 = vrot.slane %v4481_v37, 3  ;;  %v4486_v35 = vrot.slane %v4484_v38, 4  ;;  %v16186_v10 = vsel %vm2498_vm1, %v2574_v17, %v2576_v60 }
 0x236   :  { %v859_v44 = vpop.f32.mrb[162].mxu0  ;;  %v18924_v18 = vshrl.u32 %v16167_v6, 16  ;;  %v16190_v47 = vor.u32 %v4477_v3, %v4474_v16  ;;  %v14388_v63 = vld [vmem:[%s18600_s2 + $0x100] sm:$0xff]   ;;  %v18926_v9 = vshll.u32 %v16167_v6, 16  ;;  %v1910_v17 = vsel %vm1659_vm3, %v16119_v56, %v16156_v36 }
 0x237   :  { %v10471_v43 = vpack.c.bf16 %v942_v45, %v941_v33  ;;  %v11252_v13 = vpop.f32.mrb[163].mxu0  ;;  %v4487_v61 = vor.u32 %v4486_v35, %v4483_v8  ;;  %v18928_v44 = vshll.u32 %v15706_v50, 16 }
 0x238   :  { %v3292_v20 = vrot.slane %v18924_v18, 3  ;;  %18925 = vst [vmem:[#allocation103_spill] sm:$0xff] %v16190_v47  ;;  %v3293_v30 = vrot.slane %v18926_v9, 4  ;;  %v16200_v62 = vld [vmem:[#allocation2 + $0x140] sm:$0xf]  ;;  %v16204_v13 = vor.u32 %v4279_v57, %v4276_v22  ;;  %v4379_v9 = vor.u32 %v16149_v59, %v16138_v25 }
 0x239   :  { %v16202_v27 = vld [vmem:[#allocation2 + $0x144] sm:$0xf]  ;;  %v1429_v33 = vld [vmem:[#allocation2 + $0x140] sm:$0xf]  ;;  %10512 = vst [vmem:[#allocation2 + $0x148] sm:$0xff] %v10471_v43   ;;  %11374 = vmatmul.mubr.bf16.gmra.mrb[12].mxu0 %v1910_v17  ;;  %v4488_v35 = vsel %vm3131_vm2, %v16190_v47, %v4487_v61  ;;  %v18927_v43 = vshrl.u32 %v15706_v50, 16  ;;  %v4370_v50 = vor.u32 %v16136_v34, %v16112_v1 }
 0x23a   :  { %v9935_v16 = vcombine.low %v16200_v62, %v16202_v27  ;;  %v1430_v3 = vld [vmem:[#allocation2 + $0x144] sm:$0x7]  ;;  %v16212_v56 = vor.u32 %v3293_v30, %v3292_v20  ;;  %11958 = vmatmul.mubr.bf16.vlgmr.msra.gmra.mrb[0].mxu1 %v4488_v35  ;;  %11377 = vmatprep.mubr.msk.bf16.mxu0 %vm14735_vm0, %v18769_v2  ;;  %v4360_v22 = vrot.slane %v18928_v44, 4  ;;  %v16225_v45 = vsel %vm3131_vm2, %v16100_v55, %v16204_v13  ;;  %v14389_v20 = vld [vmem:[%s18600_s2 + $0x108] sm:$0xff]  }
 0x23b   :  { %v16216_v57 = vcombine.low %v1429_v33, %v1430_v3  ;;  %v4357_v38 = vrot.slane %v18927_v43, 3  ;;  %v3110_v15 = vld [vmem:[#allocation2 + $0x144] sm:$0xf]  ;;  %11974 = vmatpush3.bf16.msra.mxu1 %v14388_v63  ;;  %11961 = vmatprep.mubr.msk.bf16.mxu1 %vm14735_vm0, %v18769_v2  ;;  %v1918_v55 = vor.u32 %v1917_v48, %v16147_v29  ;;  %v16238_v63 = vor.u32 %v4387_v52, %v4384_v4  ;;  %v14392_v48 = vld [vmem:[%s18600_s2 + $0x110] sm:$0xff]  }
 0x23c   :  { %v4490_v8 = vshrl.u32 %v9935_v16, 16  ;;  %v4493_v18 = vshll.u32 %v9935_v16, 16  ;;  %11975 = vmatprep.subr.bf16.mxu1 %v18769_v2  ;;  %v16243_v17 = vsel %vm3131_vm2, %v3290_v28, %v16212_v56  ;;  %v4295_v3 = vshll.u32 %v15475_v11, 16 }
 0x23d   :  { %v18664_v30 = vrot.slane %v16216_v57, 3  ;;  %v9871_v1 = vcombine.low %v1429_v33, %v3110_v15  ;;  %v16248_v59 = vor.u32 %v4360_v22, %v4357_v38  ;;  %v18929_v28 = vshrl.u32 %v15811_v49, 16 }
 0x23e   :  { %v4492_v35 = vrot.slane %v4490_v8, 3  ;;  %v4495_v16 = vrot.slane %v4493_v18, 4  ;;  %v18930_v33 = vshll.u32 %v15811_v49, 16  ;;  %v1919_v38 = vsel %vm1659_vm3, %v16156_v36, %v1918_v55 }
 0x23f   :  { %v16253_v4 = vsel %vm2498_vm1, %v2576_v60, %v18664_v30  ;;  %11976 = vmatpush3.bf16.msra.mxu1 %v14389_v20  ;;  %v1923_v52 = vrot.slane %v18929_v28, 2  ;;  %v3297_v44 = vshrl.u32 %v9871_v1, 16  ;;  %v16271_v15 = vsel %vm3131_vm2, %v16248_v59, %v4370_v50 }
 0x240   :  { %v4496_v29 = vor.u32 %v4495_v16, %v4492_v35  ;;  %v1926_v43 = vrot.slane %v18930_v33, 3  ;;  %11977 = vmatprep.subr.bf16.mxu1 %v18769_v2  ;;  %v16265_v60 = vld [vmem:[#allocation2 + $0x148] sm:$0xf]  ;;  %v16267_v22 = vld [vmem:[#allocation2 + $0x14c] sm:$0xf]  ;;  %v16274_v20 = vsel %vm3131_vm2, %v4370_v50, %v4379_v9  ;;  %v16278_v49 = vsel %vm3131_vm2, %v4379_v9, %v16238_v63 }
 0x241   :  { %11378 = vmatmul.mubr.bf16.gmra.mrb[16].mxu0 %v1919_v38  ;;  %v9936_v8 = vcombine.low %v16265_v60, %v16267_v22  ;;  %v4313_v50 = vshll.u32 %v15534_v24, 16  ;;  %v3299_v16 = vrot.slane %v3297_v44, 3  ;;  %v3300_v28 = vshll.u32 %v9871_v1, 16 }
 0x242   :  { %v4497_v36 = vsel %vm3131_vm2, %v4487_v61, %v4496_v29  ;;  %11381 = vmatprep.mubr.msk.bf16.mxu0 %vm14735_vm0, %v18769_v2  ;;  %v14393_v61 = vld [vmem:[%s18600_s2 + $0x118] sm:$0xff]   ;;  %v1927_v30 = vor.u32 %v1926_v43, %v1923_v52  ;;  %v4391_v9 = vshrl.u32 %v15816_v14, 16  ;;  %v18931_v18 = vshrl.u32 %v15449_v41, 16 }
 0x243   :  { %11962 = vmatmul.mubr.bf16.gmra.mrb[4].mxu1 %v4497_v36  ;;  %v4499_v33 = vshrl.u32 %v9936_v8, 16  ;;  %v4502_v38 = vshll.u32 %v9936_v8, 16  ;;  %v3302_v1 = vrot.slane %v3300_v28, 4  ;;  %v4394_v8 = vshll.u32 %v15816_v14, 16  ;;  %v14396_v28 = vld [vmem:[%s18600_s2 + $0x120] sm:$0xff]  }
 0x244   :  { %11978 = vmatpush3.bf16.msra.mxu1 %v14392_v48  ;;  %11965 = vmatprep.mubr.msk.bf16.mxu1 %vm14735_vm0, %v18769_v2  ;;  %v4285_v25 = vrot.slane %v18931_v18, 3  ;;  %v18932_v52 = vshll.u32 %v15449_v41, 16  ;;  %v18934_v18 = vshll.u32 %v15837_v58, 16  ;;  %v1928_v14 = vsel %vm1659_vm3, %v1918_v55, %v1927_v30 }
 0x245   :  { %11979 = vmatprep.subr.bf16.mxu1 %v18769_v2  ;;  %v4501_v48 = vrot.slane %v4499_v33, 3  ;;  %v4504_v37 = vrot.slane %v4502_v38, 4  ;;  %v16304_v36 = vor.u32 %v3302_v1, %v3299_v16  ;;  %v18933_v33 = vshrl.u32 %v15837_v58, 16 }
 0x246   :  { %v4288_v43 = vrot.slane %v18932_v52, 4  ;;  %v1935_v44 = vrot.slane %v18934_v18, 3  ;;  %v4400_v41 = vshrl.u32 %v15847_v42, 16  ;;  %v4393_v1 = vrot.slane %v4391_v9, 3 }
 0x247   :  { %v4505_v35 = vor.u32 %v4504_v37, %v4501_v48  ;;  %v1932_v38 = vrot.slane %v18933_v33, 2  ;;  %v16322_v37 = vsel %vm3131_vm2, %v16212_v56, %v16304_v36  ;;  %v4403_v58 = vshll.u32 %v15847_v42, 16  ;;  %v14397_v42 = vld [vmem:[%s18600_s2 + $0x128] sm:$0xff]  }
 0x248   :  { %11980 = vmatpush3.bf16.msra.mxu1 %v14393_v61  ;;  %v4289_v16 = vor.u32 %v4288_v43, %v4285_v25  ;;  %v18935_v48 = vshrl.u32 %v15475_v11, 16  ;;  %v4396_v55 = vrot.slane %v4394_v8, 4  ;;  %v4409_v33 = vshrl.u32 %v15873_v51, 16 }
 0x249   :  { %11981 = vmatprep.subr.bf16.mxu1 %v18769_v2  ;;  %11382 = vmatmul.mubr.bf16.gmra.mrb[20].mxu0 %v1928_v14  ;;  %v4506_v61 = vsel %vm3131_vm2, %v4496_v29, %v4505_v35  ;;  %v4297_v25 = vrot.slane %v4295_v3, 4  ;;  %v1936_v29 = vor.u32 %v1935_v44, %v1932_v38  ;;  %v4412_v9 = vshll.u32 %v15873_v51, 16 }
 0x24a   :  { %v4294_v52 = vrot.slane %v18935_v48, 3  ;;  %11385 = vmatprep.mubr.msk.bf16.mxu0 %vm14735_vm0, %v18769_v2  ;;  %v16333_v56 = vsel %vm3131_vm2, %v16204_v13, %v4289_v16  ;;  %v18936_v8 = vshrl.u32 %v15506_v53, 16  ;;  %v18937_v13 = vshll.u32 %v15506_v53, 16 }
 0x24b   :  { %11966 = vmatmul.mubr.bf16.gmra.mrb[8].mxu1 %v4506_v61  ;;  %v4402_v11 = vrot.slane %v4400_v41, 3  ;;  %v4418_v3 = vshrl.u32 %v15899_v7, 16  ;;  %v4405_v44 = vrot.slane %v4403_v58, 4  ;;  %v18938_v61 = vshrl.u32 %v15534_v24, 16 }
 0x24c   :  { %11982 = vmatpush3.bf16.msra.mxu1 %v14396_v28  ;;  %11969 = vmatprep.mubr.msk.bf16.mxu1 %vm14735_vm0, %v18769_v2  ;;  %v4303_v43 = vrot.slane %v18936_v8, 3  ;;  %v4306_v18 = vrot.slane %v18937_v13, 4  ;;  %v4421_v28 = vshll.u32 %v15899_v7, 16  ;;  %v4298_v14 = vor.u32 %v4297_v25, %v4294_v52  ;;  %v14399_v7 = vld [vmem:[%s18600_s2 + $0x130] sm:$0xff]  }
 0x24d   :  { %11983 = vmatprep.subr.bf16.mxu1 %v18769_v2  ;;  %v4312_v48 = vrot.slane %v18938_v61, 3  ;;  %v4315_v51 = vrot.slane %v4313_v50, 4  ;;  %v18939_v34 = vshrl.u32 %v15868_v21, 16  ;;  %v18940_v53 = vshll.u32 %v15868_v21, 16 }
 0x24e   :  { %v4307_v38 = vor.u32 %v4306_v18, %v4303_v43  ;;  %v4411_v47 = vrot.slane %v4409_v33, 3  ;;  %v16357_v41 = vsel %vm3131_vm2, %v4289_v16, %v4298_v14  ;;  %v4414_v58 = vrot.slane %v4412_v9, 4 }
 0x24f   :  { %v1941_v8 = vrot.slane %v18939_v34, 2  ;;  %v1944_v13 = vrot.slane %v18940_v53, 3  ;;  %v4316_v50 = vor.u32 %v4315_v51, %v4312_v48  ;;  %v18941_v52 = vshrl.u32 %v15572_v23, 16 }
 0x250   :  { %11984 = vmatpush3.bf16.msra.mxu1 %v14397_v42  ;;  %v16363_v24 = vsel %vm3131_vm2, %v4298_v14, %v4307_v38  ;;  %v1937_v21 = vsel %vm1659_vm3, %v1927_v30, %v1936_v29  ;;  %v4420_v33 = vrot.slane %v4418_v3, 3  ;;  %v4423_v16 = vrot.slane %v4421_v28, 4 }
 0x251   :  { %v4321_v34 = vrot.slane %v18941_v52, 3  ;;  %11985 = vmatprep.subr.bf16.mxu1 %v18769_v2  ;;  %v18942_v25 = vshll.u32 %v15572_v23, 16  ;;  %11386 = vmatmul.mubr.bf16.gmra.mrb[24].mxu0 %v1937_v21  ;;  %v4346_v43 = vshrl.u32 %v15681_v54, 16  ;;  %v4349_v9 = vshll.u32 %v15681_v54, 16  ;;  %v14400_v54 = vld [vmem:[%s18600_s2 + $0x138] sm:$0xff]  }
 0x252   :  { %v16374_v18 = vsel %vm3131_vm2, %v4307_v38, %v4316_v50  ;;  %v18943_v14 = vshrl.u32 %v15609_v26, 16  ;;  %11389 = vmatprep.mubr.msk.bf16.mxu0 %vm14735_vm0, %v18769_v2  ;;  %v4397_v30 = vor.u32 %v4396_v55, %v4393_v1  ;;  %v18944_v23 = vshll.u32 %v15609_v26, 16  ;;  %v14625_v21 = vld [vmem:[#allocation2 + $0x10] sm:$0xf] }
 0x253   :  { %v4324_v42 = vrot.slane %v18942_v25, 4  ;;  %11970 = vmatmul.mubr.bf16.gmra.mrb[12].mxu1 %v4505_v35  ;;  %v18945_v48 = vshrl.u32 %v15646_v19, 16  ;;  %v1945_v38 = vor.u32 %v1944_v13, %v1941_v8  ;;  %v4406_v35 = vor.u32 %v4405_v44, %v4402_v11 }
 0x254   :  { %v4330_v61 = vrot.slane %v18943_v14, 3  ;;  %v4333_v28 = vrot.slane %v18944_v23, 4  ;;  %11986 = vmatpush3.bf16.msra.mxu1 %v14399_v7  ;;  %11989 = vmatprep.mubr.msk.bf16.mxu1 %vm14735_vm0, %v18769_v2  ;;  %v4415_v53 = vor.u32 %v4414_v58, %v4411_v47  ;;  %v16390_v1 = vor.u32 %v4423_v16, %v4420_v33  ;;  %v7948_v23 = vld [vmem:[#allocation2 + $0x14] sm:$0xe] }
 0x255   :  { %v4325_v3 = vor.u32 %v4324_v42, %v4321_v34  ;;  %v4339_v51 = vrot.slane %v18945_v48, 3  ;;  %11987 = vmatprep.subr.bf16.mxu1 %v18769_v2  ;;  %v18946_v7 = vshll.u32 %v15646_v19, 16  ;;  %v14624_v34 = vld [vmem:[#allocation2 + $0xc] sm:$0xf]  ;;  %v4348_v8 = vrot.slane %v4346_v43, 3 }
 0x256   :  { %v4334_v55 = vor.u32 %v4333_v28, %v4330_v61  ;;  %v9961_v25 = vcombine.low %v14624_v34, %v14625_v21  ;;  %v4351_v47 = vrot.slane %v4349_v9, 4  ;;  %v16402_v44 = vsel %vm3131_vm2, %v16238_v63, %v4397_v30  ;;  %v6788_v61 = vld [vmem:[#allocation2 + $0x18] sm:$0xf] }
 0x257   :  { %v16393_v26 = vsel %vm3131_vm2, %v4316_v50, %v4325_v3  ;;  %v4342_v52 = vrot.slane %v18946_v7, 4  ;;  %v1946_v58 = vsel %vm1659_vm3, %v1936_v29, %v1945_v38  ;;  %v18947_v50 = vshrl.u32 %v15892_v5, 16 }
 0x258   :  { %v16398_v13 = vsel %vm3131_vm2, %v4325_v3, %v4334_v55  ;;  %11988 = vmatpush3.bf16.msra.mxu1 %v14400_v54  ;;  %v16408_v33 = vsel %vm3131_vm2, %v4397_v30, %v4406_v35  ;;  %v16411_v16 = vsel %vm3131_vm2, %v4406_v35, %v4415_v53  ;;  %v18948_v42 = vshll.u32 %v15892_v5, 16  ;;  %v16434_v30 = vld [vmem:[#allocation2 + $0x1c] sm:$0xff]   ;;  %v14626_v54 = vld [vmem:[#allocation2 + $0x14] sm:$0xf]  ;;  %v14627_v35 = vld [vmem:[#allocation2 + $0x18] sm:$0xf] }
 0x259   :  { %v4343_v11 = vor.u32 %v4342_v52, %v4339_v51  ;;  %v1950_v19 = vrot.slane %v18947_v50, 2  ;;  %12153 = vmatprep.subr.bf16.mxu1 %v18769_v2  ;;  %v4352_v9 = vor.u32 %v4351_v47, %v4348_v8  ;;  %v16421_v29 = vsel %vm3131_vm2, %v4415_v53, %v16390_v1  ;;  %11390 = vmatmul.mubr.bf16.gmra.mrb[28].mxu0 %v1946_v58 }
 0x25a   :  { %v1953_v43 = vrot.slane %v18948_v42, 3  ;;  %11393 = vmatprep.mubr.msk.bf16.mxu0 %vm14735_vm0, %v18769_v2  ;;  %v16436_v28 = vcombine.low %v7948_v23, %v6788_v61  ;;  %v7103_v48 = vshrl.u32 %v16434_v30, 16  ;;  %v9962_v53 = vcombine.low %v14626_v54, %v14627_v35  ;;  %v14628_v42 = vld [vmem:[#allocation2 + $0x1c] sm:$0xf] }
 0x25b   :  { %v16417_v63 = vsel %vm3131_vm2, %v4334_v55, %v4343_v11  ;;  %11990 = vmatmul.mubr.bf16.vlgmr.msra.gmra.mrb[16].mxu1 %v9961_v25  ;;  %v16426_v14 = vsel %vm3131_vm2, %v4343_v11, %v4352_v9  ;;  %v16430_v5 = vsel %vm3131_vm2, %v4352_v9, %v16248_v59  ;;  %v18949_v59 = vshrl.u32 %v15923_v12, 16 }
 0x25c   :  { %11993 = vmatprep.mubr.msk.bf16.mxu1 %vm14735_vm0, %v18769_v2  ;;  %v1954_v3 = vor.u32 %v1953_v43, %v1950_v19  ;;  %v18950_v7 = vshll.u32 %v15923_v12, 16  ;;  %v7099_v34 = vshll.u32 %v16434_v30, 16  ;;  %v8604_v21 = vshrl.u32 %v16436_v28, 16  ;;  %v14629_v43 = vld [vmem:[#allocation2 + $0x20] sm:$0xf]  ;;  %v17121_v30 = vld [vmem:[#allocation2 + $0x34] sm:$0xff]  }
 0x25d   :  { %v1959_v55 = vrot.slane %v18949_v59, 2  ;;  %v8611_v25 = vrot.slane %v7103_v48, 1  ;;  %v9963_v9 = vcombine.low %v14628_v42, %v14629_v43  ;;  %v18952_v61 = vshrl.u32 %v15949_v40, 16  ;;  %v14630_v59 = vld [vmem:[#allocation2 + $0x24] sm:$0xf] }
 0x25e   :  { %v1955_v51 = vsel %vm1659_vm3, %v1945_v38, %v1954_v3  ;;  %v1962_v52 = vrot.slane %v18950_v7, 3  ;;  %v8607_v38 = vshll.u32 %v16436_v28, 16  ;;  %v8606_v12 = vrot.slane %v8604_v21, 1 }
 0x25f   :  { %v8612_v47 = vrot.slane %v7099_v34, 2  ;;  %v1968_v23 = vrot.slane %v18952_v61, 2  ;;  %v18955_v21 = vshll.u32 %v15975_v0, 16  ;;  %v14634_v61 = vld [vmem:[#allocation2 + $0x34] sm:$0xf] }
 0x260   :  { %v1963_v8 = vor.u32 %v1962_v52, %v1959_v55  ;;  %v8609_v11 = vrot.slane %v8607_v38, 2  ;;  %v14631_v55 = vld [vmem:[#allocation2 + $0x28] sm:$0xf] }
 0x261   :  { %11394 = vmatmul.mubr.bf16.gmra.mrb[32].mxu0 %v1955_v51  ;;  %v16455_v50 = vor.u32 %v8612_v47, %v8611_v25  ;;  %v18953_v51 = vshll.u32 %v15949_v40, 16  ;;  %v9964_v7 = vcombine.low %v14630_v59, %v14631_v55  ;;  %v18954_v40 = vshrl.u32 %v15975_v0, 16 }
 0x262   :  { %11397 = vmatprep.mubr.msk.bf16.mxu0 %vm14735_vm0, %v18769_v2  ;;  %v8610_v58 = vor.u32 %v8609_v11, %v8606_v12  ;;  %v1964_v19 = vsel %vm1659_vm3, %v1954_v3, %v1963_v8  ;;  %v1980_v38 = vrot.slane %v18955_v21, 3  ;;  %v14632_v12 = vld [vmem:[#allocation2 + $0x2c] sm:$0xf]  ;;  %v14633_v11 = vld [vmem:[#allocation2 + $0x30] sm:$0xf]  ;;  %v18957_v0 = vshll.u32 %v16013_v32, 16 }
 0x263   :  { %11994 = vmatmul.mubr.bf16.gmra.mrb[20].mxu1 %v9962_v53  ;;  %18951 = vst [vmem:[#allocation104_spill] sm:$0xff] %v16455_v50  ;;  %v1971_v54 = vrot.slane %v18953_v51, 3  ;;  %v1977_v52 = vrot.slane %v18954_v40, 2  ;;  %v9965_v47 = vcombine.low %v14632_v12, %v14633_v11  ;;  %v14637_v40 = vld [vmem:[#allocation2 + $0x40] sm:$0xf]  ;;  %v18960_v21 = vshrl.u32 %v16102_v46, 16 }
 0x264   :  { %11997 = vmatprep.mubr.msk.bf16.mxu1 %vm14735_vm0, %v18769_v2  ;;  %v16464_v35 = vsel %vm8602_vm4, %v8610_v58, %v16455_v50  ;;  %v18956_v58 = vshrl.u32 %v16013_v32, 16  ;;  %v1989_v42 = vrot.slane %v18957_v0, 3  ;;  %v18959_v32 = vshll.u32 %v16049_v31, 16  ;;  %v14638_v11 = vld [vmem:[#allocation2 + $0x44] sm:$0xf] }
 0x265   :  { %v1972_v3 = vor.u32 %v1971_v54, %v1968_v23  ;;  %v1981_v25 = vor.u32 %v1980_v38, %v1977_v52  ;;  %v14635_v23 = vld [vmem:[#allocation2 + $0x38] sm:$0xf]  ;;  %v18958_v54 = vshrl.u32 %v16049_v31, 16  ;;  %v2004_v38 = vrot.slane %v18960_v21, 2  ;;  %v14644_v21 = vld [vmem:[#allocation2 + $0x5c] sm:$0xf] }
 0x266   :  { %v9966_v51 = vcombine.low %v14634_v61, %v14635_v23  ;;  %v18961_v31 = vshll.u32 %v16102_v46, 16  ;;  %v18963_v46 = vshll.u32 %v16167_v6, 16  ;;  %v2023_v61 = vshll.u32 %v16216_v57, 16 }
 0x267   :  { %v1973_v53 = vsel %vm1659_vm3, %v1963_v8, %v1972_v3  ;;  %v1982_v8 = vsel %vm1659_vm3, %v1972_v3, %v1981_v25  ;;  %v1995_v3 = vrot.slane %v18958_v54, 2  ;;  %v14641_v54 = vld [vmem:[#allocation2 + $0x50] sm:$0xf] }
 0x269   :  { %11398 = vmatmul.mubr.bf16.gmra.mrb[36].mxu0 %v1964_v19  ;;  %v1986_v19 = vrot.slane %v18956_v58, 2 }
 0x26a   :  { %11401 = vmatprep.mubr.msk.bf16.mxu0 %vm14735_vm0, %v18769_v2 }
 0x26b   :  { %11998 = vmatmul.mubr.bf16.gmra.mrb[24].mxu1 %v9963_v9  ;;  %v1990_v43 = vor.u32 %v1989_v42, %v1986_v19  ;;  %v18962_v19 = vshrl.u32 %v16167_v6, 16  ;;  %v2016_v42 = vrot.slane %v18963_v46, 3  ;;  %v14650_v46 = vld [vmem:[#allocation2 + $0x74] sm:$0xf] }
 0x26c   :  { %12001 = vmatprep.mubr.msk.bf16.mxu1 %vm14735_vm0, %v18769_v2 }
 0x26d   :  { %v1991_v9 = vsel %vm1659_vm3, %v1981_v25, %v1990_v43  ;;  %v2007_v25 = vrot.slane %v18961_v31, 3  ;;  %v2013_v0 = vrot.slane %v18962_v19, 2 }
 0x271   :  { %11402 = vmatmul.mubr.bf16.gmra.mrb[40].mxu0 %v1973_v53  ;;  %v1998_v53 = vrot.slane %v18959_v32, 3  ;;  %v2025_v32 = vrot.slane %v2023_v61, 3  ;;  %v18967_v61 = vld [vmem:[#allocation80_spill] sm:$0xff] }
 0x272   :  { %11405 = vmatprep.mubr.msk.bf16.mxu0 %vm14735_vm0, %v18769_v2 }
 0x273   :  { %12002 = vmatmul.mubr.bf16.gmra.mrb[28].mxu1 %v9964_v7  ;;  %v1999_v59 = vor.u32 %v1998_v53, %v1995_v3  ;;  %v14636_v7 = vld [vmem:[#allocation2 + $0x3c] sm:$0xf] }
 0x274   :  { %12005 = vmatprep.mubr.msk.bf16.mxu1 %vm14735_vm0, %v18769_v2  ;;  %v9967_v52 = vcombine.low %v14636_v7, %v14637_v40  ;;  %v14643_v7 = vld [vmem:[#allocation2 + $0x58] sm:$0xf] }
 0x275   :  { %v2000_v55 = vsel %vm1659_vm3, %v1990_v43, %v1999_v59  ;;  %v2017_v43 = vor.u32 %v2016_v42, %v2013_v0  ;;  %v18965_v0 = vld [vmem:[#allocation8_spill] sm:$0xff]  ;;  %v14651_v42 = vld [vmem:[#allocation2 + $0x78] sm:$0xf] }
 0x279   :  { %11406 = vmatmul.mubr.bf16.gmra.mrb[44].mxu0 %v1982_v8  ;;  %v2008_v8 = vor.u32 %v2007_v25, %v2004_v38  ;;  %v14645_v38 = vld [vmem:[#allocation2 + $0x60] sm:$0xf]  ;;  %v14646_v25 = vld [vmem:[#allocation2 + $0x64] sm:$0xf] }
 0x27a   :  { %11409 = vmatprep.mubr.msk.bf16.mxu0 %vm14735_vm0, %v18769_v2  ;;  %v9971_v31 = vcombine.low %v14644_v21, %v14645_v38 }
 0x27b   :  { %12006 = vmatmul.mubr.bf16.gmra.mrb[32].mxu1 %v9965_v47  ;;  %v2009_v12 = vsel %vm1659_vm3, %v1999_v59, %v2008_v8  ;;  %v14639_v47 = vld [vmem:[#allocation2 + $0x48] sm:$0xf]  ;;  %v2018_v23 = vsel %vm1659_vm3, %v2008_v8, %v2017_v43 }
 0x27c   :  { %12009 = vmatprep.mubr.msk.bf16.mxu1 %vm14735_vm0, %v18769_v2  ;;  %v9968_v58 = vcombine.low %v14638_v11, %v14639_v47  ;;  %v14647_v8 = vld [vmem:[#allocation2 + $0x68] sm:$0xf]  ;;  %v18964_v11 = vld [vmem:[#allocation6_spill] sm:$0xff]  ;;  %v14648_v47 = vld [vmem:[#allocation2 + $0x6c] sm:$0xf] }
 0x281   :  { %11410 = vmatmul.mubr.bf16.gmra.mrb[48].mxu0 %v1991_v9  ;;  %v2020_v9 = vshrl.u32 %v16216_v57, 16 }
 0x282   :  { %11413 = vmatprep.mubr.msk.bf16.mxu0 %vm14735_vm0, %v18769_v2 }
 0x283   :  { %12010 = vmatmul.mubr.bf16.gmra.mrb[36].mxu1 %v9966_v51  ;;  %v14640_v51 = vld [vmem:[#allocation2 + $0x4c] sm:$0xf]  ;;  %v2022_v6 = vrot.slane %v2020_v9, 2 }
 0x284   :  { %12013 = vmatprep.mubr.msk.bf16.mxu1 %vm14735_vm0, %v18769_v2  ;;  %v9969_v3 = vcombine.low %v14640_v51, %v14641_v54  ;;  %v18966_v9 = vld [vmem:[#allocation11_spill] sm:$0xff]  ;;  %v4430_v51 = vshll.u32 %v18967_v61, 16 }
 0x285   :  { %v2026_v53 = vor.u32 %v2025_v32, %v2022_v6  ;;  %v14652_v6 = vld [vmem:[#allocation2 + $0x7c] sm:$0xf]  ;;  %v14653_v32 = vld [vmem:[#allocation2 + $0x80] sm:$0xf] }
 0x287   :  { %v2027_v59 = vsel %vm1659_vm3, %v2017_v43, %v2026_v53  ;;  %v9974_v43 = vcombine.low %v14650_v46, %v14651_v42 }
 0x289   :  { %11414 = vmatmul.mubr.bf16.gmra.mrb[52].mxu0 %v2000_v55  ;;  %v14642_v55 = vld [vmem:[#allocation2 + $0x54] sm:$0xf] }
 0x28a   :  { %11417 = vmatprep.mubr.msk.bf16.mxu0 %vm14735_vm0, %v18769_v2  ;;  %v9970_v40 = vcombine.low %v14642_v55, %v14643_v7  ;;  %v14483_v55 = vld [vmem:[%s18600_s2 + $0x148] sm:$0xff]  }
 0x28b   :  { %12014 = vmatmul.mubr.bf16.gmra.mrb[40].mxu1 %v9967_v52  ;;  %v14472_v52 = vld [vmem:[%s18600_s2 + $0x140] sm:$0xff]  }
 0x28c   :  { %12017 = vmatprep.mubr.msk.bf16.mxu1 %vm14735_vm0, %v18769_v2  ;;  %12154 = vmatpush3.bf16.msra.mxu1 %v14472_v52 }
 0x28d   :  { %12155 = vmatprep.subr.bf16.mxu1 %v18769_v2 }
 0x290   :  { %12156 = vmatpush3.bf16.msra.mxu1 %v14483_v55 }
 0x291   :  { %11418 = vmatmul.mubr.bf16.gmra.mrb[56].mxu0 %v2009_v12  ;;  %v9972_v12 = vcombine.low %v14646_v25, %v14647_v8  ;;  %12157 = vmatprep.subr.bf16.mxu1 %v18769_v2  ;;  %v14654_v8 = vld [vmem:[#allocation2 + $0x84] sm:$0xf] }
 0x292   :  { %11421 = vmatprep.mubr.msk.bf16.mxu0 %vm14735_vm0, %v18769_v2 }
 0x293   :  { %12018 = vmatmul.mubr.bf16.gmra.mrb[44].mxu1 %v9968_v58  ;;  %v14649_v58 = vld [vmem:[#allocation2 + $0x70] sm:$0xf] }
 0x294   :  { %12021 = vmatprep.mubr.msk.bf16.mxu1 %vm14735_vm0, %v18769_v2  ;;  %v9973_v19 = vcombine.low %v14648_v47, %v14649_v58  ;;  %v18970_v47 = vld [vmem:[#allocation15_spill] sm:$0xff] }
 0x299   :  { %11422 = vmatmul.mubr.bf16.gmra.mrb[60].mxu0 %v2018_v23  ;;  %v4427_v23 = vshrl.u32 %v18967_v61, 16  ;;  %v14657_v61 = vld [vmem:[#allocation2 + $0x90] sm:$0xf] }
 0x29a   :  { %11425 = vmatprep.mubr.msk.bf16.mxu0 %vm14735_vm0, %v18769_v2 }
 0x29b   :  { %12022 = vmatmul.mubr.bf16.gmra.mrb[48].mxu1 %v9969_v3  ;;  %v4429_v54 = vrot.slane %v4427_v23, 3  ;;  %v4432_v3 = vrot.slane %v4430_v51, 4  ;;  %v18972_v51 = vld [vmem:[#allocation17_spill] sm:$0xff] }
 0x29c   :  { %12025 = vmatprep.mubr.msk.bf16.mxu1 %vm14735_vm0, %v18769_v2 }
 0x29d   :  { %v4433_v7 = vor.u32 %v4432_v3, %v4429_v54  ;;  %v18973_v3 = vld [vmem:[#allocation90_spill] sm:$0xff] }
 0x29f   :  { %v16565_v25 = vsel %vm3131_vm2, %v16390_v1, %v4433_v7 }
 0x2a1   :  { %11426 = vmatmul.mubr.bf16.gmra.mrb[64].mxu0 %v2027_v59  ;;  %v18968_v59 = vld [vmem:[#allocation13_spill] sm:$0xff] }
 0x2a2   :  { %11429 = vmatprep.mubr.msk.bf16.mxu0 %vm14735_vm0, %v18769_v2 }
 0x2a3   :  { %12026 = vmatmul.mubr.bf16.gmra.mrb[52].mxu1 %v9970_v40  ;;  %v18969_v40 = vld [vmem:[#allocation83_spill] sm:$0xff] }
 0x2a4   :  { %12029 = vmatprep.mubr.msk.bf16.mxu1 %vm14735_vm0, %v18769_v2  ;;  %v4436_v52 = vshrl.u32 %v18969_v40, 16  ;;  %v4439_v21 = vshll.u32 %v18969_v40, 16  ;;  %v14659_v40 = vld [vmem:[#allocation2 + $0x98] sm:$0xf] }
 0x2a6   :  { %v4438_v38 = vrot.slane %v4436_v52, 3 }
 0x2a9   :  { %11430 = vmatmul.mubr.bf16.gmra.mrb[68].mxu0 %v2026_v53  ;;  %v9975_v53 = vcombine.low %v14652_v6, %v14653_v32  ;;  %v4454_v6 = vshrl.u32 %v18973_v3, 16  ;;  %v4457_v32 = vshll.u32 %v18973_v3, 16  ;;  %v14664_v3 = vld [vmem:[#allocation2 + $0xac] sm:$0xf] }
 0x2aa   :  { %11449 = vmatprep.mubr.msk.bf16.mxu0 %vm14735_vm0, %v18769_v2 }
 0x2ab   :  { %12030 = vmatmul.mubr.bf16.gmra.mrb[56].mxu1 %v9971_v31  ;;  %v4441_v31 = vrot.slane %v4439_v21, 4  ;;  %v18974_v21 = vld [vmem:[#allocation19_spill] sm:$0xff] }
 0x2ac   :  { %12033 = vmatprep.mubr.msk.bf16.mxu1 %vm14735_vm0, %v18769_v2 }
 0x2ad   :  { %v4442_v58 = vor.u32 %v4441_v31, %v4438_v38  ;;  %v18975_v31 = vld [vmem:[#allocation94_spill] sm:$0xff] }
 0x2b1   :  { %11450 = vmatmul.mubr.bf16.vlgmr.msra.gmra.mrb[164].mxu0 %v18964_v11 }
 0x2b2   :  { %11453 = vmatprep.mubr.msk.bf16.mxu0 %vm14735_vm0, %v18769_v2 }
 0x2b3   :  { %12034 = vmatmul.mubr.bf16.gmra.mrb[60].mxu1 %v9972_v12  ;;  %v14655_v12 = vld [vmem:[#allocation2 + $0x88] sm:$0xf] }
 0x2b4   :  { %12037 = vmatprep.mubr.msk.bf16.mxu1 %vm14735_vm0, %v18769_v2  ;;  %v9976_v11 = vcombine.low %v14654_v8, %v14655_v12  ;;  %v4463_v8 = vshrl.u32 %v18975_v31, 16  ;;  %v4466_v12 = vshll.u32 %v18975_v31, 16  ;;  %v14669_v31 = vld [vmem:[#allocation2 + $0xc0] sm:$0xf] }
 0x2b9   :  { %11454 = vmatmul.mubr.bf16.gmra.mrb[168].mxu0 %v18965_v0 }
 0x2ba   :  { %11457 = vmatprep.mubr.msk.bf16.mxu0 %vm14735_vm0, %v18769_v2 }
 0x2bb   :  { %12038 = vmatmul.mubr.bf16.gmra.mrb[64].mxu1 %v9973_v19  ;;  %v18971_v19 = vld [vmem:[#allocation87_spill] sm:$0xff] }
 0x2bc   :  { %12041 = vmatprep.mubr.msk.bf16.mxu1 %vm14735_vm0, %v18769_v2  ;;  %v4445_v0 = vshrl.u32 %v18971_v19, 16  ;;  %v4448_v46 = vshll.u32 %v18971_v19, 16  ;;  %v14660_v19 = vld [vmem:[#allocation2 + $0x9c] sm:$0xf] }
 0x2be   :  { %v4447_v42 = vrot.slane %v4445_v0, 3  ;;  %v4450_v1 = vrot.slane %v4448_v46, 4  ;;  %v14661_v0 = vld [vmem:[#allocation2 + $0xa0] sm:$0xf] }
 0x2bf   :  { %v9979_v46 = vcombine.low %v14660_v19, %v14661_v0  ;;  %v14671_v19 = vld [vmem:[#allocation2 + $0xc8] sm:$0xf] }
 0x2c0   :  { %v4451_v54 = vor.u32 %v4450_v1, %v4447_v42  ;;  %v18976_v42 = vld [vmem:[#allocation21_spill] sm:$0xff] }
 0x2c1   :  { %11458 = vmatmul.mubr.bf16.gmra.mrb[172].mxu0 %v18966_v9  ;;  %v14656_v9 = vld [vmem:[#allocation2 + $0x8c] sm:$0xf] }
 0x2c2   :  { %11461 = vmatprep.mubr.msk.bf16.mxu0 %vm14735_vm0, %v18769_v2  ;;  %v9977_v23 = vcombine.low %v14656_v9, %v14657_v61  ;;  %v16585_v55 = vsel %vm3131_vm2, %v4442_v58, %v4451_v54  ;;  %v14662_v61 = vld [vmem:[#allocation2 + $0xa4] sm:$0xf] }
 0x2c3   :  { %12042 = vmatmul.mubr.bf16.gmra.mrb[68].mxu1 %v9974_v43  ;;  %v16575_v43 = vsel %vm3131_vm2, %v4433_v7, %v4442_v58  ;;  %v14658_v7 = vld [vmem:[#allocation2 + $0x94] sm:$0xf] }
 0x2c4   :  { %12045 = vmatprep.mubr.msk.bf16.mxu1 %vm14735_vm0, %v18769_v2  ;;  %v9978_v52 = vcombine.low %v14658_v7, %v14659_v40  ;;  %v14666_v7 = vld [vmem:[#allocation2 + $0xb4] sm:$0xf]  ;;  %v14667_v40 = vld [vmem:[#allocation2 + $0xb8] sm:$0xf] }
 0x2c9   :  { %11462 = vmatmul.mubr.bf16.gmra.mrb[176].mxu0 %v18968_v59  ;;  %v4459_v59 = vrot.slane %v4457_v32, 4 }
 0x2ca   :  { %11465 = vmatprep.mubr.msk.bf16.mxu0 %vm14735_vm0, %v18769_v2 }
 0x2cb   :  { %12046 = vmatmul.mubr.bf16.gmra.mrb[72].mxu1 %v9975_v53  ;;  %v4456_v53 = vrot.slane %v4454_v6, 3  ;;  %v14665_v6 = vld [vmem:[#allocation2 + $0xb0] sm:$0xf] }
 0x2cc   :  { %12049 = vmatprep.mubr.msk.bf16.mxu1 %vm14735_vm0, %v18769_v2  ;;  %v9981_v32 = vcombine.low %v14664_v3, %v14665_v6  ;;  %v18982_v3 = vld [vmem:[#allocation33_spill] sm:$0xff] }
 0x2cd   :  { %v4460_v38 = vor.u32 %v4459_v59, %v4456_v53  ;;  %v18978_v53 = vld [vmem:[#allocation25_spill] sm:$0xff] }
 0x2ce   :  { %v14494_v59 = vld [vmem:[%s18600_s2 + $0x150] sm:$0xff]  }
 0x2cf   :  { %v16595_v58 = vsel %vm3131_vm2, %v4451_v54, %v4460_v38  ;;  %v18977_v54 = vld [vmem:[#allocation23_spill] sm:$0xff]  ;;  %12158 = vmatpush3.bf16.msra.mxu1 %v14494_v59  ;;  %v14504_v6 = vld [vmem:[%s18600_s2 + $0x170] sm:$0xff]   ;;  %v14675_v59 = vld [vmem:[#allocation2 + $0xd8] sm:$0xf] }
 0x2d0   :  { %12159 = vmatprep.subr.bf16.mxu1 %v18769_v2 }
 0x2d1   :  { %11466 = vmatmul.mubr.bf16.gmra.mrb[180].mxu0 %v18970_v47  ;;  %v4468_v47 = vrot.slane %v4466_v12, 4  ;;  %v18980_v12 = vld [vmem:[#allocation29_spill] sm:$0xff] }
 0x2d2   :  { %11469 = vmatprep.mubr.msk.bf16.mxu0 %vm14735_vm0, %v18769_v2 }
 0x2d3   :  { %12050 = vmatmul.mubr.bf16.gmra.mrb[76].mxu1 %v9976_v11  ;;  %v4465_v11 = vrot.slane %v4463_v8, 3 }
 0x2d4   :  { %12053 = vmatprep.mubr.msk.bf16.mxu1 %vm14735_vm0, %v18769_v2 }
 0x2d5   :  { %v16602_v1 = vor.u32 %v4468_v47, %v4465_v11  ;;  %v14499_v11 = vld [vmem:[%s18600_s2 + $0x158] sm:$0xff]   ;;  %v14670_v47 = vld [vmem:[#allocation2 + $0xc4] sm:$0xf] }
 0x2d6   :  { %12160 = vmatpush3.bf16.msra.mxu1 %v14499_v11  ;;  %v9984_v0 = vcombine.low %v14670_v47, %v14671_v19  ;;  %v18985_v47 = vld [vmem:[#allocation40_spill] sm:$0xff] }
 0x2d7   :  { %v16606_v9 = vsel %vm3131_vm2, %v4460_v38, %v16602_v1  ;;  %v14668_v38 = vld [vmem:[#allocation2 + $0xbc] sm:$0xf]  ;;  %12161 = vmatprep.subr.bf16.mxu1 %v18769_v2  ;;  %v14680_v19 = vld [vmem:[#allocation2 + $0xec] sm:$0xf] }
 0x2d8   :  { %v9983_v8 = vcombine.low %v14668_v38, %v14669_v31  ;;  %v18984_v31 = vld [vmem:[#allocation37_spill] sm:$0xff] }
 0x2d9   :  { %11470 = vmatmul.mubr.bf16.gmra.mrb[184].mxu0 %v18972_v51 }
 0x2da   :  { %11473 = vmatprep.mubr.msk.bf16.mxu0 %vm14735_vm0, %v18769_v2 }
 0x2db   :  { %12054 = vmatmul.mubr.bf16.gmra.mrb[80].mxu1 %v9977_v23  ;;  %v14663_v23 = vld [vmem:[#allocation2 + $0xa8] sm:$0xf] }
 0x2dc   :  { %12057 = vmatprep.mubr.msk.bf16.mxu1 %vm14735_vm0, %v18769_v2  ;;  %v9980_v51 = vcombine.low %v14662_v61, %v14663_v23  ;;  %v14502_v61 = vld [vmem:[%s18600_s2 + $0x168] sm:$0xff]  }
 0x2dd   :  { %v14672_v23 = vld [vmem:[#allocation2 + $0xcc] sm:$0xf] }
 0x2e1   :  { %11474 = vmatmul.mubr.bf16.gmra.mrb[188].mxu0 %v18974_v21  ;;  %v18979_v21 = vld [vmem:[#allocation27_spill] sm:$0xff] }
 0x2e2   :  { %11477 = vmatprep.mubr.msk.bf16.mxu0 %vm14735_vm0, %v18769_v2 }
 0x2e3   :  { %12058 = vmatmul.mubr.bf16.gmra.mrb[84].mxu1 %v9978_v52  ;;  %v9982_v52 = vcombine.low %v14666_v7, %v14667_v40  ;;  %v18983_v40 = vld [vmem:[#allocation35_spill] sm:$0xff] }
 0x2e4   :  { %12061 = vmatprep.mubr.msk.bf16.mxu1 %vm14735_vm0, %v18769_v2 }
 0x2e9   :  { %11478 = vmatmul.mubr.bf16.gmra.mrb[192].mxu0 %v18976_v42  ;;  %v14501_v42 = vld [vmem:[%s18600_s2 + $0x160] sm:$0xff]  }
 0x2ea   :  { %11481 = vmatprep.mubr.msk.bf16.mxu0 %vm14735_vm0, %v18769_v2  ;;  %12162 = vmatpush3.bf16.msra.mxu1 %v14501_v42  ;;  %v18986_v42 = vld [vmem:[#allocation42_spill] sm:$0xff] }
 0x2eb   :  { %12062 = vmatmul.mubr.bf16.gmra.mrb[88].mxu1 %v9979_v46  ;;  %v18981_v46 = vld [vmem:[#allocation31_spill] sm:$0xff]  ;;  %12163 = vmatprep.subr.bf16.mxu1 %v18769_v2 }
 0x2ec   :  { %12065 = vmatprep.mubr.msk.bf16.mxu1 %vm14735_vm0, %v18769_v2 }
 0x2ee   :  { %12164 = vmatpush3.bf16.msra.mxu1 %v14502_v61  ;;  %v14682_v61 = vld [vmem:[#allocation2 + $0xf4] sm:$0xf] }
 0x2ef   :  { %12165 = vmatprep.subr.bf16.mxu1 %v18769_v2 }
 0x2f1   :  { %11482 = vmatmul.mubr.bf16.gmra.mrb[196].mxu0 %v18977_v54 }
 0x2f2   :  { %11485 = vmatprep.mubr.msk.bf16.mxu0 %vm14735_vm0, %v18769_v2  ;;  %12166 = vmatpush3.bf16.msra.mxu1 %v14504_v6  ;;  %v14685_v6 = vld [vmem:[#allocation2 + $0x100] sm:$0xf] }
 0x2f3   :  { %12066 = vmatmul.mubr.bf16.gmra.mrb[92].mxu1 %v9980_v51  ;;  %v14673_v51 = vld [vmem:[#allocation2 + $0xd0] sm:$0xf]  ;;  %12167 = vmatprep.subr.bf16.mxu1 %v18769_v2 }
 0x2f4   :  { %12069 = vmatprep.mubr.msk.bf16.mxu1 %vm14735_vm0, %v18769_v2  ;;  %v9985_v54 = vcombine.low %v14672_v23, %v14673_v51  ;;  %v14683_v23 = vld [vmem:[#allocation2 + $0xf8] sm:$0xf] }
 0x2f5   :  { %v9990_v51 = vcombine.low %v14682_v61, %v14683_v23  ;;  %v14519_v61 = vld [vmem:[%s18600_s2 + $0x98] sm:$0xff]  }
 0x2f6   :  { %v14692_v23 = vld [vmem:[#allocation2 + $0x11c] sm:$0xf] }
 0x2f9   :  { %11486 = vmatmul.mubr.bf16.gmra.mrb[200].mxu0 %v18978_v53  ;;  %v14674_v53 = vld [vmem:[#allocation2 + $0xd4] sm:$0xf] }
 0x2fa   :  { %11489 = vmatprep.mubr.msk.bf16.mxu0 %vm14735_vm0, %v18769_v2  ;;  %v9986_v7 = vcombine.low %v14674_v53, %v14675_v59  ;;  %v18988_v53 = vld [vmem:[#allocation48_spill] sm:$0xff]  ;;  %v14686_v59 = vld [vmem:[#allocation2 + $0x104] sm:$0xf] }
 0x2fb   :  { %12070 = vmatmul.mubr.bf16.gmra.mrb[96].mxu1 %v9981_v32  ;;  %v14505_v32 = vld [vmem:[%s18600_s2 + $0x178] sm:$0xff]  }
 0x2fc   :  { %12073 = vmatprep.mubr.msk.bf16.mxu1 %vm14735_vm0, %v18769_v2  ;;  %12168 = vmatpush3.bf16.msra.mxu1 %v14505_v32 }
 0x2fd   :  { %12333 = vmatprep.subr.bf16.mxu1 %v18769_v2 }
 0x301   :  { %11490 = vmatmul.mubr.bf16.gmra.mrb[204].mxu0 %v18979_v21  ;;  %v14677_v21 = vld [vmem:[#allocation2 + $0xe0] sm:$0xf] }
 0x302   :  { %11493 = vmatprep.mubr.msk.bf16.mxu0 %vm14735_vm0, %v18769_v2 }
 0x303   :  { %12074 = vmatmul.mubr.bf16.gmra.mrb[100].mxu1 %v9982_v52  ;;  %v14676_v52 = vld [vmem:[#allocation2 + $0xdc] sm:$0xf] }
 0x304   :  { %12077 = vmatprep.mubr.msk.bf16.mxu1 %vm14735_vm0, %v18769_v2  ;;  %v9987_v38 = vcombine.low %v14676_v52, %v14677_v21  ;;  %v18989_v52 = vld [vmem:[#allocation50_spill] sm:$0xff]  ;;  %v14688_v21 = vld [vmem:[#allocation2 + $0x10c] sm:$0xf] }
 0x309   :  { %11494 = vmatmul.mubr.bf16.gmra.mrb[208].mxu0 %v18980_v12  ;;  %v14679_v12 = vld [vmem:[#allocation2 + $0xe8] sm:$0xf] }
 0x30a   :  { %11497 = vmatprep.mubr.msk.bf16.mxu0 %vm14735_vm0, %v18769_v2 }
 0x30b   :  { %12078 = vmatmul.mubr.bf16.gmra.mrb[104].mxu1 %v9983_v8  ;;  %v14678_v8 = vld [vmem:[#allocation2 + $0xe4] sm:$0xf] }
 0x30c   :  { %12081 = vmatprep.mubr.msk.bf16.mxu1 %vm14735_vm0, %v18769_v2  ;;  %v9988_v11 = vcombine.low %v14678_v8, %v14679_v12  ;;  %v18990_v8 = vld [vmem:[#allocation53_spill] sm:$0xff]  ;;  %v14514_v12 = vld [vmem:[%s18600_s2 + $0x80] sm:$0xff]  }
 0x30d   :  { %11614 = vmatpush3.bf16.msra.mxu0 %v14514_v12  ;;  %v18994_v12 = vld [vmem:[#allocation64_spill] sm:$0xff] }
 0x30e   :  { %11615 = vmatprep.subr.bf16.mxu0 %v18769_v2 }
 0x311   :  { %11498 = vmatmul.mubr.bf16.gmra.mrb[212].mxu0 %v18981_v46 }
 0x312   :  { %11501 = vmatprep.mubr.msk.bf16.mxu0 %vm14735_vm0, %v18769_v2 }
 0x313   :  { %12082 = vmatmul.mubr.bf16.gmra.mrb[108].mxu1 %v9984_v0  ;;  %v14681_v0 = vld [vmem:[#allocation2 + $0xf0] sm:$0xf] }
 0x314   :  { %12085 = vmatprep.mubr.msk.bf16.mxu1 %vm14735_vm0, %v18769_v2  ;;  %v9989_v46 = vcombine.low %v14680_v19, %v14681_v0  ;;  %v14691_v19 = vld [vmem:[#allocation2 + $0x118] sm:$0xf] }
 0x319   :  { %11502 = vmatmul.mubr.bf16.gmra.mrb[216].mxu0 %v18982_v3  ;;  %v14684_v3 = vld [vmem:[#allocation2 + $0xfc] sm:$0xf] }
 0x31a   :  { %11505 = vmatprep.mubr.msk.bf16.mxu0 %vm14735_vm0, %v18769_v2  ;;  %v9991_v32 = vcombine.low %v14684_v3, %v14685_v6  ;;  %v18992_v3 = vld [vmem:[#allocation59_spill] sm:$0xff] }
 0x31b   :  { %12086 = vmatmul.mubr.bf16.gmra.mrb[112].mxu1 %v9985_v54  ;;  %v18987_v54 = vld [vmem:[#allocation45_spill] sm:$0xff]  ;;  %v14520_v6 = vld [vmem:[%s18600_s2 + $0xa0] sm:$0xff]  }
 0x31c   :  { %12089 = vmatprep.mubr.msk.bf16.mxu1 %vm14735_vm0, %v18769_v2 }
 0x321   :  { %11506 = vmatmul.mubr.bf16.gmra.mrb[220].mxu0 %v18983_v40 }
 0x322   :  { %11509 = vmatprep.mubr.msk.bf16.mxu0 %vm14735_vm0, %v18769_v2 }
 0x323   :  { %12090 = vmatmul.mubr.bf16.gmra.mrb[116].mxu1 %v9986_v7  ;;  %v14687_v7 = vld [vmem:[#allocation2 + $0x108] sm:$0xf] }
 0x324   :  { %12093 = vmatprep.mubr.msk.bf16.mxu1 %vm14735_vm0, %v18769_v2  ;;  %v9992_v40 = vcombine.low %v14686_v59, %v14687_v7  ;;  %v14695_v59 = vld [vmem:[#allocation2 + $0x128] sm:$0xf] }
 0x329   :  { %11510 = vmatmul.mubr.bf16.gmra.mrb[224].mxu0 %v18984_v31 }
 0x32a   :  { %11513 = vmatprep.mubr.msk.bf16.mxu0 %vm14735_vm0, %v18769_v2 }
 0x32b   :  { %12094 = vmatmul.mubr.bf16.gmra.mrb[120].mxu1 %v9987_v38  ;;  %v14689_v38 = vld [vmem:[#allocation2 + $0x110] sm:$0xf] }
 0x32c   :  { %12097 = vmatprep.mubr.msk.bf16.mxu1 %vm14735_vm0, %v18769_v2  ;;  %v9993_v31 = vcombine.low %v14688_v21, %v14689_v38  ;;  %v14525_v21 = vld [vmem:[%s18600_s2 + $0xb8] sm:$0xff]   ;;  %v14696_v38 = vld [vmem:[#allocation2 + $0x12c] sm:$0xf] }
 0x331   :  { %11514 = vmatmul.mubr.bf16.gmra.mrb[228].mxu0 %v18985_v47  ;;  %v14690_v47 = vld [vmem:[#allocation2 + $0x114] sm:$0xf] }
 0x332   :  { %11517 = vmatprep.mubr.msk.bf16.mxu0 %vm14735_vm0, %v18769_v2  ;;  %v9994_v0 = vcombine.low %v14690_v47, %v14691_v19  ;;  %v18996_v47 = vld [vmem:[#allocation97_spill] sm:$0xff] }
 0x333   :  { %12098 = vmatmul.mubr.bf16.gmra.mrb[124].mxu1 %v9988_v11  ;;  %v14516_v11 = vld [vmem:[%s18600_s2 + $0x88] sm:$0xff]   ;;  %v18997_v19 = vld [vmem:[#allocation101_spill] sm:$0xff] }
 0x334   :  { %12101 = vmatprep.mubr.msk.bf16.mxu1 %vm14735_vm0, %v18769_v2  ;;  %11616 = vmatpush3.bf16.msra.mxu0 %v14516_v11  ;;  %v18995_v11 = vld [vmem:[#allocation67_spill] sm:$0xff] }
 0x335   :  { %11617 = vmatprep.subr.bf16.mxu0 %v18769_v2 }
 0x339   :  { %11518 = vmatmul.mubr.bf16.gmra.mrb[232].mxu0 %v18986_v42  ;;  %v14517_v42 = vld [vmem:[%s18600_s2 + $0x90] sm:$0xff]  }
 0x33a   :  { %11521 = vmatprep.mubr.msk.bf16.mxu0 %vm14735_vm0, %v18769_v2  ;;  %11618 = vmatpush3.bf16.msra.mxu0 %v14517_v42  ;;  %v19000_v42 = vcombine.low %v16160_v39, %v16200_v62  ;;  %v14506_v39 = vld [vmem:[#allocation2 + $0xc] sm:$0xff]   ;;  %v14507_v62 = vld [vmem:[#allocation2 + $0x14] sm:$0xff]  }
 0x33b   :  { %12102 = vmatmul.mubr.bf16.gmra.mrb[128].mxu1 %v9989_v46  ;;  %v18991_v46 = vld [vmem:[#allocation56_spill] sm:$0xff]  ;;  %11619 = vmatprep.subr.bf16.mxu0 %v18769_v2 }
 0x33c   :  { %12105 = vmatprep.mubr.msk.bf16.mxu1 %vm14735_vm0, %v18769_v2 }
 0x33e   :  { %11620 = vmatpush3.bf16.msra.mxu0 %v14519_v61  ;;  %v19001_v61 = vld [vmem:[#allocation71_spill] sm:$0xff] }
 0x33f   :  { %11621 = vmatprep.subr.bf16.mxu0 %v18769_v2 }
 0x341   :  { %11522 = vmatmul.mubr.bf16.gmra.mrb[236].mxu0 %v18987_v54 }
 0x342   :  { %11525 = vmatprep.mubr.msk.bf16.mxu0 %vm14735_vm0, %v18769_v2  ;;  %11622 = vmatpush3.bf16.msra.mxu0 %v14520_v6  ;;  %v5938_v6 = vshll.u32 %v14507_v62, 16 }
 0x343   :  { %12106 = vmatmul.mubr.bf16.gmra.mrb[132].mxu1 %v9990_v51  ;;  %v14693_v51 = vld [vmem:[#allocation2 + $0x120] sm:$0xf]  ;;  %11623 = vmatprep.subr.bf16.mxu0 %v18769_v2 }
 0x344   :  { %12109 = vmatprep.mubr.msk.bf16.mxu1 %vm14735_vm0, %v18769_v2  ;;  %v9995_v54 = vcombine.low %v14692_v23, %v14693_v51  ;;  %v19002_v23 = vcombine.low %v16202_v27, %v16265_v60  ;;  %v5933_v51 = vshll.u32 %v14506_v39, 16  ;;  %v5931_v60 = vshrl.u32 %v14506_v39, 16 }
 0x346   :  { %v5935_v27 = vrot.slane %v5933_v51, 1  ;;  %v14511_v51 = vld [vmem:[#allocation2 + $0x34] sm:$0xff]  }
 0x349   :  { %11526 = vmatmul.mubr.bf16.gmra.mrb[240].mxu0 %v18988_v53  ;;  %v14694_v53 = vld [vmem:[#allocation2 + $0x124] sm:$0xf] }
 0x34a   :  { %11529 = vmatprep.mubr.msk.bf16.mxu0 %vm14735_vm0, %v18769_v2  ;;  %v9996_v7 = vcombine.low %v14694_v53, %v14695_v59  ;;  %v14508_v53 = vld [vmem:[#allocation2 + $0x1c] sm:$0xff]   ;;  %v5936_v59 = vor.u32 %v5935_v27, %v5931_v60  ;;  %v5970_v27 = vshll.u32 %v14511_v51, 16 }
 0x34b   :  { %12110 = vmatmul.mubr.bf16.gmra.mrb[136].mxu1 %v9991_v32  ;;  %v14522_v32 = vld [vmem:[%s18600_s2 + $0xa8] sm:$0xff]  }
 0x34c   :  { %12113 = vmatprep.mubr.msk.bf16.mxu1 %vm14735_vm0, %v18769_v2  ;;  %11624 = vmatpush3.bf16.msra.mxu0 %v14522_v32  ;;  %v5940_v32 = vrot.slane %v5938_v6, 1 }
 0x34d   :  { %11625 = vmatprep.subr.bf16.mxu0 %v18769_v2 }
 0x351   :  { %11530 = vmatmul.mubr.bf16.gmra.mrb[244].mxu0 %v18989_v52  ;;  %v14523_v52 = vld [vmem:[%s18600_s2 + $0xb0] sm:$0xff]  }
 0x352   :  { %11533 = vmatprep.mubr.msk.bf16.mxu0 %vm14735_vm0, %v18769_v2  ;;  %11626 = vmatpush3.bf16.msra.mxu0 %v14523_v52  ;;  %v5942_v52 = vshrl.u32 %v14507_v62, 16 }
 0x353   :  { %12114 = vmatmul.mubr.bf16.gmra.mrb[140].mxu1 %v9992_v40  ;;  %v18993_v40 = vld [vmem:[#allocation61_spill] sm:$0xff]  ;;  %11627 = vmatprep.subr.bf16.mxu0 %v18769_v2 }
 0x354   :  { %12117 = vmatprep.mubr.msk.bf16.mxu1 %vm14735_vm0, %v18769_v2 }
 0x356   :  { %11628 = vmatpush3.bf16.msra.mxu0 %v14525_v21 }
 0x357   :  { %11793 = vmatprep.subr.bf16.mxu0 %v18769_v2 }
 0x359   :  { %11534 = vmatmul.mubr.bf16.gmra.mrb[248].mxu0 %v18990_v8 }
 0x35a   :  { %11537 = vmatprep.mubr.msk.bf16.mxu0 %vm14735_vm0, %v18769_v2 }
 0x35b   :  { %12118 = vmatmul.mubr.bf16.gmra.mrb[144].mxu1 %v9993_v31  ;;  %v14697_v31 = vld [vmem:[#allocation2 + $0x130] sm:$0xf] }
 0x35c   :  { %12121 = vmatprep.mubr.msk.bf16.mxu1 %vm14735_vm0, %v18769_v2  ;;  %v9997_v8 = vcombine.low %v14696_v38, %v14697_v31  ;;  %v14509_v38 = vld [vmem:[#allocation2 + $0x24] sm:$0xff]   ;;  %v5944_v31 = vor.u32 %v5942_v52, %v5940_v32  ;;  %v5974_v52 = vshrl.u32 %v14511_v51, 16  ;;  %v14518_v51 = vld [vmem:[#allocation2 + $0x54] sm:$0xff]  }
 0x35d   :  { %v5958_v39 = vshrl.u32 %v14509_v38, 16 }
 0x361   :  { %11538 = vmatmul.mubr.bf16.gmra.mrb[252].mxu0 %v18991_v46  ;;  %v18999_v46 = vld [vmem:[#allocation69_spill] sm:$0xff] }
 0x362   :  { %11541 = vmatprep.mubr.msk.bf16.mxu0 %vm14735_vm0, %v18769_v2 }
 0x363   :  { %12122 = vmatmul.mubr.bf16.gmra.mrb[148].mxu1 %v9994_v0  ;;  %v18998_v0 = vcombine.low %v18996_v47, %v18997_v19  ;;  %v5950_v47 = vshrl.u32 %v14508_v53, 16 }
 0x364   :  { %12125 = vmatprep.mubr.msk.bf16.mxu1 %vm14735_vm0, %v18769_v2 }
 0x369   :  { %11542 = vmatmul.mubr.bf16.gmra.mrb[0].mxu0 %v18992_v3  ;;  %v19003_v3 = vld [vmem:[#allocation74_spill] sm:$0xff] }
 0x36a   :  { %11545 = vmatprep.mubr.msk.bf16.mxu0 %vm14735_vm0, %v18769_v2 }
 0x36b   :  { %12126 = vmatmul.mubr.bf16.gmra.mrb[152].mxu1 %v9995_v54  ;;  %v10001_v54 = vcombine.low %v16267_v22, %v16267_v22  ;;  %v5941_v22 = vsel %vm5929_vm5, %v5936_v59, %v5940_v32  ;;  %v5972_v32 = vrot.slane %v5970_v27, 1  ;;  %v6002_v27 = vshll.u32 %v14518_v51, 16 }
 0x36c   :  { %12129 = vmatprep.mubr.msk.bf16.mxu1 %vm14735_vm0, %v18769_v2 }
 0x371   :  { %11546 = vmatmul.mubr.bf16.gmra.mrb[4].mxu0 %v18993_v40  ;;  %v5946_v40 = vshll.u32 %v14508_v53, 16  ;;  %v14512_v53 = vld [vmem:[#allocation2 + $0x3c] sm:$0xff]  }
 0x372   :  { %11549 = vmatprep.mubr.msk.bf16.mxu0 %vm14735_vm0, %v18769_v2 }
 0x373   :  { %12130 = vmatmul.mubr.bf16.gmra.mrb[156].mxu1 %v9996_v7  ;;  %v19004_v7 = vld [vmem:[#allocation76_spill] sm:$0xff]  ;;  %v5948_v21 = vrot.slane %v5946_v40, 1  ;;  %v5978_v40 = vshll.u32 %v14512_v53, 16 }
 0x374   :  { %12133 = vmatprep.mubr.msk.bf16.mxu1 %vm14735_vm0, %v18769_v2 }
 0x379   :  { %11550 = vmatmul.mubr.bf16.gmra.mrb[8].mxu0 %v18994_v12  ;;  %v5949_v12 = vsel %vm5929_vm5, %v5944_v31, %v5948_v21  ;;  %v5976_v31 = vor.u32 %v5974_v52, %v5972_v32 }
 0x37a   :  { %11553 = vmatprep.mubr.msk.bf16.mxu0 %vm14735_vm0, %v18769_v2 }
 0x37b   :  { %12134 = vmatmul.mubr.bf16.gmra.mrb[160].mxu1 %v9997_v8  ;;  %v19005_v8 = vld [vmem:[#allocation79_spill] sm:$0xff] }
 0x37c   :  { %12137 = vmatprep.mubr.msk.bf16.mxu1 %vm14735_vm0, %v18769_v2 }
 0x381   :  { %11554 = vmatmul.mubr.bf16.gmra.mrb[12].mxu0 %v18995_v11  ;;  %v5954_v11 = vshll.u32 %v14509_v38, 16  ;;  %v14513_v38 = vld [vmem:[#allocation2 + $0x44] sm:$0xff]  }
 0x382   :  { %11557 = vmatprep.mubr.msk.bf16.mxu0 %vm14735_vm0, %v18769_v2 }
 0x383   :  { %12138 = vmatmul.mubr.bf16.gmra.mrb[0].mxu1 %v18998_v0  ;;  %v5956_v19 = vrot.slane %v5954_v11, 1  ;;  %v14510_v0 = vld [vmem:[#allocation2 + $0x2c] sm:$0xff]   ;;  %v5986_v11 = vshll.u32 %v14513_v38, 16 }
 0x384   :  { %12141 = vmatprep.mubr.msk.bf16.mxu1 %vm14735_vm0, %v18769_v2  ;;  %v5966_v60 = vshrl.u32 %v14510_v0, 16 }
 0x389   :  { %11558 = vmatmul.mubr.bf16.gmra.mrb[16].mxu0 %v18999_v46  ;;  %v5952_v46 = vor.u32 %v5950_v47, %v5948_v21  ;;  %v5980_v21 = vrot.slane %v5978_v40, 1  ;;  %v5982_v47 = vshrl.u32 %v14512_v53, 16  ;;  %v14521_v53 = vld [vmem:[#allocation2 + $0x5c] sm:$0xff]   ;;  %v6006_v40 = vshrl.u32 %v14518_v51, 16 }
 0x38a   :  { %11561 = vmatprep.mubr.msk.bf16.mxu0 %vm14735_vm0, %v18769_v2 }
 0x38b   :  { %12142 = vmatmul.mubr.bf16.gmra.mrb[4].mxu1 %v19000_v42  ;;  %v19006_v42 = vld [vmem:[#allocation82_spill] sm:$0xff] }
 0x38c   :  { %12145 = vmatprep.mubr.msk.bf16.mxu1 %vm14735_vm0, %v18769_v2 }
 0x391   :  { %11562 = vmatmul.mubr.bf16.gmra.mrb[20].mxu0 %v19001_v61  ;;  %v5957_v61 = vsel %vm5929_vm5, %v5952_v46, %v5956_v19  ;;  %v5984_v46 = vor.u32 %v5982_v47, %v5980_v21  ;;  %v14526_v47 = vld [vmem:[#allocation2 + $0x6c] sm:$0xff]  }
 0x392   :  { %11565 = vmatprep.mubr.msk.bf16.mxu0 %vm14735_vm0, %v18769_v2 }
 0x393   :  { %12146 = vmatmul.mubr.bf16.gmra.mrb[8].mxu1 %v19002_v23  ;;  %v5962_v23 = vshll.u32 %v14510_v0, 16  ;;  %v14515_v0 = vld [vmem:[#allocation2 + $0x4c] sm:$0xff]  }
 0x394   :  { %12149 = vmatprep.mubr.msk.bf16.mxu1 %vm14735_vm0, %v18769_v2 }
 0x395   :  { %v5964_v62 = vrot.slane %v5962_v23, 1  ;;  %v5994_v23 = vshll.u32 %v14515_v0, 16 }
 0x397   :  { %v5968_v59 = vor.u32 %v5966_v60, %v5964_v62  ;;  %v5998_v60 = vshrl.u32 %v14515_v0, 16 }
 0x399   :  { %11566 = vmatmul.mubr.bf16.gmra.mrb[24].mxu0 %v19003_v3  ;;  %v19007_v3 = vld [vmem:[#allocation85_spill] sm:$0xff] }
 0x39a   :  { %11569 = vmatprep.mubr.msk.bf16.mxu0 %vm14735_vm0, %v18769_v2 }
 0x39b   :  { %12150 = vmatmul.mubr.bf16.gmra.mrb[12].mxu1 %v10001_v54  ;;  %v5960_v54 = vor.u32 %v5958_v39, %v5956_v19  ;;  %v5988_v19 = vrot.slane %v5986_v11, 1  ;;  %v5990_v39 = vshrl.u32 %v14513_v38, 16 }
 0x39c   :  { %12169 = vmatprep.mubr.msk.bf16.mxu1 %vm14735_vm0, %v18769_v2 }
 0x39d   :  { %v5965_v6 = vsel %vm5929_vm5, %v5960_v54, %v5964_v62  ;;  %v5996_v62 = vrot.slane %v5994_v23, 1  ;;  %v5992_v54 = vor.u32 %v5990_v39, %v5988_v19  ;;  %v14527_v23 = vld [vmem:[#allocation2 + $0x74] sm:$0xff]  }
 0x3a1   :  { %11570 = vmatmul.mubr.bf16.gmra.mrb[28].mxu0 %v19004_v7  ;;  %v19008_v7 = vld [vmem:[#allocation89_spill] sm:$0xff] }
 0x3a2   :  { %11573 = vmatprep.mubr.msk.bf16.mxu0 %vm14735_vm0, %v18769_v2 }
 0x3a3   :  { %12170 = vmatmul.mubr.bf16.vlgmr.msra.gmra.mrb[16].mxu1 %v5941_v22  ;;  %v5973_v22 = vsel %vm5929_vm5, %v5968_v59, %v5972_v32  ;;  %v6004_v32 = vrot.slane %v6002_v27, 1  ;;  %v6000_v59 = vor.u32 %v5998_v60, %v5996_v62  ;;  %v14528_v27 = vld [vmem:[#allocation2 + $0x7c] sm:$0xff]  }
 0x3a4   :  { %12173 = vmatprep.mubr.msk.bf16.mxu1 %vm14735_vm0, %v18769_v2 }
 0x3a5   :  { %v6008_v38 = vor.u32 %v6006_v40, %v6004_v32  ;;  %v6038_v40 = vshrl.u32 %v14527_v23, 16 }
 0x3a9   :  { %11574 = vmatmul.mubr.bf16.gmra.mrb[32].mxu0 %v19005_v8  ;;  %v19009_v8 = vld [vmem:[#allocation92_spill] sm:$0xff] }
 0x3aa   :  { %11577 = vmatprep.mubr.msk.bf16.mxu0 %vm14735_vm0, %v18769_v2 }
 0x3ab   :  { %12174 = vmatmul.mubr.bf16.gmra.mrb[20].mxu1 %v5949_v12  ;;  %v5981_v12 = vsel %vm5929_vm5, %v5976_v31, %v5980_v21  ;;  %v14524_v21 = vld [vmem:[#allocation2 + $0x64] sm:$0xff]  }
 0x3ac   :  { %12177 = vmatprep.mubr.msk.bf16.mxu1 %vm14735_vm0, %v18769_v2 }
 0x3b1   :  { %11578 = vmatmul.mubr.bf16.gmra.mrb[36].mxu0 %v19006_v42  ;;  %v19010_v42 = vld [vmem:[#allocation96_spill] sm:$0xff] }
 0x3b2   :  { %11581 = vmatprep.mubr.msk.bf16.mxu0 %vm14735_vm0, %v18769_v2 }
 0x3b3   :  { %12178 = vmatmul.mubr.bf16.gmra.mrb[24].mxu1 %v5957_v61  ;;  %v5989_v61 = vsel %vm5929_vm5, %v5984_v46, %v5988_v19  ;;  %v19012_v19 = vrot.slane %v16216_v57, 3  ;;  %v6026_v46 = vshll.u32 %v14526_v47, 16  ;;  %v6034_v57 = vshll.u32 %v14527_v23, 16 }
 0x3b4   :  { %12181 = vmatprep.mubr.msk.bf16.mxu1 %vm14735_vm0, %v18769_v2 }
 0x3b9   :  { %11582 = vmatmul.mubr.bf16.gmra.mrb[40].mxu0 %v19007_v3  ;;  %v19011_v3 = vld [vmem:[#allocation100_spill] sm:$0xff] }
 0x3ba   :  { %11585 = vmatprep.mubr.msk.bf16.mxu0 %vm14735_vm0, %v18769_v2 }
 0x3bb   :  { %12182 = vmatmul.mubr.bf16.gmra.mrb[28].mxu1 %v5965_v6  ;;  %v5997_v6 = vsel %vm5929_vm5, %v5992_v54, %v5996_v62  ;;  %v19013_v62 = vld [vmem:[#allocation7_spill] sm:$0xff] }
 0x3bc   :  { %12185 = vmatprep.mubr.msk.bf16.mxu1 %vm14735_vm0, %v18769_v2  ;;  %v14698_v54 = vld [vmem:[%s18600_s2 + $0xc0] sm:$0xff]  }
 0x3c1   :  { %11586 = vmatmul.mubr.bf16.gmra.mrb[44].mxu0 %v19008_v7  ;;  %v6005_v7 = vsel %vm5929_vm5, %v6000_v59, %v6004_v32  ;;  %v14699_v32 = vld [vmem:[%s18600_s2 + $0xc8] sm:$0xff]  }
 0x3c2   :  { %11589 = vmatprep.mubr.msk.bf16.mxu0 %vm14735_vm0, %v18769_v2 }
 0x3c3   :  { %12186 = vmatmul.mubr.bf16.gmra.mrb[32].mxu1 %v5973_v22  ;;  %v6010_v22 = vshll.u32 %v14521_v53, 16 }
 0x3c4   :  { %12189 = vmatprep.mubr.msk.bf16.mxu1 %vm14735_vm0, %v18769_v2 }
 0x3c5   :  { %v6012_v52 = vrot.slane %v6010_v22, 1  ;;  %v14700_v22 = vld [vmem:[%s18600_s2 + $0xd0] sm:$0xff]  }
 0x3c7   :  { %v6013_v31 = vsel %vm5929_vm5, %v6008_v38, %v6012_v52 }
 0x3c9   :  { %11590 = vmatmul.mubr.bf16.gmra.mrb[48].mxu0 %v19009_v8  ;;  %v6018_v8 = vshll.u32 %v14524_v21, 16 }
 0x3ca   :  { %11593 = vmatprep.mubr.msk.bf16.mxu0 %vm14735_vm0, %v18769_v2 }
 0x3cb   :  { %12190 = vmatmul.mubr.bf16.gmra.mrb[36].mxu1 %v5981_v12  ;;  %v6014_v12 = vshrl.u32 %v14521_v53, 16  ;;  %v6020_v11 = vrot.slane %v6018_v8, 1  ;;  %v19014_v53 = vld [vmem:[#allocation9_spill] sm:$0xff]  ;;  %v19015_v8 = vld [vmem:[#allocation12_spill] sm:$0xff] }
 0x3cc   :  { %12193 = vmatprep.mubr.msk.bf16.mxu1 %vm14735_vm0, %v18769_v2 }
 0x3d1   :  { %11594 = vmatmul.mubr.bf16.gmra.mrb[52].mxu0 %v19010_v42  ;;  %v6022_v42 = vshrl.u32 %v14524_v21, 16  ;;  %v14529_v21 = vld [vmem:[#allocation2 + $0x84] sm:$0xff]  }
 0x3d2   :  { %11597 = vmatprep.mubr.msk.bf16.mxu0 %vm14735_vm0, %v18769_v2 }
 0x3d3   :  { %12194 = vmatmul.mubr.bf16.gmra.mrb[40].mxu1 %v5989_v61  ;;  %v6028_v61 = vrot.slane %v6026_v46, 1  ;;  %v6024_v39 = vor.u32 %v6022_v42, %v6020_v11  ;;  %v14703_v46 = vld [vmem:[%s18600_s2 + $0xe8] sm:$0xff]   ;;  %v19016_v42 = vld [vmem:[#allocation14_spill] sm:$0xff] }
 0x3d4   :  { %12197 = vmatprep.mubr.msk.bf16.mxu1 %vm14735_vm0, %v18769_v2 }
 0x3d5   :  { %v6029_v51 = vsel %vm5929_vm5, %v6024_v39, %v6028_v61  ;;  %v14547_v39 = vld [vmem:[%s18600_s2 + $0x188] sm:$0xff]  }
 0x3d9   :  { %11598 = vmatmul.mubr.bf16.gmra.mrb[56].mxu0 %v19011_v3  ;;  %v6030_v3 = vshrl.u32 %v14526_v47, 16  ;;  %v6046_v47 = vshrl.u32 %v14528_v27, 16 }
 0x3da   :  { %11601 = vmatprep.mubr.msk.bf16.mxu0 %vm14735_vm0, %v18769_v2 }
 0x3db   :  { %12198 = vmatmul.mubr.bf16.gmra.mrb[44].mxu1 %v5997_v6  ;;  %v6036_v6 = vrot.slane %v6034_v57, 1  ;;  %v6032_v60 = vor.u32 %v6030_v3, %v6028_v61 }
 0x3dc   :  { %12201 = vmatprep.mubr.msk.bf16.mxu1 %vm14735_vm0, %v18769_v2 }
 0x3dd   :  { %v6037_v59 = vsel %vm5929_vm5, %v6032_v60, %v6036_v6  ;;  %v6040_v38 = vor.u32 %v6038_v40, %v6036_v6  ;;  %v14705_v6 = vld [vmem:[%s18600_s2 + $0xf8] sm:$0xff]  }
 0x3de   :  { %v19018_v40 = vld [vmem:[#allocation18_spill] sm:$0xff] }
 0x3e1   :  { %11602 = vmatmul.mubr.bf16.gmra.mrb[60].mxu0 %v16186_v10  ;;  %v14541_v10 = vld [vmem:[%s18600_s2 + $0x180] sm:$0xff]  }
 0x3e2   :  { %11605 = vmatprep.mubr.msk.bf16.mxu0 %vm14735_vm0, %v18769_v2  ;;  %12334 = vmatpush3.bf16.msra.mxu1 %v14541_v10 }
 0x3e3   :  { %12202 = vmatmul.mubr.bf16.gmra.mrb[48].mxu1 %v6005_v7  ;;  %12335 = vmatprep.subr.bf16.mxu1 %v18769_v2  ;;  %v6042_v7 = vshll.u32 %v14528_v27, 16  ;;  %v19017_v27 = vld [vmem:[#allocation16_spill] sm:$0xff] }
 0x3e4   :  { %12205 = vmatprep.mubr.msk.bf16.mxu1 %vm14735_vm0, %v18769_v2 }
 0x3e6   :  { %12336 = vmatpush3.bf16.msra.mxu1 %v14547_v39 }
 0x3e7   :  { %12337 = vmatprep.subr.bf16.mxu1 %v18769_v2 }
 0x3e9   :  { %11606 = vmatmul.mubr.bf16.gmra.mrb[64].mxu0 %v16253_v4  ;;  %v6016_v4 = vor.u32 %v6014_v12, %v6012_v52  ;;  %v6044_v52 = vrot.slane %v6042_v7, 1  ;;  %v6050_v12 = vshll.u32 %v14529_v21, 16  ;;  %v14532_v7 = vld [vmem:[#allocation2 + $0x9c] sm:$0xff]  }
 0x3ea   :  { %11609 = vmatprep.mubr.msk.bf16.mxu0 %vm14735_vm0, %v18769_v2 }
 0x3eb   :  { %12206 = vmatmul.mubr.bf16.gmra.mrb[52].mxu1 %v6013_v31  ;;  %v6021_v0 = vsel %vm5929_vm5, %v6016_v4, %v6020_v11  ;;  %v14701_v31 = vld [vmem:[%s18600_s2 + $0xd8] sm:$0xff]   ;;  %v6045_v10 = vsel %vm5929_vm5, %v6040_v38, %v6044_v52  ;;  %v14702_v11 = vld [vmem:[%s18600_s2 + $0xe0] sm:$0xff]   ;;  %v6052_v4 = vrot.slane %v6050_v12, 1  ;;  %v19019_v12 = vld [vmem:[#allocation20_spill] sm:$0xff] }
 0x3ec   :  { %12209 = vmatprep.mubr.msk.bf16.mxu1 %vm14735_vm0, %v18769_v2 }
 0x3f1   :  { %11610 = vmatmul.mubr.bf16.gmra.mrb[68].mxu0 %v19012_v19  ;;  %v14530_v19 = vld [vmem:[#allocation2 + $0x8c] sm:$0xff]  }
 0x3f2   :  { %11629 = vmatprep.mubr.msk.bf16.mxu0 %vm14735_vm0, %v18769_v2  ;;  %v6058_v23 = vshll.u32 %v14530_v19, 16 }
 0x3f3   :  { %12210 = vmatmul.mubr.bf16.gmra.mrb[56].mxu1 %v6021_v0  ;;  %v6048_v0 = vor.u32 %v6046_v47, %v6044_v52 }
 0x3f4   :  { %12213 = vmatprep.mubr.msk.bf16.mxu1 %vm14735_vm0, %v18769_v2  ;;  %v6060_v57 = vrot.slane %v6058_v23, 1 }
 0x3f5   :  { %v6053_v61 = vsel %vm5929_vm5, %v6048_v0, %v6052_v4  ;;  %v14534_v0 = vld [vmem:[#allocation2 + $0xac] sm:$0xff]  }
 0x3f6   :  { %v6090_v23 = vshll.u32 %v14534_v0, 16 }
 0x3f9   :  { %11630 = vmatmul.mubr.bf16.vlgmr.msra.gmra.mrb[164].mxu0 %v19013_v62  ;;  %v14704_v62 = vld [vmem:[%s18600_s2 + $0xf0] sm:$0xff]  }
 0x3fa   :  { %11633 = vmatprep.mubr.msk.bf16.mxu0 %vm14735_vm0, %v18769_v2  ;;  %11794 = vmatpush3.bf16.msra.mxu0 %v14698_v54  ;;  %v14531_v54 = vld [vmem:[#allocation2 + $0x94] sm:$0xff]  }
 0x3fb   :  { %12214 = vmatmul.mubr.bf16.gmra.mrb[60].mxu1 %v6029_v51  ;;  %11795 = vmatprep.subr.bf16.mxu0 %v18769_v2  ;;  %v6054_v51 = vshrl.u32 %v14529_v21, 16  ;;  %v6074_v21 = vshll.u32 %v14532_v7, 16  ;;  %v6070_v38 = vshrl.u32 %v14531_v54, 16 }
 0x3fc   :  { %12217 = vmatprep.mubr.msk.bf16.mxu1 %vm14735_vm0, %v18769_v2 }
 0x3fd   :  { %v6056_v3 = vor.u32 %v6054_v51, %v6052_v4  ;;  %v6078_v4 = vshrl.u32 %v14532_v7, 16  ;;  %v14535_v51 = vld [vmem:[#allocation2 + $0xb4] sm:$0xff]  }
 0x3fe   :  { %11796 = vmatpush3.bf16.msra.mxu0 %v14699_v32  ;;  %v6066_v32 = vshll.u32 %v14531_v54, 16  ;;  %v19021_v54 = vld [vmem:[#allocation24_spill] sm:$0xff] }
 0x3ff   :  { %11797 = vmatprep.subr.bf16.mxu0 %v18769_v2  ;;  %v6061_v60 = vsel %vm5929_vm5, %v6056_v3, %v6060_v57 }
 0x401   :  { %11634 = vmatmul.mubr.bf16.gmra.mrb[168].mxu0 %v19014_v53  ;;  %v6062_v53 = vshrl.u32 %v14530_v19, 16 }
 0x402   :  { %11637 = vmatprep.mubr.msk.bf16.mxu0 %vm14735_vm0, %v18769_v2  ;;  %11798 = vmatpush3.bf16.msra.mxu0 %v14700_v22 }
 0x403   :  { %12218 = vmatmul.mubr.bf16.gmra.mrb[64].mxu1 %v6037_v59  ;;  %11799 = vmatprep.subr.bf16.mxu0 %v18769_v2  ;;  %v6068_v59 = vrot.slane %v6066_v32, 1  ;;  %v6064_v22 = vor.u32 %v6062_v53, %v6060_v57  ;;  %v14536_v32 = vld [vmem:[#allocation2 + $0xbc] sm:$0xff]  }
 0x404   :  { %12221 = vmatprep.mubr.msk.bf16.mxu1 %vm14735_vm0, %v18769_v2 }
 0x405   :  { %v6069_v52 = vsel %vm5929_vm5, %v6064_v22, %v6068_v59  ;;  %v6106_v22 = vshll.u32 %v14536_v32, 16 }
 0x406   :  { %11800 = vmatpush3.bf16.msra.mxu0 %v14701_v31  ;;  %v6076_v31 = vrot.slane %v6074_v21, 1 }
 0x407   :  { %11801 = vmatprep.subr.bf16.mxu0 %v18769_v2  ;;  %v6108_v21 = vrot.slane %v6106_v22, 1 }
 0x409   :  { %11638 = vmatmul.mubr.bf16.gmra.mrb[172].mxu0 %v19015_v8  ;;  %v14533_v8 = vld [vmem:[#allocation2 + $0xa4] sm:$0xff]  }
 0x40a   :  { %11641 = vmatprep.mubr.msk.bf16.mxu0 %vm14735_vm0, %v18769_v2  ;;  %11802 = vmatpush3.bf16.msra.mxu0 %v14702_v11  ;;  %v6082_v47 = vshll.u32 %v14533_v8, 16  ;;  %v6086_v39 = vshrl.u32 %v14533_v8, 16  ;;  %v19023_v8 = vld [vmem:[#allocation28_spill] sm:$0xff] }
 0x40b   :  { %12222 = vmatmul.mubr.bf16.gmra.mrb[68].mxu1 %v6045_v10  ;;  %11803 = vmatprep.subr.bf16.mxu0 %v18769_v2  ;;  %v6072_v10 = vor.u32 %v6070_v38, %v6068_v59  ;;  %v19022_v59 = vld [vmem:[#allocation26_spill] sm:$0xff] }
 0x40c   :  { %12225 = vmatprep.mubr.msk.bf16.mxu1 %vm14735_vm0, %v18769_v2  ;;  %v6084_v19 = vrot.slane %v6082_v47, 1  ;;  %v14537_v38 = vld [vmem:[#allocation2 + $0xc4] sm:$0xff]  }
 0x40d   :  { %v6077_v11 = vsel %vm5929_vm5, %v6072_v10, %v6076_v31 }
 0x40e   :  { %11804 = vmatpush3.bf16.msra.mxu0 %v14703_v46  ;;  %v6080_v46 = vor.u32 %v6078_v4, %v6076_v31  ;;  %v6088_v57 = vor.u32 %v6086_v39, %v6084_v19  ;;  %v14538_v4 = vld [vmem:[#allocation2 + $0xcc] sm:$0xff]  }
 0x40f   :  { %11805 = vmatprep.subr.bf16.mxu0 %v18769_v2 }
 0x411   :  { %11642 = vmatmul.mubr.bf16.gmra.mrb[176].mxu0 %v19016_v42  ;;  %v19020_v42 = vld [vmem:[#allocation22_spill] sm:$0xff] }
 0x412   :  { %11645 = vmatprep.mubr.msk.bf16.mxu0 %vm14735_vm0, %v18769_v2  ;;  %11806 = vmatpush3.bf16.msra.mxu0 %v14704_v62  ;;  %v6092_v62 = vrot.slane %v6090_v23, 1  ;;  %v6118_v23 = vshrl.u32 %v14537_v38, 16 }
 0x413   :  { %12226 = vmatmul.mubr.bf16.gmra.mrb[72].mxu1 %v6053_v61  ;;  %11807 = vmatprep.subr.bf16.mxu0 %v18769_v2  ;;  %v6085_v61 = vsel %vm5929_vm5, %v6080_v46, %v6084_v19 }
 0x414   :  { %12229 = vmatprep.mubr.msk.bf16.mxu1 %vm14735_vm0, %v18769_v2  ;;  %v6093_v3 = vsel %vm5929_vm5, %v6088_v57, %v6092_v62  ;;  %v19025_v57 = vld [vmem:[#allocation32_spill] sm:$0xff] }
 0x416   :  { %11808 = vmatpush3.bf16.msra.mxu0 %v14705_v6  ;;  %v6098_v6 = vshll.u32 %v14535_v51, 16 }
 0x419   :  { %11646 = vmatmul.mubr.bf16.gmra.mrb[180].mxu0 %v19017_v27  ;;  %v6094_v27 = vshrl.u32 %v14534_v0, 16  ;;  %v19024_v0 = vld [vmem:[#allocation30_spill] sm:$0xff] }
 0x41a   :  { %11649 = vmatprep.mubr.msk.bf16.mxu0 %vm14735_vm0, %v18769_v2 }
 0x41b   :  { %12230 = vmatmul.mubr.bf16.gmra.mrb[76].mxu1 %v6061_v60  ;;  %v6100_v60 = vrot.slane %v6098_v6, 1  ;;  %v6096_v53 = vor.u32 %v6094_v27, %v6092_v62  ;;  %v14539_v62 = vld [vmem:[#allocation2 + $0xd4] sm:$0xff]   ;;  %v14559_v6 = vld [vmem:[%s18600_s2 + $0x1a0] sm:$0xff]   ;;  %v14560_v27 = vld [vmem:[%s18600_s2 + $0x1a8] sm:$0xff]  }
 0x41c   :  { %12233 = vmatprep.mubr.msk.bf16.mxu1 %vm14735_vm0, %v18769_v2 }
 0x41d   :  { %v6101_v7 = vsel %vm5929_vm5, %v6096_v53, %v6100_v60  ;;  %v14540_v53 = vld [vmem:[#allocation2 + $0xdc] sm:$0xff]  }
 0x421   :  { %11650 = vmatmul.mubr.bf16.gmra.mrb[184].mxu0 %v19018_v40  ;;  %v14553_v40 = vld [vmem:[%s18600_s2 + $0x190] sm:$0xff]  }
 0x422   :  { %11653 = vmatprep.mubr.msk.bf16.mxu0 %vm14735_vm0, %v18769_v2  ;;  %12338 = vmatpush3.bf16.msra.mxu1 %v14553_v40  ;;  %v6138_v40 = vshll.u32 %v14540_v53, 16 }
 0x423   :  { %12234 = vmatmul.mubr.bf16.gmra.mrb[80].mxu1 %v6069_v52  ;;  %12339 = vmatprep.subr.bf16.mxu1 %v18769_v2  ;;  %v6102_v52 = vshrl.u32 %v14535_v51, 16 }
 0x424   :  { %12237 = vmatprep.mubr.msk.bf16.mxu1 %vm14735_vm0, %v18769_v2 }
 0x425   :  { %v6104_v31 = vor.u32 %v6102_v52, %v6100_v60  ;;  %v6126_v60 = vshrl.u32 %v14538_v4, 16  ;;  %v14561_v52 = vld [vmem:[%s18600_s2 + $0x1b0] sm:$0xff]  }
 0x427   :  { %v6109_v10 = vsel %vm5929_vm5, %v6104_v31, %v6108_v21  ;;  %v6140_v31 = vrot.slane %v6138_v40, 1 }
 0x429   :  { %11654 = vmatmul.mubr.bf16.gmra.mrb[188].mxu0 %v19019_v12  ;;  %v6114_v12 = vshll.u32 %v14537_v38, 16  ;;  %v6134_v38 = vshrl.u32 %v14539_v62, 16 }
 0x42a   :  { %11657 = vmatprep.mubr.msk.bf16.mxu0 %vm14735_vm0, %v18769_v2 }
 0x42b   :  { %12238 = vmatmul.mubr.bf16.gmra.mrb[84].mxu1 %v6077_v11  ;;  %v6110_v11 = vshrl.u32 %v14536_v32, 16  ;;  %v6116_v47 = vrot.slane %v6114_v12, 1  ;;  %v19027_v12 = vld [vmem:[#allocation36_spill] sm:$0xff] }
 0x42c   :  { %12241 = vmatprep.mubr.msk.bf16.mxu1 %vm14735_vm0, %v18769_v2 }
 0x42d   :  { %v6112_v19 = vor.u32 %v6110_v11, %v6108_v21  ;;  %v6120_v51 = vor.u32 %v6118_v23, %v6116_v47  ;;  %v14562_v21 = vld [vmem:[%s18600_s2 + $0x1b8] sm:$0xff]  }
 0x42f   :  { %v6117_v46 = vsel %vm5929_vm5, %v6112_v19, %v6116_v47 }
 0x431   :  { %11658 = vmatmul.mubr.bf16.gmra.mrb[192].mxu0 %v19020_v42  ;;  %v6122_v42 = vshll.u32 %v14538_v4, 16  ;;  %v6142_v4 = vshrl.u32 %v14540_v53, 16 }
 0x432   :  { %11661 = vmatprep.mubr.msk.bf16.mxu0 %vm14735_vm0, %v18769_v2 }
 0x433   :  { %12242 = vmatmul.mubr.bf16.gmra.mrb[88].mxu1 %v6085_v61  ;;  %v14557_v61 = vld [vmem:[%s18600_s2 + $0x198] sm:$0xff]   ;;  %v6124_v39 = vrot.slane %v6122_v42, 1  ;;  %v19028_v42 = vld [vmem:[#allocation39_spill] sm:$0xff] }
 0x434   :  { %12245 = vmatprep.mubr.msk.bf16.mxu1 %vm14735_vm0, %v18769_v2  ;;  %12340 = vmatpush3.bf16.msra.mxu1 %v14557_v61 }
 0x435   :  { %12341 = vmatprep.subr.bf16.mxu1 %v18769_v2 }
 0x438   :  { %12342 = vmatpush3.bf16.msra.mxu1 %v14559_v6 }
 0x439   :  { %11662 = vmatmul.mubr.bf16.gmra.mrb[196].mxu0 %v19021_v54  ;;  %v6125_v54 = vsel %vm5929_vm5, %v6120_v51, %v6124_v39  ;;  %12343 = vmatprep.subr.bf16.mxu1 %v18769_v2  ;;  %v14544_v51 = vld [vmem:[#allocation2 + $0xf4] sm:$0xff]  }
 0x43a   :  { %11665 = vmatprep.mubr.msk.bf16.mxu0 %vm14735_vm0, %v18769_v2  ;;  %v6162_v6 = vshll.u32 %v14544_v51, 16  ;;  %v6166_v40 = vshrl.u32 %v14544_v51, 16 }
 0x43b   :  { %12246 = vmatmul.mubr.bf16.gmra.mrb[92].mxu1 %v6093_v3  ;;  %v6130_v3 = vshll.u32 %v14539_v62, 16 }
 0x43c   :  { %12249 = vmatprep.mubr.msk.bf16.mxu1 %vm14735_vm0, %v18769_v2  ;;  %12344 = vmatpush3.bf16.msra.mxu1 %v14560_v27 }
 0x43d   :  { %v6132_v32 = vrot.slane %v6130_v3, 1  ;;  %12345 = vmatprep.subr.bf16.mxu1 %v18769_v2 }
 0x440   :  { %12346 = vmatpush3.bf16.msra.mxu1 %v14561_v52 }
 0x441   :  { %11666 = vmatmul.mubr.bf16.gmra.mrb[200].mxu0 %v19022_v59  ;;  %v6128_v59 = vor.u32 %v6126_v60, %v6124_v39  ;;  %12347 = vmatprep.subr.bf16.mxu1 %v18769_v2  ;;  %v6164_v60 = vrot.slane %v6162_v6, 1  ;;  %v14550_v6 = vld [vmem:[#allocation2 + $0x11c] sm:$0xff]  }
 0x442   :  { %11669 = vmatprep.mubr.msk.bf16.mxu0 %vm14735_vm0, %v18769_v2 }
 0x443   :  { %12250 = vmatmul.mubr.bf16.gmra.mrb[96].mxu1 %v6101_v7  ;;  %v19026_v7 = vld [vmem:[#allocation34_spill] sm:$0xff]  ;;  %v6133_v22 = vsel %vm5929_vm5, %v6128_v59, %v6132_v32  ;;  %v19030_v59 = vld [vmem:[#allocation44_spill] sm:$0xff] }
 0x444   :  { %12253 = vmatprep.mubr.msk.bf16.mxu1 %vm14735_vm0, %v18769_v2  ;;  %12348 = vmatpush3.bf16.msra.mxu1 %v14562_v21  ;;  %v14546_v21 = vld [vmem:[#allocation2 + $0x104] sm:$0xff]  }
 0x445   :  { %12513 = vmatprep.subr.bf16.mxu1 %v18769_v2 }
 0x449   :  { %11670 = vmatmul.mubr.bf16.gmra.mrb[204].mxu0 %v19023_v8  ;;  %v14542_v8 = vld [vmem:[#allocation2 + $0xe4] sm:$0xff]  }
 0x44a   :  { %11673 = vmatprep.mubr.msk.bf16.mxu0 %vm14735_vm0, %v18769_v2  ;;  %v6146_v47 = vshll.u32 %v14542_v8, 16  ;;  %v6150_v39 = vshrl.u32 %v14542_v8, 16 }
 0x44b   :  { %12254 = vmatmul.mubr.bf16.gmra.mrb[100].mxu1 %v6109_v10  ;;  %v6136_v10 = vor.u32 %v6134_v38, %v6132_v32  ;;  %v14545_v32 = vld [vmem:[#allocation2 + $0xfc] sm:$0xff]   ;;  %v6168_v38 = vor.u32 %v6166_v40, %v6164_v60 }
 0x44c   :  { %12257 = vmatprep.mubr.msk.bf16.mxu1 %vm14735_vm0, %v18769_v2  ;;  %v6148_v19 = vrot.slane %v6146_v47, 1  ;;  %v14548_v47 = vld [vmem:[#allocation2 + $0x10c] sm:$0xff]  }
 0x44d   :  { %v6141_v11 = vsel %vm5929_vm5, %v6136_v10, %v6140_v31  ;;  %v6178_v10 = vshll.u32 %v14546_v21, 16 }
 0x451   :  { %11674 = vmatmul.mubr.bf16.gmra.mrb[208].mxu0 %v19024_v0  ;;  %v14543_v0 = vld [vmem:[#allocation2 + $0xec] sm:$0xff]  }
 0x452   :  { %11677 = vmatprep.mubr.msk.bf16.mxu0 %vm14735_vm0, %v18769_v2  ;;  %v6154_v23 = vshll.u32 %v14543_v0, 16  ;;  %v6158_v27 = vshrl.u32 %v14543_v0, 16 }
 0x453   :  { %12258 = vmatmul.mubr.bf16.gmra.mrb[104].mxu1 %v6117_v46  ;;  %v6144_v46 = vor.u32 %v6142_v4, %v6140_v31  ;;  %v19031_v31 = vld [vmem:[#allocation46_spill] sm:$0xff] }
 0x454   :  { %12261 = vmatprep.mubr.msk.bf16.mxu1 %vm14735_vm0, %v18769_v2  ;;  %v6156_v62 = vrot.slane %v6154_v23, 1  ;;  %v14549_v23 = vld [vmem:[#allocation2 + $0x114] sm:$0xff]  }
 0x455   :  { %v6149_v61 = vsel %vm5929_vm5, %v6144_v46, %v6148_v19  ;;  %v6186_v46 = vshll.u32 %v14548_v47, 16 }
 0x456   :  { %v6160_v53 = vor.u32 %v6158_v27, %v6156_v62 }
 0x459   :  { %11678 = vmatmul.mubr.bf16.gmra.mrb[212].mxu0 %v19025_v57  ;;  %v6152_v57 = vor.u32 %v6150_v39, %v6148_v19  ;;  %v19032_v19 = vld [vmem:[#allocation49_spill] sm:$0xff] }
 0x45a   :  { %11681 = vmatprep.mubr.msk.bf16.mxu0 %vm14735_vm0, %v18769_v2 }
 0x45b   :  { %12262 = vmatmul.mubr.bf16.gmra.mrb[108].mxu1 %v6125_v54  ;;  %v19029_v54 = vld [vmem:[#allocation41_spill] sm:$0xff]  ;;  %v6157_v3 = vsel %vm5929_vm5, %v6152_v57, %v6156_v62  ;;  %v19033_v62 = vld [vmem:[#allocation52_spill] sm:$0xff]  ;;  %v6194_v57 = vshll.u32 %v14549_v23, 16 }
 0x45c   :  { %12265 = vmatprep.mubr.msk.bf16.mxu1 %vm14735_vm0, %v18769_v2 }
 0x461   :  { %11682 = vmatmul.mubr.bf16.gmra.mrb[216].mxu0 %v19026_v7  ;;  %v6165_v7 = vsel %vm5929_vm5, %v6160_v53, %v6164_v60  ;;  %v19034_v60 = vld [vmem:[#allocation55_spill] sm:$0xff]  ;;  %v6202_v53 = vshll.u32 %v14550_v6, 16 }
 0x462   :  { %11685 = vmatprep.mubr.msk.bf16.mxu0 %vm14735_vm0, %v18769_v2 }
 0x463   :  { %12266 = vmatmul.mubr.bf16.gmra.mrb[112].mxu1 %v6133_v22  ;;  %v6170_v22 = vshll.u32 %v14545_v32, 16 }
 0x464   :  { %12269 = vmatprep.mubr.msk.bf16.mxu1 %vm14735_vm0, %v18769_v2 }
 0x465   :  { %v6172_v52 = vrot.slane %v6170_v22, 1  ;;  %v14551_v22 = vld [vmem:[#allocation2 + $0x124] sm:$0xff]  }
 0x467   :  { %v6173_v8 = vsel %vm5929_vm5, %v6168_v38, %v6172_v52  ;;  %v6210_v38 = vshll.u32 %v14551_v22, 16 }
 0x469   :  { %11686 = vmatmul.mubr.bf16.gmra.mrb[220].mxu0 %v19027_v12  ;;  %v6174_v12 = vshrl.u32 %v14545_v32, 16 }
 0x46a   :  { %11689 = vmatprep.mubr.msk.bf16.mxu0 %vm14735_vm0, %v18769_v2 }
 0x46b   :  { %12270 = vmatmul.mubr.bf16.gmra.mrb[116].mxu1 %v6141_v11  ;;  %v6180_v11 = vrot.slane %v6178_v10, 1  ;;  %v6176_v4 = vor.u32 %v6174_v12, %v6172_v52  ;;  %v19035_v52 = vld [vmem:[#allocation58_spill] sm:$0xff]  ;;  %v14552_v10 = vld [vmem:[#allocation2 + $0x12c] sm:$0xff]  }
 0x46c   :  { %12273 = vmatprep.mubr.msk.bf16.mxu1 %vm14735_vm0, %v18769_v2 }
 0x46d   :  { %v6181_v0 = vsel %vm5929_vm5, %v6176_v4, %v6180_v11  ;;  %v6218_v4 = vshll.u32 %v14552_v10, 16 }
 0x471   :  { %11690 = vmatmul.mubr.bf16.gmra.mrb[224].mxu0 %v19028_v42  ;;  %v6182_v42 = vshrl.u32 %v14546_v21, 16 }
 0x472   :  { %11693 = vmatprep.mubr.msk.bf16.mxu0 %vm14735_vm0, %v18769_v2 }
 0x473   :  { %12274 = vmatmul.mubr.bf16.gmra.mrb[120].mxu1 %v6149_v61  ;;  %v6188_v61 = vrot.slane %v6186_v46, 1  ;;  %v6184_v39 = vor.u32 %v6182_v42, %v6180_v11  ;;  %v19036_v11 = vld [vmem:[#allocation60_spill] sm:$0xff] }
 0x474   :  { %12277 = vmatprep.mubr.msk.bf16.mxu1 %vm14735_vm0, %v18769_v2  ;;  %v14554_v46 = vld [vmem:[#allocation2 + $0x134] sm:$0xff]  }
 0x475   :  { %v6189_v51 = vsel %vm5929_vm5, %v6184_v39, %v6188_v61  ;;  %v6226_v39 = vshll.u32 %v14554_v46, 16 }
 0x479   :  { %11694 = vmatmul.mubr.bf16.gmra.mrb[228].mxu0 %v19029_v54  ;;  %v6190_v54 = vshrl.u32 %v14548_v47, 16 }
 0x47a   :  { %11697 = vmatprep.mubr.msk.bf16.mxu0 %vm14735_vm0, %v18769_v2 }
 0x47b   :  { %12278 = vmatmul.mubr.bf16.gmra.mrb[124].mxu1 %v6157_v3  ;;  %v6196_v3 = vrot.slane %v6194_v57, 1  ;;  %v6192_v27 = vor.u32 %v6190_v54, %v6188_v61  ;;  %v19037_v61 = vld [vmem:[#allocation63_spill] sm:$0xff]  ;;  %v14555_v57 = vld [vmem:[#allocation2 + $0x13c] sm:$0xff]  }
 0x47c   :  { %12281 = vmatprep.mubr.msk.bf16.mxu1 %vm14735_vm0, %v18769_v2 }
 0x47d   :  { %v6197_v32 = vsel %vm5929_vm5, %v6192_v27, %v6196_v3  ;;  %v6234_v27 = vshll.u32 %v14555_v57, 16 }
 0x481   :  { %11698 = vmatmul.mubr.bf16.gmra.mrb[232].mxu0 %v19030_v59  ;;  %v6198_v59 = vshrl.u32 %v14549_v23, 16 }
 0x482   :  { %11701 = vmatprep.mubr.msk.bf16.mxu0 %vm14735_vm0, %v18769_v2 }
 0x483   :  { %12282 = vmatmul.mubr.bf16.gmra.mrb[128].mxu1 %v6165_v7  ;;  %v6204_v7 = vrot.slane %v6202_v53, 1  ;;  %v6200_v40 = vor.u32 %v6198_v59, %v6196_v3  ;;  %v19038_v3 = vld [vmem:[#allocation65_spill] sm:$0xff]  ;;  %v14556_v53 = vld [vmem:[#allocation2 + $0x144] sm:$0xff]  }
 0x484   :  { %12285 = vmatprep.mubr.msk.bf16.mxu1 %vm14735_vm0, %v18769_v2 }
 0x485   :  { %v6205_v21 = vsel %vm5929_vm5, %v6200_v40, %v6204_v7  ;;  %v6242_v40 = vshll.u32 %v14556_v53, 16 }
 0x489   :  { %11702 = vmatmul.mubr.bf16.gmra.mrb[236].mxu0 %v19031_v31  ;;  %v6206_v31 = vshrl.u32 %v14550_v6, 16 }
 0x48a   :  { %11705 = vmatprep.mubr.msk.bf16.mxu0 %vm14735_vm0, %v18769_v2 }
 0x48b   :  { %12286 = vmatmul.mubr.bf16.gmra.mrb[132].mxu1 %v6173_v8  ;;  %v6212_v8 = vrot.slane %v6210_v38, 1  ;;  %v6208_v12 = vor.u32 %v6206_v31, %v6204_v7  ;;  %v19039_v7 = vld [vmem:[#allocation68_spill] sm:$0xff] }
 0x48c   :  { %12289 = vmatprep.mubr.msk.bf16.mxu1 %vm14735_vm0, %v18769_v2  ;;  %v14558_v31 = vld [vmem:[#allocation2 + $0x14c] sm:$0x1f]  }
 0x48d   :  { %v6213_v47 = vsel %vm5929_vm5, %v6208_v12, %v6212_v8  ;;  %v6246_v12 = vshrl.u32 %v14556_v53, 16 }
 0x491   :  { %11706 = vmatmul.mubr.bf16.gmra.mrb[240].mxu0 %v19032_v19  ;;  %v6214_v19 = vshrl.u32 %v14551_v22, 16 }
 0x492   :  { %11709 = vmatprep.mubr.msk.bf16.mxu0 %vm14735_vm0, %v18769_v2 }
 0x493   :  { %12290 = vmatmul.mubr.bf16.gmra.mrb[136].mxu1 %v6181_v0  ;;  %v6220_v0 = vrot.slane %v6218_v4, 1  ;;  %v6216_v42 = vor.u32 %v6214_v19, %v6212_v8  ;;  %v19040_v8 = vld [vmem:[#allocation70_spill] sm:$0xff]  ;;  %v19041_v19 = vld [vmem:[#allocation73_spill] sm:$0xff] }
 0x494   :  { %12293 = vmatprep.mubr.msk.bf16.mxu1 %vm14735_vm0, %v18769_v2 }
 0x495   :  { %v6221_v23 = vsel %vm5929_vm5, %v6216_v42, %v6220_v0  ;;  %v14706_v42 = vld [vmem:[#allocation2 + $0x18] sm:$0xf] }
 0x499   :  { %11710 = vmatmul.mubr.bf16.gmra.mrb[244].mxu0 %v19033_v62  ;;  %v6222_v62 = vshrl.u32 %v14552_v10, 16 }
 0x49a   :  { %11713 = vmatprep.mubr.msk.bf16.mxu0 %vm14735_vm0, %v18769_v2 }
 0x49b   :  { %12294 = vmatmul.mubr.bf16.gmra.mrb[140].mxu1 %v6189_v51  ;;  %v6228_v51 = vrot.slane %v6226_v39, 1  ;;  %v6224_v54 = vor.u32 %v6222_v62, %v6220_v0 }
 0x49c   :  { %12297 = vmatprep.mubr.msk.bf16.mxu1 %vm14735_vm0, %v18769_v2 }
 0x49d   :  { %v6229_v6 = vsel %vm5929_vm5, %v6224_v54, %v6228_v51 }
 0x4a1   :  { %11714 = vmatmul.mubr.bf16.gmra.mrb[248].mxu0 %v19034_v60  ;;  %v6230_v60 = vshrl.u32 %v14554_v46, 16  ;;  %v6787_v46 = vld [vmem:[#allocation2 + $0x14] sm:$0xf] }
 0x4a2   :  { %11717 = vmatprep.mubr.msk.bf16.mxu0 %vm14735_vm0, %v18769_v2 }
 0x4a3   :  { %12298 = vmatmul.mubr.bf16.gmra.mrb[144].mxu1 %v6197_v32  ;;  %v6236_v32 = vrot.slane %v6234_v27, 1  ;;  %v6232_v59 = vor.u32 %v6230_v60, %v6228_v51  ;;  %v19042_v51 = vld [vmem:[#allocation75_spill] sm:$0xff]  ;;  %v19043_v60 = vld [vmem:[#allocation77_spill] sm:$0xff] }
 0x4a4   :  { %12301 = vmatprep.mubr.msk.bf16.mxu1 %vm14735_vm0, %v18769_v2 }
 0x4a5   :  { %v6237_v22 = vsel %vm5929_vm5, %v6232_v59, %v6236_v32 }
 0x4a9   :  { %11718 = vmatmul.mubr.bf16.gmra.mrb[252].mxu0 %v19035_v52  ;;  %v6238_v52 = vshrl.u32 %v14555_v57, 16 }
 0x4aa   :  { %11721 = vmatprep.mubr.msk.bf16.mxu0 %vm14735_vm0, %v18769_v2 }
 0x4ab   :  { %12302 = vmatmul.mubr.bf16.gmra.mrb[148].mxu1 %v6205_v21  ;;  %v6244_v21 = vrot.slane %v6242_v40, 1  ;;  %v6240_v38 = vor.u32 %v6238_v52, %v6236_v32 }
 0x4ac   :  { %12305 = vmatprep.mubr.msk.bf16.mxu1 %vm14735_vm0, %v18769_v2 }
 0x4ad   :  { %v6245_v10 = vsel %vm5929_vm5, %v6240_v38, %v6244_v21 }
 0x4b1   :  { %11722 = vmatmul.mubr.bf16.gmra.mrb[0].mxu0 %v19036_v11  ;;  %v6250_v11 = vshll.u32 %v14558_v31, 16 }
 0x4b2   :  { %11725 = vmatprep.mubr.msk.bf16.mxu0 %vm14735_vm0, %v18769_v2 }
 0x4b3   :  { %12306 = vmatmul.mubr.bf16.gmra.mrb[152].mxu1 %v6213_v47  ;;  %v6248_v47 = vor.u32 %v6246_v12, %v6244_v21  ;;  %v6252_v4 = vrot.slane %v6250_v11, 1 }
 0x4b4   :  { %12309 = vmatprep.mubr.msk.bf16.mxu1 %vm14735_vm0, %v18769_v2 }
 0x4b5   :  { %v6253_v0 = vsel %vm5929_vm5, %v6248_v47, %v6252_v4  ;;  %v17135_v47 = vld [vmem:[#allocation2 + $0x3c] sm:$0xff]  }
 0x4b9   :  { %11726 = vmatmul.mubr.bf16.gmra.mrb[4].mxu0 %v19037_v61  ;;  %v10091_v61 = vcombine.low %v6787_v46, %v14706_v42  ;;  %v18694_v46 = vshll.u32 %v17135_v47, 16  ;;  %v18703_v42 = vshrl.u32 %v17121_v30, 16 }
 0x4ba   :  { %11729 = vmatprep.mubr.msk.bf16.mxu0 %vm14735_vm0, %v18769_v2 }
 0x4bb   :  { %12310 = vmatmul.mubr.bf16.gmra.mrb[156].mxu1 %v6221_v23  ;;  %v6254_v23 = vshrl.u32 %v14558_v31, 16  ;;  %v7094_v39 = vshll.u32 %v10091_v61, 16  ;;  %v7092_v54 = vshrl.u32 %v10091_v61, 16  ;;  %v19045_v31 = vld [vmem:[#allocation84_spill] sm:$0xff]  ;;  %v7133_v61 = vrot.slane %v18694_v46, 1  ;;  %v17381_v46 = vld [vmem:[#allocation2 + $0xc4] sm:$0xff]  }
 0x4bc   :  { %12313 = vmatprep.mubr.msk.bf16.mxu1 %vm14735_vm0, %v18769_v2 }
 0x4bd   :  { %v6256_v62 = vor.u32 %v6254_v23, %v6252_v4  ;;  %v7096_v57 = vrot.slane %v7094_v39, 1  ;;  %v17149_v23 = vld [vmem:[#allocation2 + $0x44] sm:$0xff]  }
 0x4bf   :  { %v7097_v27 = vor.u32 %v7096_v57, %v7092_v54  ;;  %v18688_v57 = vshll.u32 %v17149_v23, 16  ;;  %v18698_v54 = vshrl.u32 %v17135_v47, 16 }
 0x4c1   :  { %11730 = vmatmul.mubr.bf16.gmra.mrb[8].mxu0 %v19038_v3  ;;  %v7101_v3 = vrot.slane %v7099_v34, 1  ;;  %v17107_v34 = vld [vmem:[#allocation2 + $0x2c] sm:$0xff]  }
 0x4c2   :  { %11733 = vmatprep.mubr.msk.bf16.mxu0 %vm14735_vm0, %v18769_v2  ;;  %v18707_v52 = vshll.u32 %v17107_v34, 16  ;;  %v18708_v12 = vshrl.u32 %v17107_v34, 16 }
 0x4c3   :  { %12314 = vmatmul.mubr.bf16.gmra.mrb[160].mxu1 %v6229_v6  ;;  %v17096_v6 = vld [vmem:[#allocation2 + $0x24] sm:$0xff]   ;;  %v7102_v32 = vsel %vm5929_vm5, %v7097_v27, %v7101_v3  ;;  %v17163_v27 = vld [vmem:[#allocation2 + $0x4c] sm:$0xff]  }
 0x4c4   :  { %12317 = vmatprep.mubr.msk.bf16.mxu1 %vm14735_vm0, %v18769_v2  ;;  %v18729_v53 = vshll.u32 %v17096_v6, 16  ;;  %v18730_v21 = vshrl.u32 %v17096_v6, 16  ;;  %v7117_v38 = vrot.slane %v18707_v52, 1 }
 0x4c6   :  { %v7109_v59 = vrot.slane %v18729_v53, 1  ;;  %v7121_v4 = vor.u32 %v18708_v12, %v7117_v38 }
 0x4c9   :  { %11734 = vmatmul.mubr.bf16.gmra.mrb[12].mxu0 %v19039_v7  ;;  %v7105_v7 = vor.u32 %v7103_v48, %v7101_v3  ;;  %v7113_v48 = vor.u32 %v18730_v21, %v7109_v59  ;;  %v7141_v3 = vrot.slane %v18688_v57, 1  ;;  %v17353_v57 = vld [vmem:[#allocation2 + $0xb4] sm:$0xff]  }
 0x4ca   :  { %11737 = vmatprep.mubr.msk.bf16.mxu0 %vm14735_vm0, %v18769_v2 }
 0x4cb   :  { %12318 = vmatmul.mubr.bf16.gmra.mrb[0].mxu1 %v6237_v22  ;;  %v19044_v22 = vld [vmem:[#allocation81_spill] sm:$0xff]  ;;  %v7110_v40 = vsel %vm5929_vm5, %v7105_v7, %v7109_v59  ;;  %v18682_v7 = vshll.u32 %v17163_v27, 16 }
 0x4cc   :  { %12321 = vmatprep.mubr.msk.bf16.mxu1 %vm14735_vm0, %v18769_v2 }
 0x4d1   :  { %11738 = vmatmul.mubr.bf16.gmra.mrb[16].mxu0 %v19040_v8  ;;  %v7118_v8 = vsel %vm5929_vm5, %v7113_v48, %v7117_v38  ;;  %v17177_v38 = vld [vmem:[#allocation2 + $0x54] sm:$0xff]  }
 0x4d2   :  { %11741 = vmatprep.mubr.msk.bf16.mxu0 %vm14735_vm0, %v18769_v2 }
 0x4d3   :  { %12322 = vmatmul.mubr.bf16.gmra.mrb[4].mxu1 %v6245_v10  ;;  %v18700_v10 = vshll.u32 %v17121_v30, 16 }
 0x4d4   :  { %12325 = vmatprep.mubr.msk.bf16.mxu1 %vm14735_vm0, %v18769_v2 }
 0x4d5   :  { %v7125_v11 = vrot.slane %v18700_v10, 1  ;;  %v17413_v10 = vld [vmem:[#allocation2 + $0xd4] sm:$0xff]  }
 0x4d7   :  { %v7129_v39 = vor.u32 %v18703_v42, %v7125_v11  ;;  %v17427_v42 = vld [vmem:[#allocation2 + $0xdc] sm:$0xff]  }
 0x4d9   :  { %11742 = vmatmul.mubr.bf16.gmra.mrb[20].mxu0 %v19041_v19  ;;  %v19046_v19 = vld [vmem:[#allocation88_spill] sm:$0xff] }
 0x4da   :  { %11745 = vmatprep.mubr.msk.bf16.mxu0 %vm14735_vm0, %v18769_v2 }
 0x4db   :  { %12326 = vmatmul.mubr.bf16.gmra.mrb[8].mxu1 %v6253_v0  ;;  %v7126_v0 = vsel %vm5929_vm5, %v7121_v4, %v7125_v11  ;;  %v18676_v11 = vshll.u32 %v17177_v38, 16  ;;  %v18685_v4 = vshrl.u32 %v17163_v27, 16 }
 0x4dc   :  { %12329 = vmatprep.mubr.msk.bf16.mxu1 %vm14735_vm0, %v18769_v2 }
 0x4e1   :  { %11746 = vmatmul.mubr.bf16.gmra.mrb[24].mxu0 %v19042_v51  ;;  %v7134_v51 = vsel %vm5929_vm5, %v7129_v39, %v7133_v61  ;;  %v19050_v39 = vld [vmem:[#allocation102_spill] sm:$0xff] }
 0x4e2   :  { %11749 = vmatprep.mubr.msk.bf16.mxu0 %vm14735_vm0, %v18769_v2 }
 0x4e3   :  { %12330 = vmatmul.mubr.bf16.gmra.mrb[12].mxu1 %v6256_v62  ;;  %v19047_v62 = vld [vmem:[#allocation91_spill] sm:$0xff] }
 0x4e4   :  { %12349 = vmatprep.mubr.msk.bf16.mxu1 %vm14735_vm0, %v18769_v2 }
 0x4e9   :  { %11750 = vmatmul.mubr.bf16.gmra.mrb[28].mxu0 %v19043_v60  ;;  %v7137_v60 = vor.u32 %v18698_v54, %v7133_v61 }
 0x4ea   :  { %11753 = vmatprep.mubr.msk.bf16.mxu0 %vm14735_vm0, %v18769_v2 }
 0x4eb   :  { %12350 = vmatmul.mubr.bf16.vlgmr.msra.gmra.mrb[16].mxu1 %v7102_v32  ;;  %v19048_v32 = vld [vmem:[#allocation95_spill] sm:$0xff]  ;;  %v7142_v59 = vsel %vm5929_vm5, %v7137_v60, %v7141_v3 }
 0x4ec   :  { %12353 = vmatprep.mubr.msk.bf16.mxu1 %vm14735_vm0, %v18769_v2 }
 0x4f1   :  { %11754 = vmatmul.mubr.bf16.gmra.mrb[32].mxu0 %v19044_v22  ;;  %v18691_v22 = vshrl.u32 %v17149_v23, 16 }
 0x4f2   :  { %11757 = vmatprep.mubr.msk.bf16.mxu0 %vm14735_vm0, %v18769_v2 }
 0x4f3   :  { %12354 = vmatmul.mubr.bf16.gmra.mrb[20].mxu1 %v7110_v40  ;;  %v7149_v40 = vrot.slane %v18682_v7, 1  ;;  %v7145_v48 = vor.u32 %v18691_v22, %v7141_v3  ;;  %v18680_v3 = vshrl.u32 %v17177_v38, 16  ;;  %v17325_v7 = vld [vmem:[#allocation2 + $0xa4] sm:$0xff]   ;;  %v17367_v22 = vld [vmem:[#allocation2 + $0xbc] sm:$0xff]  }
 0x4f4   :  { %12357 = vmatprep.mubr.msk.bf16.mxu1 %vm14735_vm0, %v18769_v2 }
 0x4f5   :  { %v7153_v61 = vor.u32 %v18685_v4, %v7149_v40  ;;  %v17339_v4 = vld [vmem:[#allocation2 + $0xac] sm:$0xff]  }
 0x4f9   :  { %11758 = vmatmul.mubr.bf16.gmra.mrb[36].mxu0 %v19045_v31  ;;  %v19049_v31 = vld [vmem:[#allocation99_spill] sm:$0xff] }
 0x4fa   :  { %11761 = vmatprep.mubr.msk.bf16.mxu0 %vm14735_vm0, %v18769_v2 }
 0x4fb   :  { %12358 = vmatmul.mubr.bf16.gmra.mrb[24].mxu1 %v7118_v8  ;;  %v7150_v8 = vsel %vm5929_vm5, %v7145_v48, %v7149_v40 }
 0x4fc   :  { %12361 = vmatprep.mubr.msk.bf16.mxu1 %vm14735_vm0, %v18769_v2 }
 0x501   :  { %11762 = vmatmul.mubr.bf16.gmra.mrb[40].mxu0 %v19046_v19  ;;  %v7157_v19 = vrot.slane %v18676_v11, 1  ;;  %v17293_v11 = vld [vmem:[#allocation2 + $0x94] sm:$0xff]  }
 0x502   :  { %11765 = vmatprep.mubr.msk.bf16.mxu0 %vm14735_vm0, %v18769_v2 }
 0x503   :  { %12362 = vmatmul.mubr.bf16.gmra.mrb[28].mxu1 %v7126_v0  ;;  %v17191_v0 = vld [vmem:[#allocation2 + $0x5c] sm:$0xff]  }
 0x504   :  { %12365 = vmatprep.mubr.msk.bf16.mxu1 %vm14735_vm0, %v18769_v2 }
 0x509   :  { %11766 = vmatmul.mubr.bf16.gmra.mrb[44].mxu0 %v19047_v62  ;;  %v7158_v62 = vsel %vm5929_vm5, %v7153_v61, %v7157_v19  ;;  %v17219_v61 = vld [vmem:[#allocation2 + $0x6c] sm:$0xff]  }
 0x50a   :  { %11769 = vmatprep.mubr.msk.bf16.mxu0 %vm14735_vm0, %v18769_v2 }
 0x50b   :  { %12366 = vmatmul.mubr.bf16.gmra.mrb[32].mxu1 %v7134_v51  ;;  %v18670_v51 = vshll.u32 %v17191_v0, 16 }
 0x50c   :  { %12369 = vmatprep.mubr.msk.bf16.mxu1 %vm14735_vm0, %v18769_v2 }
 0x50d   :  { %v7165_v60 = vrot.slane %v18670_v51, 1  ;;  %v17265_v51 = vld [vmem:[#allocation2 + $0x84] sm:$0xff]  }
 0x511   :  { %11770 = vmatmul.mubr.bf16.gmra.mrb[48].mxu0 %v19048_v32  ;;  %v17205_v32 = vld [vmem:[#allocation2 + $0x64] sm:$0xff]  }
 0x512   :  { %11773 = vmatprep.mubr.msk.bf16.mxu0 %vm14735_vm0, %v18769_v2  ;;  %v18667_v48 = vshll.u32 %v17205_v32, 16 }
 0x513   :  { %12370 = vmatmul.mubr.bf16.gmra.mrb[36].mxu1 %v7142_v59  ;;  %v7161_v59 = vor.u32 %v18680_v3, %v7157_v19 }
 0x514   :  { %12373 = vmatprep.mubr.msk.bf16.mxu1 %vm14735_vm0, %v18769_v2 }
 0x515   :  { %v7166_v40 = vsel %vm5929_vm5, %v7161_v59, %v7165_v60  ;;  %v17236_v59 = vld [vmem:[#allocation2 + $0x74] sm:$0xff]  }
 0x519   :  { %11774 = vmatmul.mubr.bf16.gmra.mrb[52].mxu0 %v19049_v31  ;;  %v18673_v31 = vshrl.u32 %v17191_v0, 16 }
 0x51a   :  { %11777 = vmatprep.mubr.msk.bf16.mxu0 %vm14735_vm0, %v18769_v2 }
 0x51b   :  { %12374 = vmatmul.mubr.bf16.gmra.mrb[40].mxu1 %v7150_v8  ;;  %v7173_v8 = vrot.slane %v18667_v48, 1  ;;  %v17251_v48 = vld [vmem:[#allocation2 + $0x7c] sm:$0xff]  }
 0x51c   :  { %12377 = vmatprep.mubr.msk.bf16.mxu1 %vm14735_vm0, %v18769_v2 }
 0x521   :  { %11778 = vmatmul.mubr.bf16.gmra.mrb[56].mxu0 %v19050_v39  ;;  %v18666_v39 = vshll.u32 %v17219_v61, 16 }
 0x522   :  { %11781 = vmatprep.mubr.msk.bf16.mxu0 %vm14735_vm0, %v18769_v2 }
 0x523   :  { %12378 = vmatmul.mubr.bf16.gmra.mrb[44].mxu1 %v7158_v62  ;;  %v14591_v62 = vld [vmem:[%s18600_s2 + $0x1c0] sm:$0xff]  }
 0x524   :  { %12381 = vmatprep.mubr.msk.bf16.mxu1 %vm14735_vm0, %v18769_v2  ;;  %12514 = vmatpush3.bf16.msra.mxu1 %v14591_v62  ;;  %v18672_v62 = vshrl.u32 %v17219_v61, 16 }
 0x525   :  { %12515 = vmatprep.subr.bf16.mxu1 %v18769_v2 }
 0x529   :  { %11782 = vmatmul.mubr.bf16.gmra.mrb[60].mxu0 %v16243_v17  ;;  %v7169_v17 = vor.u32 %v18673_v31, %v7165_v60  ;;  %v18669_v60 = vshrl.u32 %v17205_v32, 16  ;;  %v17279_v31 = vld [vmem:[#allocation2 + $0x8c] sm:$0xff]  }
 0x52a   :  { %11785 = vmatprep.mubr.msk.bf16.mxu0 %vm14735_vm0, %v18769_v2 }
 0x52b   :  { %12382 = vmatmul.mubr.bf16.gmra.mrb[48].mxu1 %v7166_v40  ;;  %v7174_v19 = vsel %vm5929_vm5, %v7169_v17, %v7173_v8  ;;  %v7177_v40 = vor.u32 %v18669_v60, %v7173_v8  ;;  %v19051_v8 = vld [vmem:[#allocation10_spill] sm:$0xff] }
 0x52c   :  { %12385 = vmatprep.mubr.msk.bf16.mxu1 %vm14735_vm0, %v18769_v2 }
 0x531   :  { %11786 = vmatmul.mubr.bf16.gmra.mrb[64].mxu0 %v16322_v37  ;;  %v7181_v37 = vrot.slane %v18666_v39, 1 }
 0x532   :  { %11789 = vmatprep.mubr.msk.bf16.mxu0 %vm14735_vm0, %v18769_v2 }
 0x533   :  { %12386 = vmatmul.mubr.bf16.gmra.mrb[52].mxu1 %v7174_v19  ;;  %v7182_v17 = vsel %vm5929_vm5, %v7177_v40, %v7181_v37  ;;  %v18668_v19 = vshll.u32 %v17236_v59, 16 }
 0x534   :  { %12389 = vmatprep.mubr.msk.bf16.mxu1 %vm14735_vm0, %v18769_v2 }
 0x535   :  { %v7189_v39 = vrot.slane %v18668_v19, 1  ;;  %v18675_v19 = vshrl.u32 %v17236_v59, 16 }
 0x539   :  { %11790 = vmatmul.mubr.bf16.gmra.mrb[68].mxu0 %v16304_v36  ;;  %v7185_v36 = vor.u32 %v18672_v62, %v7181_v37  ;;  %v7193_v37 = vor.u32 %v18675_v19, %v7189_v39 }
 0x53a   :  { %11809 = vmatprep.mubr.msk.bf16.mxu0 %vm14735_vm0, %v18769_v2 }
 0x53b   :  { %12390 = vmatmul.mubr.bf16.gmra.mrb[56].mxu1 %v7182_v17  ;;  %v7190_v40 = vsel %vm5929_vm5, %v7185_v36, %v7189_v39  ;;  %v18671_v17 = vshll.u32 %v17251_v48, 16  ;;  %v19052_v36 = vld [vmem:[#allocation38_spill] sm:$0xff] }
 0x53c   :  { %12393 = vmatprep.mubr.msk.bf16.mxu1 %vm14735_vm0, %v18769_v2 }
 0x53d   :  { %v7197_v60 = vrot.slane %v18671_v17, 1  ;;  %v18677_v17 = vshrl.u32 %v17251_v48, 16 }
 0x53f   :  { %v7201_v39 = vor.u32 %v18677_v17, %v7197_v60  ;;  %v14597_v17 = vld [vmem:[%s18600_s2 + $0x1c8] sm:$0xff]  }
 0x540   :  { %12516 = vmatpush3.bf16.msra.mxu1 %v14597_v17  ;;  %v18687_v17 = vshrl.u32 %v17293_v11, 16 }
 0x541   :  { %11810 = vmatmul.mubr.bf16.vlgmr.msra.gmra.mrb[164].mxu0 %v19051_v8  ;;  %v7198_v8 = vsel %vm5929_vm5, %v7193_v37, %v7197_v60  ;;  %v19053_v37 = vld [vmem:[#allocation43_spill] sm:$0xff]  ;;  %12517 = vmatprep.subr.bf16.mxu1 %v18769_v2 }
 0x542   :  { %11813 = vmatprep.mubr.msk.bf16.mxu0 %vm14735_vm0, %v18769_v2 }
 0x543   :  { %12394 = vmatmul.mubr.bf16.gmra.mrb[60].mxu1 %v7190_v40  ;;  %v18674_v40 = vshll.u32 %v17265_v51, 16 }
 0x544   :  { %12397 = vmatprep.mubr.msk.bf16.mxu1 %vm14735_vm0, %v18769_v2 }
 0x545   :  { %v7205_v62 = vrot.slane %v18674_v40, 1  ;;  %v18679_v40 = vshrl.u32 %v17265_v51, 16 }
 0x547   :  { %v7209_v60 = vor.u32 %v18679_v40, %v7205_v62 }
 0x549   :  { %11814 = vmatmul.mubr.bf16.gmra.mrb[168].mxu0 %v19052_v36  ;;  %v7206_v36 = vsel %vm5929_vm5, %v7201_v39, %v7205_v62  ;;  %v19054_v39 = vld [vmem:[#allocation47_spill] sm:$0xff]  ;;  %v18684_v62 = vshrl.u32 %v17279_v31, 16 }
 0x54a   :  { %11817 = vmatprep.mubr.msk.bf16.mxu0 %vm14735_vm0, %v18769_v2 }
 0x54b   :  { %12398 = vmatmul.mubr.bf16.gmra.mrb[64].mxu1 %v7198_v8  ;;  %v18678_v8 = vshll.u32 %v17279_v31, 16 }
 0x54c   :  { %12401 = vmatprep.mubr.msk.bf16.mxu1 %vm14735_vm0, %v18769_v2 }
 0x54d   :  { %v7213_v19 = vrot.slane %v18678_v8, 1  ;;  %v19055_v8 = vld [vmem:[#allocation51_spill] sm:$0xff] }
 0x551   :  { %11818 = vmatmul.mubr.bf16.gmra.mrb[172].mxu0 %v19053_v37  ;;  %v7214_v37 = vsel %vm5929_vm5, %v7209_v60, %v7213_v19  ;;  %v17310_v60 = vld [vmem:[#allocation2 + $0x9c] sm:$0xff]  }
 0x552   :  { %11821 = vmatprep.mubr.msk.bf16.mxu0 %vm14735_vm0, %v18769_v2  ;;  %v18683_v3 = vshll.u32 %v17310_v60, 16 }
 0x553   :  { %12402 = vmatmul.mubr.bf16.gmra.mrb[68].mxu1 %v7206_v36  ;;  %v18681_v36 = vshll.u32 %v17293_v11, 16 }
 0x554   :  { %12405 = vmatprep.mubr.msk.bf16.mxu1 %vm14735_vm0, %v18769_v2 }
 0x559   :  { %11822 = vmatmul.mubr.bf16.gmra.mrb[176].mxu0 %v19054_v39  ;;  %v7221_v39 = vrot.slane %v18681_v36, 1  ;;  %v7229_v36 = vrot.slane %v18683_v3, 1  ;;  %v18690_v3 = vshrl.u32 %v17310_v60, 16 }
 0x55a   :  { %11825 = vmatprep.mubr.msk.bf16.mxu0 %vm14735_vm0, %v18769_v2 }
 0x55b   :  { %12406 = vmatmul.mubr.bf16.gmra.mrb[72].mxu1 %v7214_v37  ;;  %v7217_v37 = vor.u32 %v18684_v62, %v7213_v19  ;;  %v7225_v19 = vor.u32 %v18687_v17, %v7221_v39 }
 0x55c   :  { %12409 = vmatprep.mubr.msk.bf16.mxu1 %vm14735_vm0, %v18769_v2 }
 0x55d   :  { %v7222_v40 = vsel %vm5929_vm5, %v7217_v37, %v7221_v39  ;;  %v18686_v37 = vshll.u32 %v17325_v7, 16  ;;  %v7233_v39 = vor.u32 %v18690_v3, %v7229_v36 }
 0x55f   :  { %v7237_v62 = vrot.slane %v18686_v37, 1  ;;  %v18693_v37 = vshrl.u32 %v17325_v7, 16 }
 0x561   :  { %11826 = vmatmul.mubr.bf16.gmra.mrb[180].mxu0 %v19055_v8  ;;  %v19056_v8 = vld [vmem:[#allocation54_spill] sm:$0xff] }
 0x562   :  { %11829 = vmatprep.mubr.msk.bf16.mxu0 %vm14735_vm0, %v18769_v2 }
 0x563   :  { %12410 = vmatmul.mubr.bf16.gmra.mrb[76].mxu1 %v7222_v40  ;;  %v7230_v40 = vsel %vm5929_vm5, %v7225_v19, %v7229_v36  ;;  %v19057_v19 = vld [vmem:[#allocation57_spill] sm:$0xff]  ;;  %v7241_v36 = vor.u32 %v18693_v37, %v7237_v62 }
 0x564   :  { %12413 = vmatprep.mubr.msk.bf16.mxu1 %vm14735_vm0, %v18769_v2 }
 0x569   :  { %11830 = vmatmul.mubr.bf16.gmra.mrb[184].mxu0 %v19056_v8  ;;  %v7238_v8 = vsel %vm5929_vm5, %v7233_v39, %v7237_v62  ;;  %v19058_v39 = vld [vmem:[#allocation62_spill] sm:$0xff] }
 0x56a   :  { %11833 = vmatprep.mubr.msk.bf16.mxu0 %vm14735_vm0, %v18769_v2 }
 0x56b   :  { %12414 = vmatmul.mubr.bf16.gmra.mrb[80].mxu1 %v7230_v40  ;;  %v18689_v40 = vshll.u32 %v17339_v4, 16 }
 0x56c   :  { %12417 = vmatprep.mubr.msk.bf16.mxu1 %vm14735_vm0, %v18769_v2 }
 0x56d   :  { %v7245_v17 = vrot.slane %v18689_v40, 1  ;;  %v18695_v40 = vshrl.u32 %v17339_v4, 16 }
 0x56f   :  { %v7249_v62 = vor.u32 %v18695_v40, %v7245_v17  ;;  %v14603_v40 = vld [vmem:[%s18600_s2 + $0x1d0] sm:$0xff]  }
 0x570   :  { %12518 = vmatpush3.bf16.msra.mxu1 %v14603_v40  ;;  %v18704_v40 = vshrl.u32 %v17381_v46, 16 }
 0x571   :  { %11834 = vmatmul.mubr.bf16.gmra.mrb[188].mxu0 %v19057_v19  ;;  %v7246_v19 = vsel %vm5929_vm5, %v7241_v36, %v7245_v17  ;;  %v19059_v36 = vld [vmem:[#allocation66_spill] sm:$0xff]  ;;  %12519 = vmatprep.subr.bf16.mxu1 %v18769_v2 }
 0x572   :  { %11837 = vmatprep.mubr.msk.bf16.mxu0 %vm14735_vm0, %v18769_v2 }
 0x573   :  { %12418 = vmatmul.mubr.bf16.gmra.mrb[84].mxu1 %v7238_v8  ;;  %v18692_v8 = vshll.u32 %v17353_v57, 16 }
 0x574   :  { %12421 = vmatprep.mubr.msk.bf16.mxu1 %vm14735_vm0, %v18769_v2 }
 0x575   :  { %v7253_v3 = vrot.slane %v18692_v8, 1  ;;  %v18697_v8 = vshrl.u32 %v17353_v57, 16 }
 0x577   :  { %v7257_v17 = vor.u32 %v18697_v8, %v7253_v3 }
 0x579   :  { %11838 = vmatmul.mubr.bf16.gmra.mrb[192].mxu0 %v19058_v39  ;;  %v7254_v39 = vsel %vm5929_vm5, %v7249_v62, %v7253_v3  ;;  %v19060_v62 = vld [vmem:[#allocation72_spill] sm:$0xff]  ;;  %v18702_v3 = vshrl.u32 %v17367_v22, 16 }
 0x57a   :  { %11841 = vmatprep.mubr.msk.bf16.mxu0 %vm14735_vm0, %v18769_v2 }
 0x57b   :  { %12422 = vmatmul.mubr.bf16.gmra.mrb[88].mxu1 %v7246_v19  ;;  %v18696_v19 = vshll.u32 %v17367_v22, 16 }
 0x57c   :  { %12425 = vmatprep.mubr.msk.bf16.mxu1 %vm14735_vm0, %v18769_v2 }
 0x57d   :  { %v7261_v37 = vrot.slane %v18696_v19, 1 }
 0x57f   :  { %v7265_v19 = vor.u32 %v18702_v3, %v7261_v37 }
 0x581   :  { %11842 = vmatmul.mubr.bf16.gmra.mrb[196].mxu0 %v19059_v36  ;;  %v7262_v36 = vsel %vm5929_vm5, %v7257_v17, %v7261_v37 }
 0x582   :  { %11845 = vmatprep.mubr.msk.bf16.mxu0 %vm14735_vm0, %v18769_v2 }
 0x583   :  { %12426 = vmatmul.mubr.bf16.gmra.mrb[92].mxu1 %v7254_v39  ;;  %v18699_v39 = vshll.u32 %v17381_v46, 16 }
 0x584   :  { %12429 = vmatprep.mubr.msk.bf16.mxu1 %vm14735_vm0, %v18769_v2 }
 0x585   :  { %v7269_v17 = vrot.slane %v18699_v39, 1 }
 0x587   :  { %v7270_v8 = vsel %vm5929_vm5, %v7265_v19, %v7269_v17  ;;  %v7273_v37 = vor.u32 %v18704_v40, %v7269_v17  ;;  %v19062_v19 = vld [vmem:[#allocation86_spill] sm:$0xff]  ;;  %v18709_v40 = vshll.u32 %v17427_v42, 16 }
 0x589   :  { %11846 = vmatmul.mubr.bf16.gmra.mrb[200].mxu0 %v19060_v62  ;;  %v17399_v62 = vld [vmem:[#allocation2 + $0xcc] sm:$0xff]  }
 0x58a   :  { %11849 = vmatprep.mubr.msk.bf16.mxu0 %vm14735_vm0, %v18769_v2  ;;  %v18701_v54 = vshll.u32 %v17399_v62, 16 }
 0x58b   :  { %12430 = vmatmul.mubr.bf16.gmra.mrb[96].mxu1 %v7262_v36  ;;  %v19061_v36 = vld [vmem:[#allocation78_spill] sm:$0xff] }
 0x58c   :  { %12433 = vmatprep.mubr.msk.bf16.mxu1 %vm14735_vm0, %v18769_v2  ;;  %v7277_v39 = vrot.slane %v18701_v54, 1  ;;  %v18706_v54 = vshrl.u32 %v17399_v62, 16 }
 0x58e   :  { %v7281_v17 = vor.u32 %v18706_v54, %v7277_v39  ;;  %v19064_v54 = vld [vmem:[#allocation98_spill] sm:$0xff] }
 0x591   :  { %11850 = vmatmul.mubr.bf16.gmra.mrb[204].mxu0 %v19061_v36  ;;  %v18705_v36 = vshll.u32 %v17413_v10, 16 }
 0x592   :  { %11853 = vmatprep.mubr.msk.bf16.mxu0 %vm14735_vm0, %v18769_v2 }
 0x593   :  { %12434 = vmatmul.mubr.bf16.gmra.mrb[100].mxu1 %v7270_v8  ;;  %v7278_v8 = vsel %vm5929_vm5, %v7273_v37, %v7277_v39  ;;  %v7285_v3 = vrot.slane %v18705_v36, 1  ;;  %v14607_v37 = vld [vmem:[%s18600_s2 + $0x1d8] sm:$0xff]   ;;  %v14609_v36 = vld [vmem:[%s18600_s2 + $0x1e0] sm:$0xff]   ;;  %v18710_v39 = vshrl.u32 %v17413_v10, 16 }
 0x594   :  { %12437 = vmatprep.mubr.msk.bf16.mxu1 %vm14735_vm0, %v18769_v2  ;;  %12520 = vmatpush3.bf16.msra.mxu1 %v14607_v37 }
 0x595   :  { %12521 = vmatprep.subr.bf16.mxu1 %v18769_v2  ;;  %v7289_v37 = vor.u32 %v18710_v39, %v7285_v3 }
 0x598   :  { %12522 = vmatpush3.bf16.msra.mxu1 %v14609_v36  ;;  %v14611_v36 = vld [vmem:[%s18600_s2 + $0x1f0] sm:$0xff]  }
 0x599   :  { %11854 = vmatmul.mubr.bf16.gmra.mrb[208].mxu0 %v19062_v19  ;;  %v19063_v19 = vld [vmem:[#allocation93_spill] sm:$0xff]  ;;  %12523 = vmatprep.subr.bf16.mxu1 %v18769_v2 }
 0x59a   :  { %11857 = vmatprep.mubr.msk.bf16.mxu0 %vm14735_vm0, %v18769_v2 }
 0x59b   :  { %12438 = vmatmul.mubr.bf16.gmra.mrb[104].mxu1 %v7278_v8  ;;  %v7286_v8 = vsel %vm5929_vm5, %v7281_v17, %v7285_v3  ;;  %v7293_v17 = vrot.slane %v18709_v40, 1 }
 0x59c   :  { %12441 = vmatprep.mubr.msk.bf16.mxu1 %vm14735_vm0, %v18769_v2 }
 0x59d   :  { %v7294_v52 = vsel %vm5929_vm5, %v7289_v37, %v7293_v17  ;;  %v17470_v37 = vld [vmem:[#allocation2 + $0xec] sm:$0xff]  }
 0x59e   :  { %v18711_v39 = vshll.u32 %v17470_v37, 16 }
 0x5a1   :  { %11858 = vmatmul.mubr.bf16.gmra.mrb[212].mxu0 %v19063_v19  ;;  %v17448_v19 = vld [vmem:[#allocation2 + $0xe4] sm:$0xff]  }
 0x5a2   :  { %11861 = vmatprep.mubr.msk.bf16.mxu0 %vm14735_vm0, %v18769_v2  ;;  %v18712_v12 = vshll.u32 %v17448_v19, 16 }
 0x5a3   :  { %12442 = vmatmul.mubr.bf16.gmra.mrb[108].mxu1 %v7286_v8  ;;  %v14610_v8 = vld [vmem:[%s18600_s2 + $0x1e8] sm:$0xff]  }
 0x5a4   :  { %12445 = vmatprep.mubr.msk.bf16.mxu1 %vm14735_vm0, %v18769_v2  ;;  %12524 = vmatpush3.bf16.msra.mxu1 %v14610_v8  ;;  %v7301_v3 = vrot.slane %v18712_v12, 1  ;;  %v14612_v8 = vld [vmem:[%s18600_s2 + $0x1f8] sm:$0xff]  }
 0x5a5   :  { %12525 = vmatprep.subr.bf16.mxu1 %v18769_v2 }
 0x5a8   :  { %12526 = vmatpush3.bf16.msra.mxu1 %v14611_v36  ;;  %v7309_v36 = vrot.slane %v18711_v39, 1  ;;  %v18717_v39 = vshrl.u32 %v17470_v37, 16 }
 0x5a9   :  { %11862 = vmatmul.mubr.bf16.gmra.mrb[216].mxu0 %v19064_v54  ;;  %v18713_v54 = vshrl.u32 %v17427_v42, 16  ;;  %12527 = vmatprep.subr.bf16.mxu1 %v18769_v2 }
 0x5aa   :  { %11865 = vmatprep.mubr.msk.bf16.mxu0 %vm14735_vm0, %v18769_v2 }
 0x5ab   :  { %12446 = vmatmul.mubr.bf16.gmra.mrb[112].mxu1 %v7294_v52  ;;  %v7297_v52 = vor.u32 %v18713_v54, %v7293_v17  ;;  %v18715_v17 = vshrl.u32 %v17448_v19, 16  ;;  %v17503_v54 = vld [vmem:[#allocation2 + $0xfc] sm:$0xff]  }
 0x5ac   :  { %12449 = vmatprep.mubr.msk.bf16.mxu1 %vm14735_vm0, %v18769_v2  ;;  %12528 = vmatpush3.bf16.msra.mxu1 %v14612_v8 }
 0x5ad   :  { %v7302_v40 = vsel %vm5929_vm5, %v7297_v52, %v7301_v3  ;;  %12693 = vmatprep.subr.bf16.mxu1 %v18769_v2  ;;  %v7305_v52 = vor.u32 %v18715_v17, %v7301_v3  ;;  %v17517_v17 = vld [vmem:[#allocation2 + $0x104] sm:$0xff]  }
 0x5b1   :  { %11866 = vmatmul.mubr.bf16.gmra.mrb[220].mxu0 %v16225_v45  ;;  %v17489_v45 = vld [vmem:[#allocation2 + $0xf4] sm:$0xff]  }
 0x5b2   :  { %11869 = vmatprep.mubr.msk.bf16.mxu0 %vm14735_vm0, %v18769_v2  ;;  %v18714_v8 = vshll.u32 %v17489_v45, 16 }
 0x5b3   :  { %12450 = vmatmul.mubr.bf16.gmra.mrb[116].mxu1 %v7302_v40  ;;  %v7310_v40 = vsel %vm5929_vm5, %v7305_v52, %v7309_v36  ;;  %v18716_v52 = vshll.u32 %v17503_v54, 16 }
 0x5b4   :  { %12453 = vmatprep.mubr.msk.bf16.mxu1 %vm14735_vm0, %v18769_v2  ;;  %v7317_v12 = vrot.slane %v18714_v8, 1 }
 0x5b5   :  { %v7325_v8 = vrot.slane %v18716_v52, 1 }
 0x5b9   :  { %11870 = vmatmul.mubr.bf16.gmra.mrb[224].mxu0 %v16333_v56  ;;  %v7313_v56 = vor.u32 %v18717_v39, %v7309_v36  ;;  %v17531_v39 = vld [vmem:[#allocation2 + $0x10c] sm:$0xff]  }
 0x5ba   :  { %11873 = vmatprep.mubr.msk.bf16.mxu0 %vm14735_vm0, %v18769_v2 }
 0x5bb   :  { %12454 = vmatmul.mubr.bf16.gmra.mrb[120].mxu1 %v7310_v40  ;;  %v7318_v3 = vsel %vm5929_vm5, %v7313_v56, %v7317_v12  ;;  %v18719_v40 = vshrl.u32 %v17489_v45, 16  ;;  %v18718_v56 = vshll.u32 %v17517_v17, 16 }
 0x5bc   :  { %12457 = vmatprep.mubr.msk.bf16.mxu1 %vm14735_vm0, %v18769_v2 }
 0x5bd   :  { %v7333_v52 = vrot.slane %v18718_v56, 1 }
 0x5c1   :  { %11874 = vmatmul.mubr.bf16.gmra.mrb[228].mxu0 %v16357_v41  ;;  %v7321_v41 = vor.u32 %v18719_v40, %v7317_v12  ;;  %v17545_v40 = vld [vmem:[#allocation2 + $0x114] sm:$0xff]  }
 0x5c2   :  { %11877 = vmatprep.mubr.msk.bf16.mxu0 %vm14735_vm0, %v18769_v2 }
 0x5c3   :  { %12458 = vmatmul.mubr.bf16.gmra.mrb[124].mxu1 %v7318_v3  ;;  %v7326_v36 = vsel %vm5929_vm5, %v7321_v41, %v7325_v8  ;;  %v18721_v3 = vshrl.u32 %v17503_v54, 16  ;;  %v18720_v41 = vshll.u32 %v17531_v39, 16 }
 0x5c4   :  { %12461 = vmatprep.mubr.msk.bf16.mxu1 %vm14735_vm0, %v18769_v2 }
 0x5c5   :  { %v7341_v56 = vrot.slane %v18720_v41, 1 }
 0x5c9   :  { %11878 = vmatmul.mubr.bf16.gmra.mrb[232].mxu0 %v16363_v24  ;;  %v7329_v24 = vor.u32 %v18721_v3, %v7325_v8  ;;  %v17559_v3 = vld [vmem:[#allocation2 + $0x11c] sm:$0xff]  }
 0x5ca   :  { %11881 = vmatprep.mubr.msk.bf16.mxu0 %vm14735_vm0, %v18769_v2 }
 0x5cb   :  { %12462 = vmatmul.mubr.bf16.gmra.mrb[128].mxu1 %v7326_v36  ;;  %v7334_v12 = vsel %vm5929_vm5, %v7329_v24, %v7333_v52  ;;  %v18723_v36 = vshrl.u32 %v17517_v17, 16  ;;  %v18722_v24 = vshll.u32 %v17545_v40, 16 }
 0x5cc   :  { %12465 = vmatprep.mubr.msk.bf16.mxu1 %vm14735_vm0, %v18769_v2 }
 0x5cd   :  { %v7349_v41 = vrot.slane %v18722_v24, 1 }
 0x5d1   :  { %11882 = vmatmul.mubr.bf16.gmra.mrb[236].mxu0 %v16374_v18  ;;  %v7337_v18 = vor.u32 %v18723_v36, %v7333_v52  ;;  %v17573_v36 = vld [vmem:[#allocation2 + $0x124] sm:$0xff]  }
 0x5d2   :  { %11885 = vmatprep.mubr.msk.bf16.mxu0 %vm14735_vm0, %v18769_v2 }
 0x5d3   :  { %12466 = vmatmul.mubr.bf16.gmra.mrb[132].mxu1 %v7334_v12  ;;  %v7342_v8 = vsel %vm5929_vm5, %v7337_v18, %v7341_v56  ;;  %v18725_v12 = vshrl.u32 %v17531_v39, 16  ;;  %v18724_v18 = vshll.u32 %v17559_v3, 16 }
 0x5d4   :  { %12469 = vmatprep.mubr.msk.bf16.mxu1 %vm14735_vm0, %v18769_v2 }
 0x5d5   :  { %v7357_v24 = vrot.slane %v18724_v18, 1 }
 0x5d9   :  { %11886 = vmatmul.mubr.bf16.gmra.mrb[240].mxu0 %v16393_v26  ;;  %v7345_v26 = vor.u32 %v18725_v12, %v7341_v56  ;;  %v17587_v12 = vld [vmem:[#allocation2 + $0x12c] sm:$0xff]  }
 0x5da   :  { %11889 = vmatprep.mubr.msk.bf16.mxu0 %vm14735_vm0, %v18769_v2 }
 0x5db   :  { %12470 = vmatmul.mubr.bf16.gmra.mrb[136].mxu1 %v7342_v8  ;;  %v7350_v52 = vsel %vm5929_vm5, %v7345_v26, %v7349_v41  ;;  %v18727_v8 = vshrl.u32 %v17545_v40, 16  ;;  %v18726_v26 = vshll.u32 %v17573_v36, 16 }
 0x5dc   :  { %12473 = vmatprep.mubr.msk.bf16.mxu1 %vm14735_vm0, %v18769_v2 }
 0x5dd   :  { %v7365_v18 = vrot.slane %v18726_v26, 1 }
 0x5e1   :  { %11890 = vmatmul.mubr.bf16.gmra.mrb[244].mxu0 %v16398_v13  ;;  %v7353_v13 = vor.u32 %v18727_v8, %v7349_v41  ;;  %v18732_v8 = vshrl.u32 %v17573_v36, 16 }
 0x5e2   :  { %11893 = vmatprep.mubr.msk.bf16.mxu0 %vm14735_vm0, %v18769_v2 }
 0x5e3   :  { %12474 = vmatmul.mubr.bf16.gmra.mrb[140].mxu1 %v7350_v52  ;;  %v7358_v56 = vsel %vm5929_vm5, %v7353_v13, %v7357_v24  ;;  %v18728_v52 = vshrl.u32 %v17559_v3, 16  ;;  %v18731_v13 = vshll.u32 %v17587_v12, 16 }
 0x5e4   :  { %12477 = vmatprep.mubr.msk.bf16.mxu1 %vm14735_vm0, %v18769_v2 }
 0x5e9   :  { %11894 = vmatmul.mubr.bf16.gmra.mrb[248].mxu0 %v16417_v63  ;;  %v7361_v63 = vor.u32 %v18728_v52, %v7357_v24  ;;  %v7373_v24 = vrot.slane %v18731_v13, 1 }
 0x5ea   :  { %11897 = vmatprep.mubr.msk.bf16.mxu0 %vm14735_vm0, %v18769_v2 }
 0x5eb   :  { %12478 = vmatmul.mubr.bf16.gmra.mrb[144].mxu1 %v7358_v56  ;;  %v7366_v41 = vsel %vm5929_vm5, %v7361_v63, %v7365_v18 }
 0x5ec   :  { %12481 = vmatprep.mubr.msk.bf16.mxu1 %vm14735_vm0, %v18769_v2 }
 0x5f1   :  { %11898 = vmatmul.mubr.bf16.gmra.mrb[252].mxu0 %v16426_v14  ;;  %v17603_v14 = vld [vmem:[#allocation2 + $0x134] sm:$0xff]  }
 0x5f2   :  { %11901 = vmatprep.mubr.msk.bf16.mxu0 %vm14735_vm0, %v18769_v2  ;;  %v18733_v21 = vshll.u32 %v17603_v14, 16 }
 0x5f3   :  { %12482 = vmatmul.mubr.bf16.gmra.mrb[148].mxu1 %v7366_v41  ;;  %v7369_v41 = vor.u32 %v18732_v8, %v7365_v18 }
 0x5f4   :  { %12485 = vmatprep.mubr.msk.bf16.mxu1 %vm14735_vm0, %v18769_v2  ;;  %v17598_v56 = vpop.f32.mrb[56].mxu0  ;;  %v7381_v18 = vrot.slane %v18733_v21, 1 }
 0x5f5   :  { %19065 = vst [vmem:[#allocation6_spill] sm:$0xff] %v17598_v56  ;;  %v11779_v26 = vpop.f32.mrb[57].mxu0  ;;  %v7374_v53 = vsel %vm5929_vm5, %v7369_v41, %v7373_v24 }
 0x5f6   :  { %v17605_v63 = vpop.f32.mrb[58].mxu0 }
 0x5f7   :  { %19066 = vst [vmem:[#allocation8_spill] sm:$0xff] %v17605_v63  ;;  %v11780_v52 = vpop.f32.mrb[59].mxu0 }
 0x5f8   :  { %v18734_v52 = vshrl.u32 %v17587_v12, 16 }
 0x5f9   :  { %11902 = vmatmul.mubr.bf16.gmra.mrb[0].mxu0 %v16430_v5  ;;  %v17621_v5 = vld [vmem:[#allocation2 + $0x13c] sm:$0xff]  }
 0x5fa   :  { %11905 = vmatprep.mubr.msk.bf16.mxu0 %vm14735_vm0, %v18769_v2 }
 0x5fb   :  { %12486 = vmatmul.mubr.bf16.gmra.mrb[152].mxu1 %v7374_v53  ;;  %v7377_v53 = vor.u32 %v18734_v52, %v7373_v24 }
 0x5fc   :  { %12489 = vmatprep.mubr.msk.bf16.mxu1 %vm14735_vm0, %v18769_v2  ;;  %v17616_v26 = vpop.f32.mrb[60].mxu0 }
 0x5fd   :  { %19067 = vst [vmem:[#allocation11_spill] sm:$0xff] %v17616_v26  ;;  %v11783_v13 = vpop.f32.mrb[61].mxu0  ;;  %v7382_v63 = vsel %vm5929_vm5, %v7377_v53, %v7381_v18  ;;  %v18735_v26 = vshll.u32 %v17621_v5, 16 }
 0x5fe   :  { %v17623_v41 = vpop.f32.mrb[62].mxu0 }
 0x5ff   :  { %19068 = vst [vmem:[#allocation80_spill] sm:$0xff] %v17623_v41  ;;  %v11784_v8 = vpop.f32.mrb[63].mxu0  ;;  %v7389_v24 = vrot.slane %v18735_v26, 1 }
 0x600   :  { %v18736_v8 = vshrl.u32 %v17603_v14, 16 }
 0x601   :  { %11906 = vmatmul.mubr.bf16.gmra.mrb[4].mxu0 %v16271_v15  ;;  %v17639_v15 = vld [vmem:[#allocation2 + $0x144] sm:$0xff]  }
 0x602   :  { %11909 = vmatprep.mubr.msk.bf16.mxu0 %vm14735_vm0, %v18769_v2 }
 0x603   :  { %12490 = vmatmul.mubr.bf16.gmra.mrb[156].mxu1 %v7382_v63  ;;  %v7385_v63 = vor.u32 %v18736_v8, %v7381_v18 }
 0x604   :  { %12493 = vmatprep.mubr.msk.bf16.mxu1 %vm14735_vm0, %v18769_v2  ;;  %v17634_v13 = vpop.f32.mrb[64].mxu0 }
 0x605   :  { %19069 = vst [vmem:[#allocation13_spill] sm:$0xff] %v17634_v13  ;;  %v11787_v21 = vpop.f32.mrb[65].mxu0  ;;  %v7390_v41 = vsel %vm5929_vm5, %v7385_v63, %v7389_v24  ;;  %v18737_v13 = vshll.u32 %v17639_v15, 16 }
 0x606   :  { %v17641_v53 = vpop.f32.mrb[66].mxu0 }
 0x607   :  { %19070 = vst [vmem:[#allocation83_spill] sm:$0xff] %v17641_v53  ;;  %v11788_v52 = vpop.f32.mrb[67].mxu0  ;;  %v7397_v18 = vrot.slane %v18737_v13, 1  ;;  %v6868_v13 = vld [vmem:[#allocation2 + $0x158] sm:$0x1] }
 0x608   :  { %v18738_v52 = vshrl.u32 %v17621_v5, 16 }
 0x609   :  { %11910 = vmatmul.mubr.bf16.gmra.mrb[8].mxu0 %v16274_v20 }
 0x60a   :  { %11913 = vmatprep.mubr.msk.bf16.mxu0 %vm14735_vm0, %v18769_v2  ;;  %v7393_v63 = vor.u32 %v18738_v52, %v7389_v24  ;;  %v6867_v24 = vld [vmem:[#allocation2 + $0x154] sm:$0xf] }
 0x60b   :  { %12494 = vmatmul.mubr.bf16.gmra.mrb[160].mxu1 %v7390_v41  ;;  %v17659_v41 = vld [vmem:[#allocation2 + $0x14c] sm:$0xff]   ;;  %v17677_v56 = vcombine.low %v6867_v24, %v6868_v13 }
 0x60c   :  { %12497 = vmatprep.mubr.msk.bf16.mxu1 %vm14735_vm0, %v18769_v2  ;;  %v17652_v21 = vpop.f32.mrb[68].mxu0  ;;  %v7398_v53 = vsel %vm5929_vm5, %v7393_v63, %v7397_v18 }
 0x60d   :  { %19071 = vst [vmem:[#allocation15_spill] sm:$0xff] %v17652_v21  ;;  %v11791_v26 = vpop.f32.mrb[69].mxu0 }
 0x60e   :  { %v3751_v20 = vpop.f32.mrb[70].mxu0  ;;  %v18742_v26 = vshrl.u32 %v17639_v15, 16 }
 0x60f   :  { %v11792_v8 = vpop.f32.mrb[71].mxu0 }
 0x610   :  { %v18740_v8 = vshll.u32 %v17659_v41, 16 }
 0x611   :  { %11914 = vmatmul.mubr.bf16.gmra.mrb[12].mxu0 %v16278_v49  ;;  %v7401_v49 = vor.u32 %v18742_v26, %v7397_v18 }
 0x612   :  { %11917 = vmatprep.mubr.msk.bf16.mxu0 %vm14735_vm0, %v18769_v2  ;;  %v7405_v21 = vrot.slane %v18740_v8, 1  ;;  %v7415_v8 = vshrl.u32 %v17677_v56, 16 }
 0x613   :  { %12498 = vmatmul.mubr.bf16.gmra.mrb[0].mxu1 %v7398_v53 }
 0x614   :  { %12501 = vmatprep.mubr.msk.bf16.mxu1 %vm14735_vm0, %v18769_v2  ;;  %v17669_v20 = vpop.f32.mrb[164].mxu0  ;;  %v7406_v50 = vsel %vm5929_vm5, %v7401_v49, %v7405_v21 }
 0x615   :  { %19072 = vst [vmem:[#allocation87_spill] sm:$0xff] %v17669_v20  ;;  %v11811_v52 = vpop.f32.mrb[165].mxu0  ;;  %v7411_v20 = vshll.u32 %v17677_v56, 16 }
 0x616   :  { %v17673_v63 = vpop.f32.mrb[166].mxu0  ;;  %v18741_v52 = vshrl.u32 %v17659_v41, 16 }
 0x617   :  { %v11812_v53 = vpop.f32.mrb[167].mxu0 }
 0x618   :  { %v7409_v13 = vor.u32 %v18741_v52, %v7405_v21 }
 0x619   :  { %11918 = vmatmul.mubr.bf16.gmra.mrb[16].mxu0 %v16402_v44  ;;  %v7413_v44 = vrot.slane %v7411_v20, 1 }
 0x61a   :  { %11921 = vmatprep.mubr.msk.bf16.mxu0 %vm14735_vm0, %v18769_v2 }
 0x61b   :  { %12502 = vmatmul.mubr.bf16.gmra.mrb[4].mxu1 %v7406_v50  ;;  %v7414_v50 = vsel %vm5929_vm5, %v7409_v13, %v7413_v44  ;;  %v7417_v52 = vor.u32 %v7415_v8, %v7413_v44  ;;  %v7970_v8 = vrot.slane %v16436_v28, 1 }
 0x61c   :  { %12505 = vmatprep.mubr.msk.bf16.mxu1 %vm14735_vm0, %v18769_v2  ;;  %v17687_v18 = vpop.f32.mrb[168].mxu0 }
 0x61d   :  { %v11815_v53 = vpop.f32.mrb[169].mxu0 }
 0x61e   :  { %v17691_v24 = vpop.f32.mrb[170].mxu0 }
 0x61f   :  { %v11816_v49 = vpop.f32.mrb[171].mxu0 }
 0x621   :  { %11922 = vmatmul.mubr.bf16.gmra.mrb[20].mxu0 %v16408_v33 }
 0x622   :  { %11925 = vmatprep.mubr.msk.bf16.mxu0 %vm14735_vm0, %v18769_v2 }
 0x623   :  { %12506 = vmatmul.mubr.bf16.gmra.mrb[8].mxu1 %v7414_v50  ;;  %v14707_v50 = vld [vmem:[#allocation2 + $0x1c] sm:$0xff]  }
 0x624   :  { %12509 = vmatprep.mubr.msk.bf16.mxu1 %vm14735_vm0, %v18769_v2  ;;  %v17700_v53 = vpop.f32.mrb[172].mxu0  ;;  %v7971_v26 = vrot.slane %v14707_v50, 1 }
 0x625   :  { %19073 = vst [vmem:[#allocation17_spill] sm:$0xff] %v17700_v53  ;;  %v11819_v21 = vpop.f32.mrb[173].mxu0 }
 0x626   :  { %v17702_v20 = vpop.f32.mrb[174].mxu0 }
 0x627   :  { %v11820_v49 = vpop.f32.mrb[175].mxu0 }
 0x628   :  { %v7973_v49 = vrot.slane %v17096_v6, 1 }
 0x629   :  { %11926 = vmatmul.mubr.bf16.gmra.mrb[24].mxu0 %v16411_v16  ;;  %v7972_v16 = vsel %vm7969_vm6, %v7970_v8, %v7971_v26  ;;  %v7975_v8 = vrot.slane %v17107_v34, 1 }
 0x62a   :  { %11929 = vmatprep.mubr.msk.bf16.mxu0 %vm14735_vm0, %v18769_v2 }
 0x62b   :  { %12510 = vmatmul.mubr.bf16.gmra.mrb[12].mxu1 %v7417_v52 }
 0x62c   :  { %12529 = vmatprep.mubr.msk.bf16.mxu1 %vm14735_vm0, %v18769_v2  ;;  %v17709_v33 = vpop.f32.mrb[176].mxu0 }
 0x62d   :  { %v11823_v13 = vpop.f32.mrb[177].mxu0 }
 0x62e   :  { %v17711_v53 = vpop.f32.mrb[178].mxu0 }
 0x62f   :  { %v11824_v21 = vpop.f32.mrb[179].mxu0 }
 0x631   :  { %11930 = vmatmul.mubr.bf16.gmra.mrb[28].mxu0 %v16421_v29  ;;  %v7974_v29 = vsel %vm7969_vm6, %v7971_v26, %v7973_v49 }
 0x632   :  { %11933 = vmatprep.mubr.msk.bf16.mxu0 %vm14735_vm0, %v18769_v2 }
 0x633   :  { %12530 = vmatmul.mubr.bf16.vlgmr.msra.gmra.mrb[16].mxu1 %v7972_v16 }
 0x634   :  { %12533 = vmatprep.mubr.msk.bf16.mxu1 %vm14735_vm0, %v18769_v2  ;;  %v17720_v52 = vpop.f32.mrb[180].mxu0 }
 0x635   :  { %v11827_v44 = vpop.f32.mrb[181].mxu0 }
 0x636   :  { %v17723_v13 = vpop.f32.mrb[182].mxu0 }
 0x637   :  { %v11828_v50 = vpop.f32.mrb[183].mxu0 }
 0x639   :  { %11934 = vmatmul.mubr.bf16.gmra.mrb[32].mxu0 %v16565_v25  ;;  %v7976_v25 = vsel %vm7969_vm6, %v7973_v49, %v7975_v8 }
 0x63a   :  { %11937 = vmatprep.mubr.msk.bf16.mxu0 %vm14735_vm0, %v18769_v2 }
 0x63b   :  { %12534 = vmatmul.mubr.bf16.gmra.mrb[20].mxu1 %v7974_v29  ;;  %v7977_v29 = vrot.slane %v17121_v30, 1 }
 0x63c   :  { %12537 = vmatprep.mubr.msk.bf16.mxu1 %vm14735_vm0, %v18769_v2  ;;  %v17731_v28 = vpop.f32.mrb[184].mxu0 }
 0x63d   :  { %v11831_v21 = vpop.f32.mrb[185].mxu0 }
 0x63e   :  { %v17734_v16 = vpop.f32.mrb[186].mxu0 }
 0x63f   :  { %19074 = vst [vmem:[#allocation90_spill] sm:$0xff] %v17734_v16  ;;  %v11832_v44 = vpop.f32.mrb[187].mxu0 }
 0x641   :  { %11938 = vmatmul.mubr.bf16.gmra.mrb[36].mxu0 %v16575_v43  ;;  %v7978_v43 = vsel %vm7969_vm6, %v7975_v8, %v7977_v29 }
 0x642   :  { %11941 = vmatprep.mubr.msk.bf16.mxu0 %vm14735_vm0, %v18769_v2 }
 0x643   :  { %12538 = vmatmul.mubr.bf16.gmra.mrb[24].mxu1 %v7976_v25  ;;  %v7979_v25 = vrot.slane %v17135_v47, 1 }
 0x644   :  { %12541 = vmatprep.mubr.msk.bf16.mxu1 %vm14735_vm0, %v18769_v2  ;;  %v17742_v26 = vpop.f32.mrb[188].mxu0 }
 0x645   :  { %v11835_v50 = vpop.f32.mrb[189].mxu0 }
 0x646   :  { %v17745_v21 = vpop.f32.mrb[190].mxu0 }
 0x647   :  { %19075 = vst [vmem:[#allocation19_spill] sm:$0xff] %v17745_v21  ;;  %v11836_v16 = vpop.f32.mrb[191].mxu0 }
 0x649   :  { %11942 = vmatmul.mubr.bf16.gmra.mrb[40].mxu0 %v16585_v55  ;;  %v7980_v55 = vsel %vm7969_vm6, %v7977_v29, %v7979_v25 }
 0x64a   :  { %11945 = vmatprep.mubr.msk.bf16.mxu0 %vm14735_vm0, %v18769_v2 }
 0x64b   :  { %12542 = vmatmul.mubr.bf16.gmra.mrb[28].mxu1 %v7978_v43  ;;  %v7981_v43 = vrot.slane %v17149_v23, 1 }
 0x64c   :  { %12545 = vmatprep.mubr.msk.bf16.mxu1 %vm14735_vm0, %v18769_v2  ;;  %v17753_v49 = vpop.f32.mrb[192].mxu0 }
 0x64d   :  { %v11839_v44 = vpop.f32.mrb[193].mxu0 }
 0x64e   :  { %v17756_v50 = vpop.f32.mrb[194].mxu0 }
 0x64f   :  { %19076 = vst [vmem:[#allocation94_spill] sm:$0xff] %v17756_v50  ;;  %v11840_v21 = vpop.f32.mrb[195].mxu0 }
 0x651   :  { %11946 = vmatmul.mubr.bf16.gmra.mrb[44].mxu0 %v16595_v58  ;;  %v7982_v58 = vsel %vm7969_vm6, %v7979_v25, %v7981_v43 }
 0x652   :  { %11949 = vmatprep.mubr.msk.bf16.mxu0 %vm14735_vm0, %v18769_v2 }
 0x653   :  { %12546 = vmatmul.mubr.bf16.gmra.mrb[32].mxu1 %v7980_v55  ;;  %v7983_v55 = vrot.slane %v17163_v27, 1 }
 0x654   :  { %12549 = vmatprep.mubr.msk.bf16.mxu1 %vm14735_vm0, %v18769_v2  ;;  %v17764_v8 = vpop.f32.mrb[196].mxu0 }
 0x655   :  { %19077 = vst [vmem:[#allocation21_spill] sm:$0xff] %v17764_v8  ;;  %v11843_v16 = vpop.f32.mrb[197].mxu0  ;;  %v7984_v25 = vsel %vm7969_vm6, %v7981_v43, %v7983_v55 }
 0x656   :  { %v17767_v44 = vpop.f32.mrb[198].mxu0 }
 0x657   :  { %19078 = vst [vmem:[#allocation23_spill] sm:$0xff] %v17767_v44  ;;  %v11844_v50 = vpop.f32.mrb[199].mxu0 }
 0x658   :  { %v19081_v50 = vld [vmem:[#allocation103_spill] sm:$0xff] }
 0x659   :  { %11950 = vmatmul.mubr.bf16.gmra.mrb[48].mxu0 %v16606_v9  ;;  %v4479_v9 = vsel %vm3131_vm2, %v16602_v1, %v19081_v50  ;;  %v7987_v50 = vrot.slane %v17191_v0, 1 }
 0x65a   :  { %11953 = vmatprep.mubr.msk.bf16.mxu0 %vm14735_vm0, %v18769_v2 }
 0x65b   :  { %12550 = vmatmul.mubr.bf16.gmra.mrb[36].mxu1 %v7982_v58 }
 0x65c   :  { %12553 = vmatprep.mubr.msk.bf16.mxu1 %vm14735_vm0, %v18769_v2  ;;  %v17775_v29 = vpop.f32.mrb[200].mxu0 }
 0x65d   :  { %19079 = vst [vmem:[#allocation25_spill] sm:$0xff] %v17775_v29  ;;  %v11847_v21 = vpop.f32.mrb[201].mxu0 }
 0x65e   :  { %v17778_v16 = vpop.f32.mrb[202].mxu0  ;;  %v7985_v21 = vrot.slane %v17177_v38, 1 }
 0x65f   :  { %19080 = vst [vmem:[#allocation27_spill] sm:$0xff] %v17778_v16  ;;  %v11848_v44 = vpop.f32.mrb[203].mxu0 }
 0x660   :  { %v7986_v44 = vsel %vm7969_vm6, %v7983_v55, %v7985_v21 }
 0x661   :  { %11954 = vmatmul.mubr.bf16.gmra.mrb[52].mxu0 %v4479_v9 }
 0x663   :  { %12554 = vmatmul.mubr.bf16.gmra.mrb[40].mxu1 %v7984_v25 }
 0x664   :  { %12557 = vmatprep.mubr.msk.bf16.mxu1 %vm14735_vm0, %v18769_v2  ;;  %v17786_v58 = vpop.f32.mrb[204].mxu0 }
 0x665   :  { %19082 = vst [vmem:[#allocation29_spill] sm:$0xff] %v17786_v58  ;;  %v11851_v29 = vpop.f32.mrb[205].mxu0 }
 0x666   :  { %v17789_v8 = vpop.f32.mrb[206].mxu0  ;;  %v7988_v29 = vsel %vm7969_vm6, %v7985_v21, %v7987_v50 }
 0x667   :  { %19083 = vst [vmem:[#allocation31_spill] sm:$0xff] %v17789_v8  ;;  %v11852_v16 = vpop.f32.mrb[207].mxu0 }
 0x66b   :  { %12558 = vmatmul.mubr.bf16.gmra.mrb[44].mxu1 %v7986_v44  ;;  %v7989_v44 = vrot.slane %v17205_v32, 1 }
 0x66c   :  { %12561 = vmatprep.mubr.msk.bf16.mxu1 %vm14735_vm0, %v18769_v2  ;;  %v17794_v1 = vpop.f32.mrb[208].mxu0 }
 0x66d   :  { %19084 = vst [vmem:[#allocation33_spill] sm:$0xff] %v17794_v1  ;;  %v11855_v43 = vpop.f32.mrb[209].mxu0 }
 0x66e   :  { %v17797_v9 = vpop.f32.mrb[210].mxu0  ;;  %v7990_v43 = vsel %vm7969_vm6, %v7987_v50, %v7989_v44 }
 0x66f   :  { %19085 = vst [vmem:[#allocation35_spill] sm:$0xff] %v17797_v9  ;;  %v11856_v25 = vpop.f32.mrb[211].mxu0 }
 0x673   :  { %12562 = vmatmul.mubr.bf16.gmra.mrb[48].mxu1 %v7988_v29  ;;  %v7991_v29 = vrot.slane %v17219_v61, 1 }
 0x674   :  { %12565 = vmatprep.mubr.msk.bf16.mxu1 %vm14735_vm0, %v18769_v2  ;;  %v17802_v16 = vpop.f32.mrb[212].mxu0 }
 0x675   :  { %19086 = vst [vmem:[#allocation37_spill] sm:$0xff] %v17802_v16  ;;  %v11859_v55 = vpop.f32.mrb[213].mxu0 }
 0x676   :  { %v17805_v8 = vpop.f32.mrb[214].mxu0  ;;  %v14614_v55 = vld [vmem:[%s18600_s2 + $0x200] sm:$0xff]  }
 0x677   :  { %19087 = vst [vmem:[#allocation40_spill] sm:$0xff] %v17805_v8  ;;  %v11860_v1 = vpop.f32.mrb[215].mxu0  ;;  %12694 = vmatpush3.bf16.msra.mxu1 %v14614_v55 }
 0x678   :  { %v7992_v1 = vsel %vm7969_vm6, %v7989_v44, %v7991_v29  ;;  %12695 = vmatprep.subr.bf16.mxu1 %v18769_v2 }
 0x67b   :  { %12566 = vmatmul.mubr.bf16.gmra.mrb[52].mxu1 %v7990_v43 }
 0x67c   :  { %12569 = vmatprep.mubr.msk.bf16.mxu1 %vm14735_vm0, %v18769_v2  ;;  %v17810_v25 = vpop.f32.mrb[216].mxu0 }
 0x67d   :  { %19088 = vst [vmem:[#allocation42_spill] sm:$0xff] %v17810_v25  ;;  %v11863_v21 = vpop.f32.mrb[217].mxu0 }
 0x67e   :  { %v17813_v9 = vpop.f32.mrb[218].mxu0  ;;  %v7993_v21 = vrot.slane %v17236_v59, 1 }
 0x67f   :  { %19089 = vst [vmem:[#allocation45_spill] sm:$0xff] %v17813_v9  ;;  %v11864_v16 = vpop.f32.mrb[219].mxu0 }
 0x680   :  { %v7994_v25 = vsel %vm7969_vm6, %v7991_v29, %v7993_v21  ;;  %v7997_v29 = vrot.slane %v17265_v51, 1 }
 0x683   :  { %12570 = vmatmul.mubr.bf16.gmra.mrb[56].mxu1 %v7992_v1  ;;  %v7995_v1 = vrot.slane %v17251_v48, 1 }
 0x684   :  { %12573 = vmatprep.mubr.msk.bf16.mxu1 %vm14735_vm0, %v18769_v2  ;;  %v17822_v50 = vpop.f32.mrb[220].mxu0 }
 0x685   :  { %19090 = vst [vmem:[#allocation48_spill] sm:$0xff] %v17822_v50  ;;  %v11867_v43 = vpop.f32.mrb[221].mxu0 }
 0x686   :  { %v17825_v9 = vpop.f32.mrb[222].mxu0  ;;  %v7996_v43 = vsel %vm7969_vm6, %v7993_v21, %v7995_v1 }
 0x687   :  { %19091 = vst [vmem:[#allocation50_spill] sm:$0xff] %v17825_v9  ;;  %v11868_v16 = vpop.f32.mrb[223].mxu0 }
 0x68b   :  { %12574 = vmatmul.mubr.bf16.gmra.mrb[60].mxu1 %v7994_v25 }
 0x68c   :  { %12577 = vmatprep.mubr.msk.bf16.mxu1 %vm14735_vm0, %v18769_v2  ;;  %v17830_v44 = vpop.f32.mrb[224].mxu0 }
 0x68d   :  { %19092 = vst [vmem:[#allocation53_spill] sm:$0xff] %v17830_v44  ;;  %v11871_v55 = vpop.f32.mrb[225].mxu0 }
 0x68e   :  { %v17833_v8 = vpop.f32.mrb[226].mxu0  ;;  %v7998_v55 = vsel %vm7969_vm6, %v7995_v1, %v7997_v29 }
 0x68f   :  { %19093 = vst [vmem:[#allocation56_spill] sm:$0xff] %v17833_v8  ;;  %v11872_v50 = vpop.f32.mrb[227].mxu0 }
 0x693   :  { %12578 = vmatmul.mubr.bf16.gmra.mrb[64].mxu1 %v7996_v43  ;;  %v7999_v43 = vrot.slane %v17279_v31, 1 }
 0x694   :  { %12581 = vmatprep.mubr.msk.bf16.mxu1 %vm14735_vm0, %v18769_v2  ;;  %v17838_v16 = vpop.f32.mrb[228].mxu0 }
 0x695   :  { %19094 = vst [vmem:[#allocation59_spill] sm:$0xff] %v17838_v16  ;;  %v11875_v25 = vpop.f32.mrb[229].mxu0 }
 0x696   :  { %v17841_v9 = vpop.f32.mrb[230].mxu0  ;;  %v8000_v25 = vsel %vm7969_vm6, %v7997_v29, %v7999_v43 }
 0x697   :  { %19095 = vst [vmem:[#allocation61_spill] sm:$0xff] %v17841_v9  ;;  %v11876_v44 = vpop.f32.mrb[231].mxu0 }
 0x69b   :  { %12582 = vmatmul.mubr.bf16.gmra.mrb[68].mxu1 %v7998_v55  ;;  %v8001_v55 = vrot.slane %v17293_v11, 1 }
 0x69c   :  { %12585 = vmatprep.mubr.msk.bf16.mxu1 %vm14735_vm0, %v18769_v2  ;;  %v17846_v50 = vpop.f32.mrb[232].mxu0 }
 0x69d   :  { %19096 = vst [vmem:[#allocation64_spill] sm:$0xff] %v17846_v50  ;;  %v11879_v21 = vpop.f32.mrb[233].mxu0 }
 0x69e   :  { %v17849_v8 = vpop.f32.mrb[234].mxu0  ;;  %v14615_v21 = vld [vmem:[%s18600_s2 + $0x208] sm:$0xff]  }
 0x69f   :  { %19097 = vst [vmem:[#allocation67_spill] sm:$0xff] %v17849_v8  ;;  %v11880_v16 = vpop.f32.mrb[235].mxu0  ;;  %12696 = vmatpush3.bf16.msra.mxu1 %v14615_v21 }
 0x6a0   :  { %v8002_v16 = vsel %vm7969_vm6, %v7999_v43, %v8001_v55  ;;  %12697 = vmatprep.subr.bf16.mxu1 %v18769_v2 }
 0x6a3   :  { %12586 = vmatmul.mubr.bf16.gmra.mrb[72].mxu1 %v8000_v25 }
 0x6a4   :  { %12589 = vmatprep.mubr.msk.bf16.mxu1 %vm14735_vm0, %v18769_v2  ;;  %v17854_v44 = vpop.f32.mrb[236].mxu0 }
 0x6a5   :  { %19098 = vst [vmem:[#allocation97_spill] sm:$0xff] %v17854_v44  ;;  %v11883_v1 = vpop.f32.mrb[237].mxu0 }
 0x6a6   :  { %v17857_v9 = vpop.f32.mrb[238].mxu0  ;;  %v8003_v1 = vrot.slane %v17310_v60, 1 }
 0x6a7   :  { %19099 = vst [vmem:[#allocation101_spill] sm:$0xff] %v17857_v9  ;;  %v11884_v50 = vpop.f32.mrb[239].mxu0 }
 0x6a8   :  { %v8004_v44 = vsel %vm7969_vm6, %v8001_v55, %v8003_v1  ;;  %v8007_v55 = vrot.slane %v17339_v4, 1 }
 0x6ab   :  { %12590 = vmatmul.mubr.bf16.gmra.mrb[76].mxu1 %v8002_v16  ;;  %v8005_v16 = vrot.slane %v17325_v7, 1 }
 0x6ac   :  { %12593 = vmatprep.mubr.msk.bf16.mxu1 %vm14735_vm0, %v18769_v2  ;;  %v17866_v29 = vpop.f32.mrb[240].mxu0 }
 0x6ad   :  { %19100 = vst [vmem:[#allocation69_spill] sm:$0xff] %v17866_v29  ;;  %v11887_v25 = vpop.f32.mrb[241].mxu0 }
 0x6ae   :  { %v17869_v9 = vpop.f32.mrb[242].mxu0  ;;  %v8006_v25 = vsel %vm7969_vm6, %v8003_v1, %v8005_v16 }
 0x6af   :  { %19101 = vst [vmem:[#allocation71_spill] sm:$0xff] %v17869_v9  ;;  %v11888_v50 = vpop.f32.mrb[243].mxu0 }
 0x6b3   :  { %12594 = vmatmul.mubr.bf16.gmra.mrb[80].mxu1 %v8004_v44 }
 0x6b4   :  { %12597 = vmatprep.mubr.msk.bf16.mxu1 %vm14735_vm0, %v18769_v2  ;;  %v17874_v43 = vpop.f32.mrb[244].mxu0 }
 0x6b5   :  { %19102 = vst [vmem:[#allocation74_spill] sm:$0xff] %v17874_v43  ;;  %v11891_v21 = vpop.f32.mrb[245].mxu0 }
 0x6b6   :  { %v17877_v8 = vpop.f32.mrb[246].mxu0  ;;  %v8008_v21 = vsel %vm7969_vm6, %v8005_v16, %v8007_v55 }
 0x6b7   :  { %19103 = vst [vmem:[#allocation76_spill] sm:$0xff] %v17877_v8  ;;  %v11892_v29 = vpop.f32.mrb[247].mxu0 }
 0x6bb   :  { %12598 = vmatmul.mubr.bf16.gmra.mrb[84].mxu1 %v8006_v25  ;;  %v8009_v25 = vrot.slane %v17353_v57, 1 }
 0x6bc   :  { %12601 = vmatprep.mubr.msk.bf16.mxu1 %vm14735_vm0, %v18769_v2  ;;  %v17882_v50 = vpop.f32.mrb[248].mxu0 }
 0x6bd   :  { %19104 = vst [vmem:[#allocation79_spill] sm:$0xff] %v17882_v50  ;;  %v11895_v44 = vpop.f32.mrb[249].mxu0 }
 0x6be   :  { %v17885_v9 = vpop.f32.mrb[250].mxu0  ;;  %v8010_v44 = vsel %vm7969_vm6, %v8007_v55, %v8009_v25 }
 0x6bf   :  { %19105 = vst [vmem:[#allocation82_spill] sm:$0xff] %v17885_v9  ;;  %v11896_v43 = vpop.f32.mrb[251].mxu0 }
 0x6c0   :  { %v14616_v43 = vld [vmem:[%s18600_s2 + $0x210] sm:$0xff]  }
 0x6c1   :  { %12698 = vmatpush3.bf16.msra.mxu1 %v14616_v43 }
 0x6c2   :  { %12699 = vmatprep.subr.bf16.mxu1 %v18769_v2 }
 0x6c3   :  { %12602 = vmatmul.mubr.bf16.gmra.mrb[88].mxu1 %v8008_v21 }
 0x6c4   :  { %12605 = vmatprep.mubr.msk.bf16.mxu1 %vm14735_vm0, %v18769_v2  ;;  %v17890_v29 = vpop.f32.mrb[252].mxu0 }
 0x6c5   :  { %19106 = vst [vmem:[#allocation85_spill] sm:$0xff] %v17890_v29  ;;  %v11899_v1 = vpop.f32.mrb[253].mxu0 }
 0x6c6   :  { %v17893_v8 = vpop.f32.mrb[254].mxu0  ;;  %v8011_v1 = vrot.slane %v17367_v22, 1 }
 0x6c7   :  { %19107 = vst [vmem:[#allocation89_spill] sm:$0xff] %v17893_v8  ;;  %v11900_v50 = vpop.f32.mrb[255].mxu0 }
 0x6c8   :  { %v8012_v55 = vsel %vm7969_vm6, %v8009_v25, %v8011_v1 }
 0x6cb   :  { %12606 = vmatmul.mubr.bf16.gmra.mrb[92].mxu1 %v8010_v44 }
 0x6cc   :  { %12609 = vmatprep.mubr.msk.bf16.mxu1 %vm14735_vm0, %v18769_v2  ;;  %v17901_v16 = vpop.f32.mrb[0].mxu0 }
 0x6cd   :  { %19108 = vst [vmem:[#allocation92_spill] sm:$0xff] %v17901_v16  ;;  %v11903_v21 = vpop.f32.mrb[1].mxu0  ;;  %v8013_v16 = vrot.slane %v17381_v46, 1 }
 0x6ce   :  { %v17904_v29 = vpop.f32.mrb[2].mxu0 }
 0x6cf   :  { %19109 = vst [vmem:[#allocation96_spill] sm:$0xff] %v17904_v29  ;;  %v11904_v50 = vpop.f32.mrb[3].mxu0  ;;  %v8014_v43 = vsel %vm7969_vm6, %v8011_v1, %v8013_v16 }
 0x6d3   :  { %12610 = vmatmul.mubr.bf16.gmra.mrb[96].mxu1 %v8012_v55  ;;  %v8015_v55 = vrot.slane %v17399_v62, 1 }
 0x6d4   :  { %12613 = vmatprep.mubr.msk.bf16.mxu1 %vm14735_vm0, %v18769_v2  ;;  %v17910_v44 = vpop.f32.mrb[4].mxu0 }
 0x6d5   :  { %19110 = vst [vmem:[#allocation100_spill] sm:$0xff] %v17910_v44  ;;  %v11907_v8 = vpop.f32.mrb[5].mxu0 }
 0x6d6   :  { %v17913_v21 = vpop.f32.mrb[6].mxu0  ;;  %v8016_v8 = vsel %vm7969_vm6, %v8013_v16, %v8015_v55 }
 0x6d7   :  { %19111 = vst [vmem:[#allocation7_spill] sm:$0xff] %v17913_v21  ;;  %v11908_v9 = vpop.f32.mrb[7].mxu0 }
 0x6d8   :  { %v14617_v9 = vld [vmem:[%s18600_s2 + $0x218] sm:$0xff]  }
 0x6d9   :  { %12700 = vmatpush3.bf16.msra.mxu1 %v14617_v9  ;;  %v14619_v9 = vld [vmem:[%s18600_s2 + $0x228] sm:$0xff]  }
 0x6da   :  { %12701 = vmatprep.subr.bf16.mxu1 %v18769_v2 }
 0x6db   :  { %12614 = vmatmul.mubr.bf16.gmra.mrb[100].mxu1 %v8014_v43 }
 0x6dc   :  { %12617 = vmatprep.mubr.msk.bf16.mxu1 %vm14735_vm0, %v18769_v2  ;;  %v17918_v50 = vpop.f32.mrb[8].mxu0 }
 0x6dd   :  { %19112 = vst [vmem:[#allocation9_spill] sm:$0xff] %v17918_v50  ;;  %v11911_v25 = vpop.f32.mrb[9].mxu0  ;;  %v8023_v50 = vrot.slane %v17470_v37, 1 }
 0x6de   :  { %v17921_v29 = vpop.f32.mrb[10].mxu0  ;;  %v8017_v25 = vrot.slane %v17413_v10, 1 }
 0x6df   :  { %19113 = vst [vmem:[#allocation12_spill] sm:$0xff] %v17921_v29  ;;  %v11912_v44 = vpop.f32.mrb[11].mxu0 }
 0x6e0   :  { %v8018_v16 = vsel %vm7969_vm6, %v8015_v55, %v8017_v25 }
 0x6e3   :  { %12618 = vmatmul.mubr.bf16.gmra.mrb[104].mxu1 %v8016_v8  ;;  %v14618_v8 = vld [vmem:[%s18600_s2 + $0x220] sm:$0xff]  }
 0x6e4   :  { %12621 = vmatprep.mubr.msk.bf16.mxu1 %vm14735_vm0, %v18769_v2  ;;  %v17929_v1 = vpop.f32.mrb[12].mxu0  ;;  %12702 = vmatpush3.bf16.msra.mxu1 %v14618_v8  ;;  %v14620_v8 = vld [vmem:[%s18600_s2 + $0x230] sm:$0xff]  }
 0x6e5   :  { %19114 = vst [vmem:[#allocation14_spill] sm:$0xff] %v17929_v1  ;;  %v11915_v43 = vpop.f32.mrb[13].mxu0  ;;  %12703 = vmatprep.subr.bf16.mxu1 %v18769_v2 }
 0x6e6   :  { %v17933_v29 = vpop.f32.mrb[14].mxu0 }
 0x6e7   :  { %19115 = vst [vmem:[#allocation16_spill] sm:$0xff] %v17933_v29  ;;  %v11916_v44 = vpop.f32.mrb[15].mxu0 }
 0x6e8   :  { %v8019_v44 = vrot.slane %v17427_v42, 1  ;;  %12704 = vmatpush3.bf16.msra.mxu1 %v14619_v9 }
 0x6e9   :  { %12705 = vmatprep.subr.bf16.mxu1 %v18769_v2 }
 0x6ea   :  { %v8020_v29 = vsel %vm7969_vm6, %v8017_v25, %v8019_v44  ;;  %v8021_v25 = vrot.slane %v17448_v19, 1 }
 0x6eb   :  { %12622 = vmatmul.mubr.bf16.gmra.mrb[108].mxu1 %v8018_v16 }
 0x6ec   :  { %12625 = vmatprep.mubr.msk.bf16.mxu1 %vm14735_vm0, %v18769_v2  ;;  %v17941_v1 = vpop.f32.mrb[16].mxu0  ;;  %12706 = vmatpush3.bf16.msra.mxu1 %v14620_v8  ;;  %v8024_v58 = vsel %vm7969_vm6, %v8021_v25, %v8023_v50 }
 0x6ed   :  { %19116 = vst [vmem:[#allocation18_spill] sm:$0xff] %v17941_v1  ;;  %v11919_v43 = vpop.f32.mrb[17].mxu0  ;;  %12707 = vmatprep.subr.bf16.mxu1 %v18769_v2  ;;  %v8022_v1 = vsel %vm7969_vm6, %v8019_v44, %v8021_v25  ;;  %v8025_v44 = vrot.slane %v17489_v45, 1  ;;  %v8027_v25 = vrot.slane %v17503_v54, 1 }
 0x6ee   :  { %v17948_v55 = vpop.f32.mrb[18].mxu0 }
 0x6ef   :  { %19117 = vst [vmem:[#allocation20_spill] sm:$0xff] %v17948_v55  ;;  %v11920_v16 = vpop.f32.mrb[19].mxu0 }
 0x6f0   :  { %v14621_v16 = vld [vmem:[%s18600_s2 + $0x238] sm:$0xff]  }
 0x6f1   :  { %12708 = vmatpush3.bf16.msra.mxu1 %v14621_v16 }
 0x6f3   :  { %12626 = vmatmul.mubr.bf16.gmra.mrb[112].mxu1 %v8020_v29 }
 0x6f4   :  { %12629 = vmatprep.mubr.msk.bf16.mxu1 %vm14735_vm0, %v18769_v2  ;;  %v17957_v43 = vpop.f32.mrb[20].mxu0 }
 0x6f5   :  { %19118 = vst [vmem:[#allocation22_spill] sm:$0xff] %v17957_v43  ;;  %v11923_v9 = vpop.f32.mrb[21].mxu0 }
 0x6f6   :  { %v17964_v29 = vpop.f32.mrb[22].mxu0 }
 0x6f7   :  { %v11924_v55 = vpop.f32.mrb[23].mxu0 }
 0x6fb   :  { %12630 = vmatmul.mubr.bf16.gmra.mrb[116].mxu1 %v8022_v1 }
 0x6fc   :  { %12633 = vmatprep.mubr.msk.bf16.mxu1 %vm14735_vm0, %v18769_v2  ;;  %v17969_v8 = vpop.f32.mrb[24].mxu0 }
 0x6fd   :  { %19119 = vst [vmem:[#allocation24_spill] sm:$0xff] %v17969_v8  ;;  %v11927_v43 = vpop.f32.mrb[25].mxu0 }
 0x6fe   :  { %v17972_v9 = vpop.f32.mrb[26].mxu0  ;;  %v8026_v43 = vsel %vm7969_vm6, %v8023_v50, %v8025_v44 }
 0x6ff   :  { %19120 = vst [vmem:[#allocation26_spill] sm:$0xff] %v17972_v9  ;;  %v11928_v21 = vpop.f32.mrb[27].mxu0 }
 0x703   :  { %12634 = vmatmul.mubr.bf16.gmra.mrb[120].mxu1 %v8024_v58 }
 0x704   :  { %12637 = vmatprep.mubr.msk.bf16.mxu1 %vm14735_vm0, %v18769_v2  ;;  %v17977_v55 = vpop.f32.mrb[28].mxu0 }
 0x705   :  { %19121 = vst [vmem:[#allocation28_spill] sm:$0xff] %v17977_v55  ;;  %v11931_v1 = vpop.f32.mrb[29].mxu0 }
 0x706   :  { %v17980_v16 = vpop.f32.mrb[30].mxu0  ;;  %v8028_v1 = vsel %vm7969_vm6, %v8025_v44, %v8027_v25 }
 0x707   :  { %19122 = vst [vmem:[#allocation30_spill] sm:$0xff] %v17980_v16  ;;  %v11932_v8 = vpop.f32.mrb[31].mxu0 }
 0x70b   :  { %12638 = vmatmul.mubr.bf16.gmra.mrb[124].mxu1 %v8026_v43  ;;  %v8029_v43 = vrot.slane %v17517_v17, 1 }
 0x70c   :  { %12641 = vmatprep.mubr.msk.bf16.mxu1 %vm14735_vm0, %v18769_v2  ;;  %v17985_v21 = vpop.f32.mrb[32].mxu0 }
 0x70d   :  { %19123 = vst [vmem:[#allocation32_spill] sm:$0xff] %v17985_v21  ;;  %v11935_v58 = vpop.f32.mrb[33].mxu0 }
 0x70e   :  { %v17988_v9 = vpop.f32.mrb[34].mxu0  ;;  %v8030_v58 = vsel %vm7969_vm6, %v8027_v25, %v8029_v43 }
 0x70f   :  { %19124 = vst [vmem:[#allocation34_spill] sm:$0xff] %v17988_v9  ;;  %v11936_v55 = vpop.f32.mrb[35].mxu0 }
 0x713   :  { %12642 = vmatmul.mubr.bf16.gmra.mrb[128].mxu1 %v8028_v1  ;;  %v8031_v1 = vrot.slane %v17531_v39, 1 }
 0x714   :  { %12645 = vmatprep.mubr.msk.bf16.mxu1 %vm14735_vm0, %v18769_v2  ;;  %v17993_v8 = vpop.f32.mrb[36].mxu0 }
 0x715   :  { %19125 = vst [vmem:[#allocation36_spill] sm:$0xff] %v17993_v8  ;;  %v11939_v50 = vpop.f32.mrb[37].mxu0 }
 0x716   :  { %v17996_v16 = vpop.f32.mrb[38].mxu0  ;;  %v8032_v50 = vsel %vm7969_vm6, %v8029_v43, %v8031_v1 }
 0x717   :  { %19126 = vst [vmem:[#allocation39_spill] sm:$0xff] %v17996_v16  ;;  %v11940_v21 = vpop.f32.mrb[39].mxu0 }
 0x71b   :  { %12646 = vmatmul.mubr.bf16.gmra.mrb[132].mxu1 %v8030_v58  ;;  %v8033_v58 = vrot.slane %v17545_v40, 1 }
 0x71c   :  { %12649 = vmatprep.mubr.msk.bf16.mxu1 %vm14735_vm0, %v18769_v2  ;;  %v18001_v55 = vpop.f32.mrb[40].mxu0 }
 0x71d   :  { %19127 = vst [vmem:[#allocation41_spill] sm:$0xff] %v18001_v55  ;;  %v11943_v44 = vpop.f32.mrb[41].mxu0 }
 0x71e   :  { %v18004_v9 = vpop.f32.mrb[42].mxu0  ;;  %v8034_v44 = vsel %vm7969_vm6, %v8031_v1, %v8033_v58 }
 0x71f   :  { %19128 = vst [vmem:[#allocation44_spill] sm:$0xff] %v18004_v9  ;;  %v11944_v8 = vpop.f32.mrb[43].mxu0 }
 0x723   :  { %12650 = vmatmul.mubr.bf16.gmra.mrb[136].mxu1 %v8032_v50  ;;  %v8035_v50 = vrot.slane %v17559_v3, 1 }
 0x724   :  { %12653 = vmatprep.mubr.msk.bf16.mxu1 %vm14735_vm0, %v18769_v2  ;;  %v18009_v21 = vpop.f32.mrb[44].mxu0 }
 0x725   :  { %19129 = vst [vmem:[#allocation46_spill] sm:$0xff] %v18009_v21  ;;  %v11947_v25 = vpop.f32.mrb[45].mxu0 }
 0x726   :  { %v18012_v16 = vpop.f32.mrb[46].mxu0  ;;  %v8036_v25 = vsel %vm7969_vm6, %v8033_v58, %v8035_v50 }
 0x727   :  { %19130 = vst [vmem:[#allocation49_spill] sm:$0xff] %v18012_v16  ;;  %v11948_v55 = vpop.f32.mrb[47].mxu0 }
 0x72b   :  { %12654 = vmatmul.mubr.bf16.gmra.mrb[140].mxu1 %v8034_v44  ;;  %v8037_v44 = vrot.slane %v17573_v36, 1 }
 0x72c   :  { %12657 = vmatprep.mubr.msk.bf16.mxu1 %vm14735_vm0, %v18769_v2  ;;  %v18017_v8 = vpop.f32.mrb[48].mxu0 }
 0x72d   :  { %19131 = vst [vmem:[#allocation52_spill] sm:$0xff] %v18017_v8  ;;  %v11951_v43 = vpop.f32.mrb[49].mxu0 }
 0x72e   :  { %v18020_v9 = vpop.f32.mrb[50].mxu0  ;;  %v8038_v43 = vsel %vm7969_vm6, %v8035_v50, %v8037_v44 }
 0x72f   :  { %v11952_v21 = vpop.f32.mrb[51].mxu0 }
 0x730   :  { %v8039_v21 = vrot.slane %v17587_v12, 1 }
 0x732   :  { %v8040_v58 = vsel %vm7969_vm6, %v8037_v44, %v8039_v21  ;;  %v8045_v44 = vrot.slane %v17639_v15, 1 }
 0x733   :  { %12658 = vmatmul.mubr.bf16.gmra.mrb[144].mxu1 %v8036_v25  ;;  %v8041_v25 = vrot.slane %v17603_v14, 1 }
 0x734   :  { %12661 = vmatprep.mubr.msk.bf16.mxu1 %vm14735_vm0, %v18769_v2  ;;  %v18025_v55 = vpop.f32.mrb[52].mxu0 }
 0x735   :  { %19132 = vst [vmem:[#allocation55_spill] sm:$0xff] %v18025_v55  ;;  %v11955_v1 = vpop.f32.mrb[53].mxu0 }
 0x736   :  { %v18028_v16 = vpop.f32.mrb[54].mxu0  ;;  %v8042_v1 = vsel %vm7969_vm6, %v8039_v21, %v8041_v25  ;;  %v8047_v21 = vrot.slane %v17659_v41, 1 }
 0x737   :  { %19133 = vst [vmem:[#allocation58_spill] sm:$0xff] %v18028_v16  ;;  %v11956_v8 = vpop.f32.mrb[55].mxu0  ;;  %v19138_v16 = vshll.u32 %v17107_v34, 16 }
 0x738   :  { %v8043_v8 = vrot.slane %v17621_v5, 1 }
 0x739   :  { %v8620_v55 = vrot.slane %v19138_v16, 2  ;;  %v19141_v16 = vshrl.u32 %v17135_v47, 16 }
 0x73a   :  { %v8044_v50 = vsel %vm7969_vm6, %v8041_v25, %v8043_v8  ;;  %v8049_v25 = vrot.slane %v17677_v56, 1 }
 0x73b   :  { %12662 = vmatmul.mubr.bf16.gmra.mrb[148].mxu1 %v8038_v43  ;;  %v8046_v43 = vsel %vm7969_vm6, %v8043_v8, %v8045_v44  ;;  %v19134_v8 = vshrl.u32 %v17096_v6, 16 }
 0x73c   :  { %12665 = vmatprep.mubr.msk.bf16.mxu1 %vm14735_vm0, %v18769_v2 }
 0x743   :  { %12666 = vmatmul.mubr.bf16.gmra.mrb[152].mxu1 %v8040_v58  ;;  %v8048_v58 = vsel %vm7969_vm6, %v8045_v44, %v8047_v21  ;;  %v19135_v44 = vshll.u32 %v17096_v6, 16 }
 0x744   :  { %12669 = vmatprep.mubr.msk.bf16.mxu1 %vm14735_vm0, %v18769_v2 }
 0x74b   :  { %12670 = vmatmul.mubr.bf16.gmra.mrb[156].mxu1 %v8042_v1  ;;  %v8050_v1 = vsel %vm7969_vm6, %v8047_v21, %v8049_v25  ;;  %v19136_v21 = vld [vmem:[#allocation104_spill] sm:$0xff] }
 0x74c   :  { %12673 = vmatprep.mubr.msk.bf16.mxu1 %vm14735_vm0, %v18769_v2 }
 0x753   :  { %12674 = vmatmul.mubr.bf16.gmra.mrb[160].mxu1 %v8044_v50  ;;  %v8615_v50 = vrot.slane %v19134_v8, 1  ;;  %v19139_v8 = vshrl.u32 %v17121_v30, 16 }
 0x754   :  { %12677 = vmatprep.mubr.msk.bf16.mxu1 %vm14735_vm0, %v18769_v2 }
 0x75b   :  { %12678 = vmatmul.mubr.bf16.gmra.mrb[0].mxu1 %v8046_v43  ;;  %v8616_v43 = vrot.slane %v19135_v44, 2  ;;  %v8623_v44 = vrot.slane %v19139_v8, 1  ;;  %v19144_v8 = vshll.u32 %v17149_v23, 16 }
 0x75c   :  { %12681 = vmatprep.mubr.msk.bf16.mxu1 %vm14735_vm0, %v18769_v2 }
 0x75d   :  { %v8617_v56 = vor.u32 %v8616_v43, %v8615_v50  ;;  %v19140_v50 = vshll.u32 %v17121_v30, 16 }
 0x75f   :  { %v8624_v43 = vrot.slane %v19140_v50, 2  ;;  %v19145_v50 = vshrl.u32 %v17163_v27, 16 }
 0x763   :  { %12682 = vmatmul.mubr.bf16.gmra.mrb[4].mxu1 %v8048_v58  ;;  %v8618_v58 = vsel %vm8602_vm4, %v19136_v21, %v8617_v56  ;;  %v8625_v21 = vor.u32 %v8624_v43, %v8623_v44  ;;  %v8632_v44 = vrot.slane %v19144_v8, 2  ;;  %v8635_v43 = vrot.slane %v19145_v50, 1 }
 0x764   :  { %12685 = vmatprep.mubr.msk.bf16.mxu1 %vm14735_vm0, %v18769_v2  ;;  %v19150_v8 = vshll.u32 %v17191_v0, 16 }
 0x76b   :  { %12686 = vmatmul.mubr.bf16.gmra.mrb[8].mxu1 %v8050_v1 }
 0x76c   :  { %12689 = vmatprep.mubr.msk.bf16.mxu1 %vm14735_vm0, %v18769_v2 }
 0x773   :  { %12690 = vmatmul.mubr.bf16.gmra.mrb[12].mxu1 %v8049_v25  ;;  %v19137_v25 = vshrl.u32 %v17107_v34, 16 }
 0x774   :  { %12709 = vmatprep.mubr.msk.bf16.mxu1 %vm14735_vm0, %v18769_v2 }
 0x775   :  { %v8619_v1 = vrot.slane %v19137_v25, 1 }
 0x777   :  { %v8621_v6 = vor.u32 %v8620_v55, %v8619_v1  ;;  %v19142_v55 = vshll.u32 %v17135_v47, 16  ;;  %v19143_v1 = vshrl.u32 %v17149_v23, 16 }
 0x779   :  { %v8626_v34 = vsel %vm8602_vm4, %v8621_v6, %v8625_v21  ;;  %v8628_v25 = vrot.slane %v19142_v55, 2 }
 0x77b   :  { %12710 = vmatmul.mubr.bf16.vlgmr.msra.gmra.mrb[16].mxu1 %v16464_v35  ;;  %v8622_v35 = vsel %vm8602_vm4, %v8617_v56, %v8621_v6 }
 0x77c   :  { %12713 = vmatprep.mubr.msk.bf16.mxu1 %vm14735_vm0, %v18769_v2 }
 0x783   :  { %12714 = vmatmul.mubr.bf16.gmra.mrb[20].mxu1 %v8618_v58  ;;  %v8627_v58 = vrot.slane %v19141_v16, 1 }
 0x784   :  { %12717 = vmatprep.mubr.msk.bf16.mxu1 %vm14735_vm0, %v18769_v2 }
 0x785   :  { %v8629_v56 = vor.u32 %v8628_v25, %v8627_v58  ;;  %v19147_v58 = vshrl.u32 %v17177_v38, 16  ;;  %v19148_v25 = vshll.u32 %v17177_v38, 16 }
 0x787   :  { %v8630_v30 = vsel %vm8602_vm4, %v8625_v21, %v8629_v56  ;;  %v8639_v55 = vrot.slane %v19147_v58, 1  ;;  %v19154_v58 = vshll.u32 %v17219_v61, 16 }
 0x78b   :  { %12718 = vmatmul.mubr.bf16.gmra.mrb[24].mxu1 %v8622_v35  ;;  %v8631_v35 = vrot.slane %v19143_v1, 1  ;;  %v19149_v1 = vshrl.u32 %v17191_v0, 16 }
 0x78c   :  { %12721 = vmatprep.mubr.msk.bf16.mxu1 %vm14735_vm0, %v18769_v2 }
 0x78d   :  { %v8633_v6 = vor.u32 %v8632_v44, %v8631_v35  ;;  %v8643_v35 = vrot.slane %v19149_v1, 1  ;;  %v8644_v44 = vrot.slane %v19150_v8, 2  ;;  %v19157_v8 = vshrl.u32 %v17251_v48, 16 }
 0x78f   :  { %v8634_v47 = vsel %vm8602_vm4, %v8629_v56, %v8633_v6 }
 0x793   :  { %12722 = vmatmul.mubr.bf16.gmra.mrb[28].mxu1 %v8626_v34  ;;  %v19146_v34 = vshll.u32 %v17163_v27, 16 }
 0x794   :  { %12725 = vmatprep.mubr.msk.bf16.mxu1 %vm14735_vm0, %v18769_v2 }
 0x795   :  { %v8636_v16 = vrot.slane %v19146_v34, 2 }
 0x797   :  { %v8637_v21 = vor.u32 %v8636_v16, %v8635_v43  ;;  %v19152_v43 = vshll.u32 %v17205_v32, 16 }
 0x799   :  { %v8638_v23 = vsel %vm8602_vm4, %v8633_v6, %v8637_v21  ;;  %v8645_v6 = vor.u32 %v8644_v44, %v8643_v35  ;;  %v8648_v34 = vrot.slane %v19152_v43, 2  ;;  %v8659_v44 = vrot.slane %v19157_v8, 1 }
 0x79a   :  { %v19166_v8 = vshll.u32 %v17310_v60, 16 }
 0x79b   :  { %12726 = vmatmul.mubr.bf16.gmra.mrb[32].mxu1 %v8630_v30  ;;  %v8640_v30 = vrot.slane %v19148_v25, 2 }
 0x79c   :  { %12729 = vmatprep.mubr.msk.bf16.mxu1 %vm14735_vm0, %v18769_v2 }
 0x79d   :  { %v8641_v56 = vor.u32 %v8640_v30, %v8639_v55  ;;  %v8652_v55 = vrot.slane %v19154_v58, 2  ;;  %v19155_v30 = vshrl.u32 %v17236_v59, 16  ;;  %v19162_v58 = vshll.u32 %v17279_v31, 16 }
 0x79f   :  { %v8642_v27 = vsel %vm8602_vm4, %v8637_v21, %v8641_v56  ;;  %v8646_v38 = vsel %vm8602_vm4, %v8641_v56, %v8645_v6  ;;  %v19153_v21 = vshrl.u32 %v17219_v61, 16  ;;  %v8655_v56 = vrot.slane %v19155_v30, 1 }
 0x7a3   :  { %12730 = vmatmul.mubr.bf16.gmra.mrb[36].mxu1 %v8634_v47  ;;  %v19151_v47 = vshrl.u32 %v17205_v32, 16 }
 0x7a4   :  { %12733 = vmatprep.mubr.msk.bf16.mxu1 %vm14735_vm0, %v18769_v2 }
 0x7a5   :  { %v8647_v50 = vrot.slane %v19151_v47, 1 }
 0x7a7   :  { %v8649_v16 = vor.u32 %v8648_v34, %v8647_v50  ;;  %v19159_v50 = vshrl.u32 %v17265_v51, 16  ;;  %v19160_v34 = vshll.u32 %v17265_v51, 16 }
 0x7a9   :  { %v8650_v0 = vsel %vm8602_vm4, %v8645_v6, %v8649_v16  ;;  %v19158_v6 = vshll.u32 %v17251_v48, 16  ;;  %v8663_v43 = vrot.slane %v19159_v50, 1 }
 0x7ab   :  { %12734 = vmatmul.mubr.bf16.gmra.mrb[40].mxu1 %v8638_v23  ;;  %v8651_v23 = vrot.slane %v19153_v21, 1  ;;  %v19161_v21 = vshrl.u32 %v17279_v31, 16 }
 0x7ac   :  { %12737 = vmatprep.mubr.msk.bf16.mxu1 %vm14735_vm0, %v18769_v2 }
 0x7ad   :  { %v8653_v25 = vor.u32 %v8652_v55, %v8651_v23  ;;  %v8667_v23 = vrot.slane %v19161_v21, 1  ;;  %v8668_v55 = vrot.slane %v19162_v58, 2 }
 0x7af   :  { %v8654_v32 = vsel %vm8602_vm4, %v8649_v16, %v8653_v25  ;;  %v8664_v16 = vrot.slane %v19160_v34, 2  ;;  %v19169_v34 = vshrl.u32 %v17339_v4, 16 }
 0x7b3   :  { %12738 = vmatmul.mubr.bf16.gmra.mrb[44].mxu1 %v8642_v27  ;;  %v19156_v27 = vshll.u32 %v17236_v59, 16 }
 0x7b4   :  { %12741 = vmatprep.mubr.msk.bf16.mxu1 %vm14735_vm0, %v18769_v2 }
 0x7b5   :  { %v8656_v1 = vrot.slane %v19156_v27, 2 }
 0x7b7   :  { %v8657_v35 = vor.u32 %v8656_v1, %v8655_v56  ;;  %v19164_v56 = vshll.u32 %v17293_v11, 16 }
 0x7b9   :  { %v8658_v61 = vsel %vm8602_vm4, %v8653_v25, %v8657_v35  ;;  %v8669_v25 = vor.u32 %v8668_v55, %v8667_v23  ;;  %v8672_v27 = vrot.slane %v19164_v56, 2  ;;  %v19171_v23 = vshrl.u32 %v17353_v57, 16 }
 0x7ba   :  { %v19172_v55 = vshll.u32 %v17353_v57, 16  ;;  %v19174_v56 = vshll.u32 %v17367_v22, 16 }
 0x7bb   :  { %12742 = vmatmul.mubr.bf16.gmra.mrb[48].mxu1 %v8646_v38  ;;  %v8660_v38 = vrot.slane %v19158_v6, 2  ;;  %v8687_v58 = vrot.slane %v19171_v23, 1 }
 0x7bc   :  { %12745 = vmatprep.mubr.msk.bf16.mxu1 %vm14735_vm0, %v18769_v2 }
 0x7bd   :  { %v8661_v47 = vor.u32 %v8660_v38, %v8659_v44  ;;  %v8676_v44 = vrot.slane %v19166_v8, 2  ;;  %v19167_v38 = vshrl.u32 %v17325_v7, 16 }
 0x7bf   :  { %v8662_v59 = vsel %vm8602_vm4, %v8657_v35, %v8661_v47  ;;  %v19165_v35 = vshrl.u32 %v17310_v60, 16 }
 0x7c3   :  { %12746 = vmatmul.mubr.bf16.gmra.mrb[52].mxu1 %v8650_v0  ;;  %v8665_v0 = vor.u32 %v8664_v16, %v8663_v43  ;;  %v8683_v16 = vrot.slane %v19169_v34, 1 }
 0x7c4   :  { %12749 = vmatprep.mubr.msk.bf16.mxu1 %vm14735_vm0, %v18769_v2 }
 0x7c5   :  { %v8666_v48 = vsel %vm8602_vm4, %v8661_v47, %v8665_v0  ;;  %v8670_v51 = vsel %vm8602_vm4, %v8665_v0, %v8669_v25  ;;  %v8679_v47 = vrot.slane %v19167_v38, 1  ;;  %v19170_v0 = vshll.u32 %v17339_v4, 16 }
 0x7c6   :  { %v19178_v38 = vshll.u32 %v17399_v62, 16 }
 0x7cb   :  { %12750 = vmatmul.mubr.bf16.gmra.mrb[56].mxu1 %v8654_v32  ;;  %v19163_v32 = vshrl.u32 %v17293_v11, 16 }
 0x7cc   :  { %12753 = vmatprep.mubr.msk.bf16.mxu1 %vm14735_vm0, %v18769_v2 }
 0x7cd   :  { %v8671_v30 = vrot.slane %v19163_v32, 1  ;;  %v19173_v32 = vshrl.u32 %v17367_v22, 16 }
 0x7cf   :  { %v8673_v1 = vor.u32 %v8672_v27, %v8671_v30  ;;  %v8691_v30 = vrot.slane %v19173_v32, 1  ;;  %v8692_v27 = vrot.slane %v19174_v56, 2  ;;  %v19185_v32 = vshrl.u32 %v17470_v37, 16 }
 0x7d0   :  { %v19186_v56 = vshll.u32 %v17470_v37, 16  ;;  %v19189_v37 = vld [vmem:[#allocation87_spill] sm:$0xff] }
 0x7d1   :  { %v8674_v31 = vsel %vm8602_vm4, %v8669_v25, %v8673_v1  ;;  %v8688_v25 = vrot.slane %v19172_v55, 2 }
 0x7d3   :  { %12754 = vmatmul.mubr.bf16.gmra.mrb[60].mxu1 %v8658_v61  ;;  %v8675_v61 = vrot.slane %v19165_v35, 1 }
 0x7d4   :  { %12757 = vmatprep.mubr.msk.bf16.mxu1 %vm14735_vm0, %v18769_v2 }
 0x7d5   :  { %v8677_v6 = vor.u32 %v8676_v44, %v8675_v61  ;;  %v19176_v61 = vshll.u32 %v17381_v46, 16 }
 0x7d7   :  { %v8678_v11 = vsel %vm8602_vm4, %v8673_v1, %v8677_v6  ;;  %v8693_v1 = vor.u32 %v8692_v27, %v8691_v30  ;;  %v8696_v8 = vrot.slane %v19176_v61, 2  ;;  %v8715_v30 = vrot.slane %v19185_v32, 1 }
 0x7d8   :  { %v8716_v27 = vrot.slane %v19186_v56, 2  ;;  %v19193_v32 = vshll.u32 %v17517_v17, 16 }
 0x7db   :  { %12758 = vmatmul.mubr.bf16.gmra.mrb[64].mxu1 %v8662_v59  ;;  %v19168_v59 = vshll.u32 %v17325_v7, 16 }
 0x7dc   :  { %12761 = vmatprep.mubr.msk.bf16.mxu1 %vm14735_vm0, %v18769_v2 }
 0x7dd   :  { %v8680_v50 = vrot.slane %v19168_v59, 2 }
 0x7df   :  { %v8681_v43 = vor.u32 %v8680_v50, %v8679_v47  ;;  %v8700_v47 = vrot.slane %v19178_v38, 2  ;;  %v19179_v50 = vshrl.u32 %v17413_v10, 16 }
 0x7e1   :  { %v8682_v60 = vsel %vm8602_vm4, %v8677_v6, %v8681_v43  ;;  %v19177_v6 = vshrl.u32 %v17399_v62, 16 }
 0x7e3   :  { %12762 = vmatmul.mubr.bf16.gmra.mrb[68].mxu1 %v8666_v48  ;;  %v8684_v48 = vrot.slane %v19170_v0, 2  ;;  %v19181_v0 = vshrl.u32 %v17427_v42, 16 }
 0x7e4   :  { %12765 = vmatprep.mubr.msk.bf16.mxu1 %vm14735_vm0, %v18769_v2 }
 0x7e5   :  { %v8685_v21 = vor.u32 %v8684_v48, %v8683_v16  ;;  %v8707_v48 = vrot.slane %v19181_v0, 1 }
 0x7e7   :  { %v8686_v7 = vsel %vm8602_vm4, %v8681_v43, %v8685_v21  ;;  %v8703_v43 = vrot.slane %v19179_v50, 1 }
 0x7eb   :  { %12766 = vmatmul.mubr.bf16.gmra.mrb[72].mxu1 %v8670_v51  ;;  %v8689_v51 = vor.u32 %v8688_v25, %v8687_v58  ;;  %v19183_v58 = vshrl.u32 %v17448_v19, 16  ;;  %v19184_v25 = vshll.u32 %v17448_v19, 16 }
 0x7ec   :  { %12769 = vmatprep.mubr.msk.bf16.mxu1 %vm14735_vm0, %v18769_v2 }
 0x7ed   :  { %v8690_v4 = vsel %vm8602_vm4, %v8685_v21, %v8689_v51  ;;  %v8694_v57 = vsel %vm8602_vm4, %v8689_v51, %v8693_v1  ;;  %v19182_v21 = vshll.u32 %v17427_v42, 16  ;;  %v8711_v55 = vrot.slane %v19183_v58, 1 }
 0x7ee   :  { %v8712_v51 = vrot.slane %v19184_v25, 2 }
 0x7f3   :  { %12770 = vmatmul.mubr.bf16.gmra.mrb[76].mxu1 %v8674_v31  ;;  %v19175_v31 = vshrl.u32 %v17381_v46, 16 }
 0x7f4   :  { %12773 = vmatprep.mubr.msk.bf16.mxu1 %vm14735_vm0, %v18769_v2 }
 0x7f5   :  { %v8695_v35 = vrot.slane %v19175_v31, 1 }
 0x7f7   :  { %v8697_v44 = vor.u32 %v8696_v8, %v8695_v35  ;;  %v19188_v35 = vshll.u32 %v17489_v45, 16  ;;  %v18250_v8 = vld [vmem:[%s18601_s3] ss:$0 sm:$0xff] }
 0x7f9   :  { %v8698_v22 = vsel %vm8602_vm4, %v8693_v1, %v8697_v44  ;;  %v8717_v1 = vor.u32 %v8716_v27, %v8715_v30  ;;  %v8720_v61 = vrot.slane %v19188_v35, 2 }
 0x7fb   :  { %12774 = vmatmul.mubr.bf16.gmra.mrb[80].mxu1 %v8678_v11  ;;  %v8699_v11 = vrot.slane %v19177_v6, 1 }
 0x7fc   :  { %12777 = vmatprep.mubr.msk.bf16.mxu1 %vm14735_vm0, %v18769_v2 }
 0x7fd   :  { %v8701_v59 = vor.u32 %v8700_v47, %v8699_v11  ;;  %v12979_v11 = vadd.f32 %v18250_v8, %v17673_v63  ;;  %v12981_v63 = vadd.f32 %v18250_v8, %v17687_v18  ;;  %v8728_v18 = vrot.slane %v19193_v32, 2 }
 0x7ff   :  { %v8702_v46 = vsel %vm8602_vm4, %v8697_v44, %v8701_v59  ;;  %v12977_v44 = vadd.f32 %v18250_v8, %v19189_v37 }
 0x803   :  { %12778 = vmatmul.mubr.bf16.gmra.mrb[84].mxu1 %v8682_v60  ;;  %v19180_v60 = vshll.u32 %v17413_v10, 16 }
 0x804   :  { %12781 = vmatprep.mubr.msk.bf16.mxu1 %vm14735_vm0, %v18769_v2 }
 0x805   :  { %v8704_v34 = vrot.slane %v19180_v60, 2 }
 0x807   :  { %v8705_v16 = vor.u32 %v8704_v34, %v8703_v43  ;;  %v19190_v43 = vshrl.u32 %v17503_v54, 16  ;;  %v19191_v34 = vshll.u32 %v17503_v54, 16 }
 0x809   :  { %v8706_v62 = vsel %vm8602_vm4, %v8701_v59, %v8705_v16  ;;  %v8723_v60 = vrot.slane %v19190_v43, 1 }
 0x80b   :  { %12782 = vmatmul.mubr.bf16.gmra.mrb[88].mxu1 %v8686_v7  ;;  %v8708_v7 = vrot.slane %v19182_v21, 2 }
 0x80c   :  { %12785 = vmatprep.mubr.msk.bf16.mxu1 %vm14735_vm0, %v18769_v2 }
 0x80d   :  { %v8709_v23 = vor.u32 %v8708_v7, %v8707_v48 }
 0x80f   :  { %v8710_v10 = vsel %vm8602_vm4, %v8705_v16, %v8709_v23  ;;  %v8724_v16 = vrot.slane %v19191_v34, 2 }
 0x811   :  { %v8725_v7 = vor.u32 %v8724_v16, %v8723_v60  ;;  %v12991_v60 = vadd.f32 %v18250_v8, %v17711_v53  ;;  %v12993_v53 = vadd.f32 %v18250_v8, %v17720_v52 }
 0x813   :  { %12786 = vmatmul.mubr.bf16.gmra.mrb[92].mxu1 %v8690_v4  ;;  %v8713_v4 = vor.u32 %v8712_v51, %v8711_v55 }
 0x814   :  { %12789 = vmatprep.mubr.msk.bf16.mxu1 %vm14735_vm0, %v18769_v2 }
 0x815   :  { %v8714_v42 = vsel %vm8602_vm4, %v8709_v23, %v8713_v4  ;;  %v8718_v19 = vsel %vm8602_vm4, %v8713_v4, %v8717_v1  ;;  %v12983_v23 = vadd.f32 %v18250_v8, %v17691_v24  ;;  %v19192_v4 = vshrl.u32 %v17517_v17, 16  ;;  %v19194_v24 = vld [vmem:[#allocation17_spill] sm:$0xff] }
 0x816   :  { %v12985_v27 = vadd.f32 %v18250_v8, %v19194_v24 }
 0x81b   :  { %12790 = vmatmul.mubr.bf16.gmra.mrb[96].mxu1 %v8694_v57  ;;  %v19187_v57 = vshrl.u32 %v17489_v45, 16 }
 0x81c   :  { %12793 = vmatprep.mubr.msk.bf16.mxu1 %vm14735_vm0, %v18769_v2 }
 0x81d   :  { %v8719_v31 = vrot.slane %v19187_v57, 1 }
 0x81f   :  { %v8721_v6 = vor.u32 %v8720_v61, %v8719_v31  ;;  %v12987_v31 = vadd.f32 %v18250_v8, %v17702_v20  ;;  %v12989_v20 = vadd.f32 %v18250_v8, %v17709_v33 }
 0x821   :  { %v8722_v50 = vsel %vm8602_vm4, %v8717_v1, %v8721_v6  ;;  %v8726_v51 = vsel %vm8602_vm4, %v8721_v6, %v8725_v7  ;;  %v19195_v6 = vshrl.u32 %v17531_v39, 16 }
 0x823   :  { %12794 = vmatmul.mubr.bf16.gmra.mrb[100].mxu1 %v8698_v22 }
 0x824   :  { %12797 = vmatprep.mubr.msk.bf16.mxu1 %vm14735_vm0, %v18769_v2 }
 0x82b   :  { %12798 = vmatmul.mubr.bf16.gmra.mrb[104].mxu1 %v8702_v46 }
 0x82c   :  { %12801 = vmatprep.mubr.msk.bf16.mxu1 %vm14735_vm0, %v18769_v2 }
 0x833   :  { %12802 = vmatmul.mubr.bf16.gmra.mrb[108].mxu1 %v8706_v62 }
 0x834   :  { %12805 = vmatprep.mubr.msk.bf16.mxu1 %vm14735_vm0, %v18769_v2 }
 0x83b   :  { %12806 = vmatmul.mubr.bf16.gmra.mrb[112].mxu1 %v8710_v10 }
 0x83c   :  { %12809 = vmatprep.mubr.msk.bf16.mxu1 %vm14735_vm0, %v18769_v2 }
 0x843   :  { %12810 = vmatmul.mubr.bf16.gmra.mrb[116].mxu1 %v8714_v42  ;;  %v8727_v42 = vrot.slane %v19192_v4, 1 }
 0x844   :  { %12813 = vmatprep.mubr.msk.bf16.mxu1 %vm14735_vm0, %v18769_v2 }
 0x845   :  { %v8729_v57 = vor.u32 %v8728_v18, %v8727_v42 }
 0x84b   :  { %12814 = vmatmul.mubr.bf16.gmra.mrb[120].mxu1 %v8718_v19 }
 0x84c   :  { %12817 = vmatprep.mubr.msk.bf16.mxu1 %vm14735_vm0, %v18769_v2 }
 0x84e   :  { %v8899_v22 = vpop.f32.mrb[16].mxu1 }
 0x84f   :  { %v12978_v38 = vadd.f32 %v12977_v44, %v8899_v22  ;;  %v12711_v45 = vpop.f32.mrb[17].mxu1  ;;  %v8730_v22 = vsel %vm8602_vm4, %v8725_v7, %v8729_v57 }
 0x850   :  { %v8902_v47 = vpop.f32.mrb[18].mxu1 }
 0x851   :  { %v12980_v59 = vadd.f32 %v12979_v11, %v8902_v47  ;;  %v12712_v46 = vpop.f32.mrb[19].mxu1  ;;  %v9306_v62 = vmax.f32 %v12978_v38, 0.0  ;;  %v8731_v11 = vrot.slane %v19195_v6, 1  ;;  %v19196_v38 = vshll.u32 %v17531_v39, 16 }
 0x853   :  { %v9307_v0 = vmax.f32 %v12980_v59, 0.0  ;;  %12818 = vmatmul.mubr.bf16.gmra.mrb[124].mxu1 %v8722_v50  ;;  %v8732_v45 = vrot.slane %v19196_v38, 2 }
 0x854   :  { %12821 = vmatprep.mubr.msk.bf16.mxu1 %vm14735_vm0, %v18769_v2 }
 0x855   :  { %v18267_v48 = vpack.c.bf16 %v9307_v0, %v9306_v62  ;;  %v8733_v43 = vor.u32 %v8732_v45, %v8731_v11  ;;  %v19202_v45 = vshrl.u32 %v17573_v36, 16 }
 0x856   :  { %v8907_v21 = vpop.f32.mrb[20].mxu1 }
 0x857   :  { %v12982_v10 = vadd.f32 %v12981_v63, %v8907_v21  ;;  %v12715_v58 = vpop.f32.mrb[21].mxu1  ;;  %v8734_v63 = vsel %vm8602_vm4, %v8729_v57, %v8733_v43  ;;  %v19197_v21 = vshrl.u32 %v17545_v40, 16 }
 0x858   :  { %v8910_v54 = vpop.f32.mrb[22].mxu1 }
 0x859   :  { %v12984_v55 = vadd.f32 %v12983_v23, %v8910_v54  ;;  %v12716_v25 = vpop.f32.mrb[23].mxu1  ;;  %v9308_v30 = vmax.f32 %v12982_v10, 0.0  ;;  %v8735_v7 = vrot.slane %v19197_v21, 1  ;;  %v19198_v23 = vshll.u32 %v17545_v40, 16 }
 0x85b   :  { %v9309_v56 = vmax.f32 %v12984_v55, 0.0  ;;  %12822 = vmatmul.mubr.bf16.gmra.mrb[128].mxu1 %v8726_v51  ;;  %v8736_v33 = vrot.slane %v19198_v23, 2  ;;  %v12995_v51 = vadd.f32 %v18250_v8, %v17723_v13  ;;  %v12997_v13 = vadd.f32 %v18250_v8, %v17731_v28 }
 0x85c   :  { %12825 = vmatprep.mubr.msk.bf16.mxu1 %vm14735_vm0, %v18769_v2 }
 0x85d   :  { %v18280_v1 = vpack.c.bf16 %v9309_v56, %v9308_v30  ;;  %v8737_v25 = vor.u32 %v8736_v33, %v8735_v7  ;;  %v19199_v56 = vshrl.u32 %v17559_v3, 16  ;;  %v19205_v33 = vshrl.u32 %v17587_v12, 16 }
 0x85e   :  { %v8915_v19 = vpop.f32.mrb[24].mxu1 }
 0x85f   :  { %v12986_v35 = vadd.f32 %v12985_v27, %v8915_v19  ;;  %v12719_v61 = vpop.f32.mrb[25].mxu1  ;;  %v8738_v30 = vsel %vm8602_vm4, %v8733_v43, %v8737_v25  ;;  %v8739_v24 = vrot.slane %v19199_v56, 1  ;;  %v19200_v27 = vshll.u32 %v17559_v3, 16 }
 0x860   :  { %v8918_v17 = vpop.f32.mrb[26].mxu1  ;;  %v13001_v43 = vadd.f32 %v18250_v8, %v17742_v26 }
 0x861   :  { %v12988_v37 = vadd.f32 %v12987_v31, %v8918_v17  ;;  %v12720_v44 = vpop.f32.mrb[27].mxu1  ;;  %v9310_v47 = vmax.f32 %v12986_v35, 0.0  ;;  %v8740_v52 = vrot.slane %v19200_v27, 2  ;;  %v19201_v17 = vld [vmem:[#allocation90_spill] sm:$0xff] }
 0x863   :  { %v9311_v59 = vmax.f32 %v12988_v37, 0.0  ;;  %12826 = vmatmul.mubr.bf16.gmra.mrb[132].mxu1 %v8730_v22  ;;  %v8741_v61 = vor.u32 %v8740_v52, %v8739_v24  ;;  %v12999_v37 = vadd.f32 %v18250_v8, %v19201_v17  ;;  %v19208_v52 = vshrl.u32 %v17603_v14, 16 }
 0x864   :  { %12829 = vmatprep.mubr.msk.bf16.mxu1 %vm14735_vm0, %v18769_v2 }
 0x865   :  { %v18293_v46 = vpack.c.bf16 %v9311_v59, %v9310_v47  ;;  %v8742_v38 = vsel %vm8602_vm4, %v8737_v25, %v8741_v61  ;;  %v8743_v47 = vrot.slane %v19202_v45, 1  ;;  %v19203_v59 = vshll.u32 %v17573_v36, 16 }
 0x866   :  { %v8923_v50 = vpop.f32.mrb[28].mxu1  ;;  %v13005_v25 = vadd.f32 %v18250_v8, %v17753_v49 }
 0x867   :  { %v12990_v34 = vadd.f32 %v12989_v20, %v8923_v50  ;;  %v12723_v16 = vpop.f32.mrb[29].mxu1  ;;  %v8744_v28 = vrot.slane %v19203_v59, 2 }
 0x868   :  { %v8926_v39 = vpop.f32.mrb[30].mxu1 }
 0x869   :  { %v12992_v62 = vadd.f32 %v12991_v60, %v8926_v39  ;;  %v12724_v0 = vpop.f32.mrb[31].mxu1  ;;  %v9312_v10 = vmax.f32 %v12990_v34, 0.0  ;;  %v8745_v16 = vor.u32 %v8744_v28, %v8743_v47  ;;  %v19204_v39 = vld [vmem:[#allocation19_spill] sm:$0xff]  ;;  %v19212_v28 = vshrl.u32 %v17621_v5, 16 }
 0x86b   :  { %v9313_v58 = vmax.f32 %v12992_v62, 0.0  ;;  %12830 = vmatmul.mubr.bf16.gmra.mrb[136].mxu1 %v8734_v63  ;;  %v13003_v62 = vadd.f32 %v18250_v8, %v19204_v39  ;;  %v8746_v23 = vsel %vm8602_vm4, %v8741_v61, %v8745_v16  ;;  %v19210_v61 = vld [vmem:[#allocation21_spill] sm:$0xff] }
 0x86c   :  { %12833 = vmatprep.mubr.msk.bf16.mxu1 %vm14735_vm0, %v18769_v2  ;;  %v13009_v17 = vadd.f32 %v18250_v8, %v19210_v61  ;;  %v19214_v39 = vld [vmem:[#allocation25_spill] sm:$0xff] }
 0x86d   :  { %v18306_v54 = vpack.c.bf16 %v9313_v58, %v9312_v10  ;;  %v8747_v10 = vrot.slane %v19205_v33, 1  ;;  %v19206_v58 = vshll.u32 %v17587_v12, 16 }
 0x86e   :  { %v8931_v55 = vpop.f32.mrb[32].mxu1 }
 0x86f   :  { %v12994_v4 = vadd.f32 %v12993_v53, %v8931_v55  ;;  %v12727_v42 = vpop.f32.mrb[33].mxu1  ;;  %v8748_v26 = vrot.slane %v19206_v58, 2 }
 0x870   :  { %v8934_v40 = vpop.f32.mrb[34].mxu1 }
 0x871   :  { %v12996_v32 = vadd.f32 %v12995_v51, %v8934_v40  ;;  %v12728_v18 = vpop.f32.mrb[35].mxu1  ;;  %v9314_v19 = vmax.f32 %v12994_v4, 0.0  ;;  %v8749_v42 = vor.u32 %v8748_v26, %v8747_v10  ;;  %v19207_v40 = vld [vmem:[#allocation94_spill] sm:$0xff] }
 0x873   :  { %v9315_v57 = vmax.f32 %v12996_v32, 0.0  ;;  %12834 = vmatmul.mubr.bf16.gmra.mrb[140].mxu1 %v8738_v30  ;;  %v13007_v32 = vadd.f32 %v18250_v8, %v19207_v40  ;;  %v8750_v27 = vsel %vm8602_vm4, %v8745_v16, %v8749_v42 }
 0x874   :  { %12837 = vmatprep.mubr.msk.bf16.mxu1 %vm14735_vm0, %v18769_v2 }
 0x875   :  { %v18319_v31 = vpack.c.bf16 %v9315_v57, %v9314_v19  ;;  %v8751_v19 = vrot.slane %v19208_v52, 1  ;;  %v19209_v57 = vshll.u32 %v17603_v14, 16 }
 0x876   :  { %v8939_v35 = vpop.f32.mrb[36].mxu1 }
 0x877   :  { %v12998_v44 = vadd.f32 %v12997_v13, %v8939_v35  ;;  %v12731_v22 = vpop.f32.mrb[37].mxu1  ;;  %v8752_v49 = vrot.slane %v19209_v57, 2 }
 0x878   :  { %v8942_v3 = vpop.f32.mrb[38].mxu1 }
 0x879   :  { %v13000_v6 = vadd.f32 %v12999_v37, %v8942_v3  ;;  %v12732_v11 = vpop.f32.mrb[39].mxu1  ;;  %v9316_v20 = vmax.f32 %v12998_v44, 0.0  ;;  %v8753_v22 = vor.u32 %v8752_v49, %v8751_v19  ;;  %v19211_v3 = vld [vmem:[#allocation23_spill] sm:$0xff] }
 0x87b   :  { %v9317_v50 = vmax.f32 %v13000_v6, 0.0  ;;  %12838 = vmatmul.mubr.bf16.gmra.mrb[144].mxu1 %v8742_v38  ;;  %v13011_v6 = vadd.f32 %v18250_v8, %v19211_v3  ;;  %v8754_v59 = vsel %vm8602_vm4, %v8749_v42, %v8753_v22 }
 0x87c   :  { %12841 = vmatprep.mubr.msk.bf16.mxu1 %vm14735_vm0, %v18769_v2 }
 0x87d   :  { %v18332_v60 = vpack.c.bf16 %v9317_v50, %v9316_v20  ;;  %v8755_v20 = vrot.slane %v19212_v28, 1  ;;  %v19213_v50 = vshll.u32 %v17621_v5, 16 }
 0x87e   :  { %v8947_v34 = vpop.f32.mrb[40].mxu1 }
 0x87f   :  { %v13002_v0 = vadd.f32 %v13001_v43, %v8947_v34  ;;  %v12735_v63 = vpop.f32.mrb[41].mxu1  ;;  %v8756_v43 = vrot.slane %v19213_v50, 2 }
 0x880   :  { %v8950_v36 = vpop.f32.mrb[42].mxu1 }
 0x881   :  { %v13004_v21 = vadd.f32 %v13003_v62, %v8950_v36  ;;  %v12736_v7 = vpop.f32.mrb[43].mxu1  ;;  %v9318_v53 = vmax.f32 %v13002_v0, 0.0  ;;  %v13013_v62 = vadd.f32 %v18250_v8, %v19214_v39  ;;  %v8757_v36 = vor.u32 %v8756_v43, %v8755_v20  ;;  %v19223_v20 = vld [vmem:[#allocation35_spill] sm:$0xff] }
 0x883   :  { %v9319_v55 = vmax.f32 %v13004_v21, 0.0  ;;  %12842 = vmatmul.mubr.bf16.gmra.mrb[148].mxu1 %v8746_v23  ;;  %v19215_v21 = vld [vmem:[#allocation27_spill] sm:$0xff]  ;;  %v8758_v26 = vsel %vm8602_vm4, %v8753_v22, %v8757_v36  ;;  %v14708_v22 = vld [vmem:[#allocation2 + $0x154] sm:$0xf] }
 0x884   :  { %12845 = vmatprep.mubr.msk.bf16.mxu1 %vm14735_vm0, %v18769_v2  ;;  %v13015_v7 = vadd.f32 %v18250_v8, %v19215_v21 }
 0x885   :  { %v18345_v51 = vpack.c.bf16 %v9319_v55, %v9318_v53  ;;  %v19216_v53 = vshrl.u32 %v17639_v15, 16 }
 0x886   :  { %v8955_v4 = vpop.f32.mrb[44].mxu1 }
 0x887   :  { %v13006_v18 = vadd.f32 %v13005_v25, %v8955_v4  ;;  %v12739_v30 = vpop.f32.mrb[45].mxu1  ;;  %v8759_v55 = vrot.slane %v19216_v53, 1  ;;  %v19217_v25 = vshll.u32 %v17639_v15, 16  ;;  %v8581_v15 = vld [vmem:[#allocation2 + $0x158] sm:$0x3] }
 0x888   :  { %v8958_v12 = vpop.f32.mrb[46].mxu1  ;;  %v10181_v3 = vcombine.low %v14708_v22, %v8581_v15 }
 0x889   :  { %v13008_v56 = vadd.f32 %v13007_v32, %v8958_v12  ;;  %v12740_v24 = vpop.f32.mrb[47].mxu1  ;;  %v9320_v13 = vmax.f32 %v13006_v18, 0.0  ;;  %v8760_v4 = vrot.slane %v19217_v25, 2  ;;  %v19218_v32 = vld [vmem:[#allocation29_spill] sm:$0xff] }
 0x88a   :  { %v13017_v18 = vadd.f32 %v18250_v8, %v19218_v32  ;;  %v8771_v28 = vshll.u32 %v10181_v3, 16 }
 0x88b   :  { %v9321_v35 = vmax.f32 %v13008_v56, 0.0  ;;  %12846 = vmatmul.mubr.bf16.gmra.mrb[152].mxu1 %v8750_v27  ;;  %v8761_v12 = vor.u32 %v8760_v4, %v8759_v55  ;;  %v19219_v56 = vld [vmem:[#allocation31_spill] sm:$0xff] }
 0x88c   :  { %12849 = vmatprep.mubr.msk.bf16.mxu1 %vm14735_vm0, %v18769_v2  ;;  %v13019_v24 = vadd.f32 %v18250_v8, %v19219_v56  ;;  %v19227_v56 = vld [vmem:[#allocation45_spill] sm:$0xff] }
 0x88d   :  { %v18358_v37 = vpack.c.bf16 %v9321_v35, %v9320_v13  ;;  %v8762_v13 = vsel %vm8602_vm4, %v8757_v36, %v8761_v12  ;;  %v19220_v35 = vshrl.u32 %v17659_v41, 16 }
 0x88e   :  { %v8963_v44 = vpop.f32.mrb[48].mxu1 }
 0x88f   :  { %v13010_v11 = vadd.f32 %v13009_v17, %v8963_v44  ;;  %v12743_v38 = vpop.f32.mrb[49].mxu1  ;;  %v8763_v61 = vrot.slane %v19220_v35, 1  ;;  %v19221_v17 = vshll.u32 %v17659_v41, 16  ;;  %v13023_v41 = vadd.f32 %v18250_v8, %v19223_v20  ;;  %v19231_v20 = vld [vmem:[#allocation56_spill] sm:$0xff] }
 0x890   :  { %v8966_v14 = vpop.f32.mrb[50].mxu1  ;;  %v19222_v38 = vld [vmem:[#allocation33_spill] sm:$0xff] }
 0x891   :  { %v13012_v45 = vadd.f32 %v13011_v6, %v8966_v14  ;;  %v12744_v47 = vpop.f32.mrb[51].mxu1  ;;  %v9322_v34 = vmax.f32 %v13010_v11, 0.0  ;;  %v8764_v44 = vrot.slane %v19221_v17, 2 }
 0x893   :  { %v9323_v16 = vmax.f32 %v13012_v45, 0.0  ;;  %12850 = vmatmul.mubr.bf16.gmra.mrb[156].mxu1 %v8754_v59  ;;  %v8765_v47 = vor.u32 %v8764_v44, %v8763_v61  ;;  %v8768_v59 = vshrl.u32 %v10181_v3, 16  ;;  %v19229_v44 = vld [vmem:[#allocation50_spill] sm:$0xff] }
 0x894   :  { %12853 = vmatprep.mubr.msk.bf16.mxu1 %vm14735_vm0, %v18769_v2  ;;  %v13035_v22 = vadd.f32 %v18250_v8, %v19229_v44  ;;  %v19237_v44 = vld [vmem:[#allocation101_spill] sm:$0xff] }
 0x895   :  { %v12873_v0 = vpack.c.bf16 %v9323_v16, %v9322_v34 }
 0x896   :  { %v8971_v63 = vpop.f32.mrb[52].mxu1 }
 0x897   :  { %v13014_v23 = vadd.f32 %v13013_v62, %v8971_v63  ;;  %v12747_v33 = vpop.f32.mrb[53].mxu1  ;;  %12874 = vmatprep.subr.bf16.mxu1 %v12873_v0  ;;  %v8766_v62 = vsel %vm8602_vm4, %v8761_v12, %v8765_v47  ;;  %v8770_v0 = vrot.slane %v8768_v59, 1  ;;  %v8773_v63 = vrot.slane %v8771_v28, 2 }
 0x898   :  { %v8974_v5 = vpop.f32.mrb[54].mxu1  ;;  %12876 = vmatpush3.bf16.msra.mxu1 %v18267_v48 }
 0x899   :  { %v13016_v10 = vadd.f32 %v13015_v7, %v8974_v5  ;;  %v12748_v58 = vpop.f32.mrb[55].mxu1  ;;  %v9324_v42 = vmax.f32 %v13014_v23, 0.0  ;;  %v19224_v7 = vld [vmem:[#allocation37_spill] sm:$0xff] }
 0x89a   :  { %v13025_v23 = vadd.f32 %v18250_v8, %v19224_v7  ;;  %v19225_v58 = vld [vmem:[#allocation40_spill] sm:$0xff]  ;;  %v19233_v7 = vld [vmem:[#allocation61_spill] sm:$0xff] }
 0x89b   :  { %v9325_v40 = vmax.f32 %v13016_v10, 0.0  ;;  %12854 = vmatmul.mubr.bf16.gmra.mrb[160].mxu1 %v8758_v26  ;;  %v8774_v10 = vor.u32 %v8773_v63, %v8770_v0  ;;  %v19232_v0 = vld [vmem:[#allocation59_spill] sm:$0xff] }
 0x89c   :  { %12857 = vmatprep.mubr.msk.bf16.mxu1 %vm14735_vm0, %v18769_v2  ;;  %v13041_v63 = vadd.f32 %v18250_v8, %v19232_v0 }
 0x89d   :  { %v12877_v48 = vpack.c.bf16 %v9325_v40, %v9324_v42  ;;  %v8775_v42 = vsel %vm8602_vm4, %v8765_v47, %v8774_v10 }
 0x89e   :  { %v8979_v30 = vpop.f32.mrb[56].mxu1 }
 0x89f   :  { %v13018_v27 = vadd.f32 %v13017_v18, %v8979_v30  ;;  %v12751_v52 = vpop.f32.mrb[57].mxu1  ;;  %12878 = vmatprep.subr.bf16.mxu1 %v12877_v48  ;;  %v19226_v18 = vld [vmem:[#allocation42_spill] sm:$0xff] }
 0x8a0   :  { %v8982_v19 = vpop.f32.mrb[58].mxu1  ;;  %12880 = vmatpush3.bf16.msra.mxu1 %v18280_v1  ;;  %v13021_v1 = vadd.f32 %v18250_v8, %v19222_v38  ;;  %v13029_v48 = vadd.f32 %v18250_v8, %v19226_v18 }
 0x8a1   :  { %v13020_v57 = vadd.f32 %v13019_v24, %v8982_v19  ;;  %v12752_v49 = vpop.f32.mrb[59].mxu1  ;;  %v9326_v6 = vmax.f32 %v13018_v27, 0.0  ;;  %v13031_v24 = vadd.f32 %v18250_v8, %v19227_v56  ;;  %v9395_v56 = vlaneseq }
 0x8a3   :  { %v9327_v11 = vmax.f32 %v13020_v57, 0.0  ;;  %12858 = vmatmul.mubr.bf16.gmra.mrb[0].mxu1 %v8762_v13  ;;  %v19228_v13 = vld [vmem:[#allocation48_spill] sm:$0xff] }
 0x8a4   :  { %12861 = vmatprep.mubr.msk.bf16.mxu1 %vm14735_vm0, %v18769_v2  ;;  %v13033_v35 = vadd.f32 %v18250_v8, %v19228_v13 }
 0x8a5   :  { %v12881_v14 = vpack.c.bf16 %v9327_v11, %v9326_v6 }
 0x8a6   :  { %v8987_v45 = vpop.f32.mrb[60].mxu1 }
 0x8a7   :  { %v13022_v50 = vadd.f32 %v13021_v1, %v8987_v45  ;;  %v12755_v43 = vpop.f32.mrb[61].mxu1  ;;  %12882 = vmatprep.subr.bf16.mxu1 %v12881_v14  ;;  %v19230_v45 = vld [vmem:[#allocation53_spill] sm:$0xff] }
 0x8a8   :  { %v8990_v34 = vpop.f32.mrb[62].mxu1  ;;  %12884 = vmatpush3.bf16.msra.mxu1 %v18293_v46  ;;  %v13027_v46 = vadd.f32 %v18250_v8, %v19225_v58  ;;  %v13037_v47 = vadd.f32 %v18250_v8, %v19230_v45 }
 0x8a9   :  { %v13024_v16 = vadd.f32 %v13023_v41, %v8990_v34  ;;  %v12756_v39 = vpop.f32.mrb[63].mxu1  ;;  %v9328_v36 = vmax.f32 %v13022_v50, 0.0  ;;  %v13039_v41 = vadd.f32 %v18250_v8, %v19231_v20 }
 0x8ab   :  { %v9329_v21 = vmax.f32 %v13024_v16, 0.0  ;;  %12862 = vmatmul.mubr.bf16.gmra.mrb[4].mxu1 %v8766_v62 }
 0x8ac   :  { %12865 = vmatprep.mubr.msk.bf16.mxu1 %vm14735_vm0, %v18769_v2 }
 0x8ad   :  { %v12885_v33 = vpack.c.bf16 %v9329_v21, %v9328_v36 }
 0x8ae   :  { %v8995_v5 = vpop.f32.mrb[64].mxu1 }
 0x8af   :  { %v13026_v26 = vadd.f32 %v13025_v23, %v8995_v5  ;;  %v12759_v53 = vpop.f32.mrb[65].mxu1  ;;  %12886 = vmatprep.subr.bf16.mxu1 %v12885_v33  ;;  %v13043_v23 = vadd.f32 %v18250_v8, %v19233_v7 }
 0x8b0   :  { %v8998_v55 = vpop.f32.mrb[66].mxu1  ;;  %12888 = vmatpush3.bf16.msra.mxu1 %v18306_v54  ;;  %v19234_v53 = vld [vmem:[#allocation64_spill] sm:$0xff] }
 0x8b1   :  { %v13028_v25 = vadd.f32 %v13027_v46, %v8998_v55  ;;  %v12760_v4 = vpop.f32.mrb[67].mxu1  ;;  %v9330_v40 = vmax.f32 %v13026_v26, 0.0  ;;  %v13045_v55 = vadd.f32 %v18250_v8, %v19234_v53 }
 0x8b3   :  { %v9331_v32 = vmax.f32 %v13028_v25, 0.0  ;;  %12866 = vmatmul.mubr.bf16.gmra.mrb[8].mxu1 %v8775_v42  ;;  %v19235_v42 = vld [vmem:[#allocation67_spill] sm:$0xff] }
 0x8b4   :  { %12869 = vmatprep.mubr.msk.bf16.mxu1 %vm14735_vm0, %v18769_v2 }
 0x8b5   :  { %v12889_v30 = vpack.c.bf16 %v9331_v32, %v9330_v40  ;;  %v13047_v40 = vadd.f32 %v18250_v8, %v19235_v42 }
 0x8b6   :  { %v9003_v12 = vpop.f32.mrb[68].mxu1 }
 0x8b7   :  { %v13030_v27 = vadd.f32 %v13029_v48, %v9003_v12  ;;  %v12763_v54 = vpop.f32.mrb[69].mxu1  ;;  %12890 = vmatprep.subr.bf16.mxu1 %v12889_v30 }
 0x8b8   :  { %v9006_v52 = vpop.f32.mrb[70].mxu1  ;;  %12892 = vmatpush3.bf16.msra.mxu1 %v18319_v31 }
 0x8b9   :  { %v13032_v15 = vadd.f32 %v13031_v24, %v9006_v52  ;;  %v12764_v19 = vpop.f32.mrb[71].mxu1  ;;  %v9332_v57 = vmax.f32 %v13030_v27, 0.0  ;;  %v14737_v24 = vmov 1983009808  }
 0x8ba   :  { %v9393_v27 = vunpack.c.l.s4 %v14737_v24 }
 0x8bb   :  { %v9333_v49 = vmax.f32 %v13032_v15, 0.0  ;;  %12870 = vmatmul.mubr.bf16.gmra.mrb[12].mxu1 %v8774_v10  ;;  %v9396_v15 = vshrl.u32 %v9395_v56, 7 }
 0x8bd   :  { %v12893_v61 = vpack.c.bf16 %v9333_v49, %v9332_v57  ;;  %v9394_v57 = vunpack.c.0.s8 %v9393_v27  ;;  %v19236_v49 = vld [vmem:[#allocation97_spill] sm:$0xff] }
 0x8be   :  { %v9011_v17 = vpop.f32.mrb[72].mxu1  ;;  %v13049_v13 = vadd.f32 %v18250_v8, %v19236_v49 }
 0x8bf   :  { %v13034_v3 = vadd.f32 %v13033_v35, %v9011_v17  ;;  %v12767_v6 = vpop.f32.mrb[73].mxu1  ;;  %12894 = vmatprep.subr.bf16.mxu1 %v12893_v61  ;;  %v18446_v17 = vsub.s32 %v9394_v57, %v9396_v15  ;;  %v19244_v15 = vld [vmem:[#allocation85_spill] sm:$0xff] }
 0x8c0   :  { %v9014_v11 = vpop.f32.mrb[74].mxu1  ;;  %12896 = vmatpush3.bf16.msra.mxu1 %v18332_v60 }
 0x8c1   :  { %v13036_v31 = vadd.f32 %v13035_v22, %v9014_v11  ;;  %v12768_v38 = vpop.f32.mrb[75].mxu1  ;;  %v9334_v1 = vmax.f32 %v13034_v3, 0.0  ;;  %v13051_v22 = vadd.f32 %v18250_v8, %v19237_v44 }
 0x8c3   :  { %v9335_v14 = vmax.f32 %v13036_v31, 0.0 }
 0x8c5   :  { %v12897_v59 = vpack.c.bf16 %v9335_v14, %v9334_v1 }
 0x8c6   :  { %v9019_v28 = vpop.f32.mrb[76].mxu1 }
 0x8c7   :  { %v13038_v50 = vadd.f32 %v13037_v47, %v9019_v28  ;;  %v12771_v43 = vpop.f32.mrb[77].mxu1  ;;  %12898 = vmatprep.subr.bf16.mxu1 %v12897_v59  ;;  %v19238_v59 = vld [vmem:[#allocation69_spill] sm:$0xff] }
 0x8c8   :  { %v9022_v34 = vpop.f32.mrb[78].mxu1  ;;  %12900 = vmatpush3.bf16.msra.mxu1 %v18345_v51  ;;  %v13053_v28 = vadd.f32 %v18250_v8, %v19238_v59 }
 0x8c9   :  { %v13040_v16 = vadd.f32 %v13039_v41, %v9022_v34  ;;  %v12772_v60 = vpop.f32.mrb[79].mxu1  ;;  %v9336_v39 = vmax.f32 %v13038_v50, 0.0  ;;  %v19239_v50 = vld [vmem:[#allocation71_spill] sm:$0xff] }
 0x8ca   :  { %v13055_v43 = vadd.f32 %v18250_v8, %v19239_v50 }
 0x8cb   :  { %v9337_v62 = vmax.f32 %v13040_v16, 0.0 }
 0x8cd   :  { %v12901_v36 = vpack.c.bf16 %v9337_v62, %v9336_v39 }
 0x8ce   :  { %v9027_v21 = vpop.f32.mrb[80].mxu1 }
 0x8cf   :  { %v13042_v33 = vadd.f32 %v13041_v63, %v9027_v21  ;;  %v12775_v5 = vpop.f32.mrb[81].mxu1  ;;  %12902 = vmatprep.subr.bf16.mxu1 %v12901_v36  ;;  %v19240_v36 = vld [vmem:[#allocation74_spill] sm:$0xff] }
 0x8d0   :  { %v9030_v10 = vpop.f32.mrb[82].mxu1  ;;  %12904 = vmatpush3.bf16.msra.mxu1 %v18358_v37  ;;  %v18438_v37 = vld [vmem:[%s18602_s4] sm:$0xff]  ;;  %v13057_v21 = vadd.f32 %v18250_v8, %v19240_v36 }
 0x8d1   :  { %v13044_v58 = vadd.f32 %v13043_v23, %v9030_v10  ;;  %v12776_v51 = vpop.f32.mrb[83].mxu1  ;;  %v9338_v46 = vmax.f32 %v13042_v33, 0.0  ;;  %v9391_v19 = vcombine.high %v18438_v37, %v18438_v37  ;;  %v19241_v33 = vld [vmem:[#allocation76_spill] sm:$0xff] }
 0x8d2   :  { %v13059_v5 = vadd.f32 %v18250_v8, %v19241_v33 }
 0x8d3   :  { %v9339_v26 = vmax.f32 %v13044_v58, 0.0  ;;  %v18451_v31 = vrot.slane %v9391_v19, %v18446_v17  ;;  %v13065_v19 = vadd.f32 %v18250_v8, %v19244_v15  ;;  %v19252_v15 = vld [vmem:[#allocation14_spill] sm:$0xff] }
 0x8d5   :  { %v18431_v25 = vpack.c.bf16 %v9339_v26, %v9338_v46  ;;  %v9407_v14 = vcombine.high %v18451_v31, %v18451_v31 }
 0x8d6   :  { %v9035_v4 = vpop.f32.mrb[84].mxu1 }
 0x8d7   :  { %v13046_v32 = vadd.f32 %v13045_v55, %v9035_v4  ;;  %v12779_v18 = vpop.f32.mrb[85].mxu1  ;;  %9558 = vmatprep.mubr.f32.mxu0 %v9407_v14  ;;  %v19242_v4 = vld [vmem:[#allocation79_spill] sm:$0xff]  ;;  %v19246_v14 = vld [vmem:[#allocation92_spill] sm:$0xff] }
 0x8d8   :  { %v9038_v48 = vpop.f32.mrb[86].mxu1  ;;  %v13061_v42 = vadd.f32 %v18250_v8, %v19242_v4  ;;  %v19243_v18 = vld [vmem:[#allocation82_spill] sm:$0xff]  ;;  %v19250_v4 = vld [vmem:[#allocation9_spill] sm:$0xff] }
 0x8d9   :  { %v13048_v30 = vadd.f32 %v13047_v40, %v9038_v48  ;;  %v12780_v12 = vpop.f32.mrb[87].mxu1  ;;  %v9340_v54 = vmax.f32 %v13046_v32, 0.0  ;;  %v13063_v48 = vadd.f32 %v18250_v8, %v19243_v18 }
 0x8db   :  { %v9341_v52 = vmax.f32 %v13048_v30, 0.0 }
 0x8dd   :  { %v18444_v35 = vpack.c.bf16 %v9341_v52, %v9340_v54 }
 0x8de   :  { %v9043_v61 = vpop.f32.mrb[88].mxu1 }
 0x8df   :  { %v13050_v3 = vadd.f32 %v13049_v13, %v9043_v61  ;;  %v12783_v6 = vpop.f32.mrb[89].mxu1  ;;  %v19245_v13 = vld [vmem:[#allocation89_spill] sm:$0xff] }
 0x8e0   :  { %v9046_v11 = vpop.f32.mrb[90].mxu1  ;;  %v13067_v61 = vadd.f32 %v18250_v8, %v19245_v13 }
 0x8e1   :  { %v13052_v38 = vadd.f32 %v13051_v22, %v9046_v11  ;;  %v12784_v1 = vpop.f32.mrb[91].mxu1  ;;  %v9342_v45 = vmax.f32 %v13050_v3, 0.0 }
 0x8e3   :  { %v9343_v47 = vmax.f32 %v13052_v38, 0.0 }
 0x8e5   :  { %v18457_v20 = vpack.c.bf16 %v9343_v47, %v9342_v45  ;;  %v13069_v45 = vadd.f32 %v18250_v8, %v19246_v14  ;;  %v19254_v14 = vld [vmem:[#allocation18_spill] sm:$0xff] }
 0x8e6   :  { %v9051_v41 = vpop.f32.mrb[92].mxu1 }
 0x8e7   :  { %v13054_v34 = vadd.f32 %v13053_v28, %v9051_v41  ;;  %v12787_v16 = vpop.f32.mrb[93].mxu1  ;;  %v19247_v28 = vld [vmem:[#allocation96_spill] sm:$0xff] }
 0x8e8   :  { %v9054_v60 = vpop.f32.mrb[94].mxu1  ;;  %v13071_v41 = vadd.f32 %v18250_v8, %v19247_v28 }
 0x8e9   :  { %v13056_v39 = vadd.f32 %v13055_v43, %v9054_v60  ;;  %v12788_v62 = vpop.f32.mrb[95].mxu1  ;;  %v9344_v0 = vmax.f32 %v13054_v34, 0.0 }
 0x8eb   :  { %v9345_v63 = vmax.f32 %v13056_v39, 0.0 }
 0x8ed   :  { %v18463_v7 = vpack.c.bf16 %v9345_v63, %v9344_v0  ;;  %v19248_v0 = vld [vmem:[#allocation100_spill] sm:$0xff] }
 0x8ee   :  { %v9059_v23 = vpop.f32.mrb[96].mxu1  ;;  %v13073_v63 = vadd.f32 %v18250_v8, %v19248_v0  ;;  %v19256_v0 = vld [vmem:[#allocation22_spill] sm:$0xff] }
 0x8ef   :  { %v13058_v10 = vadd.f32 %v13057_v21, %v9059_v23  ;;  %v12791_v58 = vpop.f32.mrb[97].mxu1  ;;  %v19249_v23 = vld [vmem:[#allocation7_spill] sm:$0xff] }
 0x8f0   :  { %v9062_v51 = vpop.f32.mrb[98].mxu1  ;;  %v13075_v33 = vadd.f32 %v18250_v8, %v19249_v23 }
 0x8f1   :  { %v13060_v46 = vadd.f32 %v13059_v5, %v9062_v51  ;;  %v12792_v26 = vpop.f32.mrb[99].mxu1  ;;  %v9346_v53 = vmax.f32 %v13058_v10, 0.0 }
 0x8f3   :  { %v9347_v55 = vmax.f32 %v13060_v46, 0.0 }
 0x8f5   :  { %v18469_v40 = vpack.c.bf16 %v9347_v55, %v9346_v53  ;;  %v9398_v55 = vrot.slane %v18438_v37, %v18446_v17 }
 0x8f6   :  { %v9067_v32 = vpop.f32.mrb[100].mxu1 }
 0x8f7   :  { %v13062_v30 = vadd.f32 %v13061_v42, %v9067_v32  ;;  %v12795_v12 = vpop.f32.mrb[101].mxu1  ;;  %v13077_v42 = vadd.f32 %v18250_v8, %v19250_v4  ;;  %v9406_v18 = vcombine.high %v9398_v55, %v9398_v55 }
 0x8f8   :  { %v9070_v56 = vpop.f32.mrb[102].mxu1 }
 0x8f9   :  { %v13064_v24 = vadd.f32 %v13063_v48, %v9070_v56  ;;  %v12796_v27 = vpop.f32.mrb[103].mxu1  ;;  %v9348_v54 = vmax.f32 %v13062_v30, 0.0  ;;  %v19251_v30 = vld [vmem:[#allocation12_spill] sm:$0xff]  ;;  %9488 = vmatprep.mubr.f32.mxu1 %v9406_v18 }
 0x8fa   :  { %v13079_v12 = vadd.f32 %v18250_v8, %v19251_v30  ;;  %9489 = vmatmul.mubr.f32.vlgmr.msra.gmra.mrb[164].mxu1 %v9398_v55 }
 0x8fb   :  { %v9349_v52 = vmax.f32 %v13064_v24, 0.0 }
 0x8fd   :  { %v18475_v57 = vpack.c.bf16 %v9349_v52, %v9348_v54 }
 0x8fe   :  { %v9075_v49 = vpop.f32.mrb[104].mxu1 }
 0x8ff   :  { %v13066_v44 = vadd.f32 %v13065_v19, %v9075_v49  ;;  %v12799_v22 = vpop.f32.mrb[105].mxu1  ;;  %v13081_v19 = vadd.f32 %v18250_v8, %v19252_v15 }
 0x900   :  { %v9078_v3 = vpop.f32.mrb[106].mxu1 }
 0x901   :  { %v13068_v6 = vadd.f32 %v13067_v61, %v9078_v3  ;;  %v12800_v11 = vpop.f32.mrb[107].mxu1  ;;  %v9350_v38 = vmax.f32 %v13066_v44, 0.0  ;;  %v19253_v61 = vld [vmem:[#allocation16_spill] sm:$0xff] }
 0x902   :  { %v13083_v44 = vadd.f32 %v18250_v8, %v19253_v61 }
 0x903   :  { %v9351_v1 = vmax.f32 %v13068_v6, 0.0 }
 0x905   :  { %v18481_v47 = vpack.c.bf16 %v9351_v1, %v9350_v38 }
 0x906   :  { %v9083_v59 = vpop.f32.mrb[108].mxu1 }
 0x907   :  { %v13070_v50 = vadd.f32 %v13069_v45, %v9083_v59  ;;  %v12803_v43 = vpop.f32.mrb[109].mxu1  ;;  %v13085_v45 = vadd.f32 %v18250_v8, %v19254_v14 }
 0x908   :  { %v9086_v34 = vpop.f32.mrb[110].mxu1 }
 0x909   :  { %v13072_v16 = vadd.f32 %v13071_v41, %v9086_v34  ;;  %v12804_v60 = vpop.f32.mrb[111].mxu1  ;;  %v9352_v39 = vmax.f32 %v13070_v50, 0.0  ;;  %v19255_v41 = vld [vmem:[#allocation20_spill] sm:$0xff] }
 0x90a   :  { %v13087_v50 = vadd.f32 %v18250_v8, %v19255_v41 }
 0x90b   :  { %v9353_v62 = vmax.f32 %v13072_v16, 0.0 }
 0x90d   :  { %v18487_v36 = vpack.c.bf16 %v9353_v62, %v9352_v39 }
 0x90e   :  { %v9091_v21 = vpop.f32.mrb[112].mxu1 }
 0x90f   :  { %v13074_v5 = vadd.f32 %v13073_v63, %v9091_v21  ;;  %v12807_v10 = vpop.f32.mrb[113].mxu1  ;;  %v13089_v63 = vadd.f32 %v18250_v8, %v19256_v0 }
 0x910   :  { %v9094_v58 = vpop.f32.mrb[114].mxu1 }
 0x911   :  { %v13076_v51 = vadd.f32 %v13075_v33, %v9094_v58  ;;  %v12808_v46 = vpop.f32.mrb[115].mxu1  ;;  %v9354_v26 = vmax.f32 %v13074_v5, 0.0  ;;  %v13091_v33 = vadd.f32 %v18250_v8, %v17964_v29 }
 0x913   :  { %v9355_v53 = vmax.f32 %v13076_v51, 0.0 }
 0x915   :  { %v12905_v32 = vpack.c.bf16 %v9355_v53, %v9354_v26  ;;  %v19257_v53 = vld [vmem:[#allocation24_spill] sm:$0xff] }
 0x916   :  { %v9099_v48 = vpop.f32.mrb[116].mxu1  ;;  %v13093_v55 = vadd.f32 %v18250_v8, %v19257_v53 }
 0x917   :  { %v13078_v56 = vadd.f32 %v13077_v42, %v9099_v48  ;;  %v12811_v24 = vpop.f32.mrb[117].mxu1  ;;  %12906 = vmatprep.subr.bf16.mxu0 %v12905_v32  ;;  %v19258_v32 = vld [vmem:[#allocation26_spill] sm:$0xff] }
 0x918   :  { %v9102_v27 = vpop.f32.mrb[118].mxu1  ;;  %12908 = vmatpush3.bf16.msra.mxu0 %v18431_v25  ;;  %v13095_v18 = vadd.f32 %v18250_v8, %v19258_v32 }
 0x919   :  { %v13080_v54 = vadd.f32 %v13079_v12, %v9102_v27  ;;  %v12812_v52 = vpop.f32.mrb[119].mxu1  ;;  %v9356_v37 = vmax.f32 %v13078_v56, 0.0  ;;  %v19259_v27 = vld [vmem:[#allocation28_spill] sm:$0xff] }
 0x91b   :  { %v9357_v17 = vmax.f32 %v13080_v54, 0.0  ;;  %v13097_v54 = vadd.f32 %v18250_v8, %v19259_v27 }
 0x91d   :  { %v12909_v49 = vpack.c.bf16 %v9357_v17, %v9356_v37  ;;  %v19260_v17 = vld [vmem:[#allocation30_spill] sm:$0xff] }
 0x91e   :  { %v9107_v13 = vpop.f32.mrb[120].mxu1  ;;  %v13099_v15 = vadd.f32 %v18250_v8, %v19260_v17 }
 0x91f   :  { %v13082_v22 = vadd.f32 %v13081_v19, %v9107_v13  ;;  %v12815_v3 = vpop.f32.mrb[121].mxu1  ;;  %12910 = vmatprep.subr.bf16.mxu0 %v12909_v49 }
 0x920   :  { %v9110_v6 = vpop.f32.mrb[122].mxu1  ;;  %12912 = vmatpush3.bf16.msra.mxu0 %v18444_v35  ;;  %v19261_v3 = vld [vmem:[#allocation32_spill] sm:$0xff] }
 0x921   :  { %v13084_v25 = vadd.f32 %v13083_v44, %v9110_v6  ;;  %v12816_v11 = vpop.f32.mrb[123].mxu1  ;;  %v9358_v38 = vmax.f32 %v13082_v22, 0.0  ;;  %v13101_v6 = vadd.f32 %v18250_v8, %v19261_v3 }
 0x923   :  { %v9359_v1 = vmax.f32 %v13084_v25, 0.0 }
 0x925   :  { %v12913_v59 = vpack.c.bf16 %v9359_v1, %v9358_v38  ;;  %v19262_v38 = vld [vmem:[#allocation34_spill] sm:$0xff] }
 0x926   :  { %v9115_v28 = vpop.f32.mrb[124].mxu1  ;;  %v13103_v1 = vadd.f32 %v18250_v8, %v19262_v38 }
 0x927   :  { %v13086_v43 = vadd.f32 %v13085_v45, %v9115_v28  ;;  %v12819_v34 = vpop.f32.mrb[125].mxu1  ;;  %12914 = vmatprep.subr.bf16.mxu0 %v12913_v59 }
 0x928   :  { %v9118_v16 = vpop.f32.mrb[126].mxu1  ;;  %12916 = vmatpush3.bf16.msra.mxu0 %v18457_v20 }
 0x929   :  { %v13088_v60 = vadd.f32 %v13087_v50, %v9118_v16  ;;  %v12820_v35 = vpop.f32.mrb[127].mxu1  ;;  %v9360_v39 = vmax.f32 %v13086_v43, 0.0  ;;  %v19263_v43 = vld [vmem:[#allocation36_spill] sm:$0xff] }
 0x92a   :  { %v13105_v34 = vadd.f32 %v18250_v8, %v19263_v43 }
 0x92b   :  { %v9361_v62 = vmax.f32 %v13088_v60, 0.0  ;;  %v18533_v60 = vld.sshfl [vmem:[%s18602_s4 + $0x8] sm:$0x33 pattern:$0x76325410] }
 0x92d   :  { %v12917_v21 = vpack.c.bf16 %v9361_v62, %v9360_v39  ;;  %v19264_v39 = vld [vmem:[#allocation39_spill] sm:$0xff] }
 0x92e   :  { %v9123_v23 = vpop.f32.mrb[128].mxu1  ;;  %v13107_v62 = vadd.f32 %v18250_v8, %v19264_v39 }
 0x92f   :  { %v13090_v5 = vadd.f32 %v13089_v63, %v9123_v23  ;;  %v12823_v10 = vpop.f32.mrb[129].mxu1  ;;  %12918 = vmatprep.subr.bf16.mxu0 %v12917_v21  ;;  %v9415_v21 = vcombine.high %v18533_v60, %v18533_v60 }
 0x930   :  { %v9126_v58 = vpop.f32.mrb[130].mxu1  ;;  %12920 = vmatpush3.bf16.msra.mxu0 %v18463_v7 }
 0x931   :  { %v13092_v51 = vadd.f32 %v13091_v33, %v9126_v58  ;;  %v12824_v20 = vpop.f32.mrb[131].mxu1  ;;  %v9362_v46 = vmax.f32 %v13090_v5, 0.0  ;;  %v14738_v5 = vmov 0.0|0.0  }
 0x933   :  { %v9363_v26 = vmax.f32 %v13092_v51, 0.0  ;;  %v19265_v51 = vld [vmem:[#allocation41_spill] sm:$0xff] }
 0x934   :  { %v13109_v20 = vadd.f32 %v18250_v8, %v19265_v51 }
 0x935   :  { %v12921_v4 = vpack.c.bf16 %v9363_v26, %v9362_v46 }
 0x936   :  { %v9131_v42 = vpop.f32.mrb[132].mxu1 }
 0x937   :  { %v13094_v48 = vadd.f32 %v13093_v55, %v9131_v42  ;;  %v12827_v29 = vpop.f32.mrb[133].mxu1  ;;  %12922 = vmatprep.subr.bf16.mxu0 %v12921_v4 }
 0x938   :  { %v9134_v30 = vpop.f32.mrb[134].mxu1  ;;  %12924 = vmatpush3.bf16.msra.mxu0 %v18469_v40 }
 0x939   :  { %v13096_v12 = vadd.f32 %v13095_v18, %v9134_v30  ;;  %v12828_v7 = vpop.f32.mrb[135].mxu1  ;;  %v9364_v56 = vmax.f32 %v13094_v48, 0.0  ;;  %v19267_v30 = vld [vmem:[#allocation46_spill] sm:$0xff] }
 0x93b   :  { %v9365_v24 = vmax.f32 %v13096_v12, 0.0 }
 0x93d   :  { %v12925_v52 = vpack.c.bf16 %v9365_v24, %v9364_v56  ;;  %v19268_v56 = vld [vmem:[#allocation49_spill] sm:$0xff] }
 0x93e   :  { %v9139_v37 = vpop.f32.mrb[136].mxu1 }
 0x93f   :  { %v13098_v19 = vadd.f32 %v13097_v54, %v9139_v37  ;;  %v12831_v49 = vpop.f32.mrb[137].mxu1  ;;  %12926 = vmatprep.subr.bf16.mxu0 %v12925_v52 }
 0x940   :  { %v9142_v13 = vpop.f32.mrb[138].mxu1  ;;  %12928 = vmatpush3.bf16.msra.mxu0 %v18475_v57  ;;  %v19269_v49 = vld [vmem:[#allocation52_spill] sm:$0xff] }
 0x941   :  { %v13100_v61 = vadd.f32 %v13099_v15, %v9142_v13  ;;  %v12832_v40 = vpop.f32.mrb[139].mxu1  ;;  %v9366_v44 = vmax.f32 %v13098_v19, 0.0 }
 0x943   :  { %v9367_v22 = vmax.f32 %v13100_v61, 0.0 }
 0x945   :  { %v12929_v25 = vpack.c.bf16 %v9367_v22, %v9366_v44 }
 0x946   :  { %v9147_v11 = vpop.f32.mrb[140].mxu1 }
 0x947   :  { %v13102_v14 = vadd.f32 %v13101_v6, %v9147_v11  ;;  %v12835_v45 = vpop.f32.mrb[141].mxu1  ;;  %12930 = vmatprep.subr.bf16.mxu0 %v12929_v25 }
 0x948   :  { %v9150_v59 = vpop.f32.mrb[142].mxu1  ;;  %12932 = vmatpush3.bf16.msra.mxu0 %v18481_v47 }
 0x949   :  { %v13104_v28 = vadd.f32 %v13103_v1, %v9150_v59  ;;  %v12836_v57 = vpop.f32.mrb[143].mxu1  ;;  %v9368_v41 = vmax.f32 %v13102_v14, 0.0  ;;  %v19270_v14 = vld [vmem:[#allocation55_spill] sm:$0xff] }
 0x94a   :  { %v19271_v57 = vld [vmem:[#allocation58_spill] sm:$0xff] }
 0x94b   :  { %v9369_v50 = vmax.f32 %v13104_v28, 0.0 }
 0x94d   :  { %v12933_v16 = vpack.c.bf16 %v9369_v50, %v9368_v41 }
 0x94e   :  { %v9155_v35 = vpop.f32.mrb[144].mxu1 }
 0x94f   :  { %v13106_v0 = vadd.f32 %v13105_v34, %v9155_v35  ;;  %v12839_v63 = vpop.f32.mrb[145].mxu1  ;;  %12934 = vmatprep.subr.bf16.mxu0 %v12933_v16 }
 0x950   :  { %v9158_v47 = vpop.f32.mrb[146].mxu1  ;;  %12936 = vmatpush3.bf16.msra.mxu0 %v18487_v36  ;;  %v19266_v36 = vld [vmem:[#allocation44_spill] sm:$0xff] }
 0x951   :  { %v13108_v23 = vadd.f32 %v13107_v62, %v9158_v47  ;;  %v12840_v33 = vpop.f32.mrb[147].mxu1  ;;  %12937 = vmatprep.subr.bf16.mxu0 %v14738_v5  ;;  %v9370_v10 = vmax.f32 %v13106_v0, 0.0  ;;  %v13111_v53 = vadd.f32 %v18250_v8, %v19266_v36  ;;  %v19272_v62 = vld [vmem:[#allocation6_spill] sm:$0xff]  ;;  %v19274_v36 = vld [vmem:[#allocation11_spill] sm:$0xff] }
 0x953   :  { %v9371_v58 = vmax.f32 %v13108_v23, 0.0  ;;  %9559 = vmatmul.mubr.f32.vlgmr.msra.gmra.mrb[72].mxu0 %v18451_v31  ;;  %v18550_v31 = vld [vmem:[%s18601_s3] ss:$0 sm:$0xff]  ;;  %s14739_s3 = smov [#allocation3]  }
 0x954   :  { %10191 = vmatprep.mubr.msk.f32.mxu0 %vm9421_vm7, %v9415_v21  ;;  %v13113_v12 = vadd.f32 %v18550_v31, %v19267_v30  ;;  %v13115_v24 = vadd.f32 %v18550_v31, %v19268_v56  ;;  %v13117_v13 = vadd.f32 %v18550_v31, %v19269_v49  ;;  %v13119_v44 = vadd.f32 %v18550_v31, %v18020_v9  ;;  %v19273_v21 = vld [vmem:[#allocation8_spill] sm:$0xff]  ;;  %v19276_v56 = vld [vmem:[#allocation13_spill] sm:$0xff]  ;;  %s9642_s16 = sshll.u32 %s14739_s3, 4  ;;  %s9643_s16 = int_to_ptr.vmem [resolvable:$true] %s9642_s16 }
 0x955   :  { %v12938_v46 = vpack.c.bf16 %v9371_v58, %v9370_v10  ;;  %v13121_v45 = vadd.f32 %v18550_v31, %v19270_v14  ;;  %v13123_v41 = vadd.f32 %v18550_v31, %v19271_v57  ;;  %v13125_v0 = vadd.f32 %v18550_v31, %v19272_v62  ;;  %s14710_s17 = scalar_lea.vmem %s9643_s16, 32  ;;  %p14715_p1 = scmp.lt.s32.totalorder %s9643_s16, %s9643_s16 }
 0x956   :  { %v9163_v26 = vpop.f32.mrb[148].mxu1  ;;  %v13127_v23 = vadd.f32 %v18550_v31, %v19273_v21  ;;  %p14711_p0 = scmp.ne.s32.totalorder %s9643_s16, %s14710_s17  ;;  %p14716_p2 = scmp.lt.s32.totalorder %s14710_s17, %s14710_s17 }
 0x957   :  { %v13110_v55 = vadd.f32 %v13109_v20, %v9163_v26  ;;  %v12843_v4 = vpop.f32.mrb[149].mxu1  ;;  %12939 = vmatpush1.bf16.msra.mxu0 %v12938_v46 }
 0x958   :  { %v9166_v42 = vpop.f32.mrb[150].mxu1  ;;  %12940 = vmatprep.subr.bf16.mxu0 %v14738_v5  ;;  %p14717_p3 = por %p14716_p2, %p14715_p1 }
 0x959   :  { %v13112_v32 = vadd.f32 %v13111_v53, %v9166_v42  ;;  %v12844_v18 = vpop.f32.mrb[151].mxu1  ;;  %v9372_v48 = vmax.f32 %v13110_v55, 0.0  ;;  %v13129_v53 = vadd.f32 %v18550_v31, %v19274_v36  ;;  %v19275_v42 = vld [vmem:[#allocation80_spill] sm:$0xff] }
 0x95a   :  { %p14718_p4 = pnand %p14717_p3, %p14711_p0 }
 0x95b   :  { %v9373_v29 = vmax.f32 %v13112_v32, 0.0  ;;  %v13131_v32 = vadd.f32 %v18550_v31, %v19275_v42 }
 0x95d   :  { %v12941_v7 = vpack.c.bf16 %v9373_v29, %v9372_v48 }
 0x95e   :  { %v9171_v8 = vpop.f32.mrb[152].mxu1 }
 0x95f   :  { %v13114_v27 = vadd.f32 %v13113_v12, %v9171_v8  ;;  %v12847_v54 = vpop.f32.mrb[153].mxu1  ;;  %12942 = vmatpush1.bf16.msra.mxu0 %v12941_v7 }
 0x960   :  { %v9174_v52 = vpop.f32.mrb[154].mxu1  ;;  %12943 = vmatprep.subr.bf16.mxu0 %v14738_v5 }
 0x961   :  { %v13116_v37 = vadd.f32 %v13115_v24, %v9174_v52  ;;  %v12848_v17 = vpop.f32.mrb[155].mxu1  ;;  %v9374_v15 = vmax.f32 %v13114_v27, 0.0  ;;  %v13133_v24 = vadd.f32 %v18550_v31, %v19276_v56  ;;  %v19277_v52 = vld [vmem:[#allocation83_spill] sm:$0xff] }
 0x963   :  { %v9375_v19 = vmax.f32 %v13116_v37, 0.0  ;;  %v13135_v37 = vadd.f32 %v18550_v31, %v19277_v52 }
 0x965   :  { %v12944_v61 = vpack.c.bf16 %v9375_v19, %v9374_v15 }
 0x966   :  { %v9179_v40 = vpop.f32.mrb[156].mxu1 }
 0x967   :  { %v13118_v22 = vadd.f32 %v13117_v13, %v9179_v40  ;;  %v12851_v3 = vpop.f32.mrb[157].mxu1  ;;  %12945 = vmatpush1.bf16.msra.mxu0 %v12944_v61 }
 0x968   :  { %v9182_v6 = vpop.f32.mrb[158].mxu1  ;;  %12946 = vmatprep.subr.bf16.mxu0 %v14738_v5 }
 0x969   :  { %v13120_v25 = vadd.f32 %v13119_v44, %v9182_v6  ;;  %v12852_v11 = vpop.f32.mrb[159].mxu1  ;;  %v9376_v38 = vmax.f32 %v13118_v22, 0.0  ;;  %v19278_v44 = vld [vmem:[#allocation15_spill] sm:$0xff] }
 0x96a   :  { %v13137_v22 = vadd.f32 %v18550_v31, %v19278_v44 }
 0x96b   :  { %v9377_v1 = vmax.f32 %v13120_v25, 0.0 }
 0x96d   :  { %v12947_v59 = vpack.c.bf16 %v9377_v1, %v9376_v38 }
 0x96e   :  { %v9187_v28 = vpop.f32.mrb[160].mxu1 }
 0x96f   :  { %v13122_v50 = vadd.f32 %v13121_v45, %v9187_v28  ;;  %v12855_v9 = vpop.f32.mrb[161].mxu1  ;;  %12948 = vmatpush1.bf16.msra.mxu0 %v12947_v59 }
 0x970   :  { %v9190_v43 = vpop.f32.mrb[162].mxu1  ;;  %12949 = vmatprep.subr.bf16.mxu0 %v14738_v5 }
 0x971   :  { %v13124_v34 = vadd.f32 %v13123_v41, %v9190_v43  ;;  %v12856_v16 = vpop.f32.mrb[163].mxu1  ;;  %v9378_v35 = vmax.f32 %v13122_v50, 0.0 }
 0x973   :  { %v9379_v39 = vmax.f32 %v13124_v34, 0.0 }
 0x975   :  { %v12950_v63 = vpack.c.bf16 %v9379_v39, %v9378_v35 }
 0x976   :  { %v9195_v47 = vpop.f32.mrb[0].mxu1 }
 0x977   :  { %v13126_v33 = vadd.f32 %v13125_v0, %v9195_v47  ;;  %v12859_v10 = vpop.f32.mrb[1].mxu1  ;;  %12951 = vmatpush1.bf16.msra.mxu0 %v12950_v63 }
 0x978   :  { %v9198_v58 = vpop.f32.mrb[2].mxu1  ;;  %12952 = vmatprep.subr.bf16.mxu0 %v14738_v5 }
 0x979   :  { %v13128_v51 = vadd.f32 %v13127_v23, %v9198_v58  ;;  %v12860_v20 = vpop.f32.mrb[3].mxu1  ;;  %v9380_v46 = vmax.f32 %v13126_v33, 0.0 }
 0x97b   :  { %v9381_v26 = vmax.f32 %v13128_v51, 0.0 }
 0x97d   :  { %v12953_v55 = vpack.c.bf16 %v9381_v26, %v9380_v46 }
 0x97e   :  { %v9203_v4 = vpop.f32.mrb[4].mxu1 }
 0x97f   :  { %v13130_v18 = vadd.f32 %v13129_v53, %v9203_v4  ;;  %v12863_v48 = vpop.f32.mrb[5].mxu1  ;;  %12954 = vmatpush1.bf16.msra.mxu0 %v12953_v55 }
 0x980   :  { %v9206_v29 = vpop.f32.mrb[6].mxu1  ;;  %12955 = vmatprep.subr.bf16.mxu0 %v14738_v5 }
 0x981   :  { %v13132_v30 = vadd.f32 %v13131_v32, %v9206_v29  ;;  %v12864_v12 = vpop.f32.mrb[7].mxu1  ;;  %v9382_v7 = vmax.f32 %v13130_v18, 0.0 }
 0x983   :  { %v9383_v8 = vmax.f32 %v13132_v30, 0.0 }
 0x985   :  { %v12956_v27 = vpack.c.bf16 %v9383_v8, %v9382_v7 }
 0x986   :  { %v9211_v54 = vpop.f32.mrb[8].mxu1 }
 0x987   :  { %v13134_v17 = vadd.f32 %v13133_v24, %v9211_v54  ;;  %v12867_v15 = vpop.f32.mrb[9].mxu1  ;;  %12957 = vmatpush1.bf16.msra.mxu0 %v12956_v27 }
 0x988   :  { %v9214_v19 = vpop.f32.mrb[10].mxu1  ;;  %12958 = vmatprep.subr.bf16.mxu0 %v14738_v5 }
 0x989   :  { %v13136_v49 = vadd.f32 %v13135_v37, %v9214_v19  ;;  %v12868_v13 = vpop.f32.mrb[11].mxu1  ;;  %v9384_v61 = vmax.f32 %v13134_v17, 0.0 }
 0x98b   :  { %v9385_v40 = vmax.f32 %v13136_v49, 0.0 }
 0x98d   :  { %v12959_v3 = vpack.c.bf16 %v9385_v40, %v9384_v61 }
 0x98e   :  { %v9219_v6 = vpop.f32.mrb[12].mxu1 }
 0x98f   :  { %v13138_v25 = vadd.f32 %v13137_v22, %v9219_v6  ;;  %v12871_v11 = vpop.f32.mrb[13].mxu1  ;;  %12960 = vmatpush1.bf16.msra.mxu0 %v12959_v3 }
 0x990   :  { %v9222_v38 = vpop.f32.mrb[14].mxu1  ;;  %9596 = vmatprep.subr.mxu0 %v18769_v2 }
 0x991   :  { %v9386_v1 = vmax.f32 %v13138_v25, 0.0  ;;  %v12872_v14 = vpop.f32.mrb[15].mxu1 }
 0x993   :  { %9597 = vmatpush1.msra.mxu0 %v9386_v1 }
 0x994   :  { %9629 = vmatmul.mubr.f32.vlgmr.msra.gmra.mrb[74].mxu0 %v18533_v60 }
 0x9cd   :  { %v11035_v5 = vpop.f32.mrb[164].mxu1 }
 0x9ce   :  { %v11036_v45 = vpop.f32.mrb[165].mxu1 }
 0x9cf   :  { %v11037_v59 = vadd.f32 %v11036_v45, %v11035_v5 }
 0xa26   :  { %v11070_v28 = vpop.f32.mrb[72].mxu0 }
 0xa27   :  { %v11071_v57 = vpop.f32.mrb[73].mxu0 }
 0xa28   :  { %v11072_v41 = vadd.f32 %v11071_v57, %v11070_v28 }
 0xa2a   :  { %v9561_v31 = vadd.f32 %v11072_v41, %v11037_v59 }
 0xa67   :  { %v9630_v50 = vpop.f32.mrb[74].mxu0 }
 0xa68   :  { %v9631_v9 = vadd.f32 %v9630_v50, %v9561_v31  ;;  %v9632_v43 = vpop.f32.mrb[75].mxu0 }
 0xa6a   :  { %v9634_v34 = vmul.f32 0.00390625, %v9631_v9 }
 0xa6c   :  { %9635 = vst [vmem:[#allocation3] sm:$0x3] %v9634_v34 }
 0xa6d   :  { %14721 = shalt.err (!%p14718_p4)
}
 0xa6e   :  { %s14722_s20 = scalar_lea.hbm %s18603_s5, 32 }
 0xa6f   :  { %p14723_p5 = scmp.ne.s32.totalorder %s18603_s5, %s14722_s20  ;;  %p14726_p6 = scmp.lt.u32.totalorder %s14722_s20, %s18603_s5 }
 0xa71   :  { %p14728_p7 = pnand %p14726_p6, %p14723_p5 }
 0xa73   :  { %14731 = shalt.err (!%p14728_p7)
}
 0xa74   :  { %9645 = dma.vmem_to_hbm [thread:$0]  %s9643_s16, 32, %s18603_s5, [#allocation4]  }
 0xa75   :  { %14732 = dma.done.wait [#allocation4], 32  }
 0xa76   :  { %14733 = vsyncadd [#allocation4], 4294967264 }
 0xa77   :  { %9649 = vsyncpa [#allocation4], 1 }

</bundles_post_ra>
